<compile_context>
chip_gen: v7x
topology: tpu7x:2x2x1
jax: 0.10.0
libtpu: 0.0.40
codegen_flags: <defaults>
</compile_context>

<pallas_src>
import functools

import jax
import jax.numpy as jnp
from jax.experimental import pallas as pl
from jax.experimental.pallas import tpu as pltpu


LANE = 128  # TPU lane width: Cout / K padding target (lane-dense GEMM + stores).


# ----------------------------------------------------------------------------
# Pallas kernel: one Conv2d(k=4, s=2, p=1) layer (+ optional LeakyReLU).
# The im2col patch matrix is built in VMEM from the space-to-depth input, then
# a single (M, 4*K_pad) x (4*K_pad, 128) bf16 GEMM produces the layer output.
# ----------------------------------------------------------------------------
def _conv_layer_kernel(xs_ref, w_ref, b_ref, o_ref, tap_ref, *,
                       N, Ho, Wo, K_pad, apply_act, negative_slope):
    """
    xs_ref : (N, Ho+1, Wo+1, K_pad) bf16  space-to-depth input (zero-padded channels)
    w_ref  : (4*K_pad, 128)        bf16  GEMM weights (zero rows/cols in padding)
    b_ref  : (1, 128)              f32   bias row
    o_ref  : (M, 128)                    output rows, (n, ho, wo) flattened
    tap_ref: (M, 4*K_pad)          bf16  VMEM scratch: in-kernel im2col matrix
    """
    # --- in-kernel im2col: 4 taps of the 2x2/stride-1 conv on the s2d tensor ---
    # Every read/write below is a contiguous static slice (no strided accesses,
    # no HBM traffic): tap (di, dj) needs xs[:, di:di+Ho, dj:dj+Wo, :].
    for t, (di, dj) in enumerate(((0, 0), (0, 1), (1, 0), (1, 1))):
        col0 = t * K_pad
        for n in range(N):
            for a in range(Ho):
                row0 = (n * Ho + a) * Wo
                tap_ref[row0:row0 + Wo, col0:col0 + K_pad] = (
                    xs_ref[n, a + di, dj:dj + Wo, :])

    # --- single lane-dense GEMM (bf16 operands, f32 accumulation) + epilogue ---
    acc = jnp.dot(tap_ref[...], w_ref[...], preferred_element_type=jnp.float32)
    acc = acc + b_ref[...]
    if apply_act:
        acc = jnp.where(acc >= 0.0, acc, negative_slope * acc)
    o_ref[...] = acc.astype(o_ref.dtype)


# ----------------------------------------------------------------------------
# One conv layer: cheap XLA layout glue (pad + space-to-depth + channel pad),
# then one pallas_call holding the whole layer resident in VMEM.
# ----------------------------------------------------------------------------
def conv4x4_s2(x_nhwc, w_oihw, b, *, apply_act, out_dtype):
    """x_nhwc: (N,H,W,Cin); w_oihw: (Cout,Cin,4,4) PyTorch layout; b: (Cout,)."""
    N, H, W, Cin = x_nhwc.shape
    Cout = w_oihw.shape[0]
    assert H % 2 == 0 and W % 2 == 0, "stride-2 conv path assumes even H, W"
    Ho, Wo = H // 2, W // 2                 # (H + 2*1 - 4)//2 + 1
    Hs, Ws = Ho + 1, Wo + 1                 # space-to-depth spatial extents
    K = 4 * Cin                             # channels after 2x2 space-to-depth
    K_pad = ((K + LANE - 1) // LANE) * LANE
    M = N * Ho * Wo

    # ---- layout glue (≈1x activation volume; NOT a 16x im2col in HBM) --------
    xp = jnp.pad(x_nhwc, ((0, 0), (1, 1), (1, 1), (0, 0)))           # padding=1
    xs = xp.reshape(N, Hs, 2, Ws, 2, Cin)
    xs = xs.transpose(0, 1, 3, 2, 4, 5).reshape(N, Hs, Ws, K)        # space-to-depth
    xs = jnp.pad(xs, ((0, 0), (0, 0), (0, 0), (0, K_pad - K)))       # K -> 128*k
    xs = xs.astype(jnp.bfloat16)

    # ---- weights -> (4*K_pad, 128) GEMM matrix matching the tap/channel order --
    wt = jnp.transpose(w_oihw, (2, 3, 1, 0))                 # (kh, kw, Cin, Cout)
    wt = wt.reshape(2, 2, 2, 2, Cin, Cout)                   # (di, r, dj, s, c, co)
    wt = wt.transpose(0, 2, 1, 3, 4, 5).reshape(4, K, Cout)  # (t=2di+dj, (2r+s)*Cin+c, co)
    w_gemm = jnp.zeros((4, K_pad, LANE), jnp.float32).at[:, :K, :Cout].set(wt)
    w_gemm = w_gemm.reshape(4 * K_pad, LANE).astype(jnp.bfloat16)
    b_row = jnp.zeros((1, LANE), jnp.float32).at[0, :Cout].set(b)

    kernel = functools.partial(
        _conv_layer_kernel, N=N, Ho=Ho, Wo=Wo, K_pad=K_pad,
        apply_act=apply_act, negative_slope=0.2)

    out = pl.pallas_call(
        kernel,
        out_shape=jax.ShapeDtypeStruct((M, LANE), out_dtype),
        grid=(1,),
        in_specs=[
            pl.BlockSpec((N, Hs, Ws, K_pad), lambda i: (0, 0, 0, 0)),  # s2d input
            pl.BlockSpec((4 * K_pad, LANE), lambda i: (0, 0)),         # weights
            pl.BlockSpec((1, LANE), lambda i: (0, 0)),                 # bias
        ],
        out_specs=pl.BlockSpec((M, LANE), lambda i: (0, 0)),
        scratch_shapes=[pltpu.VMEM((M, 4 * K_pad), jnp.bfloat16)],     # im2col buf
        compiler_params=pltpu.CompilerParams(
            dimension_semantics=("arbitrary",)),
    )(xs, w_gemm, b_row)

    return out[:, :Cout].reshape(N, Ho, Wo, Cout)


# ----------------------------------------------------------------------------
# Full Discriminator forward (NCHW in -> NCHW out, matching PyTorch).
# ----------------------------------------------------------------------------
def discriminator_forward(params, x_nchw):
    x = jnp.transpose(x_nchw, (0, 2, 3, 1))        # NCHW -> NHWC (C on lanes)
    names = ("conv1", "conv2", "conv3", "conv4", "classifier")
    for i, name in enumerate(names):
        w, b = params[name]
        last = i == len(names) - 1
        x = conv4x4_s2(x, w, b,
                       apply_act=not last,                          # LeakyReLU(0.2)
                       out_dtype=jnp.float32 if last else jnp.bfloat16)
    return jnp.transpose(x, (0, 3, 1, 2))          # NHWC -> NCHW


def init_params(key, num_classes, ndf):
    """Deterministic synthetic parameters with the same shapes as the PyTorch module."""
    shapes = [
        ("conv1", num_classes, ndf),
        ("conv2", ndf, ndf * 2),
        ("conv3", ndf * 2, ndf * 4),
        ("conv4", ndf * 4, ndf * 8),
        ("classifier", ndf * 8, 1),
    ]
    params = {}
    for name, cin, cout in shapes:
        key, kw, kb = jax.random.split(key, 3)
        w = 0.1 * jax.random.normal(kw, (cout, cin, 4, 4), jnp.float32)
        bb = 0.1 * jax.random.normal(kb, (cout,), jnp.float32)
        params[name] = (w, bb)
    return params


# ----------------------------------------------------------------------------
# Pure-JAX f32 reference (lax conv) used only for a silent correctness check.
# ----------------------------------------------------------------------------
def _reference_forward(params, x_nchw):
    x = jnp.transpose(x_nchw, (0, 2, 3, 1))
    names = ["conv1", "conv2", "conv3", "conv4", "classifier"]
    for i, name in enumerate(names):
        w, b = params[name]
        w_hwio = jnp.transpose(w, (2, 3, 1, 0))
        x = jax.lax.conv_general_dilated(
            x, w_hwio, window_strides=(2, 2), padding=((1, 1), (1, 1)),
            dimension_numbers=("NHWC", "HWIO", "NHWC"),
        ) + b
        if i < 4:
            x = jnp.where(x >= 0.0, x, 0.2 * x)
    return jnp.transpose(x, (0, 3, 1, 2))


if __name__ == "__main__":
    key = jax.random.PRNGKey(0)
    num_classes, ndf = 4, 8
    batch, spatial = 2, 32  # 32 -> 16 -> 8 -> 4 -> 2 -> 1 through the 5 stride-2 convs

    kx, kp = jax.random.split(key)
    x = jax.random.normal(kx, (batch, num_classes, spatial, spatial), jnp.float32)
    params = init_params(kp, num_classes, ndf)

    fwd = jax.jit(discriminator_forward)
    out = jax.block_until_ready(fwd(params, x))
    assert out.shape == (batch, 1, 1, 1), out.shape

    ref = jax.block_until_ready(_reference_forward(params, x))
    # bf16 MXU operands -> loosened tolerance (structural errors would be O(1)).
    assert jnp.allclose(out, ref, atol=1e-1, rtol=5e-2), (
        float(jnp.max(jnp.abs(out - ref))))

    print("KERNEL_OK")
</pallas_src>

<mosaic_0001>
module attributes {stable_mosaic.version = 11 : i64} {
  func.func @_conv_layer_kernel(%arg0: i32, %arg1: memref<2x17x17x128xbf16, #tpu.memory_space<vmem>>, %arg2: memref<512x128xbf16, #tpu.memory_space<vmem>>, %arg3: memref<1x128xf32, #tpu.memory_space<vmem>>, %arg4: memref<512x128xbf16, #tpu.memory_space<vmem>>, %arg5: memref<512x512xbf16, #tpu.memory_space<vmem>>) attributes {dimension_semantics = [#tpu.dimension_semantics<arbitrary>], iteration_bounds = array<i64: 1>, scalar_prefetch = 0 : i64, scratch_operands = 1 : i64, tpu.core_type = #tpu.core_type<tc>, window_params = [{pipeline_mode = #tpu.pipeline_mode<synchronous>, transform_indices = @transform_0, window_bounds = array<i64: 2, 17, 17, 128>}, {pipeline_mode = #tpu.pipeline_mode<synchronous>, transform_indices = @transform_1, window_bounds = array<i64: 512, 128>}, {pipeline_mode = #tpu.pipeline_mode<synchronous>, transform_indices = @transform_2, window_bounds = array<i64: 1, 128>}, {pipeline_mode = #tpu.pipeline_mode<synchronous>, transform_indices = @transform_3, window_bounds = array<i64: 512, 128>}]} {
    %c0 = arith.constant 0 : index
    %c0_0 = arith.constant 0 : index
    %c0_1 = arith.constant 0 : index
    %c0_2 = arith.constant 0 : index
    %0 = vector.load %arg1[%c0, %c0_0, %c0_1, %c0_2] : memref<2x17x17x128xbf16, #tpu.memory_space<vmem>>, vector<1x1x16x128xbf16>
    %1 = vector.shape_cast %0 : vector<1x1x16x128xbf16> to vector<16x128xbf16>
    %c0_3 = arith.constant 0 : index
    %c0_4 = arith.constant 0 : index
    %2 = vector.load %arg5[%c0_3, %c0_4] : memref<512x512xbf16, #tpu.memory_space<vmem>>, vector<16x128xbf16>
    tpu.vector_store %arg5[%c0_3, %c0_4], %1 {strides = array<i32>} : memref<512x512xbf16, #tpu.memory_space<vmem>>, vector<16x128xbf16>,
    %c0_5 = arith.constant 0 : index
    %c1 = arith.constant 1 : index
    %c0_6 = arith.constant 0 : index
    %c0_7 = arith.constant 0 : index
    %3 = vector.load %arg1[%c0_5, %c1, %c0_6, %c0_7] : memref<2x17x17x128xbf16, #tpu.memory_space<vmem>>, vector<1x1x16x128xbf16>
    %4 = vector.shape_cast %3 : vector<1x1x16x128xbf16> to vector<16x128xbf16>
    %c16 = arith.constant 16 : index
    %c0_8 = arith.constant 0 : index
    %5 = vector.load %arg5[%c16, %c0_8] : memref<512x512xbf16, #tpu.memory_space<vmem>>, vector<16x128xbf16>
    tpu.vector_store %arg5[%c16, %c0_8], %4 {strides = array<i32>} : memref<512x512xbf16, #tpu.memory_space<vmem>>, vector<16x128xbf16>,
    %c0_9 = arith.constant 0 : index
    %c2 = arith.constant 2 : index
    %c0_10 = arith.constant 0 : index
    %c0_11 = arith.constant 0 : index
    %6 = vector.load %arg1[%c0_9, %c2, %c0_10, %c0_11] : memref<2x17x17x128xbf16, #tpu.memory_space<vmem>>, vector<1x1x16x128xbf16>
    %7 = vector.shape_cast %6 : vector<1x1x16x128xbf16> to vector<16x128xbf16>
    %c32 = arith.constant 32 : index
    %c0_12 = arith.constant 0 : index
    %8 = vector.load %arg5[%c32, %c0_12] : memref<512x512xbf16, #tpu.memory_space<vmem>>, vector<16x128xbf16>
    tpu.vector_store %arg5[%c32, %c0_12], %7 {strides = array<i32>} : memref<512x512xbf16, #tpu.memory_space<vmem>>, vector<16x128xbf16>,
    %c0_13 = arith.constant 0 : index
    %c3 = arith.constant 3 : index
    %c0_14 = arith.constant 0 : index
    %c0_15 = arith.constant 0 : index
    %9 = vector.load %arg1[%c0_13, %c3, %c0_14, %c0_15] : memref<2x17x17x128xbf16, #tpu.memory_space<vmem>>, vector<1x1x16x128xbf16>
    %10 = vector.shape_cast %9 : vector<1x1x16x128xbf16> to vector<16x128xbf16>
    %c48 = arith.constant 48 : index
    %c0_16 = arith.constant 0 : index
    %11 = vector.load %arg5[%c48, %c0_16] : memref<512x512xbf16, #tpu.memory_space<vmem>>, vector<16x128xbf16>
    tpu.vector_store %arg5[%c48, %c0_16], %10 {strides = array<i32>} : memref<512x512xbf16, #tpu.memory_space<vmem>>, vector<16x128xbf16>,
    %c0_17 = arith.constant 0 : index
    %c4 = arith.constant 4 : index
    %c0_18 = arith.constant 0 : index
    %c0_19 = arith.constant 0 : index
    %12 = vector.load %arg1[%c0_17, %c4, %c0_18, %c0_19] : memref<2x17x17x128xbf16, #tpu.memory_space<vmem>>, vector<1x1x16x128xbf16>
    %13 = vector.shape_cast %12 : vector<1x1x16x128xbf16> to vector<16x128xbf16>
    %c64 = arith.constant 64 : index
    %c0_20 = arith.constant 0 : index
    %14 = vector.load %arg5[%c64, %c0_20] : memref<512x512xbf16, #tpu.memory_space<vmem>>, vector<16x128xbf16>
    tpu.vector_store %arg5[%c64, %c0_20], %13 {strides = array<i32>} : memref<512x512xbf16, #tpu.memory_space<vmem>>, vector<16x128xbf16>,
    %c0_21 = arith.constant 0 : index
    %c5 = arith.constant 5 : index
    %c0_22 = arith.constant 0 : index
    %c0_23 = arith.constant 0 : index
    %15 = vector.load %arg1[%c0_21, %c5, %c0_22, %c0_23] : memref<2x17x17x128xbf16, #tpu.memory_space<vmem>>, vector<1x1x16x128xbf16>
    %16 = vector.shape_cast %15 : vector<1x1x16x128xbf16> to vector<16x128xbf16>
    %c80 = arith.constant 80 : index
    %c0_24 = arith.constant 0 : index
    %17 = vector.load %arg5[%c80, %c0_24] : memref<512x512xbf16, #tpu.memory_space<vmem>>, vector<16x128xbf16>
    tpu.vector_store %arg5[%c80, %c0_24], %16 {strides = array<i32>} : memref<512x512xbf16, #tpu.memory_space<vmem>>, vector<16x128xbf16>,
    %c0_25 = arith.constant 0 : index
    %c6 = arith.constant 6 : index
    %c0_26 = arith.constant 0 : index
    %c0_27 = arith.constant 0 : index
    %18 = vector.load %arg1[%c0_25, %c6, %c0_26, %c0_27] : memref<2x17x17x128xbf16, #tpu.memory_space<vmem>>, vector<1x1x16x128xbf16>
    %19 = vector.shape_cast %18 : vector<1x1x16x128xbf16> to vector<16x128xbf16>
    %c96 = arith.constant 96 : index
    %c0_28 = arith.constant 0 : index
    %20 = vector.load %arg5[%c96, %c0_28] : memref<512x512xbf16, #tpu.memory_space<vmem>>, vector<16x128xbf16>
    tpu.vector_store %arg5[%c96, %c0_28], %19 {strides = array<i32>} : memref<512x512xbf16, #tpu.memory_space<vmem>>, vector<16x128xbf16>,
    %c0_29 = arith.constant 0 : index
    %c7 = arith.constant 7 : index
    %c0_30 = arith.constant 0 : index
    %c0_31 = arith.constant 0 : index
    %21 = vector.load %arg1[%c0_29, %c7, %c0_30, %c0_31] : memref<2x17x17x128xbf16, #tpu.memory_space<vmem>>, vector<1x1x16x128xbf16>
    %22 = vector.shape_cast %21 : vector<1x1x16x128xbf16> to vector<16x128xbf16>
    %c112 = arith.constant 112 : index
    %c0_32 = arith.constant 0 : index
    %23 = vector.load %arg5[%c112, %c0_32] : memref<512x512xbf16, #tpu.memory_space<vmem>>, vector<16x128xbf16>
    tpu.vector_store %arg5[%c112, %c0_32], %22 {strides = array<i32>} : memref<512x512xbf16, #tpu.memory_space<vmem>>, vector<16x128xbf16>,
    %c0_33 = arith.constant 0 : index
    %c8 = arith.constant 8 : index
    %c0_34 = arith.constant 0 : index
    %c0_35 = arith.constant 0 : index
    %24 = vector.load %arg1[%c0_33, %c8, %c0_34, %c0_35] : memref<2x17x17x128xbf16, #tpu.memory_space<vmem>>, vector<1x1x16x128xbf16>
    %25 = vector.shape_cast %24 : vector<1x1x16x128xbf16> to vector<16x128xbf16>
    %c128 = arith.constant 128 : index
    %c0_36 = arith.constant 0 : index
    %26 = vector.load %arg5[%c128, %c0_36] : memref<512x512xbf16, #tpu.memory_space<vmem>>, vector<16x128xbf16>
    tpu.vector_store %arg5[%c128, %c0_36], %25 {strides = array<i32>} : memref<512x512xbf16, #tpu.memory_space<vmem>>, vector<16x128xbf16>,
    %c0_37 = arith.constant 0 : index
    %c9 = arith.constant 9 : index
    %c0_38 = arith.constant 0 : index
    %c0_39 = arith.constant 0 : index
    %27 = vector.load %arg1[%c0_37, %c9, %c0_38, %c0_39] : memref<2x17x17x128xbf16, #tpu.memory_space<vmem>>, vector<1x1x16x128xbf16>
    %28 = vector.shape_cast %27 : vector<1x1x16x128xbf16> to vector<16x128xbf16>
    %c144 = arith.constant 144 : index
    %c0_40 = arith.constant 0 : index
    %29 = vector.load %arg5[%c144, %c0_40] : memref<512x512xbf16, #tpu.memory_space<vmem>>, vector<16x128xbf16>
    tpu.vector_store %arg5[%c144, %c0_40], %28 {strides = array<i32>} : memref<512x512xbf16, #tpu.memory_space<vmem>>, vector<16x128xbf16>,
    %c0_41 = arith.constant 0 : index
    %c10 = arith.constant 10 : index
    %c0_42 = arith.constant 0 : index
    %c0_43 = arith.constant 0 : index
    %30 = vector.load %arg1[%c0_41, %c10, %c0_42, %c0_43] : memref<2x17x17x128xbf16, #tpu.memory_space<vmem>>, vector<1x1x16x128xbf16>
    %31 = vector.shape_cast %30 : vector<1x1x16x128xbf16> to vector<16x128xbf16>
    %c160 = arith.constant 160 : index
    %c0_44 = arith.constant 0 : index
    %32 = vector.load %arg5[%c160, %c0_44] : memref<512x512xbf16, #tpu.memory_space<vmem>>, vector<16x128xbf16>
    tpu.vector_store %arg5[%c160, %c0_44], %31 {strides = array<i32>} : memref<512x512xbf16, #tpu.memory_space<vmem>>, vector<16x128xbf16>,
    %c0_45 = arith.constant 0 : index
    %c11 = arith.constant 11 : index
    %c0_46 = arith.constant 0 : index
    %c0_47 = arith.constant 0 : index
    %33 = vector.load %arg1[%c0_45, %c11, %c0_46, %c0_47] : memref<2x17x17x128xbf16, #tpu.memory_space<vmem>>, vector<1x1x16x128xbf16>
    %34 = vector.shape_cast %33 : vector<1x1x16x128xbf16> to vector<16x128xbf16>
    %c176 = arith.constant 176 : index
    %c0_48 = arith.constant 0 : index
    %35 = vector.load %arg5[%c176, %c0_48] : memref<512x512xbf16, #tpu.memory_space<vmem>>, vector<16x128xbf16>
    tpu.vector_store %arg5[%c176, %c0_48], %34 {strides = array<i32>} : memref<512x512xbf16, #tpu.memory_space<vmem>>, vector<16x128xbf16>,
    %c0_49 = arith.constant 0 : index
    %c12 = arith.constant 12 : index
    %c0_50 = arith.constant 0 : index
    %c0_51 = arith.constant 0 : index
    %36 = vector.load %arg1[%c0_49, %c12, %c0_50, %c0_51] : memref<2x17x17x128xbf16, #tpu.memory_space<vmem>>, vector<1x1x16x128xbf16>
    %37 = vector.shape_cast %36 : vector<1x1x16x128xbf16> to vector<16x128xbf16>
    %c192 = arith.constant 192 : index
    %c0_52 = arith.constant 0 : index
    %38 = vector.load %arg5[%c192, %c0_52] : memref<512x512xbf16, #tpu.memory_space<vmem>>, vector<16x128xbf16>
    tpu.vector_store %arg5[%c192, %c0_52], %37 {strides = array<i32>} : memref<512x512xbf16, #tpu.memory_space<vmem>>, vector<16x128xbf16>,
    %c0_53 = arith.constant 0 : index
    %c13 = arith.constant 13 : index
    %c0_54 = arith.constant 0 : index
    %c0_55 = arith.constant 0 : index
    %39 = vector.load %arg1[%c0_53, %c13, %c0_54, %c0_55] : memref<2x17x17x128xbf16, #tpu.memory_space<vmem>>, vector<1x1x16x128xbf16>
    %40 = vector.shape_cast %39 : vector<1x1x16x128xbf16> to vector<16x128xbf16>
    %c208 = arith.constant 208 : index
    %c0_56 = arith.constant 0 : index
    %41 = vector.load %arg5[%c208, %c0_56] : memref<512x512xbf16, #tpu.memory_space<vmem>>, vector<16x128xbf16>
    tpu.vector_store %arg5[%c208, %c0_56], %40 {strides = array<i32>} : memref<512x512xbf16, #tpu.memory_space<vmem>>, vector<16x128xbf16>,
    %c0_57 = arith.constant 0 : index
    %c14 = arith.constant 14 : index
    %c0_58 = arith.constant 0 : index
    %c0_59 = arith.constant 0 : index
    %42 = vector.load %arg1[%c0_57, %c14, %c0_58, %c0_59] : memref<2x17x17x128xbf16, #tpu.memory_space<vmem>>, vector<1x1x16x128xbf16>
    %43 = vector.shape_cast %42 : vector<1x1x16x128xbf16> to vector<16x128xbf16>
    %c224 = arith.constant 224 : index
    %c0_60 = arith.constant 0 : index
    %44 = vector.load %arg5[%c224, %c0_60] : memref<512x512xbf16, #tpu.memory_space<vmem>>, vector<16x128xbf16>
    tpu.vector_store %arg5[%c224, %c0_60], %43 {strides = array<i32>} : memref<512x512xbf16, #tpu.memory_space<vmem>>, vector<16x128xbf16>,
    %c0_61 = arith.constant 0 : index
    %c15 = arith.constant 15 : index
    %c0_62 = arith.constant 0 : index
    %c0_63 = arith.constant 0 : index
    %45 = vector.load %arg1[%c0_61, %c15, %c0_62, %c0_63] : memref<2x17x17x128xbf16, #tpu.memory_space<vmem>>, vector<1x1x16x128xbf16>
    %46 = vector.shape_cast %45 : vector<1x1x16x128xbf16> to vector<16x128xbf16>
    %c240 = arith.constant 240 : index
    %c0_64 = arith.constant 0 : index
    %47 = vector.load %arg5[%c240, %c0_64] : memref<512x512xbf16, #tpu.memory_space<vmem>>, vector<16x128xbf16>
    tpu.vector_store %arg5[%c240, %c0_64], %46 {strides = array<i32>} : memref<512x512xbf16, #tpu.memory_space<vmem>>, vector<16x128xbf16>,
    %c1_65 = arith.constant 1 : index
    %c0_66 = arith.constant 0 : index
    %c0_67 = arith.constant 0 : index
    %c0_68 = arith.constant 0 : index
    %48 = vector.load %arg1[%c1_65, %c0_66, %c0_67, %c0_68] : memref<2x17x17x128xbf16, #tpu.memory_space<vmem>>, vector<1x1x16x128xbf16>
    %49 = vector.shape_cast %48 : vector<1x1x16x128xbf16> to vector<16x128xbf16>
    %c256 = arith.constant 256 : index
    %c0_69 = arith.constant 0 : index
    %50 = vector.load %arg5[%c256, %c0_69] : memref<512x512xbf16, #tpu.memory_space<vmem>>, vector<16x128xbf16>
    tpu.vector_store %arg5[%c256, %c0_69], %49 {strides = array<i32>} : memref<512x512xbf16, #tpu.memory_space<vmem>>, vector<16x128xbf16>,
    %c1_70 = arith.constant 1 : index
    %c1_71 = arith.constant 1 : index
    %c0_72 = arith.constant 0 : index
    %c0_73 = arith.constant 0 : index
    %51 = vector.load %arg1[%c1_70, %c1_71, %c0_72, %c0_73] : memref<2x17x17x128xbf16, #tpu.memory_space<vmem>>, vector<1x1x16x128xbf16>
    %52 = vector.shape_cast %51 : vector<1x1x16x128xbf16> to vector<16x128xbf16>
    %c272 = arith.constant 272 : index
    %c0_74 = arith.constant 0 : index
    %53 = vector.load %arg5[%c272, %c0_74] : memref<512x512xbf16, #tpu.memory_space<vmem>>, vector<16x128xbf16>
    tpu.vector_store %arg5[%c272, %c0_74], %52 {strides = array<i32>} : memref<512x512xbf16, #tpu.memory_space<vmem>>, vector<16x128xbf16>,
    %c1_75 = arith.constant 1 : index
    %c2_76 = arith.constant 2 : index
    %c0_77 = arith.constant 0 : index
    %c0_78 = arith.constant 0 : index
    %54 = vector.load %arg1[%c1_75, %c2_76, %c0_77, %c0_78] : memref<2x17x17x128xbf16, #tpu.memory_space<vmem>>, vector<1x1x16x128xbf16>
    %55 = vector.shape_cast %54 : vector<1x1x16x128xbf16> to vector<16x128xbf16>
    %c288 = arith.constant 288 : index
    %c0_79 = arith.constant 0 : index
    %56 = vector.load %arg5[%c288, %c0_79] : memref<512x512xbf16, #tpu.memory_space<vmem>>, vector<16x128xbf16>
    tpu.vector_store %arg5[%c288, %c0_79], %55 {strides = array<i32>} : memref<512x512xbf16, #tpu.memory_space<vmem>>, vector<16x128xbf16>,
    %c1_80 = arith.constant 1 : index
    %c3_81 = arith.constant 3 : index
    %c0_82 = arith.constant 0 : index
    %c0_83 = arith.constant 0 : index
    %57 = vector.load %arg1[%c1_80, %c3_81, %c0_82, %c0_83] : memref<2x17x17x128xbf16, #tpu.memory_space<vmem>>, vector<1x1x16x128xbf16>
    %58 = vector.shape_cast %57 : vector<1x1x16x128xbf16> to vector<16x128xbf16>
    %c304 = arith.constant 304 : index
    %c0_84 = arith.constant 0 : index
    %59 = vector.load %arg5[%c304, %c0_84] : memref<512x512xbf16, #tpu.memory_space<vmem>>, vector<16x128xbf16>
    tpu.vector_store %arg5[%c304, %c0_84], %58 {strides = array<i32>} : memref<512x512xbf16, #tpu.memory_space<vmem>>, vector<16x128xbf16>,
    %c1_85 = arith.constant 1 : index
    %c4_86 = arith.constant 4 : index
    %c0_87 = arith.constant 0 : index
    %c0_88 = arith.constant 0 : index
    %60 = vector.load %arg1[%c1_85, %c4_86, %c0_87, %c0_88] : memref<2x17x17x128xbf16, #tpu.memory_space<vmem>>, vector<1x1x16x128xbf16>
    %61 = vector.shape_cast %60 : vector<1x1x16x128xbf16> to vector<16x128xbf16>
    %c320 = arith.constant 320 : index
    %c0_89 = arith.constant 0 : index
    %62 = vector.load %arg5[%c320, %c0_89] : memref<512x512xbf16, #tpu.memory_space<vmem>>, vector<16x128xbf16>
    tpu.vector_store %arg5[%c320, %c0_89], %61 {strides = array<i32>} : memref<512x512xbf16, #tpu.memory_space<vmem>>, vector<16x128xbf16>,
    %c1_90 = arith.constant 1 : index
    %c5_91 = arith.constant 5 : index
    %c0_92 = arith.constant 0 : index
    %c0_93 = arith.constant 0 : index
    %63 = vector.load %arg1[%c1_90, %c5_91, %c0_92, %c0_93] : memref<2x17x17x128xbf16, #tpu.memory_space<vmem>>, vector<1x1x16x128xbf16>
    %64 = vector.shape_cast %63 : vector<1x1x16x128xbf16> to vector<16x128xbf16>
    %c336 = arith.constant 336 : index
    %c0_94 = arith.constant 0 : index
    %65 = vector.load %arg5[%c336, %c0_94] : memref<512x512xbf16, #tpu.memory_space<vmem>>, vector<16x128xbf16>
    tpu.vector_store %arg5[%c336, %c0_94], %64 {strides = array<i32>} : memref<512x512xbf16, #tpu.memory_space<vmem>>, vector<16x128xbf16>,
    %c1_95 = arith.constant 1 : index
    %c6_96 = arith.constant 6 : index
    %c0_97 = arith.constant 0 : index
    %c0_98 = arith.constant 0 : index
    %66 = vector.load %arg1[%c1_95, %c6_96, %c0_97, %c0_98] : memref<2x17x17x128xbf16, #tpu.memory_space<vmem>>, vector<1x1x16x128xbf16>
    %67 = vector.shape_cast %66 : vector<1x1x16x128xbf16> to vector<16x128xbf16>
    %c352 = arith.constant 352 : index
    %c0_99 = arith.constant 0 : index
    %68 = vector.load %arg5[%c352, %c0_99] : memref<512x512xbf16, #tpu.memory_space<vmem>>, vector<16x128xbf16>
    tpu.vector_store %arg5[%c352, %c0_99], %67 {strides = array<i32>} : memref<512x512xbf16, #tpu.memory_space<vmem>>, vector<16x128xbf16>,
    %c1_100 = arith.constant 1 : index
    %c7_101 = arith.constant 7 : index
    %c0_102 = arith.constant 0 : index
    %c0_103 = arith.constant 0 : index
    %69 = vector.load %arg1[%c1_100, %c7_101, %c0_102, %c0_103] : memref<2x17x17x128xbf16, #tpu.memory_space<vmem>>, vector<1x1x16x128xbf16>
    %70 = vector.shape_cast %69 : vector<1x1x16x128xbf16> to vector<16x128xbf16>
    %c368 = arith.constant 368 : index
    %c0_104 = arith.constant 0 : index
    %71 = vector.load %arg5[%c368, %c0_104] : memref<512x512xbf16, #tpu.memory_space<vmem>>, vector<16x128xbf16>
    tpu.vector_store %arg5[%c368, %c0_104], %70 {strides = array<i32>} : memref<512x512xbf16, #tpu.memory_space<vmem>>, vector<16x128xbf16>,
    %c1_105 = arith.constant 1 : index
    %c8_106 = arith.constant 8 : index
    %c0_107 = arith.constant 0 : index
    %c0_108 = arith.constant 0 : index
    %72 = vector.load %arg1[%c1_105, %c8_106, %c0_107, %c0_108] : memref<2x17x17x128xbf16, #tpu.memory_space<vmem>>, vector<1x1x16x128xbf16>
    %73 = vector.shape_cast %72 : vector<1x1x16x128xbf16> to vector<16x128xbf16>
    %c384 = arith.constant 384 : index
    %c0_109 = arith.constant 0 : index
    %74 = vector.load %arg5[%c384, %c0_109] : memref<512x512xbf16, #tpu.memory_space<vmem>>, vector<16x128xbf16>
    tpu.vector_store %arg5[%c384, %c0_109], %73 {strides = array<i32>} : memref<512x512xbf16, #tpu.memory_space<vmem>>, vector<16x128xbf16>,
    %c1_110 = arith.constant 1 : index
    %c9_111 = arith.constant 9 : index
    %c0_112 = arith.constant 0 : index
    %c0_113 = arith.constant 0 : index
    %75 = vector.load %arg1[%c1_110, %c9_111, %c0_112, %c0_113] : memref<2x17x17x128xbf16, #tpu.memory_space<vmem>>, vector<1x1x16x128xbf16>
    %76 = vector.shape_cast %75 : vector<1x1x16x128xbf16> to vector<16x128xbf16>
    %c400 = arith.constant 400 : index
    %c0_114 = arith.constant 0 : index
    %77 = vector.load %arg5[%c400, %c0_114] : memref<512x512xbf16, #tpu.memory_space<vmem>>, vector<16x128xbf16>
    tpu.vector_store %arg5[%c400, %c0_114], %76 {strides = array<i32>} : memref<512x512xbf16, #tpu.memory_space<vmem>>, vector<16x128xbf16>,
    %c1_115 = arith.constant 1 : index
    %c10_116 = arith.constant 10 : index
    %c0_117 = arith.constant 0 : index
    %c0_118 = arith.constant 0 : index
    %78 = vector.load %arg1[%c1_115, %c10_116, %c0_117, %c0_118] : memref<2x17x17x128xbf16, #tpu.memory_space<vmem>>, vector<1x1x16x128xbf16>
    %79 = vector.shape_cast %78 : vector<1x1x16x128xbf16> to vector<16x128xbf16>
    %c416 = arith.constant 416 : index
    %c0_119 = arith.constant 0 : index
    %80 = vector.load %arg5[%c416, %c0_119] : memref<512x512xbf16, #tpu.memory_space<vmem>>, vector<16x128xbf16>
    tpu.vector_store %arg5[%c416, %c0_119], %79 {strides = array<i32>} : memref<512x512xbf16, #tpu.memory_space<vmem>>, vector<16x128xbf16>,
    %c1_120 = arith.constant 1 : index
    %c11_121 = arith.constant 11 : index
    %c0_122 = arith.constant 0 : index
    %c0_123 = arith.constant 0 : index
    %81 = vector.load %arg1[%c1_120, %c11_121, %c0_122, %c0_123] : memref<2x17x17x128xbf16, #tpu.memory_space<vmem>>, vector<1x1x16x128xbf16>
    %82 = vector.shape_cast %81 : vector<1x1x16x128xbf16> to vector<16x128xbf16>
    %c432 = arith.constant 432 : index
    %c0_124 = arith.constant 0 : index
    %83 = vector.load %arg5[%c432, %c0_124] : memref<512x512xbf16, #tpu.memory_space<vmem>>, vector<16x128xbf16>
    tpu.vector_store %arg5[%c432, %c0_124], %82 {strides = array<i32>} : memref<512x512xbf16, #tpu.memory_space<vmem>>, vector<16x128xbf16>,
    %c1_125 = arith.constant 1 : index
    %c12_126 = arith.constant 12 : index
    %c0_127 = arith.constant 0 : index
    %c0_128 = arith.constant 0 : index
    %84 = vector.load %arg1[%c1_125, %c12_126, %c0_127, %c0_128] : memref<2x17x17x128xbf16, #tpu.memory_space<vmem>>, vector<1x1x16x128xbf16>
    %85 = vector.shape_cast %84 : vector<1x1x16x128xbf16> to vector<16x128xbf16>
    %c448 = arith.constant 448 : index
    %c0_129 = arith.constant 0 : index
    %86 = vector.load %arg5[%c448, %c0_129] : memref<512x512xbf16, #tpu.memory_space<vmem>>, vector<16x128xbf16>
    tpu.vector_store %arg5[%c448, %c0_129], %85 {strides = array<i32>} : memref<512x512xbf16, #tpu.memory_space<vmem>>, vector<16x128xbf16>,
    %c1_130 = arith.constant 1 : index
    %c13_131 = arith.constant 13 : index
    %c0_132 = arith.constant 0 : index
    %c0_133 = arith.constant 0 : index
    %87 = vector.load %arg1[%c1_130, %c13_131, %c0_132, %c0_133] : memref<2x17x17x128xbf16, #tpu.memory_space<vmem>>, vector<1x1x16x128xbf16>
    %88 = vector.shape_cast %87 : vector<1x1x16x128xbf16> to vector<16x128xbf16>
    %c464 = arith.constant 464 : index
    %c0_134 = arith.constant 0 : index
    %89 = vector.load %arg5[%c464, %c0_134] : memref<512x512xbf16, #tpu.memory_space<vmem>>, vector<16x128xbf16>
    tpu.vector_store %arg5[%c464, %c0_134], %88 {strides = array<i32>} : memref<512x512xbf16, #tpu.memory_space<vmem>>, vector<16x128xbf16>,
    %c1_135 = arith.constant 1 : index
    %c14_136 = arith.constant 14 : index
    %c0_137 = arith.constant 0 : index
    %c0_138 = arith.constant 0 : index
    %90 = vector.load %arg1[%c1_135, %c14_136, %c0_137, %c0_138] : memref<2x17x17x128xbf16, #tpu.memory_space<vmem>>, vector<1x1x16x128xbf16>
    %91 = vector.shape_cast %90 : vector<1x1x16x128xbf16> to vector<16x128xbf16>
    %c480 = arith.constant 480 : index
    %c0_139 = arith.constant 0 : index
    %92 = vector.load %arg5[%c480, %c0_139] : memref<512x512xbf16, #tpu.memory_space<vmem>>, vector<16x128xbf16>
    tpu.vector_store %arg5[%c480, %c0_139], %91 {strides = array<i32>} : memref<512x512xbf16, #tpu.memory_space<vmem>>, vector<16x128xbf16>,
    %c1_140 = arith.constant 1 : index
    %c15_141 = arith.constant 15 : index
    %c0_142 = arith.constant 0 : index
    %c0_143 = arith.constant 0 : index
    %93 = vector.load %arg1[%c1_140, %c15_141, %c0_142, %c0_143] : memref<2x17x17x128xbf16, #tpu.memory_space<vmem>>, vector<1x1x16x128xbf16>
    %94 = vector.shape_cast %93 : vector<1x1x16x128xbf16> to vector<16x128xbf16>
    %c496 = arith.constant 496 : index
    %c0_144 = arith.constant 0 : index
    %95 = vector.load %arg5[%c496, %c0_144] : memref<512x512xbf16, #tpu.memory_space<vmem>>, vector<16x128xbf16>
    tpu.vector_store %arg5[%c496, %c0_144], %94 {strides = array<i32>} : memref<512x512xbf16, #tpu.memory_space<vmem>>, vector<16x128xbf16>,
    %c0_145 = arith.constant 0 : index
    %c0_146 = arith.constant 0 : index
    %c1_147 = arith.constant 1 : index
    %c0_148 = arith.constant 0 : index
    %96 = vector.load %arg1[%c0_145, %c0_146, %c1_147, %c0_148] : memref<2x17x17x128xbf16, #tpu.memory_space<vmem>>, vector<1x1x16x128xbf16>
    %97 = vector.shape_cast %96 : vector<1x1x16x128xbf16> to vector<16x128xbf16>
    %c0_149 = arith.constant 0 : index
    %c128_150 = arith.constant 128 : index
    %98 = vector.load %arg5[%c0_149, %c128_150] : memref<512x512xbf16, #tpu.memory_space<vmem>>, vector<16x128xbf16>
    tpu.vector_store %arg5[%c0_149, %c128_150], %97 {strides = array<i32>} : memref<512x512xbf16, #tpu.memory_space<vmem>>, vector<16x128xbf16>,
    %c0_151 = arith.constant 0 : index
    %c1_152 = arith.constant 1 : index
    %c1_153 = arith.constant 1 : index
    %c0_154 = arith.constant 0 : index
    %99 = vector.load %arg1[%c0_151, %c1_152, %c1_153, %c0_154] : memref<2x17x17x128xbf16, #tpu.memory_space<vmem>>, vector<1x1x16x128xbf16>
    %100 = vector.shape_cast %99 : vector<1x1x16x128xbf16> to vector<16x128xbf16>
    %c16_155 = arith.constant 16 : index
    %c128_156 = arith.constant 128 : index
    %101 = vector.load %arg5[%c16_155, %c128_156] : memref<512x512xbf16, #tpu.memory_space<vmem>>, vector<16x128xbf16>
    tpu.vector_store %arg5[%c16_155, %c128_156], %100 {strides = array<i32>} : memref<512x512xbf16, #tpu.memory_space<vmem>>, vector<16x128xbf16>,
    %c0_157 = arith.constant 0 : index
    %c2_158 = arith.constant 2 : index
    %c1_159 = arith.constant 1 : index
    %c0_160 = arith.constant 0 : index
    %102 = vector.load %arg1[%c0_157, %c2_158, %c1_159, %c0_160] : memref<2x17x17x128xbf16, #tpu.memory_space<vmem>>, vector<1x1x16x128xbf16>
    %103 = vector.shape_cast %102 : vector<1x1x16x128xbf16> to vector<16x128xbf16>
    %c32_161 = arith.constant 32 : index
    %c128_162 = arith.constant 128 : index
    %104 = vector.load %arg5[%c32_161, %c128_162] : memref<512x512xbf16, #tpu.memory_space<vmem>>, vector<16x128xbf16>
    tpu.vector_store %arg5[%c32_161, %c128_162], %103 {strides = array<i32>} : memref<512x512xbf16, #tpu.memory_space<vmem>>, vector<16x128xbf16>,
    %c0_163 = arith.constant 0 : index
    %c3_164 = arith.constant 3 : index
    %c1_165 = arith.constant 1 : index
    %c0_166 = arith.constant 0 : index
    %105 = vector.load %arg1[%c0_163, %c3_164, %c1_165, %c0_166] : memref<2x17x17x128xbf16, #tpu.memory_space<vmem>>, vector<1x1x16x128xbf16>
    %106 = vector.shape_cast %105 : vector<1x1x16x128xbf16> to vector<16x128xbf16>
    %c48_167 = arith.constant 48 : index
    %c128_168 = arith.constant 128 : index
    %107 = vector.load %arg5[%c48_167, %c128_168] : memref<512x512xbf16, #tpu.memory_space<vmem>>, vector<16x128xbf16>
    tpu.vector_store %arg5[%c48_167, %c128_168], %106 {strides = array<i32>} : memref<512x512xbf16, #tpu.memory_space<vmem>>, vector<16x128xbf16>,
    %c0_169 = arith.constant 0 : index
    %c4_170 = arith.constant 4 : index
    %c1_171 = arith.constant 1 : index
    %c0_172 = arith.constant 0 : index
    %108 = vector.load %arg1[%c0_169, %c4_170, %c1_171, %c0_172] : memref<2x17x17x128xbf16, #tpu.memory_space<vmem>>, vector<1x1x16x128xbf16>
    %109 = vector.shape_cast %108 : vector<1x1x16x128xbf16> to vector<16x128xbf16>
    %c64_173 = arith.constant 64 : index
    %c128_174 = arith.constant 128 : index
    %110 = vector.load %arg5[%c64_173, %c128_174] : memref<512x512xbf16, #tpu.memory_space<vmem>>, vector<16x128xbf16>
    tpu.vector_store %arg5[%c64_173, %c128_174], %109 {strides = array<i32>} : memref<512x512xbf16, #tpu.memory_space<vmem>>, vector<16x128xbf16>,
    %c0_175 = arith.constant 0 : index
    %c5_176 = arith.constant 5 : index
    %c1_177 = arith.constant 1 : index
    %c0_178 = arith.constant 0 : index
    %111 = vector.load %arg1[%c0_175, %c5_176, %c1_177, %c0_178] : memref<2x17x17x128xbf16, #tpu.memory_space<vmem>>, vector<1x1x16x128xbf16>
    %112 = vector.shape_cast %111 : vector<1x1x16x128xbf16> to vector<16x128xbf16>
    %c80_179 = arith.constant 80 : index
    %c128_180 = arith.constant 128 : index
    %113 = vector.load %arg5[%c80_179, %c128_180] : memref<512x512xbf16, #tpu.memory_space<vmem>>, vector<16x128xbf16>
    tpu.vector_store %arg5[%c80_179, %c128_180], %112 {strides = array<i32>} : memref<512x512xbf16, #tpu.memory_space<vmem>>, vector<16x128xbf16>,
    %c0_181 = arith.constant 0 : index
    %c6_182 = arith.constant 6 : index
    %c1_183 = arith.constant 1 : index
    %c0_184 = arith.constant 0 : index
    %114 = vector.load %arg1[%c0_181, %c6_182, %c1_183, %c0_184] : memref<2x17x17x128xbf16, #tpu.memory_space<vmem>>, vector<1x1x16x128xbf16>
    %115 = vector.shape_cast %114 : vector<1x1x16x128xbf16> to vector<16x128xbf16>
    %c96_185 = arith.constant 96 : index
    %c128_186 = arith.constant 128 : index
    %116 = vector.load %arg5[%c96_185, %c128_186] : memref<512x512xbf16, #tpu.memory_space<vmem>>, vector<16x128xbf16>
    tpu.vector_store %arg5[%c96_185, %c128_186], %115 {strides = array<i32>} : memref<512x512xbf16, #tpu.memory_space<vmem>>, vector<16x128xbf16>,
    %c0_187 = arith.constant 0 : index
    %c7_188 = arith.constant 7 : index
    %c1_189 = arith.constant 1 : index
    %c0_190 = arith.constant 0 : index
    %117 = vector.load %arg1[%c0_187, %c7_188, %c1_189, %c0_190] : memref<2x17x17x128xbf16, #tpu.memory_space<vmem>>, vector<1x1x16x128xbf16>
    %118 = vector.shape_cast %117 : vector<1x1x16x128xbf16> to vector<16x128xbf16>
    %c112_191 = arith.constant 112 : index
    %c128_192 = arith.constant 128 : index
    %119 = vector.load %arg5[%c112_191, %c128_192] : memref<512x512xbf16, #tpu.memory_space<vmem>>, vector<16x128xbf16>
    tpu.vector_store %arg5[%c112_191, %c128_192], %118 {strides = array<i32>} : memref<512x512xbf16, #tpu.memory_space<vmem>>, vector<16x128xbf16>,
    %c0_193 = arith.constant 0 : index
    %c8_194 = arith.constant 8 : index
    %c1_195 = arith.constant 1 : index
    %c0_196 = arith.constant 0 : index
    %120 = vector.load %arg1[%c0_193, %c8_194, %c1_195, %c0_196] : memref<2x17x17x128xbf16, #tpu.memory_space<vmem>>, vector<1x1x16x128xbf16>
    %121 = vector.shape_cast %120 : vector<1x1x16x128xbf16> to vector<16x128xbf16>
    %c128_197 = arith.constant 128 : index
    %c128_198 = arith.constant 128 : index
    %122 = vector.load %arg5[%c128_197, %c128_198] : memref<512x512xbf16, #tpu.memory_space<vmem>>, vector<16x128xbf16>
    tpu.vector_store %arg5[%c128_197, %c128_198], %121 {strides = array<i32>} : memref<512x512xbf16, #tpu.memory_space<vmem>>, vector<16x128xbf16>,
    %c0_199 = arith.constant 0 : index
    %c9_200 = arith.constant 9 : index
    %c1_201 = arith.constant 1 : index
    %c0_202 = arith.constant 0 : index
    %123 = vector.load %arg1[%c0_199, %c9_200, %c1_201, %c0_202] : memref<2x17x17x128xbf16, #tpu.memory_space<vmem>>, vector<1x1x16x128xbf16>
    %124 = vector.shape_cast %123 : vector<1x1x16x128xbf16> to vector<16x128xbf16>
    %c144_203 = arith.constant 144 : index
    %c128_204 = arith.constant 128 : index
    %125 = vector.load %arg5[%c144_203, %c128_204] : memref<512x512xbf16, #tpu.memory_space<vmem>>, vector<16x128xbf16>
    tpu.vector_store %arg5[%c144_203, %c128_204], %124 {strides = array<i32>} : memref<512x512xbf16, #tpu.memory_space<vmem>>, vector<16x128xbf16>,
    %c0_205 = arith.constant 0 : index
    %c10_206 = arith.constant 10 : index
    %c1_207 = arith.constant 1 : index
    %c0_208 = arith.constant 0 : index
    %126 = vector.load %arg1[%c0_205, %c10_206, %c1_207, %c0_208] : memref<2x17x17x128xbf16, #tpu.memory_space<vmem>>, vector<1x1x16x128xbf16>
    %127 = vector.shape_cast %126 : vector<1x1x16x128xbf16> to vector<16x128xbf16>
    %c160_209 = arith.constant 160 : index
    %c128_210 = arith.constant 128 : index
    %128 = vector.load %arg5[%c160_209, %c128_210] : memref<512x512xbf16, #tpu.memory_space<vmem>>, vector<16x128xbf16>
    tpu.vector_store %arg5[%c160_209, %c128_210], %127 {strides = array<i32>} : memref<512x512xbf16, #tpu.memory_space<vmem>>, vector<16x128xbf16>,
    %c0_211 = arith.constant 0 : index
    %c11_212 = arith.constant 11 : index
    %c1_213 = arith.constant 1 : index
    %c0_214 = arith.constant 0 : index
    %129 = vector.load %arg1[%c0_211, %c11_212, %c1_213, %c0_214] : memref<2x17x17x128xbf16, #tpu.memory_space<vmem>>, vector<1x1x16x128xbf16>
    %130 = vector.shape_cast %129 : vector<1x1x16x128xbf16> to vector<16x128xbf16>
    %c176_215 = arith.constant 176 : index
    %c128_216 = arith.constant 128 : index
    %131 = vector.load %arg5[%c176_215, %c128_216] : memref<512x512xbf16, #tpu.memory_space<vmem>>, vector<16x128xbf16>
    tpu.vector_store %arg5[%c176_215, %c128_216], %130 {strides = array<i32>} : memref<512x512xbf16, #tpu.memory_space<vmem>>, vector<16x128xbf16>,
    %c0_217 = arith.constant 0 : index
    %c12_218 = arith.constant 12 : index
    %c1_219 = arith.constant 1 : index
    %c0_220 = arith.constant 0 : index
    %132 = vector.load %arg1[%c0_217, %c12_218, %c1_219, %c0_220] : memref<2x17x17x128xbf16, #tpu.memory_space<vmem>>, vector<1x1x16x128xbf16>
    %133 = vector.shape_cast %132 : vector<1x1x16x128xbf16> to vector<16x128xbf16>
    %c192_221 = arith.constant 192 : index
    %c128_222 = arith.constant 128 : index
    %134 = vector.load %arg5[%c192_221, %c128_222] : memref<512x512xbf16, #tpu.memory_space<vmem>>, vector<16x128xbf16>
    tpu.vector_store %arg5[%c192_221, %c128_222], %133 {strides = array<i32>} : memref<512x512xbf16, #tpu.memory_space<vmem>>, vector<16x128xbf16>,
    %c0_223 = arith.constant 0 : index
    %c13_224 = arith.constant 13 : index
    %c1_225 = arith.constant 1 : index
    %c0_226 = arith.constant 0 : index
    %135 = vector.load %arg1[%c0_223, %c13_224, %c1_225, %c0_226] : memref<2x17x17x128xbf16, #tpu.memory_space<vmem>>, vector<1x1x16x128xbf16>
    %136 = vector.shape_cast %135 : vector<1x1x16x128xbf16> to vector<16x128xbf16>
    %c208_227 = arith.constant 208 : index
    %c128_228 = arith.constant 128 : index
    %137 = vector.load %arg5[%c208_227, %c128_228] : memref<512x512xbf16, #tpu.memory_space<vmem>>, vector<16x128xbf16>
    tpu.vector_store %arg5[%c208_227, %c128_228], %136 {strides = array<i32>} : memref<512x512xbf16, #tpu.memory_space<vmem>>, vector<16x128xbf16>,
    %c0_229 = arith.constant 0 : index
    %c14_230 = arith.constant 14 : index
    %c1_231 = arith.constant 1 : index
    %c0_232 = arith.constant 0 : index
    %138 = vector.load %arg1[%c0_229, %c14_230, %c1_231, %c0_232] : memref<2x17x17x128xbf16, #tpu.memory_space<vmem>>, vector<1x1x16x128xbf16>
    %139 = vector.shape_cast %138 : vector<1x1x16x128xbf16> to vector<16x128xbf16>
    %c224_233 = arith.constant 224 : index
    %c128_234 = arith.constant 128 : index
    %140 = vector.load %arg5[%c224_233, %c128_234] : memref<512x512xbf16, #tpu.memory_space<vmem>>, vector<16x128xbf16>
    tpu.vector_store %arg5[%c224_233, %c128_234], %139 {strides = array<i32>} : memref<512x512xbf16, #tpu.memory_space<vmem>>, vector<16x128xbf16>,
    %c0_235 = arith.constant 0 : index
    %c15_236 = arith.constant 15 : index
    %c1_237 = arith.constant 1 : index
    %c0_238 = arith.constant 0 : index
    %141 = vector.load %arg1[%c0_235, %c15_236, %c1_237, %c0_238] : memref<2x17x17x128xbf16, #tpu.memory_space<vmem>>, vector<1x1x16x128xbf16>
    %142 = vector.shape_cast %141 : vector<1x1x16x128xbf16> to vector<16x128xbf16>
    %c240_239 = arith.constant 240 : index
    %c128_240 = arith.constant 128 : index
    %143 = vector.load %arg5[%c240_239, %c128_240] : memref<512x512xbf16, #tpu.memory_space<vmem>>, vector<16x128xbf16>
    tpu.vector_store %arg5[%c240_239, %c128_240], %142 {strides = array<i32>} : memref<512x512xbf16, #tpu.memory_space<vmem>>, vector<16x128xbf16>,
    %c1_241 = arith.constant 1 : index
    %c0_242 = arith.constant 0 : index
    %c1_243 = arith.constant 1 : index
    %c0_244 = arith.constant 0 : index
    %144 = vector.load %arg1[%c1_241, %c0_242, %c1_243, %c0_244] : memref<2x17x17x128xbf16, #tpu.memory_space<vmem>>, vector<1x1x16x128xbf16>
    %145 = vector.shape_cast %144 : vector<1x1x16x128xbf16> to vector<16x128xbf16>
    %c256_245 = arith.constant 256 : index
    %c128_246 = arith.constant 128 : index
    %146 = vector.load %arg5[%c256_245, %c128_246] : memref<512x512xbf16, #tpu.memory_space<vmem>>, vector<16x128xbf16>
    tpu.vector_store %arg5[%c256_245, %c128_246], %145 {strides = array<i32>} : memref<512x512xbf16, #tpu.memory_space<vmem>>, vector<16x128xbf16>,
    %c1_247 = arith.constant 1 : index
    %c1_248 = arith.constant 1 : index
    %c1_249 = arith.constant 1 : index
    %c0_250 = arith.constant 0 : index
    %147 = vector.load %arg1[%c1_247, %c1_248, %c1_249, %c0_250] : memref<2x17x17x128xbf16, #tpu.memory_space<vmem>>, vector<1x1x16x128xbf16>
    %148 = vector.shape_cast %147 : vector<1x1x16x128xbf16> to vector<16x128xbf16>
    %c272_251 = arith.constant 272 : index
    %c128_252 = arith.constant 128 : index
    %149 = vector.load %arg5[%c272_251, %c128_252] : memref<512x512xbf16, #tpu.memory_space<vmem>>, vector<16x128xbf16>
    tpu.vector_store %arg5[%c272_251, %c128_252], %148 {strides = array<i32>} : memref<512x512xbf16, #tpu.memory_space<vmem>>, vector<16x128xbf16>,
    %c1_253 = arith.constant 1 : index
    %c2_254 = arith.constant 2 : index
    %c1_255 = arith.constant 1 : index
    %c0_256 = arith.constant 0 : index
    %150 = vector.load %arg1[%c1_253, %c2_254, %c1_255, %c0_256] : memref<2x17x17x128xbf16, #tpu.memory_space<vmem>>, vector<1x1x16x128xbf16>
    %151 = vector.shape_cast %150 : vector<1x1x16x128xbf16> to vector<16x128xbf16>
    %c288_257 = arith.constant 288 : index
    %c128_258 = arith.constant 128 : index
    %152 = vector.load %arg5[%c288_257, %c128_258] : memref<512x512xbf16, #tpu.memory_space<vmem>>, vector<16x128xbf16>
    tpu.vector_store %arg5[%c288_257, %c128_258], %151 {strides = array<i32>} : memref<512x512xbf16, #tpu.memory_space<vmem>>, vector<16x128xbf16>,
    %c1_259 = arith.constant 1 : index
    %c3_260 = arith.constant 3 : index
    %c1_261 = arith.constant 1 : index
    %c0_262 = arith.constant 0 : index
    %153 = vector.load %arg1[%c1_259, %c3_260, %c1_261, %c0_262] : memref<2x17x17x128xbf16, #tpu.memory_space<vmem>>, vector<1x1x16x128xbf16>
    %154 = vector.shape_cast %153 : vector<1x1x16x128xbf16> to vector<16x128xbf16>
    %c304_263 = arith.constant 304 : index
    %c128_264 = arith.constant 128 : index
    %155 = vector.load %arg5[%c304_263, %c128_264] : memref<512x512xbf16, #tpu.memory_space<vmem>>, vector<16x128xbf16>
    tpu.vector_store %arg5[%c304_263, %c128_264], %154 {strides = array<i32>} : memref<512x512xbf16, #tpu.memory_space<vmem>>, vector<16x128xbf16>,
    %c1_265 = arith.constant 1 : index
    %c4_266 = arith.constant 4 : index
    %c1_267 = arith.constant 1 : index
    %c0_268 = arith.constant 0 : index
    %156 = vector.load %arg1[%c1_265, %c4_266, %c1_267, %c0_268] : memref<2x17x17x128xbf16, #tpu.memory_space<vmem>>, vector<1x1x16x128xbf16>
    %157 = vector.shape_cast %156 : vector<1x1x16x128xbf16> to vector<16x128xbf16>
    %c320_269 = arith.constant 320 : index
    %c128_270 = arith.constant 128 : index
    %158 = vector.load %arg5[%c320_269, %c128_270] : memref<512x512xbf16, #tpu.memory_space<vmem>>, vector<16x128xbf16>
    tpu.vector_store %arg5[%c320_269, %c128_270], %157 {strides = array<i32>} : memref<512x512xbf16, #tpu.memory_space<vmem>>, vector<16x128xbf16>,
    %c1_271 = arith.constant 1 : index
    %c5_272 = arith.constant 5 : index
    %c1_273 = arith.constant 1 : index
    %c0_274 = arith.constant 0 : index
    %159 = vector.load %arg1[%c1_271, %c5_272, %c1_273, %c0_274] : memref<2x17x17x128xbf16, #tpu.memory_space<vmem>>, vector<1x1x16x128xbf16>
    %160 = vector.shape_cast %159 : vector<1x1x16x128xbf16> to vector<16x128xbf16>
    %c336_275 = arith.constant 336 : index
    %c128_276 = arith.constant 128 : index
    %161 = vector.load %arg5[%c336_275, %c128_276] : memref<512x512xbf16, #tpu.memory_space<vmem>>, vector<16x128xbf16>
    tpu.vector_store %arg5[%c336_275, %c128_276], %160 {strides = array<i32>} : memref<512x512xbf16, #tpu.memory_space<vmem>>, vector<16x128xbf16>,
    %c1_277 = arith.constant 1 : index
    %c6_278 = arith.constant 6 : index
    %c1_279 = arith.constant 1 : index
    %c0_280 = arith.constant 0 : index
    %162 = vector.load %arg1[%c1_277, %c6_278, %c1_279, %c0_280] : memref<2x17x17x128xbf16, #tpu.memory_space<vmem>>, vector<1x1x16x128xbf16>
    %163 = vector.shape_cast %162 : vector<1x1x16x128xbf16> to vector<16x128xbf16>
    %c352_281 = arith.constant 352 : index
    %c128_282 = arith.constant 128 : index
    %164 = vector.load %arg5[%c352_281, %c128_282] : memref<512x512xbf16, #tpu.memory_space<vmem>>, vector<16x128xbf16>
    tpu.vector_store %arg5[%c352_281, %c128_282], %163 {strides = array<i32>} : memref<512x512xbf16, #tpu.memory_space<vmem>>, vector<16x128xbf16>,
    %c1_283 = arith.constant 1 : index
    %c7_284 = arith.constant 7 : index
    %c1_285 = arith.constant 1 : index
    %c0_286 = arith.constant 0 : index
    %165 = vector.load %arg1[%c1_283, %c7_284, %c1_285, %c0_286] : memref<2x17x17x128xbf16, #tpu.memory_space<vmem>>, vector<1x1x16x128xbf16>
    %166 = vector.shape_cast %165 : vector<1x1x16x128xbf16> to vector<16x128xbf16>
    %c368_287 = arith.constant 368 : index
    %c128_288 = arith.constant 128 : index
    %167 = vector.load %arg5[%c368_287, %c128_288] : memref<512x512xbf16, #tpu.memory_space<vmem>>, vector<16x128xbf16>
    tpu.vector_store %arg5[%c368_287, %c128_288], %166 {strides = array<i32>} : memref<512x512xbf16, #tpu.memory_space<vmem>>, vector<16x128xbf16>,
    %c1_289 = arith.constant 1 : index
    %c8_290 = arith.constant 8 : index
    %c1_291 = arith.constant 1 : index
    %c0_292 = arith.constant 0 : index
    %168 = vector.load %arg1[%c1_289, %c8_290, %c1_291, %c0_292] : memref<2x17x17x128xbf16, #tpu.memory_space<vmem>>, vector<1x1x16x128xbf16>
    %169 = vector.shape_cast %168 : vector<1x1x16x128xbf16> to vector<16x128xbf16>
    %c384_293 = arith.constant 384 : index
    %c128_294 = arith.constant 128 : index
    %170 = vector.load %arg5[%c384_293, %c128_294] : memref<512x512xbf16, #tpu.memory_space<vmem>>, vector<16x128xbf16>
    tpu.vector_store %arg5[%c384_293, %c128_294], %169 {strides = array<i32>} : memref<512x512xbf16, #tpu.memory_space<vmem>>, vector<16x128xbf16>,
    %c1_295 = arith.constant 1 : index
    %c9_296 = arith.constant 9 : index
    %c1_297 = arith.constant 1 : index
    %c0_298 = arith.constant 0 : index
    %171 = vector.load %arg1[%c1_295, %c9_296, %c1_297, %c0_298] : memref<2x17x17x128xbf16, #tpu.memory_space<vmem>>, vector<1x1x16x128xbf16>
    %172 = vector.shape_cast %171 : vector<1x1x16x128xbf16> to vector<16x128xbf16>
    %c400_299 = arith.constant 400 : index
    %c128_300 = arith.constant 128 : index
    %173 = vector.load %arg5[%c400_299, %c128_300] : memref<512x512xbf16, #tpu.memory_space<vmem>>, vector<16x128xbf16>
    tpu.vector_store %arg5[%c400_299, %c128_300], %172 {strides = array<i32>} : memref<512x512xbf16, #tpu.memory_space<vmem>>, vector<16x128xbf16>,
    %c1_301 = arith.constant 1 : index
    %c10_302 = arith.constant 10 : index
    %c1_303 = arith.constant 1 : index
    %c0_304 = arith.constant 0 : index
    %174 = vector.load %arg1[%c1_301, %c10_302, %c1_303, %c0_304] : memref<2x17x17x128xbf16, #tpu.memory_space<vmem>>, vector<1x1x16x128xbf16>
    %175 = vector.shape_cast %174 : vector<1x1x16x128xbf16> to vector<16x128xbf16>
    %c416_305 = arith.constant 416 : index
    %c128_306 = arith.constant 128 : index
    %176 = vector.load %arg5[%c416_305, %c128_306] : memref<512x512xbf16, #tpu.memory_space<vmem>>, vector<16x128xbf16>
    tpu.vector_store %arg5[%c416_305, %c128_306], %175 {strides = array<i32>} : memref<512x512xbf16, #tpu.memory_space<vmem>>, vector<16x128xbf16>,
    %c1_307 = arith.constant 1 : index
    %c11_308 = arith.constant 11 : index
    %c1_309 = arith.constant 1 : index
    %c0_310 = arith.constant 0 : index
    %177 = vector.load %arg1[%c1_307, %c11_308, %c1_309, %c0_310] : memref<2x17x17x128xbf16, #tpu.memory_space<vmem>>, vector<1x1x16x128xbf16>
    %178 = vector.shape_cast %177 : vector<1x1x16x128xbf16> to vector<16x128xbf16>
    %c432_311 = arith.constant 432 : index
    %c128_312 = arith.constant 128 : index
    %179 = vector.load %arg5[%c432_311, %c128_312] : memref<512x512xbf16, #tpu.memory_space<vmem>>, vector<16x128xbf16>
    tpu.vector_store %arg5[%c432_311, %c128_312], %178 {strides = array<i32>} : memref<512x512xbf16, #tpu.memory_space<vmem>>, vector<16x128xbf16>,
    %c1_313 = arith.constant 1 : index
    %c12_314 = arith.constant 12 : index
    %c1_315 = arith.constant 1 : index
    %c0_316 = arith.constant 0 : index
    %180 = vector.load %arg1[%c1_313, %c12_314, %c1_315, %c0_316] : memref<2x17x17x128xbf16, #tpu.memory_space<vmem>>, vector<1x1x16x128xbf16>
    %181 = vector.shape_cast %180 : vector<1x1x16x128xbf16> to vector<16x128xbf16>
    %c448_317 = arith.constant 448 : index
    %c128_318 = arith.constant 128 : index
    %182 = vector.load %arg5[%c448_317, %c128_318] : memref<512x512xbf16, #tpu.memory_space<vmem>>, vector<16x128xbf16>
    tpu.vector_store %arg5[%c448_317, %c128_318], %181 {strides = array<i32>} : memref<512x512xbf16, #tpu.memory_space<vmem>>, vector<16x128xbf16>,
    %c1_319 = arith.constant 1 : index
    %c13_320 = arith.constant 13 : index
    %c1_321 = arith.constant 1 : index
    %c0_322 = arith.constant 0 : index
    %183 = vector.load %arg1[%c1_319, %c13_320, %c1_321, %c0_322] : memref<2x17x17x128xbf16, #tpu.memory_space<vmem>>, vector<1x1x16x128xbf16>
    %184 = vector.shape_cast %183 : vector<1x1x16x128xbf16> to vector<16x128xbf16>
    %c464_323 = arith.constant 464 : index
    %c128_324 = arith.constant 128 : index
    %185 = vector.load %arg5[%c464_323, %c128_324] : memref<512x512xbf16, #tpu.memory_space<vmem>>, vector<16x128xbf16>
    tpu.vector_store %arg5[%c464_323, %c128_324], %184 {strides = array<i32>} : memref<512x512xbf16, #tpu.memory_space<vmem>>, vector<16x128xbf16>,
    %c1_325 = arith.constant 1 : index
    %c14_326 = arith.constant 14 : index
    %c1_327 = arith.constant 1 : index
    %c0_328 = arith.constant 0 : index
    %186 = vector.load %arg1[%c1_325, %c14_326, %c1_327, %c0_328] : memref<2x17x17x128xbf16, #tpu.memory_space<vmem>>, vector<1x1x16x128xbf16>
    %187 = vector.shape_cast %186 : vector<1x1x16x128xbf16> to vector<16x128xbf16>
    %c480_329 = arith.constant 480 : index
    %c128_330 = arith.constant 128 : index
    %188 = vector.load %arg5[%c480_329, %c128_330] : memref<512x512xbf16, #tpu.memory_space<vmem>>, vector<16x128xbf16>
    tpu.vector_store %arg5[%c480_329, %c128_330], %187 {strides = array<i32>} : memref<512x512xbf16, #tpu.memory_space<vmem>>, vector<16x128xbf16>,
    %c1_331 = arith.constant 1 : index
    %c15_332 = arith.constant 15 : index
    %c1_333 = arith.constant 1 : index
    %c0_334 = arith.constant 0 : index
    %189 = vector.load %arg1[%c1_331, %c15_332, %c1_333, %c0_334] : memref<2x17x17x128xbf16, #tpu.memory_space<vmem>>, vector<1x1x16x128xbf16>
    %190 = vector.shape_cast %189 : vector<1x1x16x128xbf16> to vector<16x128xbf16>
    %c496_335 = arith.constant 496 : index
    %c128_336 = arith.constant 128 : index
    %191 = vector.load %arg5[%c496_335, %c128_336] : memref<512x512xbf16, #tpu.memory_space<vmem>>, vector<16x128xbf16>
    tpu.vector_store %arg5[%c496_335, %c128_336], %190 {strides = array<i32>} : memref<512x512xbf16, #tpu.memory_space<vmem>>, vector<16x128xbf16>,
    %c0_337 = arith.constant 0 : index
    %c1_338 = arith.constant 1 : index
    %c0_339 = arith.constant 0 : index
    %c0_340 = arith.constant 0 : index
    %192 = vector.load %arg1[%c0_337, %c1_338, %c0_339, %c0_340] : memref<2x17x17x128xbf16, #tpu.memory_space<vmem>>, vector<1x1x16x128xbf16>
    %193 = vector.shape_cast %192 : vector<1x1x16x128xbf16> to vector<16x128xbf16>
    %c0_341 = arith.constant 0 : index
    %c256_342 = arith.constant 256 : index
    %194 = vector.load %arg5[%c0_341, %c256_342] : memref<512x512xbf16, #tpu.memory_space<vmem>>, vector<16x128xbf16>
    tpu.vector_store %arg5[%c0_341, %c256_342], %193 {strides = array<i32>} : memref<512x512xbf16, #tpu.memory_space<vmem>>, vector<16x128xbf16>,
    %c0_343 = arith.constant 0 : index
    %c2_344 = arith.constant 2 : index
    %c0_345 = arith.constant 0 : index
    %c0_346 = arith.constant 0 : index
    %195 = vector.load %arg1[%c0_343, %c2_344, %c0_345, %c0_346] : memref<2x17x17x128xbf16, #tpu.memory_space<vmem>>, vector<1x1x16x128xbf16>
    %196 = vector.shape_cast %195 : vector<1x1x16x128xbf16> to vector<16x128xbf16>
    %c16_347 = arith.constant 16 : index
    %c256_348 = arith.constant 256 : index
    %197 = vector.load %arg5[%c16_347, %c256_348] : memref<512x512xbf16, #tpu.memory_space<vmem>>, vector<16x128xbf16>
    tpu.vector_store %arg5[%c16_347, %c256_348], %196 {strides = array<i32>} : memref<512x512xbf16, #tpu.memory_space<vmem>>, vector<16x128xbf16>,
    %c0_349 = arith.constant 0 : index
    %c3_350 = arith.constant 3 : index
    %c0_351 = arith.constant 0 : index
    %c0_352 = arith.constant 0 : index
    %198 = vector.load %arg1[%c0_349, %c3_350, %c0_351, %c0_352] : memref<2x17x17x128xbf16, #tpu.memory_space<vmem>>, vector<1x1x16x128xbf16>
    %199 = vector.shape_cast %198 : vector<1x1x16x128xbf16> to vector<16x128xbf16>
    %c32_353 = arith.constant 32 : index
    %c256_354 = arith.constant 256 : index
    %200 = vector.load %arg5[%c32_353, %c256_354] : memref<512x512xbf16, #tpu.memory_space<vmem>>, vector<16x128xbf16>
    tpu.vector_store %arg5[%c32_353, %c256_354], %199 {strides = array<i32>} : memref<512x512xbf16, #tpu.memory_space<vmem>>, vector<16x128xbf16>,
    %c0_355 = arith.constant 0 : index
    %c4_356 = arith.constant 4 : index
    %c0_357 = arith.constant 0 : index
    %c0_358 = arith.constant 0 : index
    %201 = vector.load %arg1[%c0_355, %c4_356, %c0_357, %c0_358] : memref<2x17x17x128xbf16, #tpu.memory_space<vmem>>, vector<1x1x16x128xbf16>
    %202 = vector.shape_cast %201 : vector<1x1x16x128xbf16> to vector<16x128xbf16>
    %c48_359 = arith.constant 48 : index
    %c256_360 = arith.constant 256 : index
    %203 = vector.load %arg5[%c48_359, %c256_360] : memref<512x512xbf16, #tpu.memory_space<vmem>>, vector<16x128xbf16>
    tpu.vector_store %arg5[%c48_359, %c256_360], %202 {strides = array<i32>} : memref<512x512xbf16, #tpu.memory_space<vmem>>, vector<16x128xbf16>,
    %c0_361 = arith.constant 0 : index
    %c5_362 = arith.constant 5 : index
    %c0_363 = arith.constant 0 : index
    %c0_364 = arith.constant 0 : index
    %204 = vector.load %arg1[%c0_361, %c5_362, %c0_363, %c0_364] : memref<2x17x17x128xbf16, #tpu.memory_space<vmem>>, vector<1x1x16x128xbf16>
    %205 = vector.shape_cast %204 : vector<1x1x16x128xbf16> to vector<16x128xbf16>
    %c64_365 = arith.constant 64 : index
    %c256_366 = arith.constant 256 : index
    %206 = vector.load %arg5[%c64_365, %c256_366] : memref<512x512xbf16, #tpu.memory_space<vmem>>, vector<16x128xbf16>
    tpu.vector_store %arg5[%c64_365, %c256_366], %205 {strides = array<i32>} : memref<512x512xbf16, #tpu.memory_space<vmem>>, vector<16x128xbf16>,
    %c0_367 = arith.constant 0 : index
    %c6_368 = arith.constant 6 : index
    %c0_369 = arith.constant 0 : index
    %c0_370 = arith.constant 0 : index
    %207 = vector.load %arg1[%c0_367, %c6_368, %c0_369, %c0_370] : memref<2x17x17x128xbf16, #tpu.memory_space<vmem>>, vector<1x1x16x128xbf16>
    %208 = vector.shape_cast %207 : vector<1x1x16x128xbf16> to vector<16x128xbf16>
    %c80_371 = arith.constant 80 : index
    %c256_372 = arith.constant 256 : index
    %209 = vector.load %arg5[%c80_371, %c256_372] : memref<512x512xbf16, #tpu.memory_space<vmem>>, vector<16x128xbf16>
    tpu.vector_store %arg5[%c80_371, %c256_372], %208 {strides = array<i32>} : memref<512x512xbf16, #tpu.memory_space<vmem>>, vector<16x128xbf16>,
    %c0_373 = arith.constant 0 : index
    %c7_374 = arith.constant 7 : index
    %c0_375 = arith.constant 0 : index
    %c0_376 = arith.constant 0 : index
    %210 = vector.load %arg1[%c0_373, %c7_374, %c0_375, %c0_376] : memref<2x17x17x128xbf16, #tpu.memory_space<vmem>>, vector<1x1x16x128xbf16>
    %211 = vector.shape_cast %210 : vector<1x1x16x128xbf16> to vector<16x128xbf16>
    %c96_377 = arith.constant 96 : index
    %c256_378 = arith.constant 256 : index
    %212 = vector.load %arg5[%c96_377, %c256_378] : memref<512x512xbf16, #tpu.memory_space<vmem>>, vector<16x128xbf16>
    tpu.vector_store %arg5[%c96_377, %c256_378], %211 {strides = array<i32>} : memref<512x512xbf16, #tpu.memory_space<vmem>>, vector<16x128xbf16>,
    %c0_379 = arith.constant 0 : index
    %c8_380 = arith.constant 8 : index
    %c0_381 = arith.constant 0 : index
    %c0_382 = arith.constant 0 : index
    %213 = vector.load %arg1[%c0_379, %c8_380, %c0_381, %c0_382] : memref<2x17x17x128xbf16, #tpu.memory_space<vmem>>, vector<1x1x16x128xbf16>
    %214 = vector.shape_cast %213 : vector<1x1x16x128xbf16> to vector<16x128xbf16>
    %c112_383 = arith.constant 112 : index
    %c256_384 = arith.constant 256 : index
    %215 = vector.load %arg5[%c112_383, %c256_384] : memref<512x512xbf16, #tpu.memory_space<vmem>>, vector<16x128xbf16>
    tpu.vector_store %arg5[%c112_383, %c256_384], %214 {strides = array<i32>} : memref<512x512xbf16, #tpu.memory_space<vmem>>, vector<16x128xbf16>,
    %c0_385 = arith.constant 0 : index
    %c9_386 = arith.constant 9 : index
    %c0_387 = arith.constant 0 : index
    %c0_388 = arith.constant 0 : index
    %216 = vector.load %arg1[%c0_385, %c9_386, %c0_387, %c0_388] : memref<2x17x17x128xbf16, #tpu.memory_space<vmem>>, vector<1x1x16x128xbf16>
    %217 = vector.shape_cast %216 : vector<1x1x16x128xbf16> to vector<16x128xbf16>
    %c128_389 = arith.constant 128 : index
    %c256_390 = arith.constant 256 : index
    %218 = vector.load %arg5[%c128_389, %c256_390] : memref<512x512xbf16, #tpu.memory_space<vmem>>, vector<16x128xbf16>
    tpu.vector_store %arg5[%c128_389, %c256_390], %217 {strides = array<i32>} : memref<512x512xbf16, #tpu.memory_space<vmem>>, vector<16x128xbf16>,
    %c0_391 = arith.constant 0 : index
    %c10_392 = arith.constant 10 : index
    %c0_393 = arith.constant 0 : index
    %c0_394 = arith.constant 0 : index
    %219 = vector.load %arg1[%c0_391, %c10_392, %c0_393, %c0_394] : memref<2x17x17x128xbf16, #tpu.memory_space<vmem>>, vector<1x1x16x128xbf16>
    %220 = vector.shape_cast %219 : vector<1x1x16x128xbf16> to vector<16x128xbf16>
    %c144_395 = arith.constant 144 : index
    %c256_396 = arith.constant 256 : index
    %221 = vector.load %arg5[%c144_395, %c256_396] : memref<512x512xbf16, #tpu.memory_space<vmem>>, vector<16x128xbf16>
    tpu.vector_store %arg5[%c144_395, %c256_396], %220 {strides = array<i32>} : memref<512x512xbf16, #tpu.memory_space<vmem>>, vector<16x128xbf16>,
    %c0_397 = arith.constant 0 : index
    %c11_398 = arith.constant 11 : index
    %c0_399 = arith.constant 0 : index
    %c0_400 = arith.constant 0 : index
    %222 = vector.load %arg1[%c0_397, %c11_398, %c0_399, %c0_400] : memref<2x17x17x128xbf16, #tpu.memory_space<vmem>>, vector<1x1x16x128xbf16>
    %223 = vector.shape_cast %222 : vector<1x1x16x128xbf16> to vector<16x128xbf16>
    %c160_401 = arith.constant 160 : index
    %c256_402 = arith.constant 256 : index
    %224 = vector.load %arg5[%c160_401, %c256_402] : memref<512x512xbf16, #tpu.memory_space<vmem>>, vector<16x128xbf16>
    tpu.vector_store %arg5[%c160_401, %c256_402], %223 {strides = array<i32>} : memref<512x512xbf16, #tpu.memory_space<vmem>>, vector<16x128xbf16>,
    %c0_403 = arith.constant 0 : index
    %c12_404 = arith.constant 12 : index
    %c0_405 = arith.constant 0 : index
    %c0_406 = arith.constant 0 : index
    %225 = vector.load %arg1[%c0_403, %c12_404, %c0_405, %c0_406] : memref<2x17x17x128xbf16, #tpu.memory_space<vmem>>, vector<1x1x16x128xbf16>
    %226 = vector.shape_cast %225 : vector<1x1x16x128xbf16> to vector<16x128xbf16>
    %c176_407 = arith.constant 176 : index
    %c256_408 = arith.constant 256 : index
    %227 = vector.load %arg5[%c176_407, %c256_408] : memref<512x512xbf16, #tpu.memory_space<vmem>>, vector<16x128xbf16>
    tpu.vector_store %arg5[%c176_407, %c256_408], %226 {strides = array<i32>} : memref<512x512xbf16, #tpu.memory_space<vmem>>, vector<16x128xbf16>,
    %c0_409 = arith.constant 0 : index
    %c13_410 = arith.constant 13 : index
    %c0_411 = arith.constant 0 : index
    %c0_412 = arith.constant 0 : index
    %228 = vector.load %arg1[%c0_409, %c13_410, %c0_411, %c0_412] : memref<2x17x17x128xbf16, #tpu.memory_space<vmem>>, vector<1x1x16x128xbf16>
    %229 = vector.shape_cast %228 : vector<1x1x16x128xbf16> to vector<16x128xbf16>
    %c192_413 = arith.constant 192 : index
    %c256_414 = arith.constant 256 : index
    %230 = vector.load %arg5[%c192_413, %c256_414] : memref<512x512xbf16, #tpu.memory_space<vmem>>, vector<16x128xbf16>
    tpu.vector_store %arg5[%c192_413, %c256_414], %229 {strides = array<i32>} : memref<512x512xbf16, #tpu.memory_space<vmem>>, vector<16x128xbf16>,
    %c0_415 = arith.constant 0 : index
    %c14_416 = arith.constant 14 : index
    %c0_417 = arith.constant 0 : index
    %c0_418 = arith.constant 0 : index
    %231 = vector.load %arg1[%c0_415, %c14_416, %c0_417, %c0_418] : memref<2x17x17x128xbf16, #tpu.memory_space<vmem>>, vector<1x1x16x128xbf16>
    %232 = vector.shape_cast %231 : vector<1x1x16x128xbf16> to vector<16x128xbf16>
    %c208_419 = arith.constant 208 : index
    %c256_420 = arith.constant 256 : index
    %233 = vector.load %arg5[%c208_419, %c256_420] : memref<512x512xbf16, #tpu.memory_space<vmem>>, vector<16x128xbf16>
    tpu.vector_store %arg5[%c208_419, %c256_420], %232 {strides = array<i32>} : memref<512x512xbf16, #tpu.memory_space<vmem>>, vector<16x128xbf16>,
    %c0_421 = arith.constant 0 : index
    %c15_422 = arith.constant 15 : index
    %c0_423 = arith.constant 0 : index
    %c0_424 = arith.constant 0 : index
    %234 = vector.load %arg1[%c0_421, %c15_422, %c0_423, %c0_424] : memref<2x17x17x128xbf16, #tpu.memory_space<vmem>>, vector<1x1x16x128xbf16>
    %235 = vector.shape_cast %234 : vector<1x1x16x128xbf16> to vector<16x128xbf16>
    %c224_425 = arith.constant 224 : index
    %c256_426 = arith.constant 256 : index
    %236 = vector.load %arg5[%c224_425, %c256_426] : memref<512x512xbf16, #tpu.memory_space<vmem>>, vector<16x128xbf16>
    tpu.vector_store %arg5[%c224_425, %c256_426], %235 {strides = array<i32>} : memref<512x512xbf16, #tpu.memory_space<vmem>>, vector<16x128xbf16>,
    %c0_427 = arith.constant 0 : index
    %c16_428 = arith.constant 16 : index
    %c0_429 = arith.constant 0 : index
    %c0_430 = arith.constant 0 : index
    %237 = vector.load %arg1[%c0_427, %c16_428, %c0_429, %c0_430] : memref<2x17x17x128xbf16, #tpu.memory_space<vmem>>, vector<1x1x16x128xbf16>
    %238 = vector.shape_cast %237 : vector<1x1x16x128xbf16> to vector<16x128xbf16>
    %c240_431 = arith.constant 240 : index
    %c256_432 = arith.constant 256 : index
    %239 = vector.load %arg5[%c240_431, %c256_432] : memref<512x512xbf16, #tpu.memory_space<vmem>>, vector<16x128xbf16>
    tpu.vector_store %arg5[%c240_431, %c256_432], %238 {strides = array<i32>} : memref<512x512xbf16, #tpu.memory_space<vmem>>, vector<16x128xbf16>,
    %c1_433 = arith.constant 1 : index
    %c1_434 = arith.constant 1 : index
    %c0_435 = arith.constant 0 : index
    %c0_436 = arith.constant 0 : index
    %240 = vector.load %arg1[%c1_433, %c1_434, %c0_435, %c0_436] : memref<2x17x17x128xbf16, #tpu.memory_space<vmem>>, vector<1x1x16x128xbf16>
    %241 = vector.shape_cast %240 : vector<1x1x16x128xbf16> to vector<16x128xbf16>
    %c256_437 = arith.constant 256 : index
    %c256_438 = arith.constant 256 : index
    %242 = vector.load %arg5[%c256_437, %c256_438] : memref<512x512xbf16, #tpu.memory_space<vmem>>, vector<16x128xbf16>
    tpu.vector_store %arg5[%c256_437, %c256_438], %241 {strides = array<i32>} : memref<512x512xbf16, #tpu.memory_space<vmem>>, vector<16x128xbf16>,
    %c1_439 = arith.constant 1 : index
    %c2_440 = arith.constant 2 : index
    %c0_441 = arith.constant 0 : index
    %c0_442 = arith.constant 0 : index
    %243 = vector.load %arg1[%c1_439, %c2_440, %c0_441, %c0_442] : memref<2x17x17x128xbf16, #tpu.memory_space<vmem>>, vector<1x1x16x128xbf16>
    %244 = vector.shape_cast %243 : vector<1x1x16x128xbf16> to vector<16x128xbf16>
    %c272_443 = arith.constant 272 : index
    %c256_444 = arith.constant 256 : index
    %245 = vector.load %arg5[%c272_443, %c256_444] : memref<512x512xbf16, #tpu.memory_space<vmem>>, vector<16x128xbf16>
    tpu.vector_store %arg5[%c272_443, %c256_444], %244 {strides = array<i32>} : memref<512x512xbf16, #tpu.memory_space<vmem>>, vector<16x128xbf16>,
    %c1_445 = arith.constant 1 : index
    %c3_446 = arith.constant 3 : index
    %c0_447 = arith.constant 0 : index
    %c0_448 = arith.constant 0 : index
    %246 = vector.load %arg1[%c1_445, %c3_446, %c0_447, %c0_448] : memref<2x17x17x128xbf16, #tpu.memory_space<vmem>>, vector<1x1x16x128xbf16>
    %247 = vector.shape_cast %246 : vector<1x1x16x128xbf16> to vector<16x128xbf16>
    %c288_449 = arith.constant 288 : index
    %c256_450 = arith.constant 256 : index
    %248 = vector.load %arg5[%c288_449, %c256_450] : memref<512x512xbf16, #tpu.memory_space<vmem>>, vector<16x128xbf16>
    tpu.vector_store %arg5[%c288_449, %c256_450], %247 {strides = array<i32>} : memref<512x512xbf16, #tpu.memory_space<vmem>>, vector<16x128xbf16>,
    %c1_451 = arith.constant 1 : index
    %c4_452 = arith.constant 4 : index
    %c0_453 = arith.constant 0 : index
    %c0_454 = arith.constant 0 : index
    %249 = vector.load %arg1[%c1_451, %c4_452, %c0_453, %c0_454] : memref<2x17x17x128xbf16, #tpu.memory_space<vmem>>, vector<1x1x16x128xbf16>
    %250 = vector.shape_cast %249 : vector<1x1x16x128xbf16> to vector<16x128xbf16>
    %c304_455 = arith.constant 304 : index
    %c256_456 = arith.constant 256 : index
    %251 = vector.load %arg5[%c304_455, %c256_456] : memref<512x512xbf16, #tpu.memory_space<vmem>>, vector<16x128xbf16>
    tpu.vector_store %arg5[%c304_455, %c256_456], %250 {strides = array<i32>} : memref<512x512xbf16, #tpu.memory_space<vmem>>, vector<16x128xbf16>,
    %c1_457 = arith.constant 1 : index
    %c5_458 = arith.constant 5 : index
    %c0_459 = arith.constant 0 : index
    %c0_460 = arith.constant 0 : index
    %252 = vector.load %arg1[%c1_457, %c5_458, %c0_459, %c0_460] : memref<2x17x17x128xbf16, #tpu.memory_space<vmem>>, vector<1x1x16x128xbf16>
    %253 = vector.shape_cast %252 : vector<1x1x16x128xbf16> to vector<16x128xbf16>
    %c320_461 = arith.constant 320 : index
    %c256_462 = arith.constant 256 : index
    %254 = vector.load %arg5[%c320_461, %c256_462] : memref<512x512xbf16, #tpu.memory_space<vmem>>, vector<16x128xbf16>
    tpu.vector_store %arg5[%c320_461, %c256_462], %253 {strides = array<i32>} : memref<512x512xbf16, #tpu.memory_space<vmem>>, vector<16x128xbf16>,
    %c1_463 = arith.constant 1 : index
    %c6_464 = arith.constant 6 : index
    %c0_465 = arith.constant 0 : index
    %c0_466 = arith.constant 0 : index
    %255 = vector.load %arg1[%c1_463, %c6_464, %c0_465, %c0_466] : memref<2x17x17x128xbf16, #tpu.memory_space<vmem>>, vector<1x1x16x128xbf16>
    %256 = vector.shape_cast %255 : vector<1x1x16x128xbf16> to vector<16x128xbf16>
    %c336_467 = arith.constant 336 : index
    %c256_468 = arith.constant 256 : index
    %257 = vector.load %arg5[%c336_467, %c256_468] : memref<512x512xbf16, #tpu.memory_space<vmem>>, vector<16x128xbf16>
    tpu.vector_store %arg5[%c336_467, %c256_468], %256 {strides = array<i32>} : memref<512x512xbf16, #tpu.memory_space<vmem>>, vector<16x128xbf16>,
    %c1_469 = arith.constant 1 : index
    %c7_470 = arith.constant 7 : index
    %c0_471 = arith.constant 0 : index
    %c0_472 = arith.constant 0 : index
    %258 = vector.load %arg1[%c1_469, %c7_470, %c0_471, %c0_472] : memref<2x17x17x128xbf16, #tpu.memory_space<vmem>>, vector<1x1x16x128xbf16>
    %259 = vector.shape_cast %258 : vector<1x1x16x128xbf16> to vector<16x128xbf16>
    %c352_473 = arith.constant 352 : index
    %c256_474 = arith.constant 256 : index
    %260 = vector.load %arg5[%c352_473, %c256_474] : memref<512x512xbf16, #tpu.memory_space<vmem>>, vector<16x128xbf16>
    tpu.vector_store %arg5[%c352_473, %c256_474], %259 {strides = array<i32>} : memref<512x512xbf16, #tpu.memory_space<vmem>>, vector<16x128xbf16>,
    %c1_475 = arith.constant 1 : index
    %c8_476 = arith.constant 8 : index
    %c0_477 = arith.constant 0 : index
    %c0_478 = arith.constant 0 : index
    %261 = vector.load %arg1[%c1_475, %c8_476, %c0_477, %c0_478] : memref<2x17x17x128xbf16, #tpu.memory_space<vmem>>, vector<1x1x16x128xbf16>
    %262 = vector.shape_cast %261 : vector<1x1x16x128xbf16> to vector<16x128xbf16>
    %c368_479 = arith.constant 368 : index
    %c256_480 = arith.constant 256 : index
    %263 = vector.load %arg5[%c368_479, %c256_480] : memref<512x512xbf16, #tpu.memory_space<vmem>>, vector<16x128xbf16>
    tpu.vector_store %arg5[%c368_479, %c256_480], %262 {strides = array<i32>} : memref<512x512xbf16, #tpu.memory_space<vmem>>, vector<16x128xbf16>,
    %c1_481 = arith.constant 1 : index
    %c9_482 = arith.constant 9 : index
    %c0_483 = arith.constant 0 : index
    %c0_484 = arith.constant 0 : index
    %264 = vector.load %arg1[%c1_481, %c9_482, %c0_483, %c0_484] : memref<2x17x17x128xbf16, #tpu.memory_space<vmem>>, vector<1x1x16x128xbf16>
    %265 = vector.shape_cast %264 : vector<1x1x16x128xbf16> to vector<16x128xbf16>
    %c384_485 = arith.constant 384 : index
    %c256_486 = arith.constant 256 : index
    %266 = vector.load %arg5[%c384_485, %c256_486] : memref<512x512xbf16, #tpu.memory_space<vmem>>, vector<16x128xbf16>
    tpu.vector_store %arg5[%c384_485, %c256_486], %265 {strides = array<i32>} : memref<512x512xbf16, #tpu.memory_space<vmem>>, vector<16x128xbf16>,
    %c1_487 = arith.constant 1 : index
    %c10_488 = arith.constant 10 : index
    %c0_489 = arith.constant 0 : index
    %c0_490 = arith.constant 0 : index
    %267 = vector.load %arg1[%c1_487, %c10_488, %c0_489, %c0_490] : memref<2x17x17x128xbf16, #tpu.memory_space<vmem>>, vector<1x1x16x128xbf16>
    %268 = vector.shape_cast %267 : vector<1x1x16x128xbf16> to vector<16x128xbf16>
    %c400_491 = arith.constant 400 : index
    %c256_492 = arith.constant 256 : index
    %269 = vector.load %arg5[%c400_491, %c256_492] : memref<512x512xbf16, #tpu.memory_space<vmem>>, vector<16x128xbf16>
    tpu.vector_store %arg5[%c400_491, %c256_492], %268 {strides = array<i32>} : memref<512x512xbf16, #tpu.memory_space<vmem>>, vector<16x128xbf16>,
    %c1_493 = arith.constant 1 : index
    %c11_494 = arith.constant 11 : index
    %c0_495 = arith.constant 0 : index
    %c0_496 = arith.constant 0 : index
    %270 = vector.load %arg1[%c1_493, %c11_494, %c0_495, %c0_496] : memref<2x17x17x128xbf16, #tpu.memory_space<vmem>>, vector<1x1x16x128xbf16>
    %271 = vector.shape_cast %270 : vector<1x1x16x128xbf16> to vector<16x128xbf16>
    %c416_497 = arith.constant 416 : index
    %c256_498 = arith.constant 256 : index
    %272 = vector.load %arg5[%c416_497, %c256_498] : memref<512x512xbf16, #tpu.memory_space<vmem>>, vector<16x128xbf16>
    tpu.vector_store %arg5[%c416_497, %c256_498], %271 {strides = array<i32>} : memref<512x512xbf16, #tpu.memory_space<vmem>>, vector<16x128xbf16>,
    %c1_499 = arith.constant 1 : index
    %c12_500 = arith.constant 12 : index
    %c0_501 = arith.constant 0 : index
    %c0_502 = arith.constant 0 : index
    %273 = vector.load %arg1[%c1_499, %c12_500, %c0_501, %c0_502] : memref<2x17x17x128xbf16, #tpu.memory_space<vmem>>, vector<1x1x16x128xbf16>
    %274 = vector.shape_cast %273 : vector<1x1x16x128xbf16> to vector<16x128xbf16>
    %c432_503 = arith.constant 432 : index
    %c256_504 = arith.constant 256 : index
    %275 = vector.load %arg5[%c432_503, %c256_504] : memref<512x512xbf16, #tpu.memory_space<vmem>>, vector<16x128xbf16>
    tpu.vector_store %arg5[%c432_503, %c256_504], %274 {strides = array<i32>} : memref<512x512xbf16, #tpu.memory_space<vmem>>, vector<16x128xbf16>,
    %c1_505 = arith.constant 1 : index
    %c13_506 = arith.constant 13 : index
    %c0_507 = arith.constant 0 : index
    %c0_508 = arith.constant 0 : index
    %276 = vector.load %arg1[%c1_505, %c13_506, %c0_507, %c0_508] : memref<2x17x17x128xbf16, #tpu.memory_space<vmem>>, vector<1x1x16x128xbf16>
    %277 = vector.shape_cast %276 : vector<1x1x16x128xbf16> to vector<16x128xbf16>
    %c448_509 = arith.constant 448 : index
    %c256_510 = arith.constant 256 : index
    %278 = vector.load %arg5[%c448_509, %c256_510] : memref<512x512xbf16, #tpu.memory_space<vmem>>, vector<16x128xbf16>
    tpu.vector_store %arg5[%c448_509, %c256_510], %277 {strides = array<i32>} : memref<512x512xbf16, #tpu.memory_space<vmem>>, vector<16x128xbf16>,
    %c1_511 = arith.constant 1 : index
    %c14_512 = arith.constant 14 : index
    %c0_513 = arith.constant 0 : index
    %c0_514 = arith.constant 0 : index
    %279 = vector.load %arg1[%c1_511, %c14_512, %c0_513, %c0_514] : memref<2x17x17x128xbf16, #tpu.memory_space<vmem>>, vector<1x1x16x128xbf16>
    %280 = vector.shape_cast %279 : vector<1x1x16x128xbf16> to vector<16x128xbf16>
    %c464_515 = arith.constant 464 : index
    %c256_516 = arith.constant 256 : index
    %281 = vector.load %arg5[%c464_515, %c256_516] : memref<512x512xbf16, #tpu.memory_space<vmem>>, vector<16x128xbf16>
    tpu.vector_store %arg5[%c464_515, %c256_516], %280 {strides = array<i32>} : memref<512x512xbf16, #tpu.memory_space<vmem>>, vector<16x128xbf16>,
    %c1_517 = arith.constant 1 : index
    %c15_518 = arith.constant 15 : index
    %c0_519 = arith.constant 0 : index
    %c0_520 = arith.constant 0 : index
    %282 = vector.load %arg1[%c1_517, %c15_518, %c0_519, %c0_520] : memref<2x17x17x128xbf16, #tpu.memory_space<vmem>>, vector<1x1x16x128xbf16>
    %283 = vector.shape_cast %282 : vector<1x1x16x128xbf16> to vector<16x128xbf16>
    %c480_521 = arith.constant 480 : index
    %c256_522 = arith.constant 256 : index
    %284 = vector.load %arg5[%c480_521, %c256_522] : memref<512x512xbf16, #tpu.memory_space<vmem>>, vector<16x128xbf16>
    tpu.vector_store %arg5[%c480_521, %c256_522], %283 {strides = array<i32>} : memref<512x512xbf16, #tpu.memory_space<vmem>>, vector<16x128xbf16>,
    %c1_523 = arith.constant 1 : index
    %c16_524 = arith.constant 16 : index
    %c0_525 = arith.constant 0 : index
    %c0_526 = arith.constant 0 : index
    %285 = vector.load %arg1[%c1_523, %c16_524, %c0_525, %c0_526] : memref<2x17x17x128xbf16, #tpu.memory_space<vmem>>, vector<1x1x16x128xbf16>
    %286 = vector.shape_cast %285 : vector<1x1x16x128xbf16> to vector<16x128xbf16>
    %c496_527 = arith.constant 496 : index
    %c256_528 = arith.constant 256 : index
    %287 = vector.load %arg5[%c496_527, %c256_528] : memref<512x512xbf16, #tpu.memory_space<vmem>>, vector<16x128xbf16>
    tpu.vector_store %arg5[%c496_527, %c256_528], %286 {strides = array<i32>} : memref<512x512xbf16, #tpu.memory_space<vmem>>, vector<16x128xbf16>,
    %c0_529 = arith.constant 0 : index
    %c1_530 = arith.constant 1 : index
    %c1_531 = arith.constant 1 : index
    %c0_532 = arith.constant 0 : index
    %288 = vector.load %arg1[%c0_529, %c1_530, %c1_531, %c0_532] : memref<2x17x17x128xbf16, #tpu.memory_space<vmem>>, vector<1x1x16x128xbf16>
    %289 = vector.shape_cast %288 : vector<1x1x16x128xbf16> to vector<16x128xbf16>
    %c0_533 = arith.constant 0 : index
    %c384_534 = arith.constant 384 : index
    %290 = vector.load %arg5[%c0_533, %c384_534] : memref<512x512xbf16, #tpu.memory_space<vmem>>, vector<16x128xbf16>
    tpu.vector_store %arg5[%c0_533, %c384_534], %289 {strides = array<i32>} : memref<512x512xbf16, #tpu.memory_space<vmem>>, vector<16x128xbf16>,
    %c0_535 = arith.constant 0 : index
    %c2_536 = arith.constant 2 : index
    %c1_537 = arith.constant 1 : index
    %c0_538 = arith.constant 0 : index
    %291 = vector.load %arg1[%c0_535, %c2_536, %c1_537, %c0_538] : memref<2x17x17x128xbf16, #tpu.memory_space<vmem>>, vector<1x1x16x128xbf16>
    %292 = vector.shape_cast %291 : vector<1x1x16x128xbf16> to vector<16x128xbf16>
    %c16_539 = arith.constant 16 : index
    %c384_540 = arith.constant 384 : index
    %293 = vector.load %arg5[%c16_539, %c384_540] : memref<512x512xbf16, #tpu.memory_space<vmem>>, vector<16x128xbf16>
    tpu.vector_store %arg5[%c16_539, %c384_540], %292 {strides = array<i32>} : memref<512x512xbf16, #tpu.memory_space<vmem>>, vector<16x128xbf16>,
    %c0_541 = arith.constant 0 : index
    %c3_542 = arith.constant 3 : index
    %c1_543 = arith.constant 1 : index
    %c0_544 = arith.constant 0 : index
    %294 = vector.load %arg1[%c0_541, %c3_542, %c1_543, %c0_544] : memref<2x17x17x128xbf16, #tpu.memory_space<vmem>>, vector<1x1x16x128xbf16>
    %295 = vector.shape_cast %294 : vector<1x1x16x128xbf16> to vector<16x128xbf16>
    %c32_545 = arith.constant 32 : index
    %c384_546 = arith.constant 384 : index
    %296 = vector.load %arg5[%c32_545, %c384_546] : memref<512x512xbf16, #tpu.memory_space<vmem>>, vector<16x128xbf16>
    tpu.vector_store %arg5[%c32_545, %c384_546], %295 {strides = array<i32>} : memref<512x512xbf16, #tpu.memory_space<vmem>>, vector<16x128xbf16>,
    %c0_547 = arith.constant 0 : index
    %c4_548 = arith.constant 4 : index
    %c1_549 = arith.constant 1 : index
    %c0_550 = arith.constant 0 : index
    %297 = vector.load %arg1[%c0_547, %c4_548, %c1_549, %c0_550] : memref<2x17x17x128xbf16, #tpu.memory_space<vmem>>, vector<1x1x16x128xbf16>
    %298 = vector.shape_cast %297 : vector<1x1x16x128xbf16> to vector<16x128xbf16>
    %c48_551 = arith.constant 48 : index
    %c384_552 = arith.constant 384 : index
    %299 = vector.load %arg5[%c48_551, %c384_552] : memref<512x512xbf16, #tpu.memory_space<vmem>>, vector<16x128xbf16>
    tpu.vector_store %arg5[%c48_551, %c384_552], %298 {strides = array<i32>} : memref<512x512xbf16, #tpu.memory_space<vmem>>, vector<16x128xbf16>,
    %c0_553 = arith.constant 0 : index
    %c5_554 = arith.constant 5 : index
    %c1_555 = arith.constant 1 : index
    %c0_556 = arith.constant 0 : index
    %300 = vector.load %arg1[%c0_553, %c5_554, %c1_555, %c0_556] : memref<2x17x17x128xbf16, #tpu.memory_space<vmem>>, vector<1x1x16x128xbf16>
    %301 = vector.shape_cast %300 : vector<1x1x16x128xbf16> to vector<16x128xbf16>
    %c64_557 = arith.constant 64 : index
    %c384_558 = arith.constant 384 : index
    %302 = vector.load %arg5[%c64_557, %c384_558] : memref<512x512xbf16, #tpu.memory_space<vmem>>, vector<16x128xbf16>
    tpu.vector_store %arg5[%c64_557, %c384_558], %301 {strides = array<i32>} : memref<512x512xbf16, #tpu.memory_space<vmem>>, vector<16x128xbf16>,
    %c0_559 = arith.constant 0 : index
    %c6_560 = arith.constant 6 : index
    %c1_561 = arith.constant 1 : index
    %c0_562 = arith.constant 0 : index
    %303 = vector.load %arg1[%c0_559, %c6_560, %c1_561, %c0_562] : memref<2x17x17x128xbf16, #tpu.memory_space<vmem>>, vector<1x1x16x128xbf16>
    %304 = vector.shape_cast %303 : vector<1x1x16x128xbf16> to vector<16x128xbf16>
    %c80_563 = arith.constant 80 : index
    %c384_564 = arith.constant 384 : index
    %305 = vector.load %arg5[%c80_563, %c384_564] : memref<512x512xbf16, #tpu.memory_space<vmem>>, vector<16x128xbf16>
    tpu.vector_store %arg5[%c80_563, %c384_564], %304 {strides = array<i32>} : memref<512x512xbf16, #tpu.memory_space<vmem>>, vector<16x128xbf16>,
    %c0_565 = arith.constant 0 : index
    %c7_566 = arith.constant 7 : index
    %c1_567 = arith.constant 1 : index
    %c0_568 = arith.constant 0 : index
    %306 = vector.load %arg1[%c0_565, %c7_566, %c1_567, %c0_568] : memref<2x17x17x128xbf16, #tpu.memory_space<vmem>>, vector<1x1x16x128xbf16>
    %307 = vector.shape_cast %306 : vector<1x1x16x128xbf16> to vector<16x128xbf16>
    %c96_569 = arith.constant 96 : index
    %c384_570 = arith.constant 384 : index
    %308 = vector.load %arg5[%c96_569, %c384_570] : memref<512x512xbf16, #tpu.memory_space<vmem>>, vector<16x128xbf16>
    tpu.vector_store %arg5[%c96_569, %c384_570], %307 {strides = array<i32>} : memref<512x512xbf16, #tpu.memory_space<vmem>>, vector<16x128xbf16>,
    %c0_571 = arith.constant 0 : index
    %c8_572 = arith.constant 8 : index
    %c1_573 = arith.constant 1 : index
    %c0_574 = arith.constant 0 : index
    %309 = vector.load %arg1[%c0_571, %c8_572, %c1_573, %c0_574] : memref<2x17x17x128xbf16, #tpu.memory_space<vmem>>, vector<1x1x16x128xbf16>
    %310 = vector.shape_cast %309 : vector<1x1x16x128xbf16> to vector<16x128xbf16>
    %c112_575 = arith.constant 112 : index
    %c384_576 = arith.constant 384 : index
    %311 = vector.load %arg5[%c112_575, %c384_576] : memref<512x512xbf16, #tpu.memory_space<vmem>>, vector<16x128xbf16>
    tpu.vector_store %arg5[%c112_575, %c384_576], %310 {strides = array<i32>} : memref<512x512xbf16, #tpu.memory_space<vmem>>, vector<16x128xbf16>,
    %c0_577 = arith.constant 0 : index
    %c9_578 = arith.constant 9 : index
    %c1_579 = arith.constant 1 : index
    %c0_580 = arith.constant 0 : index
    %312 = vector.load %arg1[%c0_577, %c9_578, %c1_579, %c0_580] : memref<2x17x17x128xbf16, #tpu.memory_space<vmem>>, vector<1x1x16x128xbf16>
    %313 = vector.shape_cast %312 : vector<1x1x16x128xbf16> to vector<16x128xbf16>
    %c128_581 = arith.constant 128 : index
    %c384_582 = arith.constant 384 : index
    %314 = vector.load %arg5[%c128_581, %c384_582] : memref<512x512xbf16, #tpu.memory_space<vmem>>, vector<16x128xbf16>
    tpu.vector_store %arg5[%c128_581, %c384_582], %313 {strides = array<i32>} : memref<512x512xbf16, #tpu.memory_space<vmem>>, vector<16x128xbf16>,
    %c0_583 = arith.constant 0 : index
    %c10_584 = arith.constant 10 : index
    %c1_585 = arith.constant 1 : index
    %c0_586 = arith.constant 0 : index
    %315 = vector.load %arg1[%c0_583, %c10_584, %c1_585, %c0_586] : memref<2x17x17x128xbf16, #tpu.memory_space<vmem>>, vector<1x1x16x128xbf16>
    %316 = vector.shape_cast %315 : vector<1x1x16x128xbf16> to vector<16x128xbf16>
    %c144_587 = arith.constant 144 : index
    %c384_588 = arith.constant 384 : index
    %317 = vector.load %arg5[%c144_587, %c384_588] : memref<512x512xbf16, #tpu.memory_space<vmem>>, vector<16x128xbf16>
    tpu.vector_store %arg5[%c144_587, %c384_588], %316 {strides = array<i32>} : memref<512x512xbf16, #tpu.memory_space<vmem>>, vector<16x128xbf16>,
    %c0_589 = arith.constant 0 : index
    %c11_590 = arith.constant 11 : index
    %c1_591 = arith.constant 1 : index
    %c0_592 = arith.constant 0 : index
    %318 = vector.load %arg1[%c0_589, %c11_590, %c1_591, %c0_592] : memref<2x17x17x128xbf16, #tpu.memory_space<vmem>>, vector<1x1x16x128xbf16>
    %319 = vector.shape_cast %318 : vector<1x1x16x128xbf16> to vector<16x128xbf16>
    %c160_593 = arith.constant 160 : index
    %c384_594 = arith.constant 384 : index
    %320 = vector.load %arg5[%c160_593, %c384_594] : memref<512x512xbf16, #tpu.memory_space<vmem>>, vector<16x128xbf16>
    tpu.vector_store %arg5[%c160_593, %c384_594], %319 {strides = array<i32>} : memref<512x512xbf16, #tpu.memory_space<vmem>>, vector<16x128xbf16>,
    %c0_595 = arith.constant 0 : index
    %c12_596 = arith.constant 12 : index
    %c1_597 = arith.constant 1 : index
    %c0_598 = arith.constant 0 : index
    %321 = vector.load %arg1[%c0_595, %c12_596, %c1_597, %c0_598] : memref<2x17x17x128xbf16, #tpu.memory_space<vmem>>, vector<1x1x16x128xbf16>
    %322 = vector.shape_cast %321 : vector<1x1x16x128xbf16> to vector<16x128xbf16>
    %c176_599 = arith.constant 176 : index
    %c384_600 = arith.constant 384 : index
    %323 = vector.load %arg5[%c176_599, %c384_600] : memref<512x512xbf16, #tpu.memory_space<vmem>>, vector<16x128xbf16>
    tpu.vector_store %arg5[%c176_599, %c384_600], %322 {strides = array<i32>} : memref<512x512xbf16, #tpu.memory_space<vmem>>, vector<16x128xbf16>,
    %c0_601 = arith.constant 0 : index
    %c13_602 = arith.constant 13 : index
    %c1_603 = arith.constant 1 : index
    %c0_604 = arith.constant 0 : index
    %324 = vector.load %arg1[%c0_601, %c13_602, %c1_603, %c0_604] : memref<2x17x17x128xbf16, #tpu.memory_space<vmem>>, vector<1x1x16x128xbf16>
    %325 = vector.shape_cast %324 : vector<1x1x16x128xbf16> to vector<16x128xbf16>
    %c192_605 = arith.constant 192 : index
    %c384_606 = arith.constant 384 : index
    %326 = vector.load %arg5[%c192_605, %c384_606] : memref<512x512xbf16, #tpu.memory_space<vmem>>, vector<16x128xbf16>
    tpu.vector_store %arg5[%c192_605, %c384_606], %325 {strides = array<i32>} : memref<512x512xbf16, #tpu.memory_space<vmem>>, vector<16x128xbf16>,
    %c0_607 = arith.constant 0 : index
    %c14_608 = arith.constant 14 : index
    %c1_609 = arith.constant 1 : index
    %c0_610 = arith.constant 0 : index
    %327 = vector.load %arg1[%c0_607, %c14_608, %c1_609, %c0_610] : memref<2x17x17x128xbf16, #tpu.memory_space<vmem>>, vector<1x1x16x128xbf16>
    %328 = vector.shape_cast %327 : vector<1x1x16x128xbf16> to vector<16x128xbf16>
    %c208_611 = arith.constant 208 : index
    %c384_612 = arith.constant 384 : index
    %329 = vector.load %arg5[%c208_611, %c384_612] : memref<512x512xbf16, #tpu.memory_space<vmem>>, vector<16x128xbf16>
    tpu.vector_store %arg5[%c208_611, %c384_612], %328 {strides = array<i32>} : memref<512x512xbf16, #tpu.memory_space<vmem>>, vector<16x128xbf16>,
    %c0_613 = arith.constant 0 : index
    %c15_614 = arith.constant 15 : index
    %c1_615 = arith.constant 1 : index
    %c0_616 = arith.constant 0 : index
    %330 = vector.load %arg1[%c0_613, %c15_614, %c1_615, %c0_616] : memref<2x17x17x128xbf16, #tpu.memory_space<vmem>>, vector<1x1x16x128xbf16>
    %331 = vector.shape_cast %330 : vector<1x1x16x128xbf16> to vector<16x128xbf16>
    %c224_617 = arith.constant 224 : index
    %c384_618 = arith.constant 384 : index
    %332 = vector.load %arg5[%c224_617, %c384_618] : memref<512x512xbf16, #tpu.memory_space<vmem>>, vector<16x128xbf16>
    tpu.vector_store %arg5[%c224_617, %c384_618], %331 {strides = array<i32>} : memref<512x512xbf16, #tpu.memory_space<vmem>>, vector<16x128xbf16>,
    %c0_619 = arith.constant 0 : index
    %c16_620 = arith.constant 16 : index
    %c1_621 = arith.constant 1 : index
    %c0_622 = arith.constant 0 : index
    %333 = vector.load %arg1[%c0_619, %c16_620, %c1_621, %c0_622] : memref<2x17x17x128xbf16, #tpu.memory_space<vmem>>, vector<1x1x16x128xbf16>
    %334 = vector.shape_cast %333 : vector<1x1x16x128xbf16> to vector<16x128xbf16>
    %c240_623 = arith.constant 240 : index
    %c384_624 = arith.constant 384 : index
    %335 = vector.load %arg5[%c240_623, %c384_624] : memref<512x512xbf16, #tpu.memory_space<vmem>>, vector<16x128xbf16>
    tpu.vector_store %arg5[%c240_623, %c384_624], %334 {strides = array<i32>} : memref<512x512xbf16, #tpu.memory_space<vmem>>, vector<16x128xbf16>,
    %c1_625 = arith.constant 1 : index
    %c1_626 = arith.constant 1 : index
    %c1_627 = arith.constant 1 : index
    %c0_628 = arith.constant 0 : index
    %336 = vector.load %arg1[%c1_625, %c1_626, %c1_627, %c0_628] : memref<2x17x17x128xbf16, #tpu.memory_space<vmem>>, vector<1x1x16x128xbf16>
    %337 = vector.shape_cast %336 : vector<1x1x16x128xbf16> to vector<16x128xbf16>
    %c256_629 = arith.constant 256 : index
    %c384_630 = arith.constant 384 : index
    %338 = vector.load %arg5[%c256_629, %c384_630] : memref<512x512xbf16, #tpu.memory_space<vmem>>, vector<16x128xbf16>
    tpu.vector_store %arg5[%c256_629, %c384_630], %337 {strides = array<i32>} : memref<512x512xbf16, #tpu.memory_space<vmem>>, vector<16x128xbf16>,
    %c1_631 = arith.constant 1 : index
    %c2_632 = arith.constant 2 : index
    %c1_633 = arith.constant 1 : index
    %c0_634 = arith.constant 0 : index
    %339 = vector.load %arg1[%c1_631, %c2_632, %c1_633, %c0_634] : memref<2x17x17x128xbf16, #tpu.memory_space<vmem>>, vector<1x1x16x128xbf16>
    %340 = vector.shape_cast %339 : vector<1x1x16x128xbf16> to vector<16x128xbf16>
    %c272_635 = arith.constant 272 : index
    %c384_636 = arith.constant 384 : index
    %341 = vector.load %arg5[%c272_635, %c384_636] : memref<512x512xbf16, #tpu.memory_space<vmem>>, vector<16x128xbf16>
    tpu.vector_store %arg5[%c272_635, %c384_636], %340 {strides = array<i32>} : memref<512x512xbf16, #tpu.memory_space<vmem>>, vector<16x128xbf16>,
    %c1_637 = arith.constant 1 : index
    %c3_638 = arith.constant 3 : index
    %c1_639 = arith.constant 1 : index
    %c0_640 = arith.constant 0 : index
    %342 = vector.load %arg1[%c1_637, %c3_638, %c1_639, %c0_640] : memref<2x17x17x128xbf16, #tpu.memory_space<vmem>>, vector<1x1x16x128xbf16>
    %343 = vector.shape_cast %342 : vector<1x1x16x128xbf16> to vector<16x128xbf16>
    %c288_641 = arith.constant 288 : index
    %c384_642 = arith.constant 384 : index
    %344 = vector.load %arg5[%c288_641, %c384_642] : memref<512x512xbf16, #tpu.memory_space<vmem>>, vector<16x128xbf16>
    tpu.vector_store %arg5[%c288_641, %c384_642], %343 {strides = array<i32>} : memref<512x512xbf16, #tpu.memory_space<vmem>>, vector<16x128xbf16>,
    %c1_643 = arith.constant 1 : index
    %c4_644 = arith.constant 4 : index
    %c1_645 = arith.constant 1 : index
    %c0_646 = arith.constant 0 : index
    %345 = vector.load %arg1[%c1_643, %c4_644, %c1_645, %c0_646] : memref<2x17x17x128xbf16, #tpu.memory_space<vmem>>, vector<1x1x16x128xbf16>
    %346 = vector.shape_cast %345 : vector<1x1x16x128xbf16> to vector<16x128xbf16>
    %c304_647 = arith.constant 304 : index
    %c384_648 = arith.constant 384 : index
    %347 = vector.load %arg5[%c304_647, %c384_648] : memref<512x512xbf16, #tpu.memory_space<vmem>>, vector<16x128xbf16>
    tpu.vector_store %arg5[%c304_647, %c384_648], %346 {strides = array<i32>} : memref<512x512xbf16, #tpu.memory_space<vmem>>, vector<16x128xbf16>,
    %c1_649 = arith.constant 1 : index
    %c5_650 = arith.constant 5 : index
    %c1_651 = arith.constant 1 : index
    %c0_652 = arith.constant 0 : index
    %348 = vector.load %arg1[%c1_649, %c5_650, %c1_651, %c0_652] : memref<2x17x17x128xbf16, #tpu.memory_space<vmem>>, vector<1x1x16x128xbf16>
    %349 = vector.shape_cast %348 : vector<1x1x16x128xbf16> to vector<16x128xbf16>
    %c320_653 = arith.constant 320 : index
    %c384_654 = arith.constant 384 : index
    %350 = vector.load %arg5[%c320_653, %c384_654] : memref<512x512xbf16, #tpu.memory_space<vmem>>, vector<16x128xbf16>
    tpu.vector_store %arg5[%c320_653, %c384_654], %349 {strides = array<i32>} : memref<512x512xbf16, #tpu.memory_space<vmem>>, vector<16x128xbf16>,
    %c1_655 = arith.constant 1 : index
    %c6_656 = arith.constant 6 : index
    %c1_657 = arith.constant 1 : index
    %c0_658 = arith.constant 0 : index
    %351 = vector.load %arg1[%c1_655, %c6_656, %c1_657, %c0_658] : memref<2x17x17x128xbf16, #tpu.memory_space<vmem>>, vector<1x1x16x128xbf16>
    %352 = vector.shape_cast %351 : vector<1x1x16x128xbf16> to vector<16x128xbf16>
    %c336_659 = arith.constant 336 : index
    %c384_660 = arith.constant 384 : index
    %353 = vector.load %arg5[%c336_659, %c384_660] : memref<512x512xbf16, #tpu.memory_space<vmem>>, vector<16x128xbf16>
    tpu.vector_store %arg5[%c336_659, %c384_660], %352 {strides = array<i32>} : memref<512x512xbf16, #tpu.memory_space<vmem>>, vector<16x128xbf16>,
    %c1_661 = arith.constant 1 : index
    %c7_662 = arith.constant 7 : index
    %c1_663 = arith.constant 1 : index
    %c0_664 = arith.constant 0 : index
    %354 = vector.load %arg1[%c1_661, %c7_662, %c1_663, %c0_664] : memref<2x17x17x128xbf16, #tpu.memory_space<vmem>>, vector<1x1x16x128xbf16>
    %355 = vector.shape_cast %354 : vector<1x1x16x128xbf16> to vector<16x128xbf16>
    %c352_665 = arith.constant 352 : index
    %c384_666 = arith.constant 384 : index
    %356 = vector.load %arg5[%c352_665, %c384_666] : memref<512x512xbf16, #tpu.memory_space<vmem>>, vector<16x128xbf16>
    tpu.vector_store %arg5[%c352_665, %c384_666], %355 {strides = array<i32>} : memref<512x512xbf16, #tpu.memory_space<vmem>>, vector<16x128xbf16>,
    %c1_667 = arith.constant 1 : index
    %c8_668 = arith.constant 8 : index
    %c1_669 = arith.constant 1 : index
    %c0_670 = arith.constant 0 : index
    %357 = vector.load %arg1[%c1_667, %c8_668, %c1_669, %c0_670] : memref<2x17x17x128xbf16, #tpu.memory_space<vmem>>, vector<1x1x16x128xbf16>
    %358 = vector.shape_cast %357 : vector<1x1x16x128xbf16> to vector<16x128xbf16>
    %c368_671 = arith.constant 368 : index
    %c384_672 = arith.constant 384 : index
    %359 = vector.load %arg5[%c368_671, %c384_672] : memref<512x512xbf16, #tpu.memory_space<vmem>>, vector<16x128xbf16>
    tpu.vector_store %arg5[%c368_671, %c384_672], %358 {strides = array<i32>} : memref<512x512xbf16, #tpu.memory_space<vmem>>, vector<16x128xbf16>,
    %c1_673 = arith.constant 1 : index
    %c9_674 = arith.constant 9 : index
    %c1_675 = arith.constant 1 : index
    %c0_676 = arith.constant 0 : index
    %360 = vector.load %arg1[%c1_673, %c9_674, %c1_675, %c0_676] : memref<2x17x17x128xbf16, #tpu.memory_space<vmem>>, vector<1x1x16x128xbf16>
    %361 = vector.shape_cast %360 : vector<1x1x16x128xbf16> to vector<16x128xbf16>
    %c384_677 = arith.constant 384 : index
    %c384_678 = arith.constant 384 : index
    %362 = vector.load %arg5[%c384_677, %c384_678] : memref<512x512xbf16, #tpu.memory_space<vmem>>, vector<16x128xbf16>
    tpu.vector_store %arg5[%c384_677, %c384_678], %361 {strides = array<i32>} : memref<512x512xbf16, #tpu.memory_space<vmem>>, vector<16x128xbf16>,
    %c1_679 = arith.constant 1 : index
    %c10_680 = arith.constant 10 : index
    %c1_681 = arith.constant 1 : index
    %c0_682 = arith.constant 0 : index
    %363 = vector.load %arg1[%c1_679, %c10_680, %c1_681, %c0_682] : memref<2x17x17x128xbf16, #tpu.memory_space<vmem>>, vector<1x1x16x128xbf16>
    %364 = vector.shape_cast %363 : vector<1x1x16x128xbf16> to vector<16x128xbf16>
    %c400_683 = arith.constant 400 : index
    %c384_684 = arith.constant 384 : index
    %365 = vector.load %arg5[%c400_683, %c384_684] : memref<512x512xbf16, #tpu.memory_space<vmem>>, vector<16x128xbf16>
    tpu.vector_store %arg5[%c400_683, %c384_684], %364 {strides = array<i32>} : memref<512x512xbf16, #tpu.memory_space<vmem>>, vector<16x128xbf16>,
    %c1_685 = arith.constant 1 : index
    %c11_686 = arith.constant 11 : index
    %c1_687 = arith.constant 1 : index
    %c0_688 = arith.constant 0 : index
    %366 = vector.load %arg1[%c1_685, %c11_686, %c1_687, %c0_688] : memref<2x17x17x128xbf16, #tpu.memory_space<vmem>>, vector<1x1x16x128xbf16>
    %367 = vector.shape_cast %366 : vector<1x1x16x128xbf16> to vector<16x128xbf16>
    %c416_689 = arith.constant 416 : index
    %c384_690 = arith.constant 384 : index
    %368 = vector.load %arg5[%c416_689, %c384_690] : memref<512x512xbf16, #tpu.memory_space<vmem>>, vector<16x128xbf16>
    tpu.vector_store %arg5[%c416_689, %c384_690], %367 {strides = array<i32>} : memref<512x512xbf16, #tpu.memory_space<vmem>>, vector<16x128xbf16>,
    %c1_691 = arith.constant 1 : index
    %c12_692 = arith.constant 12 : index
    %c1_693 = arith.constant 1 : index
    %c0_694 = arith.constant 0 : index
    %369 = vector.load %arg1[%c1_691, %c12_692, %c1_693, %c0_694] : memref<2x17x17x128xbf16, #tpu.memory_space<vmem>>, vector<1x1x16x128xbf16>
    %370 = vector.shape_cast %369 : vector<1x1x16x128xbf16> to vector<16x128xbf16>
    %c432_695 = arith.constant 432 : index
    %c384_696 = arith.constant 384 : index
    %371 = vector.load %arg5[%c432_695, %c384_696] : memref<512x512xbf16, #tpu.memory_space<vmem>>, vector<16x128xbf16>
    tpu.vector_store %arg5[%c432_695, %c384_696], %370 {strides = array<i32>} : memref<512x512xbf16, #tpu.memory_space<vmem>>, vector<16x128xbf16>,
    %c1_697 = arith.constant 1 : index
    %c13_698 = arith.constant 13 : index
    %c1_699 = arith.constant 1 : index
    %c0_700 = arith.constant 0 : index
    %372 = vector.load %arg1[%c1_697, %c13_698, %c1_699, %c0_700] : memref<2x17x17x128xbf16, #tpu.memory_space<vmem>>, vector<1x1x16x128xbf16>
    %373 = vector.shape_cast %372 : vector<1x1x16x128xbf16> to vector<16x128xbf16>
    %c448_701 = arith.constant 448 : index
    %c384_702 = arith.constant 384 : index
    %374 = vector.load %arg5[%c448_701, %c384_702] : memref<512x512xbf16, #tpu.memory_space<vmem>>, vector<16x128xbf16>
    tpu.vector_store %arg5[%c448_701, %c384_702], %373 {strides = array<i32>} : memref<512x512xbf16, #tpu.memory_space<vmem>>, vector<16x128xbf16>,
    %c1_703 = arith.constant 1 : index
    %c14_704 = arith.constant 14 : index
    %c1_705 = arith.constant 1 : index
    %c0_706 = arith.constant 0 : index
    %375 = vector.load %arg1[%c1_703, %c14_704, %c1_705, %c0_706] : memref<2x17x17x128xbf16, #tpu.memory_space<vmem>>, vector<1x1x16x128xbf16>
    %376 = vector.shape_cast %375 : vector<1x1x16x128xbf16> to vector<16x128xbf16>
    %c464_707 = arith.constant 464 : index
    %c384_708 = arith.constant 384 : index
    %377 = vector.load %arg5[%c464_707, %c384_708] : memref<512x512xbf16, #tpu.memory_space<vmem>>, vector<16x128xbf16>
    tpu.vector_store %arg5[%c464_707, %c384_708], %376 {strides = array<i32>} : memref<512x512xbf16, #tpu.memory_space<vmem>>, vector<16x128xbf16>,
    %c1_709 = arith.constant 1 : index
    %c15_710 = arith.constant 15 : index
    %c1_711 = arith.constant 1 : index
    %c0_712 = arith.constant 0 : index
    %378 = vector.load %arg1[%c1_709, %c15_710, %c1_711, %c0_712] : memref<2x17x17x128xbf16, #tpu.memory_space<vmem>>, vector<1x1x16x128xbf16>
    %379 = vector.shape_cast %378 : vector<1x1x16x128xbf16> to vector<16x128xbf16>
    %c480_713 = arith.constant 480 : index
    %c384_714 = arith.constant 384 : index
    %380 = vector.load %arg5[%c480_713, %c384_714] : memref<512x512xbf16, #tpu.memory_space<vmem>>, vector<16x128xbf16>
    tpu.vector_store %arg5[%c480_713, %c384_714], %379 {strides = array<i32>} : memref<512x512xbf16, #tpu.memory_space<vmem>>, vector<16x128xbf16>,
    %c1_715 = arith.constant 1 : index
    %c16_716 = arith.constant 16 : index
    %c1_717 = arith.constant 1 : index
    %c0_718 = arith.constant 0 : index
    %381 = vector.load %arg1[%c1_715, %c16_716, %c1_717, %c0_718] : memref<2x17x17x128xbf16, #tpu.memory_space<vmem>>, vector<1x1x16x128xbf16>
    %382 = vector.shape_cast %381 : vector<1x1x16x128xbf16> to vector<16x128xbf16>
    %c496_719 = arith.constant 496 : index
    %c384_720 = arith.constant 384 : index
    %383 = vector.load %arg5[%c496_719, %c384_720] : memref<512x512xbf16, #tpu.memory_space<vmem>>, vector<16x128xbf16>
    tpu.vector_store %arg5[%c496_719, %c384_720], %382 {strides = array<i32>} : memref<512x512xbf16, #tpu.memory_space<vmem>>, vector<16x128xbf16>,
    %c0_721 = arith.constant 0 : index
    %c0_722 = arith.constant 0 : index
    %384 = vector.load %arg5[%c0_721, %c0_722] : memref<512x512xbf16, #tpu.memory_space<vmem>>, vector<512x512xbf16>
    %c0_723 = arith.constant 0 : index
    %c0_724 = arith.constant 0 : index
    %385 = vector.load %arg2[%c0_723, %c0_724] : memref<512x128xbf16, #tpu.memory_space<vmem>>, vector<512x128xbf16>
    %cst = arith.constant dense<0.000000e+00> : vector<512x128xf32>
    %386 = tpu.matmul %384, %385, %cst {dimension_numbers = #tpu.dot_dimension_numbers<[1], [0], [0], [1], [0, 0, 1, 1], [], []>} : vector<512x512xbf16>, vector<512x128xbf16>, vector<512x128xf32> -> vector<512x128xf32>
    %c0_725 = arith.constant 0 : index
    %c0_726 = arith.constant 0 : index
    %387 = vector.load %arg3[%c0_725, %c0_726] : memref<1x128xf32, #tpu.memory_space<vmem>>, vector<1x128xf32>
    %388 = vector.broadcast %387 : vector<1x128xf32> to vector<512x128xf32>
    %389 = arith.addf %386, %388 : vector<512x128xf32>
    %cst_727 = arith.constant 0.000000e+00 : f32
    %390 = vector.broadcast %cst_727 : f32 to vector<512x128xf32>
    %391 = arith.cmpf oge, %389, %390 : vector<512x128xf32>
    %cst_728 = arith.constant 2.000000e-01 : f32
    %392 = vector.broadcast %cst_728 : f32 to vector<512x128xf32>
    %393 = arith.mulf %392, %389 : vector<512x128xf32>
    %394 = arith.select %391, %389, %393 : vector<512x128xi1>, vector<512x128xf32>
    %395 = arith.truncf %394 : vector<512x128xf32> to vector<512x128xbf16>
    %c0_729 = arith.constant 0 : index
    %c0_730 = arith.constant 0 : index
    %396 = vector.load %arg4[%c0_729, %c0_730] : memref<512x128xbf16, #tpu.memory_space<vmem>>, vector<512x128xbf16>
    tpu.vector_store %arg4[%c0_729, %c0_730], %395 {strides = array<i32>} : memref<512x128xbf16, #tpu.memory_space<vmem>>, vector<512x128xbf16>,
    return
  }
  func.func @transform_0(%arg0: i32) -> (i32, i32, i32, i32) {
    %c0_i32 = arith.constant 0 : i32
    %c0_i32_0 = arith.constant 0 : i32
    %c0_i32_1 = arith.constant 0 : i32
    %c0_i32_2 = arith.constant 0 : i32
    %c0_i32_3 = arith.constant 0 : i32
    return %c0_i32, %c0_i32_0, %c0_i32_1, %c0_i32_2 : i32, i32, i32, i32
  }
  func.func @transform_1(%arg0: i32) -> (i32, i32) {
    %c0_i32 = arith.constant 0 : i32
    %c0_i32_0 = arith.constant 0 : i32
    %c0_i32_1 = arith.constant 0 : i32
    return %c0_i32, %c0_i32_0 : i32, i32
  }
  func.func @transform_2(%arg0: i32) -> (i32, i32) {
    %c0_i32 = arith.constant 0 : i32
    %c0_i32_0 = arith.constant 0 : i32
    %c0_i32_1 = arith.constant 0 : i32
    return %c0_i32, %c0_i32_0 : i32, i32
  }
  func.func @transform_3(%arg0: i32) -> (i32, i32) {
    %c0_i32 = arith.constant 0 : i32
    %c0_i32_0 = arith.constant 0 : i32
    %c0_i32_1 = arith.constant 0 : i32
    return %c0_i32, %c0_i32_0 : i32, i32
  }
}

module attributes {stable_mosaic.version = 11 : i64} {
  func.func @_conv_layer_kernel(%arg0: i32, %arg1: memref<2x9x9x128xbf16, #tpu.memory_space<vmem>>, %arg2: memref<512x128xbf16, #tpu.memory_space<vmem>>, %arg3: memref<1x128xf32, #tpu.memory_space<vmem>>, %arg4: memref<128x128xbf16, #tpu.memory_space<vmem>>, %arg5: memref<128x512xbf16, #tpu.memory_space<vmem>>) attributes {dimension_semantics = [#tpu.dimension_semantics<arbitrary>], iteration_bounds = array<i64: 1>, scalar_prefetch = 0 : i64, scratch_operands = 1 : i64, tpu.core_type = #tpu.core_type<tc>, window_params = [{pipeline_mode = #tpu.pipeline_mode<synchronous>, transform_indices = @transform_0, window_bounds = array<i64: 2, 9, 9, 128>}, {pipeline_mode = #tpu.pipeline_mode<synchronous>, transform_indices = @transform_1, window_bounds = array<i64: 512, 128>}, {pipeline_mode = #tpu.pipeline_mode<synchronous>, transform_indices = @transform_2, window_bounds = array<i64: 1, 128>}, {pipeline_mode = #tpu.pipeline_mode<synchronous>, transform_indices = @transform_3, window_bounds = array<i64: 128, 128>}]} {
    %c0 = arith.constant 0 : index
    %c0_0 = arith.constant 0 : index
    %c0_1 = arith.constant 0 : index
    %c0_2 = arith.constant 0 : index
    %0 = vector.load %arg1[%c0, %c0_0, %c0_1, %c0_2] : memref<2x9x9x128xbf16, #tpu.memory_space<vmem>>, vector<1x1x8x128xbf16>
    %1 = vector.shape_cast %0 : vector<1x1x8x128xbf16> to vector<8x128xbf16>
    %c0_3 = arith.constant 0 : index
    %c0_4 = arith.constant 0 : index
    %2 = vector.load %arg5[%c0_3, %c0_4] : memref<128x512xbf16, #tpu.memory_space<vmem>>, vector<8x128xbf16>
    tpu.vector_store %arg5[%c0_3, %c0_4], %1 {strides = array<i32>} : memref<128x512xbf16, #tpu.memory_space<vmem>>, vector<8x128xbf16>,
    %c0_5 = arith.constant 0 : index
    %c1 = arith.constant 1 : index
    %c0_6 = arith.constant 0 : index
    %c0_7 = arith.constant 0 : index
    %3 = vector.load %arg1[%c0_5, %c1, %c0_6, %c0_7] : memref<2x9x9x128xbf16, #tpu.memory_space<vmem>>, vector<1x1x8x128xbf16>
    %4 = vector.shape_cast %3 : vector<1x1x8x128xbf16> to vector<8x128xbf16>
    %c8 = arith.constant 8 : index
    %c0_8 = arith.constant 0 : index
    %5 = vector.load %arg5[%c8, %c0_8] : memref<128x512xbf16, #tpu.memory_space<vmem>>, vector<8x128xbf16>
    tpu.vector_store %arg5[%c8, %c0_8], %4 {strides = array<i32>} : memref<128x512xbf16, #tpu.memory_space<vmem>>, vector<8x128xbf16>,
    %c0_9 = arith.constant 0 : index
    %c2 = arith.constant 2 : index
    %c0_10 = arith.constant 0 : index
    %c0_11 = arith.constant 0 : index
    %6 = vector.load %arg1[%c0_9, %c2, %c0_10, %c0_11] : memref<2x9x9x128xbf16, #tpu.memory_space<vmem>>, vector<1x1x8x128xbf16>
    %7 = vector.shape_cast %6 : vector<1x1x8x128xbf16> to vector<8x128xbf16>
    %c16 = arith.constant 16 : index
    %c0_12 = arith.constant 0 : index
    %8 = vector.load %arg5[%c16, %c0_12] : memref<128x512xbf16, #tpu.memory_space<vmem>>, vector<8x128xbf16>
    tpu.vector_store %arg5[%c16, %c0_12], %7 {strides = array<i32>} : memref<128x512xbf16, #tpu.memory_space<vmem>>, vector<8x128xbf16>,
    %c0_13 = arith.constant 0 : index
    %c3 = arith.constant 3 : index
    %c0_14 = arith.constant 0 : index
    %c0_15 = arith.constant 0 : index
    %9 = vector.load %arg1[%c0_13, %c3, %c0_14, %c0_15] : memref<2x9x9x128xbf16, #tpu.memory_space<vmem>>, vector<1x1x8x128xbf16>
    %10 = vector.shape_cast %9 : vector<1x1x8x128xbf16> to vector<8x128xbf16>
    %c24 = arith.constant 24 : index
    %c0_16 = arith.constant 0 : index
    %11 = vector.load %arg5[%c24, %c0_16] : memref<128x512xbf16, #tpu.memory_space<vmem>>, vector<8x128xbf16>
    tpu.vector_store %arg5[%c24, %c0_16], %10 {strides = array<i32>} : memref<128x512xbf16, #tpu.memory_space<vmem>>, vector<8x128xbf16>,
    %c0_17 = arith.constant 0 : index
    %c4 = arith.constant 4 : index
    %c0_18 = arith.constant 0 : index
    %c0_19 = arith.constant 0 : index
    %12 = vector.load %arg1[%c0_17, %c4, %c0_18, %c0_19] : memref<2x9x9x128xbf16, #tpu.memory_space<vmem>>, vector<1x1x8x128xbf16>
    %13 = vector.shape_cast %12 : vector<1x1x8x128xbf16> to vector<8x128xbf16>
    %c32 = arith.constant 32 : index
    %c0_20 = arith.constant 0 : index
    %14 = vector.load %arg5[%c32, %c0_20] : memref<128x512xbf16, #tpu.memory_space<vmem>>, vector<8x128xbf16>
    tpu.vector_store %arg5[%c32, %c0_20], %13 {strides = array<i32>} : memref<128x512xbf16, #tpu.memory_space<vmem>>, vector<8x128xbf16>,
    %c0_21 = arith.constant 0 : index
    %c5 = arith.constant 5 : index
    %c0_22 = arith.constant 0 : index
    %c0_23 = arith.constant 0 : index
    %15 = vector.load %arg1[%c0_21, %c5, %c0_22, %c0_23] : memref<2x9x9x128xbf16, #tpu.memory_space<vmem>>, vector<1x1x8x128xbf16>
    %16 = vector.shape_cast %15 : vector<1x1x8x128xbf16> to vector<8x128xbf16>
    %c40 = arith.constant 40 : index
    %c0_24 = arith.constant 0 : index
    %17 = vector.load %arg5[%c40, %c0_24] : memref<128x512xbf16, #tpu.memory_space<vmem>>, vector<8x128xbf16>
    tpu.vector_store %arg5[%c40, %c0_24], %16 {strides = array<i32>} : memref<128x512xbf16, #tpu.memory_space<vmem>>, vector<8x128xbf16>,
    %c0_25 = arith.constant 0 : index
    %c6 = arith.constant 6 : index
    %c0_26 = arith.constant 0 : index
    %c0_27 = arith.constant 0 : index
    %18 = vector.load %arg1[%c0_25, %c6, %c0_26, %c0_27] : memref<2x9x9x128xbf16, #tpu.memory_space<vmem>>, vector<1x1x8x128xbf16>
    %19 = vector.shape_cast %18 : vector<1x1x8x128xbf16> to vector<8x128xbf16>
    %c48 = arith.constant 48 : index
    %c0_28 = arith.constant 0 : index
    %20 = vector.load %arg5[%c48, %c0_28] : memref<128x512xbf16, #tpu.memory_space<vmem>>, vector<8x128xbf16>
    tpu.vector_store %arg5[%c48, %c0_28], %19 {strides = array<i32>} : memref<128x512xbf16, #tpu.memory_space<vmem>>, vector<8x128xbf16>,
    %c0_29 = arith.constant 0 : index
    %c7 = arith.constant 7 : index
    %c0_30 = arith.constant 0 : index
    %c0_31 = arith.constant 0 : index
    %21 = vector.load %arg1[%c0_29, %c7, %c0_30, %c0_31] : memref<2x9x9x128xbf16, #tpu.memory_space<vmem>>, vector<1x1x8x128xbf16>
    %22 = vector.shape_cast %21 : vector<1x1x8x128xbf16> to vector<8x128xbf16>
    %c56 = arith.constant 56 : index
    %c0_32 = arith.constant 0 : index
    %23 = vector.load %arg5[%c56, %c0_32] : memref<128x512xbf16, #tpu.memory_space<vmem>>, vector<8x128xbf16>
    tpu.vector_store %arg5[%c56, %c0_32], %22 {strides = array<i32>} : memref<128x512xbf16, #tpu.memory_space<vmem>>, vector<8x128xbf16>,
    %c1_33 = arith.constant 1 : index
    %c0_34 = arith.constant 0 : index
    %c0_35 = arith.constant 0 : index
    %c0_36 = arith.constant 0 : index
    %24 = vector.load %arg1[%c1_33, %c0_34, %c0_35, %c0_36] : memref<2x9x9x128xbf16, #tpu.memory_space<vmem>>, vector<1x1x8x128xbf16>
    %25 = vector.shape_cast %24 : vector<1x1x8x128xbf16> to vector<8x128xbf16>
    %c64 = arith.constant 64 : index
    %c0_37 = arith.constant 0 : index
    %26 = vector.load %arg5[%c64, %c0_37] : memref<128x512xbf16, #tpu.memory_space<vmem>>, vector<8x128xbf16>
    tpu.vector_store %arg5[%c64, %c0_37], %25 {strides = array<i32>} : memref<128x512xbf16, #tpu.memory_space<vmem>>, vector<8x128xbf16>,
    %c1_38 = arith.constant 1 : index
    %c1_39 = arith.constant 1 : index
    %c0_40 = arith.constant 0 : index
    %c0_41 = arith.constant 0 : index
    %27 = vector.load %arg1[%c1_38, %c1_39, %c0_40, %c0_41] : memref<2x9x9x128xbf16, #tpu.memory_space<vmem>>, vector<1x1x8x128xbf16>
    %28 = vector.shape_cast %27 : vector<1x1x8x128xbf16> to vector<8x128xbf16>
    %c72 = arith.constant 72 : index
    %c0_42 = arith.constant 0 : index
    %29 = vector.load %arg5[%c72, %c0_42] : memref<128x512xbf16, #tpu.memory_space<vmem>>, vector<8x128xbf16>
    tpu.vector_store %arg5[%c72, %c0_42], %28 {strides = array<i32>} : memref<128x512xbf16, #tpu.memory_space<vmem>>, vector<8x128xbf16>,
    %c1_43 = arith.constant 1 : index
    %c2_44 = arith.constant 2 : index
    %c0_45 = arith.constant 0 : index
    %c0_46 = arith.constant 0 : index
    %30 = vector.load %arg1[%c1_43, %c2_44, %c0_45, %c0_46] : memref<2x9x9x128xbf16, #tpu.memory_space<vmem>>, vector<1x1x8x128xbf16>
    %31 = vector.shape_cast %30 : vector<1x1x8x128xbf16> to vector<8x128xbf16>
    %c80 = arith.constant 80 : index
    %c0_47 = arith.constant 0 : index
    %32 = vector.load %arg5[%c80, %c0_47] : memref<128x512xbf16, #tpu.memory_space<vmem>>, vector<8x128xbf16>
    tpu.vector_store %arg5[%c80, %c0_47], %31 {strides = array<i32>} : memref<128x512xbf16, #tpu.memory_space<vmem>>, vector<8x128xbf16>,
    %c1_48 = arith.constant 1 : index
    %c3_49 = arith.constant 3 : index
    %c0_50 = arith.constant 0 : index
    %c0_51 = arith.constant 0 : index
    %33 = vector.load %arg1[%c1_48, %c3_49, %c0_50, %c0_51] : memref<2x9x9x128xbf16, #tpu.memory_space<vmem>>, vector<1x1x8x128xbf16>
    %34 = vector.shape_cast %33 : vector<1x1x8x128xbf16> to vector<8x128xbf16>
    %c88 = arith.constant 88 : index
    %c0_52 = arith.constant 0 : index
    %35 = vector.load %arg5[%c88, %c0_52] : memref<128x512xbf16, #tpu.memory_space<vmem>>, vector<8x128xbf16>
    tpu.vector_store %arg5[%c88, %c0_52], %34 {strides = array<i32>} : memref<128x512xbf16, #tpu.memory_space<vmem>>, vector<8x128xbf16>,
    %c1_53 = arith.constant 1 : index
    %c4_54 = arith.constant 4 : index
    %c0_55 = arith.constant 0 : index
    %c0_56 = arith.constant 0 : index
    %36 = vector.load %arg1[%c1_53, %c4_54, %c0_55, %c0_56] : memref<2x9x9x128xbf16, #tpu.memory_space<vmem>>, vector<1x1x8x128xbf16>
    %37 = vector.shape_cast %36 : vector<1x1x8x128xbf16> to vector<8x128xbf16>
    %c96 = arith.constant 96 : index
    %c0_57 = arith.constant 0 : index
    %38 = vector.load %arg5[%c96, %c0_57] : memref<128x512xbf16, #tpu.memory_space<vmem>>, vector<8x128xbf16>
    tpu.vector_store %arg5[%c96, %c0_57], %37 {strides = array<i32>} : memref<128x512xbf16, #tpu.memory_space<vmem>>, vector<8x128xbf16>,
    %c1_58 = arith.constant 1 : index
    %c5_59 = arith.constant 5 : index
    %c0_60 = arith.constant 0 : index
    %c0_61 = arith.constant 0 : index
    %39 = vector.load %arg1[%c1_58, %c5_59, %c0_60, %c0_61] : memref<2x9x9x128xbf16, #tpu.memory_space<vmem>>, vector<1x1x8x128xbf16>
    %40 = vector.shape_cast %39 : vector<1x1x8x128xbf16> to vector<8x128xbf16>
    %c104 = arith.constant 104 : index
    %c0_62 = arith.constant 0 : index
    %41 = vector.load %arg5[%c104, %c0_62] : memref<128x512xbf16, #tpu.memory_space<vmem>>, vector<8x128xbf16>
    tpu.vector_store %arg5[%c104, %c0_62], %40 {strides = array<i32>} : memref<128x512xbf16, #tpu.memory_space<vmem>>, vector<8x128xbf16>,
    %c1_63 = arith.constant 1 : index
    %c6_64 = arith.constant 6 : index
    %c0_65 = arith.constant 0 : index
    %c0_66 = arith.constant 0 : index
    %42 = vector.load %arg1[%c1_63, %c6_64, %c0_65, %c0_66] : memref<2x9x9x128xbf16, #tpu.memory_space<vmem>>, vector<1x1x8x128xbf16>
    %43 = vector.shape_cast %42 : vector<1x1x8x128xbf16> to vector<8x128xbf16>
    %c112 = arith.constant 112 : index
    %c0_67 = arith.constant 0 : index
    %44 = vector.load %arg5[%c112, %c0_67] : memref<128x512xbf16, #tpu.memory_space<vmem>>, vector<8x128xbf16>
    tpu.vector_store %arg5[%c112, %c0_67], %43 {strides = array<i32>} : memref<128x512xbf16, #tpu.memory_space<vmem>>, vector<8x128xbf16>,
    %c1_68 = arith.constant 1 : index
    %c7_69 = arith.constant 7 : index
    %c0_70 = arith.constant 0 : index
    %c0_71 = arith.constant 0 : index
    %45 = vector.load %arg1[%c1_68, %c7_69, %c0_70, %c0_71] : memref<2x9x9x128xbf16, #tpu.memory_space<vmem>>, vector<1x1x8x128xbf16>
    %46 = vector.shape_cast %45 : vector<1x1x8x128xbf16> to vector<8x128xbf16>
    %c120 = arith.constant 120 : index
    %c0_72 = arith.constant 0 : index
    %47 = vector.load %arg5[%c120, %c0_72] : memref<128x512xbf16, #tpu.memory_space<vmem>>, vector<8x128xbf16>
    tpu.vector_store %arg5[%c120, %c0_72], %46 {strides = array<i32>} : memref<128x512xbf16, #tpu.memory_space<vmem>>, vector<8x128xbf16>,
    %c0_73 = arith.constant 0 : index
    %c0_74 = arith.constant 0 : index
    %c1_75 = arith.constant 1 : index
    %c0_76 = arith.constant 0 : index
    %48 = vector.load %arg1[%c0_73, %c0_74, %c1_75, %c0_76] : memref<2x9x9x128xbf16, #tpu.memory_space<vmem>>, vector<1x1x8x128xbf16>
    %49 = vector.shape_cast %48 : vector<1x1x8x128xbf16> to vector<8x128xbf16>
    %c0_77 = arith.constant 0 : index
    %c128 = arith.constant 128 : index
    %50 = vector.load %arg5[%c0_77, %c128] : memref<128x512xbf16, #tpu.memory_space<vmem>>, vector<8x128xbf16>
    tpu.vector_store %arg5[%c0_77, %c128], %49 {strides = array<i32>} : memref<128x512xbf16, #tpu.memory_space<vmem>>, vector<8x128xbf16>,
    %c0_78 = arith.constant 0 : index
    %c1_79 = arith.constant 1 : index
    %c1_80 = arith.constant 1 : index
    %c0_81 = arith.constant 0 : index
    %51 = vector.load %arg1[%c0_78, %c1_79, %c1_80, %c0_81] : memref<2x9x9x128xbf16, #tpu.memory_space<vmem>>, vector<1x1x8x128xbf16>
    %52 = vector.shape_cast %51 : vector<1x1x8x128xbf16> to vector<8x128xbf16>
    %c8_82 = arith.constant 8 : index
    %c128_83 = arith.constant 128 : index
    %53 = vector.load %arg5[%c8_82, %c128_83] : memref<128x512xbf16, #tpu.memory_space<vmem>>, vector<8x128xbf16>
    tpu.vector_store %arg5[%c8_82, %c128_83], %52 {strides = array<i32>} : memref<128x512xbf16, #tpu.memory_space<vmem>>, vector<8x128xbf16>,
    %c0_84 = arith.constant 0 : index
    %c2_85 = arith.constant 2 : index
    %c1_86 = arith.constant 1 : index
    %c0_87 = arith.constant 0 : index
    %54 = vector.load %arg1[%c0_84, %c2_85, %c1_86, %c0_87] : memref<2x9x9x128xbf16, #tpu.memory_space<vmem>>, vector<1x1x8x128xbf16>
    %55 = vector.shape_cast %54 : vector<1x1x8x128xbf16> to vector<8x128xbf16>
    %c16_88 = arith.constant 16 : index
    %c128_89 = arith.constant 128 : index
    %56 = vector.load %arg5[%c16_88, %c128_89] : memref<128x512xbf16, #tpu.memory_space<vmem>>, vector<8x128xbf16>
    tpu.vector_store %arg5[%c16_88, %c128_89], %55 {strides = array<i32>} : memref<128x512xbf16, #tpu.memory_space<vmem>>, vector<8x128xbf16>,
    %c0_90 = arith.constant 0 : index
    %c3_91 = arith.constant 3 : index
    %c1_92 = arith.constant 1 : index
    %c0_93 = arith.constant 0 : index
    %57 = vector.load %arg1[%c0_90, %c3_91, %c1_92, %c0_93] : memref<2x9x9x128xbf16, #tpu.memory_space<vmem>>, vector<1x1x8x128xbf16>
    %58 = vector.shape_cast %57 : vector<1x1x8x128xbf16> to vector<8x128xbf16>
    %c24_94 = arith.constant 24 : index
    %c128_95 = arith.constant 128 : index
    %59 = vector.load %arg5[%c24_94, %c128_95] : memref<128x512xbf16, #tpu.memory_space<vmem>>, vector<8x128xbf16>
    tpu.vector_store %arg5[%c24_94, %c128_95], %58 {strides = array<i32>} : memref<128x512xbf16, #tpu.memory_space<vmem>>, vector<8x128xbf16>,
    %c0_96 = arith.constant 0 : index
    %c4_97 = arith.constant 4 : index
    %c1_98 = arith.constant 1 : index
    %c0_99 = arith.constant 0 : index
    %60 = vector.load %arg1[%c0_96, %c4_97, %c1_98, %c0_99] : memref<2x9x9x128xbf16, #tpu.memory_space<vmem>>, vector<1x1x8x128xbf16>
    %61 = vector.shape_cast %60 : vector<1x1x8x128xbf16> to vector<8x128xbf16>
    %c32_100 = arith.constant 32 : index
    %c128_101 = arith.constant 128 : index
    %62 = vector.load %arg5[%c32_100, %c128_101] : memref<128x512xbf16, #tpu.memory_space<vmem>>, vector<8x128xbf16>
    tpu.vector_store %arg5[%c32_100, %c128_101], %61 {strides = array<i32>} : memref<128x512xbf16, #tpu.memory_space<vmem>>, vector<8x128xbf16>,
    %c0_102 = arith.constant 0 : index
    %c5_103 = arith.constant 5 : index
    %c1_104 = arith.constant 1 : index
    %c0_105 = arith.constant 0 : index
    %63 = vector.load %arg1[%c0_102, %c5_103, %c1_104, %c0_105] : memref<2x9x9x128xbf16, #tpu.memory_space<vmem>>, vector<1x1x8x128xbf16>
    %64 = vector.shape_cast %63 : vector<1x1x8x128xbf16> to vector<8x128xbf16>
    %c40_106 = arith.constant 40 : index
    %c128_107 = arith.constant 128 : index
    %65 = vector.load %arg5[%c40_106, %c128_107] : memref<128x512xbf16, #tpu.memory_space<vmem>>, vector<8x128xbf16>
    tpu.vector_store %arg5[%c40_106, %c128_107], %64 {strides = array<i32>} : memref<128x512xbf16, #tpu.memory_space<vmem>>, vector<8x128xbf16>,
    %c0_108 = arith.constant 0 : index
    %c6_109 = arith.constant 6 : index
    %c1_110 = arith.constant 1 : index
    %c0_111 = arith.constant 0 : index
    %66 = vector.load %arg1[%c0_108, %c6_109, %c1_110, %c0_111] : memref<2x9x9x128xbf16, #tpu.memory_space<vmem>>, vector<1x1x8x128xbf16>
    %67 = vector.shape_cast %66 : vector<1x1x8x128xbf16> to vector<8x128xbf16>
    %c48_112 = arith.constant 48 : index
    %c128_113 = arith.constant 128 : index
    %68 = vector.load %arg5[%c48_112, %c128_113] : memref<128x512xbf16, #tpu.memory_space<vmem>>, vector<8x128xbf16>
    tpu.vector_store %arg5[%c48_112, %c128_113], %67 {strides = array<i32>} : memref<128x512xbf16, #tpu.memory_space<vmem>>, vector<8x128xbf16>,
    %c0_114 = arith.constant 0 : index
    %c7_115 = arith.constant 7 : index
    %c1_116 = arith.constant 1 : index
    %c0_117 = arith.constant 0 : index
    %69 = vector.load %arg1[%c0_114, %c7_115, %c1_116, %c0_117] : memref<2x9x9x128xbf16, #tpu.memory_space<vmem>>, vector<1x1x8x128xbf16>
    %70 = vector.shape_cast %69 : vector<1x1x8x128xbf16> to vector<8x128xbf16>
    %c56_118 = arith.constant 56 : index
    %c128_119 = arith.constant 128 : index
    %71 = vector.load %arg5[%c56_118, %c128_119] : memref<128x512xbf16, #tpu.memory_space<vmem>>, vector<8x128xbf16>
    tpu.vector_store %arg5[%c56_118, %c128_119], %70 {strides = array<i32>} : memref<128x512xbf16, #tpu.memory_space<vmem>>, vector<8x128xbf16>,
    %c1_120 = arith.constant 1 : index
    %c0_121 = arith.constant 0 : index
    %c1_122 = arith.constant 1 : index
    %c0_123 = arith.constant 0 : index
    %72 = vector.load %arg1[%c1_120, %c0_121, %c1_122, %c0_123] : memref<2x9x9x128xbf16, #tpu.memory_space<vmem>>, vector<1x1x8x128xbf16>
    %73 = vector.shape_cast %72 : vector<1x1x8x128xbf16> to vector<8x128xbf16>
    %c64_124 = arith.constant 64 : index
    %c128_125 = arith.constant 128 : index
    %74 = vector.load %arg5[%c64_124, %c128_125] : memref<128x512xbf16, #tpu.memory_space<vmem>>, vector<8x128xbf16>
    tpu.vector_store %arg5[%c64_124, %c128_125], %73 {strides = array<i32>} : memref<128x512xbf16, #tpu.memory_space<vmem>>, vector<8x128xbf16>,
    %c1_126 = arith.constant 1 : index
    %c1_127 = arith.constant 1 : index
    %c1_128 = arith.constant 1 : index
    %c0_129 = arith.constant 0 : index
    %75 = vector.load %arg1[%c1_126, %c1_127, %c1_128, %c0_129] : memref<2x9x9x128xbf16, #tpu.memory_space<vmem>>, vector<1x1x8x128xbf16>
    %76 = vector.shape_cast %75 : vector<1x1x8x128xbf16> to vector<8x128xbf16>
    %c72_130 = arith.constant 72 : index
    %c128_131 = arith.constant 128 : index
    %77 = vector.load %arg5[%c72_130, %c128_131] : memref<128x512xbf16, #tpu.memory_space<vmem>>, vector<8x128xbf16>
    tpu.vector_store %arg5[%c72_130, %c128_131], %76 {strides = array<i32>} : memref<128x512xbf16, #tpu.memory_space<vmem>>, vector<8x128xbf16>,
    %c1_132 = arith.constant 1 : index
    %c2_133 = arith.constant 2 : index
    %c1_134 = arith.constant 1 : index
    %c0_135 = arith.constant 0 : index
    %78 = vector.load %arg1[%c1_132, %c2_133, %c1_134, %c0_135] : memref<2x9x9x128xbf16, #tpu.memory_space<vmem>>, vector<1x1x8x128xbf16>
    %79 = vector.shape_cast %78 : vector<1x1x8x128xbf16> to vector<8x128xbf16>
    %c80_136 = arith.constant 80 : index
    %c128_137 = arith.constant 128 : index
    %80 = vector.load %arg5[%c80_136, %c128_137] : memref<128x512xbf16, #tpu.memory_space<vmem>>, vector<8x128xbf16>
    tpu.vector_store %arg5[%c80_136, %c128_137], %79 {strides = array<i32>} : memref<128x512xbf16, #tpu.memory_space<vmem>>, vector<8x128xbf16>,
    %c1_138 = arith.constant 1 : index
    %c3_139 = arith.constant 3 : index
    %c1_140 = arith.constant 1 : index
    %c0_141 = arith.constant 0 : index
    %81 = vector.load %arg1[%c1_138, %c3_139, %c1_140, %c0_141] : memref<2x9x9x128xbf16, #tpu.memory_space<vmem>>, vector<1x1x8x128xbf16>
    %82 = vector.shape_cast %81 : vector<1x1x8x128xbf16> to vector<8x128xbf16>
    %c88_142 = arith.constant 88 : index
    %c128_143 = arith.constant 128 : index
    %83 = vector.load %arg5[%c88_142, %c128_143] : memref<128x512xbf16, #tpu.memory_space<vmem>>, vector<8x128xbf16>
    tpu.vector_store %arg5[%c88_142, %c128_143], %82 {strides = array<i32>} : memref<128x512xbf16, #tpu.memory_space<vmem>>, vector<8x128xbf16>,
    %c1_144 = arith.constant 1 : index
    %c4_145 = arith.constant 4 : index
    %c1_146 = arith.constant 1 : index
    %c0_147 = arith.constant 0 : index
    %84 = vector.load %arg1[%c1_144, %c4_145, %c1_146, %c0_147] : memref<2x9x9x128xbf16, #tpu.memory_space<vmem>>, vector<1x1x8x128xbf16>
    %85 = vector.shape_cast %84 : vector<1x1x8x128xbf16> to vector<8x128xbf16>
    %c96_148 = arith.constant 96 : index
    %c128_149 = arith.constant 128 : index
    %86 = vector.load %arg5[%c96_148, %c128_149] : memref<128x512xbf16, #tpu.memory_space<vmem>>, vector<8x128xbf16>
    tpu.vector_store %arg5[%c96_148, %c128_149], %85 {strides = array<i32>} : memref<128x512xbf16, #tpu.memory_space<vmem>>, vector<8x128xbf16>,
    %c1_150 = arith.constant 1 : index
    %c5_151 = arith.constant 5 : index
    %c1_152 = arith.constant 1 : index
    %c0_153 = arith.constant 0 : index
    %87 = vector.load %arg1[%c1_150, %c5_151, %c1_152, %c0_153] : memref<2x9x9x128xbf16, #tpu.memory_space<vmem>>, vector<1x1x8x128xbf16>
    %88 = vector.shape_cast %87 : vector<1x1x8x128xbf16> to vector<8x128xbf16>
    %c104_154 = arith.constant 104 : index
    %c128_155 = arith.constant 128 : index
    %89 = vector.load %arg5[%c104_154, %c128_155] : memref<128x512xbf16, #tpu.memory_space<vmem>>, vector<8x128xbf16>
    tpu.vector_store %arg5[%c104_154, %c128_155], %88 {strides = array<i32>} : memref<128x512xbf16, #tpu.memory_space<vmem>>, vector<8x128xbf16>,
    %c1_156 = arith.constant 1 : index
    %c6_157 = arith.constant 6 : index
    %c1_158 = arith.constant 1 : index
    %c0_159 = arith.constant 0 : index
    %90 = vector.load %arg1[%c1_156, %c6_157, %c1_158, %c0_159] : memref<2x9x9x128xbf16, #tpu.memory_space<vmem>>, vector<1x1x8x128xbf16>
    %91 = vector.shape_cast %90 : vector<1x1x8x128xbf16> to vector<8x128xbf16>
    %c112_160 = arith.constant 112 : index
    %c128_161 = arith.constant 128 : index
    %92 = vector.load %arg5[%c112_160, %c128_161] : memref<128x512xbf16, #tpu.memory_space<vmem>>, vector<8x128xbf16>
    tpu.vector_store %arg5[%c112_160, %c128_161], %91 {strides = array<i32>} : memref<128x512xbf16, #tpu.memory_space<vmem>>, vector<8x128xbf16>,
    %c1_162 = arith.constant 1 : index
    %c7_163 = arith.constant 7 : index
    %c1_164 = arith.constant 1 : index
    %c0_165 = arith.constant 0 : index
    %93 = vector.load %arg1[%c1_162, %c7_163, %c1_164, %c0_165] : memref<2x9x9x128xbf16, #tpu.memory_space<vmem>>, vector<1x1x8x128xbf16>
    %94 = vector.shape_cast %93 : vector<1x1x8x128xbf16> to vector<8x128xbf16>
    %c120_166 = arith.constant 120 : index
    %c128_167 = arith.constant 128 : index
    %95 = vector.load %arg5[%c120_166, %c128_167] : memref<128x512xbf16, #tpu.memory_space<vmem>>, vector<8x128xbf16>
    tpu.vector_store %arg5[%c120_166, %c128_167], %94 {strides = array<i32>} : memref<128x512xbf16, #tpu.memory_space<vmem>>, vector<8x128xbf16>,
    %c0_168 = arith.constant 0 : index
    %c1_169 = arith.constant 1 : index
    %c0_170 = arith.constant 0 : index
    %c0_171 = arith.constant 0 : index
    %96 = vector.load %arg1[%c0_168, %c1_169, %c0_170, %c0_171] : memref<2x9x9x128xbf16, #tpu.memory_space<vmem>>, vector<1x1x8x128xbf16>
    %97 = vector.shape_cast %96 : vector<1x1x8x128xbf16> to vector<8x128xbf16>
    %c0_172 = arith.constant 0 : index
    %c256 = arith.constant 256 : index
    %98 = vector.load %arg5[%c0_172, %c256] : memref<128x512xbf16, #tpu.memory_space<vmem>>, vector<8x128xbf16>
    tpu.vector_store %arg5[%c0_172, %c256], %97 {strides = array<i32>} : memref<128x512xbf16, #tpu.memory_space<vmem>>, vector<8x128xbf16>,
    %c0_173 = arith.constant 0 : index
    %c2_174 = arith.constant 2 : index
    %c0_175 = arith.constant 0 : index
    %c0_176 = arith.constant 0 : index
    %99 = vector.load %arg1[%c0_173, %c2_174, %c0_175, %c0_176] : memref<2x9x9x128xbf16, #tpu.memory_space<vmem>>, vector<1x1x8x128xbf16>
    %100 = vector.shape_cast %99 : vector<1x1x8x128xbf16> to vector<8x128xbf16>
    %c8_177 = arith.constant 8 : index
    %c256_178 = arith.constant 256 : index
    %101 = vector.load %arg5[%c8_177, %c256_178] : memref<128x512xbf16, #tpu.memory_space<vmem>>, vector<8x128xbf16>
    tpu.vector_store %arg5[%c8_177, %c256_178], %100 {strides = array<i32>} : memref<128x512xbf16, #tpu.memory_space<vmem>>, vector<8x128xbf16>,
    %c0_179 = arith.constant 0 : index
    %c3_180 = arith.constant 3 : index
    %c0_181 = arith.constant 0 : index
    %c0_182 = arith.constant 0 : index
    %102 = vector.load %arg1[%c0_179, %c3_180, %c0_181, %c0_182] : memref<2x9x9x128xbf16, #tpu.memory_space<vmem>>, vector<1x1x8x128xbf16>
    %103 = vector.shape_cast %102 : vector<1x1x8x128xbf16> to vector<8x128xbf16>
    %c16_183 = arith.constant 16 : index
    %c256_184 = arith.constant 256 : index
    %104 = vector.load %arg5[%c16_183, %c256_184] : memref<128x512xbf16, #tpu.memory_space<vmem>>, vector<8x128xbf16>
    tpu.vector_store %arg5[%c16_183, %c256_184], %103 {strides = array<i32>} : memref<128x512xbf16, #tpu.memory_space<vmem>>, vector<8x128xbf16>,
    %c0_185 = arith.constant 0 : index
    %c4_186 = arith.constant 4 : index
    %c0_187 = arith.constant 0 : index
    %c0_188 = arith.constant 0 : index
    %105 = vector.load %arg1[%c0_185, %c4_186, %c0_187, %c0_188] : memref<2x9x9x128xbf16, #tpu.memory_space<vmem>>, vector<1x1x8x128xbf16>
    %106 = vector.shape_cast %105 : vector<1x1x8x128xbf16> to vector<8x128xbf16>
    %c24_189 = arith.constant 24 : index
    %c256_190 = arith.constant 256 : index
    %107 = vector.load %arg5[%c24_189, %c256_190] : memref<128x512xbf16, #tpu.memory_space<vmem>>, vector<8x128xbf16>
    tpu.vector_store %arg5[%c24_189, %c256_190], %106 {strides = array<i32>} : memref<128x512xbf16, #tpu.memory_space<vmem>>, vector<8x128xbf16>,
    %c0_191 = arith.constant 0 : index
    %c5_192 = arith.constant 5 : index
    %c0_193 = arith.constant 0 : index
    %c0_194 = arith.constant 0 : index
    %108 = vector.load %arg1[%c0_191, %c5_192, %c0_193, %c0_194] : memref<2x9x9x128xbf16, #tpu.memory_space<vmem>>, vector<1x1x8x128xbf16>
    %109 = vector.shape_cast %108 : vector<1x1x8x128xbf16> to vector<8x128xbf16>
    %c32_195 = arith.constant 32 : index
    %c256_196 = arith.constant 256 : index
    %110 = vector.load %arg5[%c32_195, %c256_196] : memref<128x512xbf16, #tpu.memory_space<vmem>>, vector<8x128xbf16>
    tpu.vector_store %arg5[%c32_195, %c256_196], %109 {strides = array<i32>} : memref<128x512xbf16, #tpu.memory_space<vmem>>, vector<8x128xbf16>,
    %c0_197 = arith.constant 0 : index
    %c6_198 = arith.constant 6 : index
    %c0_199 = arith.constant 0 : index
    %c0_200 = arith.constant 0 : index
    %111 = vector.load %arg1[%c0_197, %c6_198, %c0_199, %c0_200] : memref<2x9x9x128xbf16, #tpu.memory_space<vmem>>, vector<1x1x8x128xbf16>
    %112 = vector.shape_cast %111 : vector<1x1x8x128xbf16> to vector<8x128xbf16>
    %c40_201 = arith.constant 40 : index
    %c256_202 = arith.constant 256 : index
    %113 = vector.load %arg5[%c40_201, %c256_202] : memref<128x512xbf16, #tpu.memory_space<vmem>>, vector<8x128xbf16>
    tpu.vector_store %arg5[%c40_201, %c256_202], %112 {strides = array<i32>} : memref<128x512xbf16, #tpu.memory_space<vmem>>, vector<8x128xbf16>,
    %c0_203 = arith.constant 0 : index
    %c7_204 = arith.constant 7 : index
    %c0_205 = arith.constant 0 : index
    %c0_206 = arith.constant 0 : index
    %114 = vector.load %arg1[%c0_203, %c7_204, %c0_205, %c0_206] : memref<2x9x9x128xbf16, #tpu.memory_space<vmem>>, vector<1x1x8x128xbf16>
    %115 = vector.shape_cast %114 : vector<1x1x8x128xbf16> to vector<8x128xbf16>
    %c48_207 = arith.constant 48 : index
    %c256_208 = arith.constant 256 : index
    %116 = vector.load %arg5[%c48_207, %c256_208] : memref<128x512xbf16, #tpu.memory_space<vmem>>, vector<8x128xbf16>
    tpu.vector_store %arg5[%c48_207, %c256_208], %115 {strides = array<i32>} : memref<128x512xbf16, #tpu.memory_space<vmem>>, vector<8x128xbf16>,
    %c0_209 = arith.constant 0 : index
    %c8_210 = arith.constant 8 : index
    %c0_211 = arith.constant 0 : index
    %c0_212 = arith.constant 0 : index
    %117 = vector.load %arg1[%c0_209, %c8_210, %c0_211, %c0_212] : memref<2x9x9x128xbf16, #tpu.memory_space<vmem>>, vector<1x1x8x128xbf16>
    %118 = vector.shape_cast %117 : vector<1x1x8x128xbf16> to vector<8x128xbf16>
    %c56_213 = arith.constant 56 : index
    %c256_214 = arith.constant 256 : index
    %119 = vector.load %arg5[%c56_213, %c256_214] : memref<128x512xbf16, #tpu.memory_space<vmem>>, vector<8x128xbf16>
    tpu.vector_store %arg5[%c56_213, %c256_214], %118 {strides = array<i32>} : memref<128x512xbf16, #tpu.memory_space<vmem>>, vector<8x128xbf16>,
    %c1_215 = arith.constant 1 : index
    %c1_216 = arith.constant 1 : index
    %c0_217 = arith.constant 0 : index
    %c0_218 = arith.constant 0 : index
    %120 = vector.load %arg1[%c1_215, %c1_216, %c0_217, %c0_218] : memref<2x9x9x128xbf16, #tpu.memory_space<vmem>>, vector<1x1x8x128xbf16>
    %121 = vector.shape_cast %120 : vector<1x1x8x128xbf16> to vector<8x128xbf16>
    %c64_219 = arith.constant 64 : index
    %c256_220 = arith.constant 256 : index
    %122 = vector.load %arg5[%c64_219, %c256_220] : memref<128x512xbf16, #tpu.memory_space<vmem>>, vector<8x128xbf16>
    tpu.vector_store %arg5[%c64_219, %c256_220], %121 {strides = array<i32>} : memref<128x512xbf16, #tpu.memory_space<vmem>>, vector<8x128xbf16>,
    %c1_221 = arith.constant 1 : index
    %c2_222 = arith.constant 2 : index
    %c0_223 = arith.constant 0 : index
    %c0_224 = arith.constant 0 : index
    %123 = vector.load %arg1[%c1_221, %c2_222, %c0_223, %c0_224] : memref<2x9x9x128xbf16, #tpu.memory_space<vmem>>, vector<1x1x8x128xbf16>
    %124 = vector.shape_cast %123 : vector<1x1x8x128xbf16> to vector<8x128xbf16>
    %c72_225 = arith.constant 72 : index
    %c256_226 = arith.constant 256 : index
    %125 = vector.load %arg5[%c72_225, %c256_226] : memref<128x512xbf16, #tpu.memory_space<vmem>>, vector<8x128xbf16>
    tpu.vector_store %arg5[%c72_225, %c256_226], %124 {strides = array<i32>} : memref<128x512xbf16, #tpu.memory_space<vmem>>, vector<8x128xbf16>,
    %c1_227 = arith.constant 1 : index
    %c3_228 = arith.constant 3 : index
    %c0_229 = arith.constant 0 : index
    %c0_230 = arith.constant 0 : index
    %126 = vector.load %arg1[%c1_227, %c3_228, %c0_229, %c0_230] : memref<2x9x9x128xbf16, #tpu.memory_space<vmem>>, vector<1x1x8x128xbf16>
    %127 = vector.shape_cast %126 : vector<1x1x8x128xbf16> to vector<8x128xbf16>
    %c80_231 = arith.constant 80 : index
    %c256_232 = arith.constant 256 : index
    %128 = vector.load %arg5[%c80_231, %c256_232] : memref<128x512xbf16, #tpu.memory_space<vmem>>, vector<8x128xbf16>
    tpu.vector_store %arg5[%c80_231, %c256_232], %127 {strides = array<i32>} : memref<128x512xbf16, #tpu.memory_space<vmem>>, vector<8x128xbf16>,
    %c1_233 = arith.constant 1 : index
    %c4_234 = arith.constant 4 : index
    %c0_235 = arith.constant 0 : index
    %c0_236 = arith.constant 0 : index
    %129 = vector.load %arg1[%c1_233, %c4_234, %c0_235, %c0_236] : memref<2x9x9x128xbf16, #tpu.memory_space<vmem>>, vector<1x1x8x128xbf16>
    %130 = vector.shape_cast %129 : vector<1x1x8x128xbf16> to vector<8x128xbf16>
    %c88_237 = arith.constant 88 : index
    %c256_238 = arith.constant 256 : index
    %131 = vector.load %arg5[%c88_237, %c256_238] : memref<128x512xbf16, #tpu.memory_space<vmem>>, vector<8x128xbf16>
    tpu.vector_store %arg5[%c88_237, %c256_238], %130 {strides = array<i32>} : memref<128x512xbf16, #tpu.memory_space<vmem>>, vector<8x128xbf16>,
    %c1_239 = arith.constant 1 : index
    %c5_240 = arith.constant 5 : index
    %c0_241 = arith.constant 0 : index
    %c0_242 = arith.constant 0 : index
    %132 = vector.load %arg1[%c1_239, %c5_240, %c0_241, %c0_242] : memref<2x9x9x128xbf16, #tpu.memory_space<vmem>>, vector<1x1x8x128xbf16>
    %133 = vector.shape_cast %132 : vector<1x1x8x128xbf16> to vector<8x128xbf16>
    %c96_243 = arith.constant 96 : index
    %c256_244 = arith.constant 256 : index
    %134 = vector.load %arg5[%c96_243, %c256_244] : memref<128x512xbf16, #tpu.memory_space<vmem>>, vector<8x128xbf16>
    tpu.vector_store %arg5[%c96_243, %c256_244], %133 {strides = array<i32>} : memref<128x512xbf16, #tpu.memory_space<vmem>>, vector<8x128xbf16>,
    %c1_245 = arith.constant 1 : index
    %c6_246 = arith.constant 6 : index
    %c0_247 = arith.constant 0 : index
    %c0_248 = arith.constant 0 : index
    %135 = vector.load %arg1[%c1_245, %c6_246, %c0_247, %c0_248] : memref<2x9x9x128xbf16, #tpu.memory_space<vmem>>, vector<1x1x8x128xbf16>
    %136 = vector.shape_cast %135 : vector<1x1x8x128xbf16> to vector<8x128xbf16>
    %c104_249 = arith.constant 104 : index
    %c256_250 = arith.constant 256 : index
    %137 = vector.load %arg5[%c104_249, %c256_250] : memref<128x512xbf16, #tpu.memory_space<vmem>>, vector<8x128xbf16>
    tpu.vector_store %arg5[%c104_249, %c256_250], %136 {strides = array<i32>} : memref<128x512xbf16, #tpu.memory_space<vmem>>, vector<8x128xbf16>,
    %c1_251 = arith.constant 1 : index
    %c7_252 = arith.constant 7 : index
    %c0_253 = arith.constant 0 : index
    %c0_254 = arith.constant 0 : index
    %138 = vector.load %arg1[%c1_251, %c7_252, %c0_253, %c0_254] : memref<2x9x9x128xbf16, #tpu.memory_space<vmem>>, vector<1x1x8x128xbf16>
    %139 = vector.shape_cast %138 : vector<1x1x8x128xbf16> to vector<8x128xbf16>
    %c112_255 = arith.constant 112 : index
    %c256_256 = arith.constant 256 : index
    %140 = vector.load %arg5[%c112_255, %c256_256] : memref<128x512xbf16, #tpu.memory_space<vmem>>, vector<8x128xbf16>
    tpu.vector_store %arg5[%c112_255, %c256_256], %139 {strides = array<i32>} : memref<128x512xbf16, #tpu.memory_space<vmem>>, vector<8x128xbf16>,
    %c1_257 = arith.constant 1 : index
    %c8_258 = arith.constant 8 : index
    %c0_259 = arith.constant 0 : index
    %c0_260 = arith.constant 0 : index
    %141 = vector.load %arg1[%c1_257, %c8_258, %c0_259, %c0_260] : memref<2x9x9x128xbf16, #tpu.memory_space<vmem>>, vector<1x1x8x128xbf16>
    %142 = vector.shape_cast %141 : vector<1x1x8x128xbf16> to vector<8x128xbf16>
    %c120_261 = arith.constant 120 : index
    %c256_262 = arith.constant 256 : index
    %143 = vector.load %arg5[%c120_261, %c256_262] : memref<128x512xbf16, #tpu.memory_space<vmem>>, vector<8x128xbf16>
    tpu.vector_store %arg5[%c120_261, %c256_262], %142 {strides = array<i32>} : memref<128x512xbf16, #tpu.memory_space<vmem>>, vector<8x128xbf16>,
    %c0_263 = arith.constant 0 : index
    %c1_264 = arith.constant 1 : index
    %c1_265 = arith.constant 1 : index
    %c0_266 = arith.constant 0 : index
    %144 = vector.load %arg1[%c0_263, %c1_264, %c1_265, %c0_266] : memref<2x9x9x128xbf16, #tpu.memory_space<vmem>>, vector<1x1x8x128xbf16>
    %145 = vector.shape_cast %144 : vector<1x1x8x128xbf16> to vector<8x128xbf16>
    %c0_267 = arith.constant 0 : index
    %c384 = arith.constant 384 : index
    %146 = vector.load %arg5[%c0_267, %c384] : memref<128x512xbf16, #tpu.memory_space<vmem>>, vector<8x128xbf16>
    tpu.vector_store %arg5[%c0_267, %c384], %145 {strides = array<i32>} : memref<128x512xbf16, #tpu.memory_space<vmem>>, vector<8x128xbf16>,
    %c0_268 = arith.constant 0 : index
    %c2_269 = arith.constant 2 : index
    %c1_270 = arith.constant 1 : index
    %c0_271 = arith.constant 0 : index
    %147 = vector.load %arg1[%c0_268, %c2_269, %c1_270, %c0_271] : memref<2x9x9x128xbf16, #tpu.memory_space<vmem>>, vector<1x1x8x128xbf16>
    %148 = vector.shape_cast %147 : vector<1x1x8x128xbf16> to vector<8x128xbf16>
    %c8_272 = arith.constant 8 : index
    %c384_273 = arith.constant 384 : index
    %149 = vector.load %arg5[%c8_272, %c384_273] : memref<128x512xbf16, #tpu.memory_space<vmem>>, vector<8x128xbf16>
    tpu.vector_store %arg5[%c8_272, %c384_273], %148 {strides = array<i32>} : memref<128x512xbf16, #tpu.memory_space<vmem>>, vector<8x128xbf16>,
    %c0_274 = arith.constant 0 : index
    %c3_275 = arith.constant 3 : index
    %c1_276 = arith.constant 1 : index
    %c0_277 = arith.constant 0 : index
    %150 = vector.load %arg1[%c0_274, %c3_275, %c1_276, %c0_277] : memref<2x9x9x128xbf16, #tpu.memory_space<vmem>>, vector<1x1x8x128xbf16>
    %151 = vector.shape_cast %150 : vector<1x1x8x128xbf16> to vector<8x128xbf16>
    %c16_278 = arith.constant 16 : index
    %c384_279 = arith.constant 384 : index
    %152 = vector.load %arg5[%c16_278, %c384_279] : memref<128x512xbf16, #tpu.memory_space<vmem>>, vector<8x128xbf16>
    tpu.vector_store %arg5[%c16_278, %c384_279], %151 {strides = array<i32>} : memref<128x512xbf16, #tpu.memory_space<vmem>>, vector<8x128xbf16>,
    %c0_280 = arith.constant 0 : index
    %c4_281 = arith.constant 4 : index
    %c1_282 = arith.constant 1 : index
    %c0_283 = arith.constant 0 : index
    %153 = vector.load %arg1[%c0_280, %c4_281, %c1_282, %c0_283] : memref<2x9x9x128xbf16, #tpu.memory_space<vmem>>, vector<1x1x8x128xbf16>
    %154 = vector.shape_cast %153 : vector<1x1x8x128xbf16> to vector<8x128xbf16>
    %c24_284 = arith.constant 24 : index
    %c384_285 = arith.constant 384 : index
    %155 = vector.load %arg5[%c24_284, %c384_285] : memref<128x512xbf16, #tpu.memory_space<vmem>>, vector<8x128xbf16>
    tpu.vector_store %arg5[%c24_284, %c384_285], %154 {strides = array<i32>} : memref<128x512xbf16, #tpu.memory_space<vmem>>, vector<8x128xbf16>,
    %c0_286 = arith.constant 0 : index
    %c5_287 = arith.constant 5 : index
    %c1_288 = arith.constant 1 : index
    %c0_289 = arith.constant 0 : index
    %156 = vector.load %arg1[%c0_286, %c5_287, %c1_288, %c0_289] : memref<2x9x9x128xbf16, #tpu.memory_space<vmem>>, vector<1x1x8x128xbf16>
    %157 = vector.shape_cast %156 : vector<1x1x8x128xbf16> to vector<8x128xbf16>
    %c32_290 = arith.constant 32 : index
    %c384_291 = arith.constant 384 : index
    %158 = vector.load %arg5[%c32_290, %c384_291] : memref<128x512xbf16, #tpu.memory_space<vmem>>, vector<8x128xbf16>
    tpu.vector_store %arg5[%c32_290, %c384_291], %157 {strides = array<i32>} : memref<128x512xbf16, #tpu.memory_space<vmem>>, vector<8x128xbf16>,
    %c0_292 = arith.constant 0 : index
    %c6_293 = arith.constant 6 : index
    %c1_294 = arith.constant 1 : index
    %c0_295 = arith.constant 0 : index
    %159 = vector.load %arg1[%c0_292, %c6_293, %c1_294, %c0_295] : memref<2x9x9x128xbf16, #tpu.memory_space<vmem>>, vector<1x1x8x128xbf16>
    %160 = vector.shape_cast %159 : vector<1x1x8x128xbf16> to vector<8x128xbf16>
    %c40_296 = arith.constant 40 : index
    %c384_297 = arith.constant 384 : index
    %161 = vector.load %arg5[%c40_296, %c384_297] : memref<128x512xbf16, #tpu.memory_space<vmem>>, vector<8x128xbf16>
    tpu.vector_store %arg5[%c40_296, %c384_297], %160 {strides = array<i32>} : memref<128x512xbf16, #tpu.memory_space<vmem>>, vector<8x128xbf16>,
    %c0_298 = arith.constant 0 : index
    %c7_299 = arith.constant 7 : index
    %c1_300 = arith.constant 1 : index
    %c0_301 = arith.constant 0 : index
    %162 = vector.load %arg1[%c0_298, %c7_299, %c1_300, %c0_301] : memref<2x9x9x128xbf16, #tpu.memory_space<vmem>>, vector<1x1x8x128xbf16>
    %163 = vector.shape_cast %162 : vector<1x1x8x128xbf16> to vector<8x128xbf16>
    %c48_302 = arith.constant 48 : index
    %c384_303 = arith.constant 384 : index
    %164 = vector.load %arg5[%c48_302, %c384_303] : memref<128x512xbf16, #tpu.memory_space<vmem>>, vector<8x128xbf16>
    tpu.vector_store %arg5[%c48_302, %c384_303], %163 {strides = array<i32>} : memref<128x512xbf16, #tpu.memory_space<vmem>>, vector<8x128xbf16>,
    %c0_304 = arith.constant 0 : index
    %c8_305 = arith.constant 8 : index
    %c1_306 = arith.constant 1 : index
    %c0_307 = arith.constant 0 : index
    %165 = vector.load %arg1[%c0_304, %c8_305, %c1_306, %c0_307] : memref<2x9x9x128xbf16, #tpu.memory_space<vmem>>, vector<1x1x8x128xbf16>
    %166 = vector.shape_cast %165 : vector<1x1x8x128xbf16> to vector<8x128xbf16>
    %c56_308 = arith.constant 56 : index
    %c384_309 = arith.constant 384 : index
    %167 = vector.load %arg5[%c56_308, %c384_309] : memref<128x512xbf16, #tpu.memory_space<vmem>>, vector<8x128xbf16>
    tpu.vector_store %arg5[%c56_308, %c384_309], %166 {strides = array<i32>} : memref<128x512xbf16, #tpu.memory_space<vmem>>, vector<8x128xbf16>,
    %c1_310 = arith.constant 1 : index
    %c1_311 = arith.constant 1 : index
    %c1_312 = arith.constant 1 : index
    %c0_313 = arith.constant 0 : index
    %168 = vector.load %arg1[%c1_310, %c1_311, %c1_312, %c0_313] : memref<2x9x9x128xbf16, #tpu.memory_space<vmem>>, vector<1x1x8x128xbf16>
    %169 = vector.shape_cast %168 : vector<1x1x8x128xbf16> to vector<8x128xbf16>
    %c64_314 = arith.constant 64 : index
    %c384_315 = arith.constant 384 : index
    %170 = vector.load %arg5[%c64_314, %c384_315] : memref<128x512xbf16, #tpu.memory_space<vmem>>, vector<8x128xbf16>
    tpu.vector_store %arg5[%c64_314, %c384_315], %169 {strides = array<i32>} : memref<128x512xbf16, #tpu.memory_space<vmem>>, vector<8x128xbf16>,
    %c1_316 = arith.constant 1 : index
    %c2_317 = arith.constant 2 : index
    %c1_318 = arith.constant 1 : index
    %c0_319 = arith.constant 0 : index
    %171 = vector.load %arg1[%c1_316, %c2_317, %c1_318, %c0_319] : memref<2x9x9x128xbf16, #tpu.memory_space<vmem>>, vector<1x1x8x128xbf16>
    %172 = vector.shape_cast %171 : vector<1x1x8x128xbf16> to vector<8x128xbf16>
    %c72_320 = arith.constant 72 : index
    %c384_321 = arith.constant 384 : index
    %173 = vector.load %arg5[%c72_320, %c384_321] : memref<128x512xbf16, #tpu.memory_space<vmem>>, vector<8x128xbf16>
    tpu.vector_store %arg5[%c72_320, %c384_321], %172 {strides = array<i32>} : memref<128x512xbf16, #tpu.memory_space<vmem>>, vector<8x128xbf16>,
    %c1_322 = arith.constant 1 : index
    %c3_323 = arith.constant 3 : index
    %c1_324 = arith.constant 1 : index
    %c0_325 = arith.constant 0 : index
    %174 = vector.load %arg1[%c1_322, %c3_323, %c1_324, %c0_325] : memref<2x9x9x128xbf16, #tpu.memory_space<vmem>>, vector<1x1x8x128xbf16>
    %175 = vector.shape_cast %174 : vector<1x1x8x128xbf16> to vector<8x128xbf16>
    %c80_326 = arith.constant 80 : index
    %c384_327 = arith.constant 384 : index
    %176 = vector.load %arg5[%c80_326, %c384_327] : memref<128x512xbf16, #tpu.memory_space<vmem>>, vector<8x128xbf16>
    tpu.vector_store %arg5[%c80_326, %c384_327], %175 {strides = array<i32>} : memref<128x512xbf16, #tpu.memory_space<vmem>>, vector<8x128xbf16>,
    %c1_328 = arith.constant 1 : index
    %c4_329 = arith.constant 4 : index
    %c1_330 = arith.constant 1 : index
    %c0_331 = arith.constant 0 : index
    %177 = vector.load %arg1[%c1_328, %c4_329, %c1_330, %c0_331] : memref<2x9x9x128xbf16, #tpu.memory_space<vmem>>, vector<1x1x8x128xbf16>
    %178 = vector.shape_cast %177 : vector<1x1x8x128xbf16> to vector<8x128xbf16>
    %c88_332 = arith.constant 88 : index
    %c384_333 = arith.constant 384 : index
    %179 = vector.load %arg5[%c88_332, %c384_333] : memref<128x512xbf16, #tpu.memory_space<vmem>>, vector<8x128xbf16>
    tpu.vector_store %arg5[%c88_332, %c384_333], %178 {strides = array<i32>} : memref<128x512xbf16, #tpu.memory_space<vmem>>, vector<8x128xbf16>,
    %c1_334 = arith.constant 1 : index
    %c5_335 = arith.constant 5 : index
    %c1_336 = arith.constant 1 : index
    %c0_337 = arith.constant 0 : index
    %180 = vector.load %arg1[%c1_334, %c5_335, %c1_336, %c0_337] : memref<2x9x9x128xbf16, #tpu.memory_space<vmem>>, vector<1x1x8x128xbf16>
    %181 = vector.shape_cast %180 : vector<1x1x8x128xbf16> to vector<8x128xbf16>
    %c96_338 = arith.constant 96 : index
    %c384_339 = arith.constant 384 : index
    %182 = vector.load %arg5[%c96_338, %c384_339] : memref<128x512xbf16, #tpu.memory_space<vmem>>, vector<8x128xbf16>
    tpu.vector_store %arg5[%c96_338, %c384_339], %181 {strides = array<i32>} : memref<128x512xbf16, #tpu.memory_space<vmem>>, vector<8x128xbf16>,
    %c1_340 = arith.constant 1 : index
    %c6_341 = arith.constant 6 : index
    %c1_342 = arith.constant 1 : index
    %c0_343 = arith.constant 0 : index
    %183 = vector.load %arg1[%c1_340, %c6_341, %c1_342, %c0_343] : memref<2x9x9x128xbf16, #tpu.memory_space<vmem>>, vector<1x1x8x128xbf16>
    %184 = vector.shape_cast %183 : vector<1x1x8x128xbf16> to vector<8x128xbf16>
    %c104_344 = arith.constant 104 : index
    %c384_345 = arith.constant 384 : index
    %185 = vector.load %arg5[%c104_344, %c384_345] : memref<128x512xbf16, #tpu.memory_space<vmem>>, vector<8x128xbf16>
    tpu.vector_store %arg5[%c104_344, %c384_345], %184 {strides = array<i32>} : memref<128x512xbf16, #tpu.memory_space<vmem>>, vector<8x128xbf16>,
    %c1_346 = arith.constant 1 : index
    %c7_347 = arith.constant 7 : index
    %c1_348 = arith.constant 1 : index
    %c0_349 = arith.constant 0 : index
    %186 = vector.load %arg1[%c1_346, %c7_347, %c1_348, %c0_349] : memref<2x9x9x128xbf16, #tpu.memory_space<vmem>>, vector<1x1x8x128xbf16>
    %187 = vector.shape_cast %186 : vector<1x1x8x128xbf16> to vector<8x128xbf16>
    %c112_350 = arith.constant 112 : index
    %c384_351 = arith.constant 384 : index
    %188 = vector.load %arg5[%c112_350, %c384_351] : memref<128x512xbf16, #tpu.memory_space<vmem>>, vector<8x128xbf16>
    tpu.vector_store %arg5[%c112_350, %c384_351], %187 {strides = array<i32>} : memref<128x512xbf16, #tpu.memory_space<vmem>>, vector<8x128xbf16>,
    %c1_352 = arith.constant 1 : index
    %c8_353 = arith.constant 8 : index
    %c1_354 = arith.constant 1 : index
    %c0_355 = arith.constant 0 : index
    %189 = vector.load %arg1[%c1_352, %c8_353, %c1_354, %c0_355] : memref<2x9x9x128xbf16, #tpu.memory_space<vmem>>, vector<1x1x8x128xbf16>
    %190 = vector.shape_cast %189 : vector<1x1x8x128xbf16> to vector<8x128xbf16>
    %c120_356 = arith.constant 120 : index
    %c384_357 = arith.constant 384 : index
    %191 = vector.load %arg5[%c120_356, %c384_357] : memref<128x512xbf16, #tpu.memory_space<vmem>>, vector<8x128xbf16>
    tpu.vector_store %arg5[%c120_356, %c384_357], %190 {strides = array<i32>} : memref<128x512xbf16, #tpu.memory_space<vmem>>, vector<8x128xbf16>,
    %c0_358 = arith.constant 0 : index
    %c0_359 = arith.constant 0 : index
    %192 = vector.load %arg5[%c0_358, %c0_359] : memref<128x512xbf16, #tpu.memory_space<vmem>>, vector<128x512xbf16>
    %c0_360 = arith.constant 0 : index
    %c0_361 = arith.constant 0 : index
    %193 = vector.load %arg2[%c0_360, %c0_361] : memref<512x128xbf16, #tpu.memory_space<vmem>>, vector<512x128xbf16>
    %cst = arith.constant dense<0.000000e+00> : vector<128x128xf32>
    %194 = tpu.matmul %192, %193, %cst {dimension_numbers = #tpu.dot_dimension_numbers<[1], [0], [0], [1], [0, 0, 1, 1], [], []>} : vector<128x512xbf16>, vector<512x128xbf16>, vector<128x128xf32> -> vector<128x128xf32>
    %c0_362 = arith.constant 0 : index
    %c0_363 = arith.constant 0 : index
    %195 = vector.load %arg3[%c0_362, %c0_363] : memref<1x128xf32, #tpu.memory_space<vmem>>, vector<1x128xf32>
    %196 = vector.broadcast %195 : vector<1x128xf32> to vector<128x128xf32>
    %197 = arith.addf %194, %196 : vector<128x128xf32>
    %cst_364 = arith.constant 0.000000e+00 : f32
    %198 = vector.broadcast %cst_364 : f32 to vector<128x128xf32>
    %199 = arith.cmpf oge, %197, %198 : vector<128x128xf32>
    %cst_365 = arith.constant 2.000000e-01 : f32
    %200 = vector.broadcast %cst_365 : f32 to vector<128x128xf32>
    %201 = arith.mulf %200, %197 : vector<128x128xf32>
    %202 = arith.select %199, %197, %201 : vector<128x128xi1>, vector<128x128xf32>
    %203 = arith.truncf %202 : vector<128x128xf32> to vector<128x128xbf16>
    %c0_366 = arith.constant 0 : index
    %c0_367 = arith.constant 0 : index
    %204 = vector.load %arg4[%c0_366, %c0_367] : memref<128x128xbf16, #tpu.memory_space<vmem>>, vector<128x128xbf16>
    tpu.vector_store %arg4[%c0_366, %c0_367], %203 {strides = array<i32>} : memref<128x128xbf16, #tpu.memory_space<vmem>>, vector<128x128xbf16>,
    return
  }
  func.func @transform_0(%arg0: i32) -> (i32, i32, i32, i32) {
    %c0_i32 = arith.constant 0 : i32
    %c0_i32_0 = arith.constant 0 : i32
    %c0_i32_1 = arith.constant 0 : i32
    %c0_i32_2 = arith.constant 0 : i32
    %c0_i32_3 = arith.constant 0 : i32
    return %c0_i32, %c0_i32_0, %c0_i32_1, %c0_i32_2 : i32, i32, i32, i32
  }
  func.func @transform_1(%arg0: i32) -> (i32, i32) {
    %c0_i32 = arith.constant 0 : i32
    %c0_i32_0 = arith.constant 0 : i32
    %c0_i32_1 = arith.constant 0 : i32
    return %c0_i32, %c0_i32_0 : i32, i32
  }
  func.func @transform_2(%arg0: i32) -> (i32, i32) {
    %c0_i32 = arith.constant 0 : i32
    %c0_i32_0 = arith.constant 0 : i32
    %c0_i32_1 = arith.constant 0 : i32
    return %c0_i32, %c0_i32_0 : i32, i32
  }
  func.func @transform_3(%arg0: i32) -> (i32, i32) {
    %c0_i32 = arith.constant 0 : i32
    %c0_i32_0 = arith.constant 0 : i32
    %c0_i32_1 = arith.constant 0 : i32
    return %c0_i32, %c0_i32_0 : i32, i32
  }
}

module attributes {stable_mosaic.version = 11 : i64} {
  func.func @_conv_layer_kernel(%arg0: i32, %arg1: memref<2x5x5x128xbf16, #tpu.memory_space<vmem>>, %arg2: memref<512x128xbf16, #tpu.memory_space<vmem>>, %arg3: memref<1x128xf32, #tpu.memory_space<vmem>>, %arg4: memref<32x128xbf16, #tpu.memory_space<vmem>>, %arg5: memref<32x512xbf16, #tpu.memory_space<vmem>>) attributes {dimension_semantics = [#tpu.dimension_semantics<arbitrary>], iteration_bounds = array<i64: 1>, scalar_prefetch = 0 : i64, scratch_operands = 1 : i64, tpu.core_type = #tpu.core_type<tc>, window_params = [{pipeline_mode = #tpu.pipeline_mode<synchronous>, transform_indices = @transform_0, window_bounds = array<i64: 2, 5, 5, 128>}, {pipeline_mode = #tpu.pipeline_mode<synchronous>, transform_indices = @transform_1, window_bounds = array<i64: 512, 128>}, {pipeline_mode = #tpu.pipeline_mode<synchronous>, transform_indices = @transform_2, window_bounds = array<i64: 1, 128>}, {pipeline_mode = #tpu.pipeline_mode<synchronous>, transform_indices = @transform_3, window_bounds = array<i64: 32, 128>}]} {
    %c0 = arith.constant 0 : index
    %c0_0 = arith.constant 0 : index
    %c0_1 = arith.constant 0 : index
    %c0_2 = arith.constant 0 : index
    %0 = vector.load %arg1[%c0, %c0_0, %c0_1, %c0_2] : memref<2x5x5x128xbf16, #tpu.memory_space<vmem>>, vector<1x1x4x128xbf16>
    %1 = vector.shape_cast %0 : vector<1x1x4x128xbf16> to vector<4x128xbf16>
    %c0_3 = arith.constant 0 : index
    %c0_4 = arith.constant 0 : index
    %2 = vector.load %arg5[%c0_3, %c0_4] : memref<32x512xbf16, #tpu.memory_space<vmem>>, vector<4x128xbf16>
    tpu.vector_store %arg5[%c0_3, %c0_4], %1 {strides = array<i32>} : memref<32x512xbf16, #tpu.memory_space<vmem>>, vector<4x128xbf16>,
    %c0_5 = arith.constant 0 : index
    %c1 = arith.constant 1 : index
    %c0_6 = arith.constant 0 : index
    %c0_7 = arith.constant 0 : index
    %3 = vector.load %arg1[%c0_5, %c1, %c0_6, %c0_7] : memref<2x5x5x128xbf16, #tpu.memory_space<vmem>>, vector<1x1x4x128xbf16>
    %4 = vector.shape_cast %3 : vector<1x1x4x128xbf16> to vector<4x128xbf16>
    %c4 = arith.constant 4 : index
    %c0_8 = arith.constant 0 : index
    %5 = vector.load %arg5[%c4, %c0_8] : memref<32x512xbf16, #tpu.memory_space<vmem>>, vector<4x128xbf16>
    tpu.vector_store %arg5[%c4, %c0_8], %4 {strides = array<i32>} : memref<32x512xbf16, #tpu.memory_space<vmem>>, vector<4x128xbf16>,
    %c0_9 = arith.constant 0 : index
    %c2 = arith.constant 2 : index
    %c0_10 = arith.constant 0 : index
    %c0_11 = arith.constant 0 : index
    %6 = vector.load %arg1[%c0_9, %c2, %c0_10, %c0_11] : memref<2x5x5x128xbf16, #tpu.memory_space<vmem>>, vector<1x1x4x128xbf16>
    %7 = vector.shape_cast %6 : vector<1x1x4x128xbf16> to vector<4x128xbf16>
    %c8 = arith.constant 8 : index
    %c0_12 = arith.constant 0 : index
    %8 = vector.load %arg5[%c8, %c0_12] : memref<32x512xbf16, #tpu.memory_space<vmem>>, vector<4x128xbf16>
    tpu.vector_store %arg5[%c8, %c0_12], %7 {strides = array<i32>} : memref<32x512xbf16, #tpu.memory_space<vmem>>, vector<4x128xbf16>,
    %c0_13 = arith.constant 0 : index
    %c3 = arith.constant 3 : index
    %c0_14 = arith.constant 0 : index
    %c0_15 = arith.constant 0 : index
    %9 = vector.load %arg1[%c0_13, %c3, %c0_14, %c0_15] : memref<2x5x5x128xbf16, #tpu.memory_space<vmem>>, vector<1x1x4x128xbf16>
    %10 = vector.shape_cast %9 : vector<1x1x4x128xbf16> to vector<4x128xbf16>
    %c12 = arith.constant 12 : index
    %c0_16 = arith.constant 0 : index
    %11 = vector.load %arg5[%c12, %c0_16] : memref<32x512xbf16, #tpu.memory_space<vmem>>, vector<4x128xbf16>
    tpu.vector_store %arg5[%c12, %c0_16], %10 {strides = array<i32>} : memref<32x512xbf16, #tpu.memory_space<vmem>>, vector<4x128xbf16>,
    %c1_17 = arith.constant 1 : index
    %c0_18 = arith.constant 0 : index
    %c0_19 = arith.constant 0 : index
    %c0_20 = arith.constant 0 : index
    %12 = vector.load %arg1[%c1_17, %c0_18, %c0_19, %c0_20] : memref<2x5x5x128xbf16, #tpu.memory_space<vmem>>, vector<1x1x4x128xbf16>
    %13 = vector.shape_cast %12 : vector<1x1x4x128xbf16> to vector<4x128xbf16>
    %c16 = arith.constant 16 : index
    %c0_21 = arith.constant 0 : index
    %14 = vector.load %arg5[%c16, %c0_21] : memref<32x512xbf16, #tpu.memory_space<vmem>>, vector<4x128xbf16>
    tpu.vector_store %arg5[%c16, %c0_21], %13 {strides = array<i32>} : memref<32x512xbf16, #tpu.memory_space<vmem>>, vector<4x128xbf16>,
    %c1_22 = arith.constant 1 : index
    %c1_23 = arith.constant 1 : index
    %c0_24 = arith.constant 0 : index
    %c0_25 = arith.constant 0 : index
    %15 = vector.load %arg1[%c1_22, %c1_23, %c0_24, %c0_25] : memref<2x5x5x128xbf16, #tpu.memory_space<vmem>>, vector<1x1x4x128xbf16>
    %16 = vector.shape_cast %15 : vector<1x1x4x128xbf16> to vector<4x128xbf16>
    %c20 = arith.constant 20 : index
    %c0_26 = arith.constant 0 : index
    %17 = vector.load %arg5[%c20, %c0_26] : memref<32x512xbf16, #tpu.memory_space<vmem>>, vector<4x128xbf16>
    tpu.vector_store %arg5[%c20, %c0_26], %16 {strides = array<i32>} : memref<32x512xbf16, #tpu.memory_space<vmem>>, vector<4x128xbf16>,
    %c1_27 = arith.constant 1 : index
    %c2_28 = arith.constant 2 : index
    %c0_29 = arith.constant 0 : index
    %c0_30 = arith.constant 0 : index
    %18 = vector.load %arg1[%c1_27, %c2_28, %c0_29, %c0_30] : memref<2x5x5x128xbf16, #tpu.memory_space<vmem>>, vector<1x1x4x128xbf16>
    %19 = vector.shape_cast %18 : vector<1x1x4x128xbf16> to vector<4x128xbf16>
    %c24 = arith.constant 24 : index
    %c0_31 = arith.constant 0 : index
    %20 = vector.load %arg5[%c24, %c0_31] : memref<32x512xbf16, #tpu.memory_space<vmem>>, vector<4x128xbf16>
    tpu.vector_store %arg5[%c24, %c0_31], %19 {strides = array<i32>} : memref<32x512xbf16, #tpu.memory_space<vmem>>, vector<4x128xbf16>,
    %c1_32 = arith.constant 1 : index
    %c3_33 = arith.constant 3 : index
    %c0_34 = arith.constant 0 : index
    %c0_35 = arith.constant 0 : index
    %21 = vector.load %arg1[%c1_32, %c3_33, %c0_34, %c0_35] : memref<2x5x5x128xbf16, #tpu.memory_space<vmem>>, vector<1x1x4x128xbf16>
    %22 = vector.shape_cast %21 : vector<1x1x4x128xbf16> to vector<4x128xbf16>
    %c28 = arith.constant 28 : index
    %c0_36 = arith.constant 0 : index
    %23 = vector.load %arg5[%c28, %c0_36] : memref<32x512xbf16, #tpu.memory_space<vmem>>, vector<4x128xbf16>
    tpu.vector_store %arg5[%c28, %c0_36], %22 {strides = array<i32>} : memref<32x512xbf16, #tpu.memory_space<vmem>>, vector<4x128xbf16>,
    %c0_37 = arith.constant 0 : index
    %c0_38 = arith.constant 0 : index
    %c1_39 = arith.constant 1 : index
    %c0_40 = arith.constant 0 : index
    %24 = vector.load %arg1[%c0_37, %c0_38, %c1_39, %c0_40] : memref<2x5x5x128xbf16, #tpu.memory_space<vmem>>, vector<1x1x4x128xbf16>
    %25 = vector.shape_cast %24 : vector<1x1x4x128xbf16> to vector<4x128xbf16>
    %c0_41 = arith.constant 0 : index
    %c128 = arith.constant 128 : index
    %26 = vector.load %arg5[%c0_41, %c128] : memref<32x512xbf16, #tpu.memory_space<vmem>>, vector<4x128xbf16>
    tpu.vector_store %arg5[%c0_41, %c128], %25 {strides = array<i32>} : memref<32x512xbf16, #tpu.memory_space<vmem>>, vector<4x128xbf16>,
    %c0_42 = arith.constant 0 : index
    %c1_43 = arith.constant 1 : index
    %c1_44 = arith.constant 1 : index
    %c0_45 = arith.constant 0 : index
    %27 = vector.load %arg1[%c0_42, %c1_43, %c1_44, %c0_45] : memref<2x5x5x128xbf16, #tpu.memory_space<vmem>>, vector<1x1x4x128xbf16>
    %28 = vector.shape_cast %27 : vector<1x1x4x128xbf16> to vector<4x128xbf16>
    %c4_46 = arith.constant 4 : index
    %c128_47 = arith.constant 128 : index
    %29 = vector.load %arg5[%c4_46, %c128_47] : memref<32x512xbf16, #tpu.memory_space<vmem>>, vector<4x128xbf16>
    tpu.vector_store %arg5[%c4_46, %c128_47], %28 {strides = array<i32>} : memref<32x512xbf16, #tpu.memory_space<vmem>>, vector<4x128xbf16>,
    %c0_48 = arith.constant 0 : index
    %c2_49 = arith.constant 2 : index
    %c1_50 = arith.constant 1 : index
    %c0_51 = arith.constant 0 : index
    %30 = vector.load %arg1[%c0_48, %c2_49, %c1_50, %c0_51] : memref<2x5x5x128xbf16, #tpu.memory_space<vmem>>, vector<1x1x4x128xbf16>
    %31 = vector.shape_cast %30 : vector<1x1x4x128xbf16> to vector<4x128xbf16>
    %c8_52 = arith.constant 8 : index
    %c128_53 = arith.constant 128 : index
    %32 = vector.load %arg5[%c8_52, %c128_53] : memref<32x512xbf16, #tpu.memory_space<vmem>>, vector<4x128xbf16>
    tpu.vector_store %arg5[%c8_52, %c128_53], %31 {strides = array<i32>} : memref<32x512xbf16, #tpu.memory_space<vmem>>, vector<4x128xbf16>,
    %c0_54 = arith.constant 0 : index
    %c3_55 = arith.constant 3 : index
    %c1_56 = arith.constant 1 : index
    %c0_57 = arith.constant 0 : index
    %33 = vector.load %arg1[%c0_54, %c3_55, %c1_56, %c0_57] : memref<2x5x5x128xbf16, #tpu.memory_space<vmem>>, vector<1x1x4x128xbf16>
    %34 = vector.shape_cast %33 : vector<1x1x4x128xbf16> to vector<4x128xbf16>
    %c12_58 = arith.constant 12 : index
    %c128_59 = arith.constant 128 : index
    %35 = vector.load %arg5[%c12_58, %c128_59] : memref<32x512xbf16, #tpu.memory_space<vmem>>, vector<4x128xbf16>
    tpu.vector_store %arg5[%c12_58, %c128_59], %34 {strides = array<i32>} : memref<32x512xbf16, #tpu.memory_space<vmem>>, vector<4x128xbf16>,
    %c1_60 = arith.constant 1 : index
    %c0_61 = arith.constant 0 : index
    %c1_62 = arith.constant 1 : index
    %c0_63 = arith.constant 0 : index
    %36 = vector.load %arg1[%c1_60, %c0_61, %c1_62, %c0_63] : memref<2x5x5x128xbf16, #tpu.memory_space<vmem>>, vector<1x1x4x128xbf16>
    %37 = vector.shape_cast %36 : vector<1x1x4x128xbf16> to vector<4x128xbf16>
    %c16_64 = arith.constant 16 : index
    %c128_65 = arith.constant 128 : index
    %38 = vector.load %arg5[%c16_64, %c128_65] : memref<32x512xbf16, #tpu.memory_space<vmem>>, vector<4x128xbf16>
    tpu.vector_store %arg5[%c16_64, %c128_65], %37 {strides = array<i32>} : memref<32x512xbf16, #tpu.memory_space<vmem>>, vector<4x128xbf16>,
    %c1_66 = arith.constant 1 : index
    %c1_67 = arith.constant 1 : index
    %c1_68 = arith.constant 1 : index
    %c0_69 = arith.constant 0 : index
    %39 = vector.load %arg1[%c1_66, %c1_67, %c1_68, %c0_69] : memref<2x5x5x128xbf16, #tpu.memory_space<vmem>>, vector<1x1x4x128xbf16>
    %40 = vector.shape_cast %39 : vector<1x1x4x128xbf16> to vector<4x128xbf16>
    %c20_70 = arith.constant 20 : index
    %c128_71 = arith.constant 128 : index
    %41 = vector.load %arg5[%c20_70, %c128_71] : memref<32x512xbf16, #tpu.memory_space<vmem>>, vector<4x128xbf16>
    tpu.vector_store %arg5[%c20_70, %c128_71], %40 {strides = array<i32>} : memref<32x512xbf16, #tpu.memory_space<vmem>>, vector<4x128xbf16>,
    %c1_72 = arith.constant 1 : index
    %c2_73 = arith.constant 2 : index
    %c1_74 = arith.constant 1 : index
    %c0_75 = arith.constant 0 : index
    %42 = vector.load %arg1[%c1_72, %c2_73, %c1_74, %c0_75] : memref<2x5x5x128xbf16, #tpu.memory_space<vmem>>, vector<1x1x4x128xbf16>
    %43 = vector.shape_cast %42 : vector<1x1x4x128xbf16> to vector<4x128xbf16>
    %c24_76 = arith.constant 24 : index
    %c128_77 = arith.constant 128 : index
    %44 = vector.load %arg5[%c24_76, %c128_77] : memref<32x512xbf16, #tpu.memory_space<vmem>>, vector<4x128xbf16>
    tpu.vector_store %arg5[%c24_76, %c128_77], %43 {strides = array<i32>} : memref<32x512xbf16, #tpu.memory_space<vmem>>, vector<4x128xbf16>,
    %c1_78 = arith.constant 1 : index
    %c3_79 = arith.constant 3 : index
    %c1_80 = arith.constant 1 : index
    %c0_81 = arith.constant 0 : index
    %45 = vector.load %arg1[%c1_78, %c3_79, %c1_80, %c0_81] : memref<2x5x5x128xbf16, #tpu.memory_space<vmem>>, vector<1x1x4x128xbf16>
    %46 = vector.shape_cast %45 : vector<1x1x4x128xbf16> to vector<4x128xbf16>
    %c28_82 = arith.constant 28 : index
    %c128_83 = arith.constant 128 : index
    %47 = vector.load %arg5[%c28_82, %c128_83] : memref<32x512xbf16, #tpu.memory_space<vmem>>, vector<4x128xbf16>
    tpu.vector_store %arg5[%c28_82, %c128_83], %46 {strides = array<i32>} : memref<32x512xbf16, #tpu.memory_space<vmem>>, vector<4x128xbf16>,
    %c0_84 = arith.constant 0 : index
    %c1_85 = arith.constant 1 : index
    %c0_86 = arith.constant 0 : index
    %c0_87 = arith.constant 0 : index
    %48 = vector.load %arg1[%c0_84, %c1_85, %c0_86, %c0_87] : memref<2x5x5x128xbf16, #tpu.memory_space<vmem>>, vector<1x1x4x128xbf16>
    %49 = vector.shape_cast %48 : vector<1x1x4x128xbf16> to vector<4x128xbf16>
    %c0_88 = arith.constant 0 : index
    %c256 = arith.constant 256 : index
    %50 = vector.load %arg5[%c0_88, %c256] : memref<32x512xbf16, #tpu.memory_space<vmem>>, vector<4x128xbf16>
    tpu.vector_store %arg5[%c0_88, %c256], %49 {strides = array<i32>} : memref<32x512xbf16, #tpu.memory_space<vmem>>, vector<4x128xbf16>,
    %c0_89 = arith.constant 0 : index
    %c2_90 = arith.constant 2 : index
    %c0_91 = arith.constant 0 : index
    %c0_92 = arith.constant 0 : index
    %51 = vector.load %arg1[%c0_89, %c2_90, %c0_91, %c0_92] : memref<2x5x5x128xbf16, #tpu.memory_space<vmem>>, vector<1x1x4x128xbf16>
    %52 = vector.shape_cast %51 : vector<1x1x4x128xbf16> to vector<4x128xbf16>
    %c4_93 = arith.constant 4 : index
    %c256_94 = arith.constant 256 : index
    %53 = vector.load %arg5[%c4_93, %c256_94] : memref<32x512xbf16, #tpu.memory_space<vmem>>, vector<4x128xbf16>
    tpu.vector_store %arg5[%c4_93, %c256_94], %52 {strides = array<i32>} : memref<32x512xbf16, #tpu.memory_space<vmem>>, vector<4x128xbf16>,
    %c0_95 = arith.constant 0 : index
    %c3_96 = arith.constant 3 : index
    %c0_97 = arith.constant 0 : index
    %c0_98 = arith.constant 0 : index
    %54 = vector.load %arg1[%c0_95, %c3_96, %c0_97, %c0_98] : memref<2x5x5x128xbf16, #tpu.memory_space<vmem>>, vector<1x1x4x128xbf16>
    %55 = vector.shape_cast %54 : vector<1x1x4x128xbf16> to vector<4x128xbf16>
    %c8_99 = arith.constant 8 : index
    %c256_100 = arith.constant 256 : index
    %56 = vector.load %arg5[%c8_99, %c256_100] : memref<32x512xbf16, #tpu.memory_space<vmem>>, vector<4x128xbf16>
    tpu.vector_store %arg5[%c8_99, %c256_100], %55 {strides = array<i32>} : memref<32x512xbf16, #tpu.memory_space<vmem>>, vector<4x128xbf16>,
    %c0_101 = arith.constant 0 : index
    %c4_102 = arith.constant 4 : index
    %c0_103 = arith.constant 0 : index
    %c0_104 = arith.constant 0 : index
    %57 = vector.load %arg1[%c0_101, %c4_102, %c0_103, %c0_104] : memref<2x5x5x128xbf16, #tpu.memory_space<vmem>>, vector<1x1x4x128xbf16>
    %58 = vector.shape_cast %57 : vector<1x1x4x128xbf16> to vector<4x128xbf16>
    %c12_105 = arith.constant 12 : index
    %c256_106 = arith.constant 256 : index
    %59 = vector.load %arg5[%c12_105, %c256_106] : memref<32x512xbf16, #tpu.memory_space<vmem>>, vector<4x128xbf16>
    tpu.vector_store %arg5[%c12_105, %c256_106], %58 {strides = array<i32>} : memref<32x512xbf16, #tpu.memory_space<vmem>>, vector<4x128xbf16>,
    %c1_107 = arith.constant 1 : index
    %c1_108 = arith.constant 1 : index
    %c0_109 = arith.constant 0 : index
    %c0_110 = arith.constant 0 : index
    %60 = vector.load %arg1[%c1_107, %c1_108, %c0_109, %c0_110] : memref<2x5x5x128xbf16, #tpu.memory_space<vmem>>, vector<1x1x4x128xbf16>
    %61 = vector.shape_cast %60 : vector<1x1x4x128xbf16> to vector<4x128xbf16>
    %c16_111 = arith.constant 16 : index
    %c256_112 = arith.constant 256 : index
    %62 = vector.load %arg5[%c16_111, %c256_112] : memref<32x512xbf16, #tpu.memory_space<vmem>>, vector<4x128xbf16>
    tpu.vector_store %arg5[%c16_111, %c256_112], %61 {strides = array<i32>} : memref<32x512xbf16, #tpu.memory_space<vmem>>, vector<4x128xbf16>,
    %c1_113 = arith.constant 1 : index
    %c2_114 = arith.constant 2 : index
    %c0_115 = arith.constant 0 : index
    %c0_116 = arith.constant 0 : index
    %63 = vector.load %arg1[%c1_113, %c2_114, %c0_115, %c0_116] : memref<2x5x5x128xbf16, #tpu.memory_space<vmem>>, vector<1x1x4x128xbf16>
    %64 = vector.shape_cast %63 : vector<1x1x4x128xbf16> to vector<4x128xbf16>
    %c20_117 = arith.constant 20 : index
    %c256_118 = arith.constant 256 : index
    %65 = vector.load %arg5[%c20_117, %c256_118] : memref<32x512xbf16, #tpu.memory_space<vmem>>, vector<4x128xbf16>
    tpu.vector_store %arg5[%c20_117, %c256_118], %64 {strides = array<i32>} : memref<32x512xbf16, #tpu.memory_space<vmem>>, vector<4x128xbf16>,
    %c1_119 = arith.constant 1 : index
    %c3_120 = arith.constant 3 : index
    %c0_121 = arith.constant 0 : index
    %c0_122 = arith.constant 0 : index
    %66 = vector.load %arg1[%c1_119, %c3_120, %c0_121, %c0_122] : memref<2x5x5x128xbf16, #tpu.memory_space<vmem>>, vector<1x1x4x128xbf16>
    %67 = vector.shape_cast %66 : vector<1x1x4x128xbf16> to vector<4x128xbf16>
    %c24_123 = arith.constant 24 : index
    %c256_124 = arith.constant 256 : index
    %68 = vector.load %arg5[%c24_123, %c256_124] : memref<32x512xbf16, #tpu.memory_space<vmem>>, vector<4x128xbf16>
    tpu.vector_store %arg5[%c24_123, %c256_124], %67 {strides = array<i32>} : memref<32x512xbf16, #tpu.memory_space<vmem>>, vector<4x128xbf16>,
    %c1_125 = arith.constant 1 : index
    %c4_126 = arith.constant 4 : index
    %c0_127 = arith.constant 0 : index
    %c0_128 = arith.constant 0 : index
    %69 = vector.load %arg1[%c1_125, %c4_126, %c0_127, %c0_128] : memref<2x5x5x128xbf16, #tpu.memory_space<vmem>>, vector<1x1x4x128xbf16>
    %70 = vector.shape_cast %69 : vector<1x1x4x128xbf16> to vector<4x128xbf16>
    %c28_129 = arith.constant 28 : index
    %c256_130 = arith.constant 256 : index
    %71 = vector.load %arg5[%c28_129, %c256_130] : memref<32x512xbf16, #tpu.memory_space<vmem>>, vector<4x128xbf16>
    tpu.vector_store %arg5[%c28_129, %c256_130], %70 {strides = array<i32>} : memref<32x512xbf16, #tpu.memory_space<vmem>>, vector<4x128xbf16>,
    %c0_131 = arith.constant 0 : index
    %c1_132 = arith.constant 1 : index
    %c1_133 = arith.constant 1 : index
    %c0_134 = arith.constant 0 : index
    %72 = vector.load %arg1[%c0_131, %c1_132, %c1_133, %c0_134] : memref<2x5x5x128xbf16, #tpu.memory_space<vmem>>, vector<1x1x4x128xbf16>
    %73 = vector.shape_cast %72 : vector<1x1x4x128xbf16> to vector<4x128xbf16>
    %c0_135 = arith.constant 0 : index
    %c384 = arith.constant 384 : index
    %74 = vector.load %arg5[%c0_135, %c384] : memref<32x512xbf16, #tpu.memory_space<vmem>>, vector<4x128xbf16>
    tpu.vector_store %arg5[%c0_135, %c384], %73 {strides = array<i32>} : memref<32x512xbf16, #tpu.memory_space<vmem>>, vector<4x128xbf16>,
    %c0_136 = arith.constant 0 : index
    %c2_137 = arith.constant 2 : index
    %c1_138 = arith.constant 1 : index
    %c0_139 = arith.constant 0 : index
    %75 = vector.load %arg1[%c0_136, %c2_137, %c1_138, %c0_139] : memref<2x5x5x128xbf16, #tpu.memory_space<vmem>>, vector<1x1x4x128xbf16>
    %76 = vector.shape_cast %75 : vector<1x1x4x128xbf16> to vector<4x128xbf16>
    %c4_140 = arith.constant 4 : index
    %c384_141 = arith.constant 384 : index
    %77 = vector.load %arg5[%c4_140, %c384_141] : memref<32x512xbf16, #tpu.memory_space<vmem>>, vector<4x128xbf16>
    tpu.vector_store %arg5[%c4_140, %c384_141], %76 {strides = array<i32>} : memref<32x512xbf16, #tpu.memory_space<vmem>>, vector<4x128xbf16>,
    %c0_142 = arith.constant 0 : index
    %c3_143 = arith.constant 3 : index
    %c1_144 = arith.constant 1 : index
    %c0_145 = arith.constant 0 : index
    %78 = vector.load %arg1[%c0_142, %c3_143, %c1_144, %c0_145] : memref<2x5x5x128xbf16, #tpu.memory_space<vmem>>, vector<1x1x4x128xbf16>
    %79 = vector.shape_cast %78 : vector<1x1x4x128xbf16> to vector<4x128xbf16>
    %c8_146 = arith.constant 8 : index
    %c384_147 = arith.constant 384 : index
    %80 = vector.load %arg5[%c8_146, %c384_147] : memref<32x512xbf16, #tpu.memory_space<vmem>>, vector<4x128xbf16>
    tpu.vector_store %arg5[%c8_146, %c384_147], %79 {strides = array<i32>} : memref<32x512xbf16, #tpu.memory_space<vmem>>, vector<4x128xbf16>,
    %c0_148 = arith.constant 0 : index
    %c4_149 = arith.constant 4 : index
    %c1_150 = arith.constant 1 : index
    %c0_151 = arith.constant 0 : index
    %81 = vector.load %arg1[%c0_148, %c4_149, %c1_150, %c0_151] : memref<2x5x5x128xbf16, #tpu.memory_space<vmem>>, vector<1x1x4x128xbf16>
    %82 = vector.shape_cast %81 : vector<1x1x4x128xbf16> to vector<4x128xbf16>
    %c12_152 = arith.constant 12 : index
    %c384_153 = arith.constant 384 : index
    %83 = vector.load %arg5[%c12_152, %c384_153] : memref<32x512xbf16, #tpu.memory_space<vmem>>, vector<4x128xbf16>
    tpu.vector_store %arg5[%c12_152, %c384_153], %82 {strides = array<i32>} : memref<32x512xbf16, #tpu.memory_space<vmem>>, vector<4x128xbf16>,
    %c1_154 = arith.constant 1 : index
    %c1_155 = arith.constant 1 : index
    %c1_156 = arith.constant 1 : index
    %c0_157 = arith.constant 0 : index
    %84 = vector.load %arg1[%c1_154, %c1_155, %c1_156, %c0_157] : memref<2x5x5x128xbf16, #tpu.memory_space<vmem>>, vector<1x1x4x128xbf16>
    %85 = vector.shape_cast %84 : vector<1x1x4x128xbf16> to vector<4x128xbf16>
    %c16_158 = arith.constant 16 : index
    %c384_159 = arith.constant 384 : index
    %86 = vector.load %arg5[%c16_158, %c384_159] : memref<32x512xbf16, #tpu.memory_space<vmem>>, vector<4x128xbf16>
    tpu.vector_store %arg5[%c16_158, %c384_159], %85 {strides = array<i32>} : memref<32x512xbf16, #tpu.memory_space<vmem>>, vector<4x128xbf16>,
    %c1_160 = arith.constant 1 : index
    %c2_161 = arith.constant 2 : index
    %c1_162 = arith.constant 1 : index
    %c0_163 = arith.constant 0 : index
    %87 = vector.load %arg1[%c1_160, %c2_161, %c1_162, %c0_163] : memref<2x5x5x128xbf16, #tpu.memory_space<vmem>>, vector<1x1x4x128xbf16>
    %88 = vector.shape_cast %87 : vector<1x1x4x128xbf16> to vector<4x128xbf16>
    %c20_164 = arith.constant 20 : index
    %c384_165 = arith.constant 384 : index
    %89 = vector.load %arg5[%c20_164, %c384_165] : memref<32x512xbf16, #tpu.memory_space<vmem>>, vector<4x128xbf16>
    tpu.vector_store %arg5[%c20_164, %c384_165], %88 {strides = array<i32>} : memref<32x512xbf16, #tpu.memory_space<vmem>>, vector<4x128xbf16>,
    %c1_166 = arith.constant 1 : index
    %c3_167 = arith.constant 3 : index
    %c1_168 = arith.constant 1 : index
    %c0_169 = arith.constant 0 : index
    %90 = vector.load %arg1[%c1_166, %c3_167, %c1_168, %c0_169] : memref<2x5x5x128xbf16, #tpu.memory_space<vmem>>, vector<1x1x4x128xbf16>
    %91 = vector.shape_cast %90 : vector<1x1x4x128xbf16> to vector<4x128xbf16>
    %c24_170 = arith.constant 24 : index
    %c384_171 = arith.constant 384 : index
    %92 = vector.load %arg5[%c24_170, %c384_171] : memref<32x512xbf16, #tpu.memory_space<vmem>>, vector<4x128xbf16>
    tpu.vector_store %arg5[%c24_170, %c384_171], %91 {strides = array<i32>} : memref<32x512xbf16, #tpu.memory_space<vmem>>, vector<4x128xbf16>,
    %c1_172 = arith.constant 1 : index
    %c4_173 = arith.constant 4 : index
    %c1_174 = arith.constant 1 : index
    %c0_175 = arith.constant 0 : index
    %93 = vector.load %arg1[%c1_172, %c4_173, %c1_174, %c0_175] : memref<2x5x5x128xbf16, #tpu.memory_space<vmem>>, vector<1x1x4x128xbf16>
    %94 = vector.shape_cast %93 : vector<1x1x4x128xbf16> to vector<4x128xbf16>
    %c28_176 = arith.constant 28 : index
    %c384_177 = arith.constant 384 : index
    %95 = vector.load %arg5[%c28_176, %c384_177] : memref<32x512xbf16, #tpu.memory_space<vmem>>, vector<4x128xbf16>
    tpu.vector_store %arg5[%c28_176, %c384_177], %94 {strides = array<i32>} : memref<32x512xbf16, #tpu.memory_space<vmem>>, vector<4x128xbf16>,
    %c0_178 = arith.constant 0 : index
    %c0_179 = arith.constant 0 : index
    %96 = vector.load %arg5[%c0_178, %c0_179] : memref<32x512xbf16, #tpu.memory_space<vmem>>, vector<32x512xbf16>
    %c0_180 = arith.constant 0 : index
    %c0_181 = arith.constant 0 : index
    %97 = vector.load %arg2[%c0_180, %c0_181] : memref<512x128xbf16, #tpu.memory_space<vmem>>, vector<512x128xbf16>
    %cst = arith.constant dense<0.000000e+00> : vector<32x128xf32>
    %98 = tpu.matmul %96, %97, %cst {dimension_numbers = #tpu.dot_dimension_numbers<[1], [0], [0], [1], [0, 0, 1, 1], [], []>} : vector<32x512xbf16>, vector<512x128xbf16>, vector<32x128xf32> -> vector<32x128xf32>
    %c0_182 = arith.constant 0 : index
    %c0_183 = arith.constant 0 : index
    %99 = vector.load %arg3[%c0_182, %c0_183] : memref<1x128xf32, #tpu.memory_space<vmem>>, vector<1x128xf32>
    %100 = vector.broadcast %99 : vector<1x128xf32> to vector<32x128xf32>
    %101 = arith.addf %98, %100 : vector<32x128xf32>
    %cst_184 = arith.constant 0.000000e+00 : f32
    %102 = vector.broadcast %cst_184 : f32 to vector<32x128xf32>
    %103 = arith.cmpf oge, %101, %102 : vector<32x128xf32>
    %cst_185 = arith.constant 2.000000e-01 : f32
    %104 = vector.broadcast %cst_185 : f32 to vector<32x128xf32>
    %105 = arith.mulf %104, %101 : vector<32x128xf32>
    %106 = arith.select %103, %101, %105 : vector<32x128xi1>, vector<32x128xf32>
    %107 = arith.truncf %106 : vector<32x128xf32> to vector<32x128xbf16>
    %c0_186 = arith.constant 0 : index
    %c0_187 = arith.constant 0 : index
    %108 = vector.load %arg4[%c0_186, %c0_187] : memref<32x128xbf16, #tpu.memory_space<vmem>>, vector<32x128xbf16>
    tpu.vector_store %arg4[%c0_186, %c0_187], %107 {strides = array<i32>} : memref<32x128xbf16, #tpu.memory_space<vmem>>, vector<32x128xbf16>,
    return
  }
  func.func @transform_0(%arg0: i32) -> (i32, i32, i32, i32) {
    %c0_i32 = arith.constant 0 : i32
    %c0_i32_0 = arith.constant 0 : i32
    %c0_i32_1 = arith.constant 0 : i32
    %c0_i32_2 = arith.constant 0 : i32
    %c0_i32_3 = arith.constant 0 : i32
    return %c0_i32, %c0_i32_0, %c0_i32_1, %c0_i32_2 : i32, i32, i32, i32
  }
  func.func @transform_1(%arg0: i32) -> (i32, i32) {
    %c0_i32 = arith.constant 0 : i32
    %c0_i32_0 = arith.constant 0 : i32
    %c0_i32_1 = arith.constant 0 : i32
    return %c0_i32, %c0_i32_0 : i32, i32
  }
  func.func @transform_2(%arg0: i32) -> (i32, i32) {
    %c0_i32 = arith.constant 0 : i32
    %c0_i32_0 = arith.constant 0 : i32
    %c0_i32_1 = arith.constant 0 : i32
    return %c0_i32, %c0_i32_0 : i32, i32
  }
  func.func @transform_3(%arg0: i32) -> (i32, i32) {
    %c0_i32 = arith.constant 0 : i32
    %c0_i32_0 = arith.constant 0 : i32
    %c0_i32_1 = arith.constant 0 : i32
    return %c0_i32, %c0_i32_0 : i32, i32
  }
}

module attributes {stable_mosaic.version = 11 : i64} {
  func.func @_conv_layer_kernel(%arg0: i32, %arg1: memref<2x3x3x128xbf16, #tpu.memory_space<vmem>>, %arg2: memref<512x128xbf16, #tpu.memory_space<vmem>>, %arg3: memref<1x128xf32, #tpu.memory_space<vmem>>, %arg4: memref<8x128xbf16, #tpu.memory_space<vmem>>, %arg5: memref<8x512xbf16, #tpu.memory_space<vmem>>) attributes {dimension_semantics = [#tpu.dimension_semantics<arbitrary>], iteration_bounds = array<i64: 1>, scalar_prefetch = 0 : i64, scratch_operands = 1 : i64, tpu.core_type = #tpu.core_type<tc>, window_params = [{pipeline_mode = #tpu.pipeline_mode<synchronous>, transform_indices = @transform_0, window_bounds = array<i64: 2, 3, 3, 128>}, {pipeline_mode = #tpu.pipeline_mode<synchronous>, transform_indices = @transform_1, window_bounds = array<i64: 512, 128>}, {pipeline_mode = #tpu.pipeline_mode<synchronous>, transform_indices = @transform_2, window_bounds = array<i64: 1, 128>}, {pipeline_mode = #tpu.pipeline_mode<synchronous>, transform_indices = @transform_3, window_bounds = array<i64: 8, 128>}]} {
    %c0 = arith.constant 0 : index
    %c0_0 = arith.constant 0 : index
    %c0_1 = arith.constant 0 : index
    %c0_2 = arith.constant 0 : index
    %0 = vector.load %arg1[%c0, %c0_0, %c0_1, %c0_2] : memref<2x3x3x128xbf16, #tpu.memory_space<vmem>>, vector<1x1x2x128xbf16>
    %1 = vector.shape_cast %0 : vector<1x1x2x128xbf16> to vector<2x128xbf16>
    %c0_3 = arith.constant 0 : index
    %c0_4 = arith.constant 0 : index
    %2 = vector.load %arg5[%c0_3, %c0_4] : memref<8x512xbf16, #tpu.memory_space<vmem>>, vector<2x128xbf16>
    tpu.vector_store %arg5[%c0_3, %c0_4], %1 {strides = array<i32>} : memref<8x512xbf16, #tpu.memory_space<vmem>>, vector<2x128xbf16>,
    %c0_5 = arith.constant 0 : index
    %c1 = arith.constant 1 : index
    %c0_6 = arith.constant 0 : index
    %c0_7 = arith.constant 0 : index
    %3 = vector.load %arg1[%c0_5, %c1, %c0_6, %c0_7] : memref<2x3x3x128xbf16, #tpu.memory_space<vmem>>, vector<1x1x2x128xbf16>
    %4 = vector.shape_cast %3 : vector<1x1x2x128xbf16> to vector<2x128xbf16>
    %c2 = arith.constant 2 : index
    %c0_8 = arith.constant 0 : index
    %5 = vector.load %arg5[%c2, %c0_8] : memref<8x512xbf16, #tpu.memory_space<vmem>>, vector<2x128xbf16>
    tpu.vector_store %arg5[%c2, %c0_8], %4 {strides = array<i32>} : memref<8x512xbf16, #tpu.memory_space<vmem>>, vector<2x128xbf16>,
    %c1_9 = arith.constant 1 : index
    %c0_10 = arith.constant 0 : index
    %c0_11 = arith.constant 0 : index
    %c0_12 = arith.constant 0 : index
    %6 = vector.load %arg1[%c1_9, %c0_10, %c0_11, %c0_12] : memref<2x3x3x128xbf16, #tpu.memory_space<vmem>>, vector<1x1x2x128xbf16>
    %7 = vector.shape_cast %6 : vector<1x1x2x128xbf16> to vector<2x128xbf16>
    %c4 = arith.constant 4 : index
    %c0_13 = arith.constant 0 : index
    %8 = vector.load %arg5[%c4, %c0_13] : memref<8x512xbf16, #tpu.memory_space<vmem>>, vector<2x128xbf16>
    tpu.vector_store %arg5[%c4, %c0_13], %7 {strides = array<i32>} : memref<8x512xbf16, #tpu.memory_space<vmem>>, vector<2x128xbf16>,
    %c1_14 = arith.constant 1 : index
    %c1_15 = arith.constant 1 : index
    %c0_16 = arith.constant 0 : index
    %c0_17 = arith.constant 0 : index
    %9 = vector.load %arg1[%c1_14, %c1_15, %c0_16, %c0_17] : memref<2x3x3x128xbf16, #tpu.memory_space<vmem>>, vector<1x1x2x128xbf16>
    %10 = vector.shape_cast %9 : vector<1x1x2x128xbf16> to vector<2x128xbf16>
    %c6 = arith.constant 6 : index
    %c0_18 = arith.constant 0 : index
    %11 = vector.load %arg5[%c6, %c0_18] : memref<8x512xbf16, #tpu.memory_space<vmem>>, vector<2x128xbf16>
    tpu.vector_store %arg5[%c6, %c0_18], %10 {strides = array<i32>} : memref<8x512xbf16, #tpu.memory_space<vmem>>, vector<2x128xbf16>,
    %c0_19 = arith.constant 0 : index
    %c0_20 = arith.constant 0 : index
    %c1_21 = arith.constant 1 : index
    %c0_22 = arith.constant 0 : index
    %12 = vector.load %arg1[%c0_19, %c0_20, %c1_21, %c0_22] : memref<2x3x3x128xbf16, #tpu.memory_space<vmem>>, vector<1x1x2x128xbf16>
    %13 = vector.shape_cast %12 : vector<1x1x2x128xbf16> to vector<2x128xbf16>
    %c0_23 = arith.constant 0 : index
    %c128 = arith.constant 128 : index
    %14 = vector.load %arg5[%c0_23, %c128] : memref<8x512xbf16, #tpu.memory_space<vmem>>, vector<2x128xbf16>
    tpu.vector_store %arg5[%c0_23, %c128], %13 {strides = array<i32>} : memref<8x512xbf16, #tpu.memory_space<vmem>>, vector<2x128xbf16>,
    %c0_24 = arith.constant 0 : index
    %c1_25 = arith.constant 1 : index
    %c1_26 = arith.constant 1 : index
    %c0_27 = arith.constant 0 : index
    %15 = vector.load %arg1[%c0_24, %c1_25, %c1_26, %c0_27] : memref<2x3x3x128xbf16, #tpu.memory_space<vmem>>, vector<1x1x2x128xbf16>
    %16 = vector.shape_cast %15 : vector<1x1x2x128xbf16> to vector<2x128xbf16>
    %c2_28 = arith.constant 2 : index
    %c128_29 = arith.constant 128 : index
    %17 = vector.load %arg5[%c2_28, %c128_29] : memref<8x512xbf16, #tpu.memory_space<vmem>>, vector<2x128xbf16>
    tpu.vector_store %arg5[%c2_28, %c128_29], %16 {strides = array<i32>} : memref<8x512xbf16, #tpu.memory_space<vmem>>, vector<2x128xbf16>,
    %c1_30 = arith.constant 1 : index
    %c0_31 = arith.constant 0 : index
    %c1_32 = arith.constant 1 : index
    %c0_33 = arith.constant 0 : index
    %18 = vector.load %arg1[%c1_30, %c0_31, %c1_32, %c0_33] : memref<2x3x3x128xbf16, #tpu.memory_space<vmem>>, vector<1x1x2x128xbf16>
    %19 = vector.shape_cast %18 : vector<1x1x2x128xbf16> to vector<2x128xbf16>
    %c4_34 = arith.constant 4 : index
    %c128_35 = arith.constant 128 : index
    %20 = vector.load %arg5[%c4_34, %c128_35] : memref<8x512xbf16, #tpu.memory_space<vmem>>, vector<2x128xbf16>
    tpu.vector_store %arg5[%c4_34, %c128_35], %19 {strides = array<i32>} : memref<8x512xbf16, #tpu.memory_space<vmem>>, vector<2x128xbf16>,
    %c1_36 = arith.constant 1 : index
    %c1_37 = arith.constant 1 : index
    %c1_38 = arith.constant 1 : index
    %c0_39 = arith.constant 0 : index
    %21 = vector.load %arg1[%c1_36, %c1_37, %c1_38, %c0_39] : memref<2x3x3x128xbf16, #tpu.memory_space<vmem>>, vector<1x1x2x128xbf16>
    %22 = vector.shape_cast %21 : vector<1x1x2x128xbf16> to vector<2x128xbf16>
    %c6_40 = arith.constant 6 : index
    %c128_41 = arith.constant 128 : index
    %23 = vector.load %arg5[%c6_40, %c128_41] : memref<8x512xbf16, #tpu.memory_space<vmem>>, vector<2x128xbf16>
    tpu.vector_store %arg5[%c6_40, %c128_41], %22 {strides = array<i32>} : memref<8x512xbf16, #tpu.memory_space<vmem>>, vector<2x128xbf16>,
    %c0_42 = arith.constant 0 : index
    %c1_43 = arith.constant 1 : index
    %c0_44 = arith.constant 0 : index
    %c0_45 = arith.constant 0 : index
    %24 = vector.load %arg1[%c0_42, %c1_43, %c0_44, %c0_45] : memref<2x3x3x128xbf16, #tpu.memory_space<vmem>>, vector<1x1x2x128xbf16>
    %25 = vector.shape_cast %24 : vector<1x1x2x128xbf16> to vector<2x128xbf16>
    %c0_46 = arith.constant 0 : index
    %c256 = arith.constant 256 : index
    %26 = vector.load %arg5[%c0_46, %c256] : memref<8x512xbf16, #tpu.memory_space<vmem>>, vector<2x128xbf16>
    tpu.vector_store %arg5[%c0_46, %c256], %25 {strides = array<i32>} : memref<8x512xbf16, #tpu.memory_space<vmem>>, vector<2x128xbf16>,
    %c0_47 = arith.constant 0 : index
    %c2_48 = arith.constant 2 : index
    %c0_49 = arith.constant 0 : index
    %c0_50 = arith.constant 0 : index
    %27 = vector.load %arg1[%c0_47, %c2_48, %c0_49, %c0_50] : memref<2x3x3x128xbf16, #tpu.memory_space<vmem>>, vector<1x1x2x128xbf16>
    %28 = vector.shape_cast %27 : vector<1x1x2x128xbf16> to vector<2x128xbf16>
    %c2_51 = arith.constant 2 : index
    %c256_52 = arith.constant 256 : index
    %29 = vector.load %arg5[%c2_51, %c256_52] : memref<8x512xbf16, #tpu.memory_space<vmem>>, vector<2x128xbf16>
    tpu.vector_store %arg5[%c2_51, %c256_52], %28 {strides = array<i32>} : memref<8x512xbf16, #tpu.memory_space<vmem>>, vector<2x128xbf16>,
    %c1_53 = arith.constant 1 : index
    %c1_54 = arith.constant 1 : index
    %c0_55 = arith.constant 0 : index
    %c0_56 = arith.constant 0 : index
    %30 = vector.load %arg1[%c1_53, %c1_54, %c0_55, %c0_56] : memref<2x3x3x128xbf16, #tpu.memory_space<vmem>>, vector<1x1x2x128xbf16>
    %31 = vector.shape_cast %30 : vector<1x1x2x128xbf16> to vector<2x128xbf16>
    %c4_57 = arith.constant 4 : index
    %c256_58 = arith.constant 256 : index
    %32 = vector.load %arg5[%c4_57, %c256_58] : memref<8x512xbf16, #tpu.memory_space<vmem>>, vector<2x128xbf16>
    tpu.vector_store %arg5[%c4_57, %c256_58], %31 {strides = array<i32>} : memref<8x512xbf16, #tpu.memory_space<vmem>>, vector<2x128xbf16>,
    %c1_59 = arith.constant 1 : index
    %c2_60 = arith.constant 2 : index
    %c0_61 = arith.constant 0 : index
    %c0_62 = arith.constant 0 : index
    %33 = vector.load %arg1[%c1_59, %c2_60, %c0_61, %c0_62] : memref<2x3x3x128xbf16, #tpu.memory_space<vmem>>, vector<1x1x2x128xbf16>
    %34 = vector.shape_cast %33 : vector<1x1x2x128xbf16> to vector<2x128xbf16>
    %c6_63 = arith.constant 6 : index
    %c256_64 = arith.constant 256 : index
    %35 = vector.load %arg5[%c6_63, %c256_64] : memref<8x512xbf16, #tpu.memory_space<vmem>>, vector<2x128xbf16>
    tpu.vector_store %arg5[%c6_63, %c256_64], %34 {strides = array<i32>} : memref<8x512xbf16, #tpu.memory_space<vmem>>, vector<2x128xbf16>,
    %c0_65 = arith.constant 0 : index
    %c1_66 = arith.constant 1 : index
    %c1_67 = arith.constant 1 : index
    %c0_68 = arith.constant 0 : index
    %36 = vector.load %arg1[%c0_65, %c1_66, %c1_67, %c0_68] : memref<2x3x3x128xbf16, #tpu.memory_space<vmem>>, vector<1x1x2x128xbf16>
    %37 = vector.shape_cast %36 : vector<1x1x2x128xbf16> to vector<2x128xbf16>
    %c0_69 = arith.constant 0 : index
    %c384 = arith.constant 384 : index
    %38 = vector.load %arg5[%c0_69, %c384] : memref<8x512xbf16, #tpu.memory_space<vmem>>, vector<2x128xbf16>
    tpu.vector_store %arg5[%c0_69, %c384], %37 {strides = array<i32>} : memref<8x512xbf16, #tpu.memory_space<vmem>>, vector<2x128xbf16>,
    %c0_70 = arith.constant 0 : index
    %c2_71 = arith.constant 2 : index
    %c1_72 = arith.constant 1 : index
    %c0_73 = arith.constant 0 : index
    %39 = vector.load %arg1[%c0_70, %c2_71, %c1_72, %c0_73] : memref<2x3x3x128xbf16, #tpu.memory_space<vmem>>, vector<1x1x2x128xbf16>
    %40 = vector.shape_cast %39 : vector<1x1x2x128xbf16> to vector<2x128xbf16>
    %c2_74 = arith.constant 2 : index
    %c384_75 = arith.constant 384 : index
    %41 = vector.load %arg5[%c2_74, %c384_75] : memref<8x512xbf16, #tpu.memory_space<vmem>>, vector<2x128xbf16>
    tpu.vector_store %arg5[%c2_74, %c384_75], %40 {strides = array<i32>} : memref<8x512xbf16, #tpu.memory_space<vmem>>, vector<2x128xbf16>,
    %c1_76 = arith.constant 1 : index
    %c1_77 = arith.constant 1 : index
    %c1_78 = arith.constant 1 : index
    %c0_79 = arith.constant 0 : index
    %42 = vector.load %arg1[%c1_76, %c1_77, %c1_78, %c0_79] : memref<2x3x3x128xbf16, #tpu.memory_space<vmem>>, vector<1x1x2x128xbf16>
    %43 = vector.shape_cast %42 : vector<1x1x2x128xbf16> to vector<2x128xbf16>
    %c4_80 = arith.constant 4 : index
    %c384_81 = arith.constant 384 : index
    %44 = vector.load %arg5[%c4_80, %c384_81] : memref<8x512xbf16, #tpu.memory_space<vmem>>, vector<2x128xbf16>
    tpu.vector_store %arg5[%c4_80, %c384_81], %43 {strides = array<i32>} : memref<8x512xbf16, #tpu.memory_space<vmem>>, vector<2x128xbf16>,
    %c1_82 = arith.constant 1 : index
    %c2_83 = arith.constant 2 : index
    %c1_84 = arith.constant 1 : index
    %c0_85 = arith.constant 0 : index
    %45 = vector.load %arg1[%c1_82, %c2_83, %c1_84, %c0_85] : memref<2x3x3x128xbf16, #tpu.memory_space<vmem>>, vector<1x1x2x128xbf16>
    %46 = vector.shape_cast %45 : vector<1x1x2x128xbf16> to vector<2x128xbf16>
    %c6_86 = arith.constant 6 : index
    %c384_87 = arith.constant 384 : index
    %47 = vector.load %arg5[%c6_86, %c384_87] : memref<8x512xbf16, #tpu.memory_space<vmem>>, vector<2x128xbf16>
    tpu.vector_store %arg5[%c6_86, %c384_87], %46 {strides = array<i32>} : memref<8x512xbf16, #tpu.memory_space<vmem>>, vector<2x128xbf16>,
    %c0_88 = arith.constant 0 : index
    %c0_89 = arith.constant 0 : index
    %48 = vector.load %arg5[%c0_88, %c0_89] : memref<8x512xbf16, #tpu.memory_space<vmem>>, vector<8x512xbf16>
    %c0_90 = arith.constant 0 : index
    %c0_91 = arith.constant 0 : index
    %49 = vector.load %arg2[%c0_90, %c0_91] : memref<512x128xbf16, #tpu.memory_space<vmem>>, vector<512x128xbf16>
    %cst = arith.constant dense<0.000000e+00> : vector<8x128xf32>
    %50 = tpu.matmul %48, %49, %cst {dimension_numbers = #tpu.dot_dimension_numbers<[1], [0], [0], [1], [0, 0, 1, 1], [], []>} : vector<8x512xbf16>, vector<512x128xbf16>, vector<8x128xf32> -> vector<8x128xf32>
    %c0_92 = arith.constant 0 : index
    %c0_93 = arith.constant 0 : index
    %51 = vector.load %arg3[%c0_92, %c0_93] : memref<1x128xf32, #tpu.memory_space<vmem>>, vector<1x128xf32>
    %52 = vector.broadcast %51 : vector<1x128xf32> to vector<8x128xf32>
    %53 = arith.addf %50, %52 : vector<8x128xf32>
    %cst_94 = arith.constant 0.000000e+00 : f32
    %54 = vector.broadcast %cst_94 : f32 to vector<8x128xf32>
    %55 = arith.cmpf oge, %53, %54 : vector<8x128xf32>
    %cst_95 = arith.constant 2.000000e-01 : f32
    %56 = vector.broadcast %cst_95 : f32 to vector<8x128xf32>
    %57 = arith.mulf %56, %53 : vector<8x128xf32>
    %58 = arith.select %55, %53, %57 : vector<8x128xi1>, vector<8x128xf32>
    %59 = arith.truncf %58 : vector<8x128xf32> to vector<8x128xbf16>
    %c0_96 = arith.constant 0 : index
    %c0_97 = arith.constant 0 : index
    %60 = vector.load %arg4[%c0_96, %c0_97] : memref<8x128xbf16, #tpu.memory_space<vmem>>, vector<8x128xbf16>
    tpu.vector_store %arg4[%c0_96, %c0_97], %59 {strides = array<i32>} : memref<8x128xbf16, #tpu.memory_space<vmem>>, vector<8x128xbf16>,
    return
  }
  func.func @transform_0(%arg0: i32) -> (i32, i32, i32, i32) {
    %c0_i32 = arith.constant 0 : i32
    %c0_i32_0 = arith.constant 0 : i32
    %c0_i32_1 = arith.constant 0 : i32
    %c0_i32_2 = arith.constant 0 : i32
    %c0_i32_3 = arith.constant 0 : i32
    return %c0_i32, %c0_i32_0, %c0_i32_1, %c0_i32_2 : i32, i32, i32, i32
  }
  func.func @transform_1(%arg0: i32) -> (i32, i32) {
    %c0_i32 = arith.constant 0 : i32
    %c0_i32_0 = arith.constant 0 : i32
    %c0_i32_1 = arith.constant 0 : i32
    return %c0_i32, %c0_i32_0 : i32, i32
  }
  func.func @transform_2(%arg0: i32) -> (i32, i32) {
    %c0_i32 = arith.constant 0 : i32
    %c0_i32_0 = arith.constant 0 : i32
    %c0_i32_1 = arith.constant 0 : i32
    return %c0_i32, %c0_i32_0 : i32, i32
  }
  func.func @transform_3(%arg0: i32) -> (i32, i32) {
    %c0_i32 = arith.constant 0 : i32
    %c0_i32_0 = arith.constant 0 : i32
    %c0_i32_1 = arith.constant 0 : i32
    return %c0_i32, %c0_i32_0 : i32, i32
  }
}

module attributes {stable_mosaic.version = 11 : i64} {
  func.func @_conv_layer_kernel(%arg0: i32, %arg1: memref<2x2x2x256xbf16, #tpu.memory_space<vmem>>, %arg2: memref<1024x128xbf16, #tpu.memory_space<vmem>>, %arg3: memref<1x128xf32, #tpu.memory_space<vmem>>, %arg4: memref<2x128xf32, #tpu.memory_space<vmem>>, %arg5: memref<2x1024xbf16, #tpu.memory_space<vmem>>) attributes {dimension_semantics = [#tpu.dimension_semantics<arbitrary>], iteration_bounds = array<i64: 1>, scalar_prefetch = 0 : i64, scratch_operands = 1 : i64, tpu.core_type = #tpu.core_type<tc>, window_params = [{pipeline_mode = #tpu.pipeline_mode<synchronous>, transform_indices = @transform_0, window_bounds = array<i64: 2, 2, 2, 256>}, {pipeline_mode = #tpu.pipeline_mode<synchronous>, transform_indices = @transform_1, window_bounds = array<i64: 1024, 128>}, {pipeline_mode = #tpu.pipeline_mode<synchronous>, transform_indices = @transform_2, window_bounds = array<i64: 1, 128>}, {pipeline_mode = #tpu.pipeline_mode<synchronous>, transform_indices = @transform_3, window_bounds = array<i64: 2, 128>}]} {
    %c0 = arith.constant 0 : index
    %c0_0 = arith.constant 0 : index
    %c0_1 = arith.constant 0 : index
    %c0_2 = arith.constant 0 : index
    %0 = vector.load %arg1[%c0, %c0_0, %c0_1, %c0_2] : memref<2x2x2x256xbf16, #tpu.memory_space<vmem>>, vector<1x1x1x256xbf16>
    %1 = vector.shape_cast %0 : vector<1x1x1x256xbf16> to vector<1x256xbf16>
    %c0_3 = arith.constant 0 : index
    %c0_4 = arith.constant 0 : index
    %2 = vector.load %arg5[%c0_3, %c0_4] : memref<2x1024xbf16, #tpu.memory_space<vmem>>, vector<1x256xbf16>
    tpu.vector_store %arg5[%c0_3, %c0_4], %1 {strides = array<i32>} : memref<2x1024xbf16, #tpu.memory_space<vmem>>, vector<1x256xbf16>,
    %c1 = arith.constant 1 : index
    %c0_5 = arith.constant 0 : index
    %c0_6 = arith.constant 0 : index
    %c0_7 = arith.constant 0 : index
    %3 = vector.load %arg1[%c1, %c0_5, %c0_6, %c0_7] : memref<2x2x2x256xbf16, #tpu.memory_space<vmem>>, vector<1x1x1x256xbf16>
    %4 = vector.shape_cast %3 : vector<1x1x1x256xbf16> to vector<1x256xbf16>
    %c1_8 = arith.constant 1 : index
    %c0_9 = arith.constant 0 : index
    %5 = vector.load %arg5[%c1_8, %c0_9] : memref<2x1024xbf16, #tpu.memory_space<vmem>>, vector<1x256xbf16>
    tpu.vector_store %arg5[%c1_8, %c0_9], %4 {strides = array<i32>} : memref<2x1024xbf16, #tpu.memory_space<vmem>>, vector<1x256xbf16>,
    %c0_10 = arith.constant 0 : index
    %c0_11 = arith.constant 0 : index
    %c1_12 = arith.constant 1 : index
    %c0_13 = arith.constant 0 : index
    %6 = vector.load %arg1[%c0_10, %c0_11, %c1_12, %c0_13] : memref<2x2x2x256xbf16, #tpu.memory_space<vmem>>, vector<1x1x1x256xbf16>
    %7 = vector.shape_cast %6 : vector<1x1x1x256xbf16> to vector<1x256xbf16>
    %c0_14 = arith.constant 0 : index
    %c256 = arith.constant 256 : index
    %8 = vector.load %arg5[%c0_14, %c256] : memref<2x1024xbf16, #tpu.memory_space<vmem>>, vector<1x256xbf16>
    tpu.vector_store %arg5[%c0_14, %c256], %7 {strides = array<i32>} : memref<2x1024xbf16, #tpu.memory_space<vmem>>, vector<1x256xbf16>,
    %c1_15 = arith.constant 1 : index
    %c0_16 = arith.constant 0 : index
    %c1_17 = arith.constant 1 : index
    %c0_18 = arith.constant 0 : index
    %9 = vector.load %arg1[%c1_15, %c0_16, %c1_17, %c0_18] : memref<2x2x2x256xbf16, #tpu.memory_space<vmem>>, vector<1x1x1x256xbf16>
    %10 = vector.shape_cast %9 : vector<1x1x1x256xbf16> to vector<1x256xbf16>
    %c1_19 = arith.constant 1 : index
    %c256_20 = arith.constant 256 : index
    %11 = vector.load %arg5[%c1_19, %c256_20] : memref<2x1024xbf16, #tpu.memory_space<vmem>>, vector<1x256xbf16>
    tpu.vector_store %arg5[%c1_19, %c256_20], %10 {strides = array<i32>} : memref<2x1024xbf16, #tpu.memory_space<vmem>>, vector<1x256xbf16>,
    %c0_21 = arith.constant 0 : index
    %c1_22 = arith.constant 1 : index
    %c0_23 = arith.constant 0 : index
    %c0_24 = arith.constant 0 : index
    %12 = vector.load %arg1[%c0_21, %c1_22, %c0_23, %c0_24] : memref<2x2x2x256xbf16, #tpu.memory_space<vmem>>, vector<1x1x1x256xbf16>
    %13 = vector.shape_cast %12 : vector<1x1x1x256xbf16> to vector<1x256xbf16>
    %c0_25 = arith.constant 0 : index
    %c512 = arith.constant 512 : index
    %14 = vector.load %arg5[%c0_25, %c512] : memref<2x1024xbf16, #tpu.memory_space<vmem>>, vector<1x256xbf16>
    tpu.vector_store %arg5[%c0_25, %c512], %13 {strides = array<i32>} : memref<2x1024xbf16, #tpu.memory_space<vmem>>, vector<1x256xbf16>,
    %c1_26 = arith.constant 1 : index
    %c1_27 = arith.constant 1 : index
    %c0_28 = arith.constant 0 : index
    %c0_29 = arith.constant 0 : index
    %15 = vector.load %arg1[%c1_26, %c1_27, %c0_28, %c0_29] : memref<2x2x2x256xbf16, #tpu.memory_space<vmem>>, vector<1x1x1x256xbf16>
    %16 = vector.shape_cast %15 : vector<1x1x1x256xbf16> to vector<1x256xbf16>
    %c1_30 = arith.constant 1 : index
    %c512_31 = arith.constant 512 : index
    %17 = vector.load %arg5[%c1_30, %c512_31] : memref<2x1024xbf16, #tpu.memory_space<vmem>>, vector<1x256xbf16>
    tpu.vector_store %arg5[%c1_30, %c512_31], %16 {strides = array<i32>} : memref<2x1024xbf16, #tpu.memory_space<vmem>>, vector<1x256xbf16>,
    %c0_32 = arith.constant 0 : index
    %c1_33 = arith.constant 1 : index
    %c1_34 = arith.constant 1 : index
    %c0_35 = arith.constant 0 : index
    %18 = vector.load %arg1[%c0_32, %c1_33, %c1_34, %c0_35] : memref<2x2x2x256xbf16, #tpu.memory_space<vmem>>, vector<1x1x1x256xbf16>
    %19 = vector.shape_cast %18 : vector<1x1x1x256xbf16> to vector<1x256xbf16>
    %c0_36 = arith.constant 0 : index
    %c768 = arith.constant 768 : index
    %20 = vector.load %arg5[%c0_36, %c768] : memref<2x1024xbf16, #tpu.memory_space<vmem>>, vector<1x256xbf16>
    tpu.vector_store %arg5[%c0_36, %c768], %19 {strides = array<i32>} : memref<2x1024xbf16, #tpu.memory_space<vmem>>, vector<1x256xbf16>,
    %c1_37 = arith.constant 1 : index
    %c1_38 = arith.constant 1 : index
    %c1_39 = arith.constant 1 : index
    %c0_40 = arith.constant 0 : index
    %21 = vector.load %arg1[%c1_37, %c1_38, %c1_39, %c0_40] : memref<2x2x2x256xbf16, #tpu.memory_space<vmem>>, vector<1x1x1x256xbf16>
    %22 = vector.shape_cast %21 : vector<1x1x1x256xbf16> to vector<1x256xbf16>
    %c1_41 = arith.constant 1 : index
    %c768_42 = arith.constant 768 : index
    %23 = vector.load %arg5[%c1_41, %c768_42] : memref<2x1024xbf16, #tpu.memory_space<vmem>>, vector<1x256xbf16>
    tpu.vector_store %arg5[%c1_41, %c768_42], %22 {strides = array<i32>} : memref<2x1024xbf16, #tpu.memory_space<vmem>>, vector<1x256xbf16>,
    %c0_43 = arith.constant 0 : index
    %c0_44 = arith.constant 0 : index
    %24 = vector.load %arg5[%c0_43, %c0_44] : memref<2x1024xbf16, #tpu.memory_space<vmem>>, vector<2x1024xbf16>
    %c0_45 = arith.constant 0 : index
    %c0_46 = arith.constant 0 : index
    %25 = vector.load %arg2[%c0_45, %c0_46] : memref<1024x128xbf16, #tpu.memory_space<vmem>>, vector<1024x128xbf16>
    %cst = arith.constant dense<0.000000e+00> : vector<2x128xf32>
    %26 = tpu.matmul %24, %25, %cst {dimension_numbers = #tpu.dot_dimension_numbers<[1], [0], [0], [1], [0, 0, 1, 1], [], []>} : vector<2x1024xbf16>, vector<1024x128xbf16>, vector<2x128xf32> -> vector<2x128xf32>
    %c0_47 = arith.constant 0 : index
    %c0_48 = arith.constant 0 : index
    %27 = vector.load %arg3[%c0_47, %c0_48] : memref<1x128xf32, #tpu.memory_space<vmem>>, vector<1x128xf32>
    %28 = vector.broadcast %27 : vector<1x128xf32> to vector<2x128xf32>
    %29 = arith.addf %26, %28 : vector<2x128xf32>
    %c0_49 = arith.constant 0 : index
    %c0_50 = arith.constant 0 : index
    %30 = vector.load %arg4[%c0_49, %c0_50] : memref<2x128xf32, #tpu.memory_space<vmem>>, vector<2x128xf32>
    tpu.vector_store %arg4[%c0_49, %c0_50], %29 {strides = array<i32>} : memref<2x128xf32, #tpu.memory_space<vmem>>, vector<2x128xf32>,
    return
  }
  func.func @transform_0(%arg0: i32) -> (i32, i32, i32, i32) {
    %c0_i32 = arith.constant 0 : i32
    %c0_i32_0 = arith.constant 0 : i32
    %c0_i32_1 = arith.constant 0 : i32
    %c0_i32_2 = arith.constant 0 : i32
    %c0_i32_3 = arith.constant 0 : i32
    return %c0_i32, %c0_i32_0, %c0_i32_1, %c0_i32_2 : i32, i32, i32, i32
  }
  func.func @transform_1(%arg0: i32) -> (i32, i32) {
    %c0_i32 = arith.constant 0 : i32
    %c0_i32_0 = arith.constant 0 : i32
    %c0_i32_1 = arith.constant 0 : i32
    return %c0_i32, %c0_i32_0 : i32, i32
  }
  func.func @transform_2(%arg0: i32) -> (i32, i32) {
    %c0_i32 = arith.constant 0 : i32
    %c0_i32_0 = arith.constant 0 : i32
    %c0_i32_1 = arith.constant 0 : i32
    return %c0_i32, %c0_i32_0 : i32, i32
  }
  func.func @transform_3(%arg0: i32) -> (i32, i32) {
    %c0_i32 = arith.constant 0 : i32
    %c0_i32_0 = arith.constant 0 : i32
    %c0_i32_1 = arith.constant 0 : i32
    return %c0_i32, %c0_i32_0 : i32, i32
  }
}

</mosaic_0001>

<bundles_post_ra>
// kernel: discriminator_forward.5
= control target key start
LH: loop header
LB: loop body
LE: loop exit
PB: predicated region body
PF: predicated region fallthrough
CT: control target
= control target key end

     0   :  { %v4923_v0 = vmov 0   ;;  %vm345_vm0 = vsmask.f32 7424  ;;  %s5886_s1 = inlined_call_operand.vmem [shape: bf16[512,128], index: 1, kind: input, shape index: {}]   ;;  %s5887_s0 = inlined_call_operand.vmem [shape: bf16[2,17,17,128], index: 0, kind: input, shape index: {}]   ;;  %s5888_s2 = inlined_call_operand.vmem [shape: f32[1,128], index: 2, kind: input, shape index: {}]   ;;  %s5889_s3 = inlined_call_operand.vmem [shape: bf16[512,128], index: 3, kind: output, shape index: {}]  }
   0x1   :  { %2616 = vmatprep.subr.bf16.mxu1 %v4923_v0  ;;  %2905 = vmatprep.subr.bf16.mxu0 %v4923_v0  ;;  %v4698_v1 = vld [vmem:[%s5886_s1] sm:$0xff]   ;;  %v4700_v3 = vld [vmem:[%s5886_s1 + $0x8] sm:$0xff]   ;;  %v4702_v5 = vld [vmem:[%s5886_s1 + $0x10] sm:$0xff]  }
   0x2   :  { %v4699_v2 = vld [vmem:[%s5886_s1 + $0x80] sm:$0xff]   ;;  %2617 = vmatpush1.bf16.msra.mxu1 %v4698_v1  ;;  %v4701_v4 = vld [vmem:[%s5886_s1 + $0x88] sm:$0xff]   ;;  %v4703_v6 = vld [vmem:[%s5886_s1 + $0x90] sm:$0xff]  }
   0x3   :  { %2906 = vmatpush1.bf16.msra.mxu0 %v4699_v2  ;;  %2618 = vmatprep.subr.bf16.mxu1 %v4923_v0  ;;  %v4704_v7 = vld [vmem:[%s5886_s1 + $0x18] sm:$0xff]   ;;  %v4706_v9 = vld [vmem:[%s5886_s1 + $0x20] sm:$0xff]   ;;  %v4708_v11 = vld [vmem:[%s5886_s1 + $0x28] sm:$0xff]  }
   0x4   :  { %2907 = vmatprep.subr.bf16.mxu0 %v4923_v0  ;;  %v4705_v8 = vld [vmem:[%s5886_s1 + $0x98] sm:$0xff]   ;;  %v4707_v10 = vld [vmem:[%s5886_s1 + $0xa0] sm:$0xff]   ;;  %v4709_v12 = vld [vmem:[%s5886_s1 + $0xa8] sm:$0xff]  }
   0x5   :  { %v4710_v13 = vld [vmem:[%s5886_s1 + $0x30] sm:$0xff]   ;;  %v4712_v15 = vld [vmem:[%s5886_s1 + $0x38] sm:$0xff]   ;;  %v4714_v17 = vld [vmem:[%s5886_s1 + $0x40] sm:$0xff]  }
   0x6   :  { %2619 = vmatpush1.bf16.msra.mxu1 %v4700_v3  ;;  %v4711_v14 = vld [vmem:[%s5886_s1 + $0xb0] sm:$0xff]   ;;  %v4713_v16 = vld [vmem:[%s5886_s1 + $0xb8] sm:$0xff]   ;;  %v4715_v18 = vld [vmem:[%s5886_s1 + $0xc0] sm:$0xff]  }
   0x7   :  { %2908 = vmatpush1.bf16.msra.mxu0 %v4701_v4  ;;  %2620 = vmatprep.subr.bf16.mxu1 %v4923_v0  ;;  %v4716_v19 = vld [vmem:[%s5886_s1 + $0x48] sm:$0xff]   ;;  %v4730_v21 = vld [vmem:[%s5887_s0] sm:$0xff]   ;;  %v4733_v27 = vld [vmem:[%s5887_s0 + $0x14] ss:$0 sps:$4 sm:$0x11]  }
   0x8   :  { %2909 = vmatprep.subr.bf16.mxu0 %v4923_v0  ;;  %v4717_v20 = vld [vmem:[%s5886_s1 + $0xc8] sm:$0xff]   ;;  %v347_v24 = vshrl.u32 %v4730_v21, 16  ;;  %v349_v25 = vshll.u32 %v4730_v21, 16  ;;  %v1444_v32 = vshll.u32 %v4733_v27, 16  ;;  %v4718_v33 = vld [vmem:[%s5886_s1 + $0x50] sm:$0xff]   ;;  %v4720_v40 = vld [vmem:[%s5886_s1 + $0x58] sm:$0xff]  }
   0x9   :  { %v4731_v22 = vld [vmem:[%s5887_s0 + $0x8] ss:$0 sps:$4 sm:$0x11]   ;;  %v4732_v23 = vld [vmem:[%s5887_s0 + $0xc] sm:$0xff]   ;;  %v4721_v42 = vld [vmem:[%s5886_s1 + $0xd8] sm:$0xff]  }
   0xa   :  { %2621 = vmatpush1.bf16.msra.mxu1 %v4702_v5  ;;  %v354_v26 = vshll.u32 %v4731_v22, 16  ;;  %v1437_v28 = vshrl.u32 %v4732_v23, 16  ;;  %v1439_v29 = vshll.u32 %v4732_v23, 16  ;;  %v351_v30 = vrot.slane %v349_v25, 1  ;;  %v4719_v35 = vld [vmem:[%s5886_s1 + $0xd0] sm:$0xff]   ;;  %v4722_v43 = vld [vmem:[%s5886_s1 + $0x60] sm:$0xff]  }
   0xb   :  { %2910 = vmatpush1.bf16.msra.mxu0 %v4703_v6  ;;  %2622 = vmatprep.subr.bf16.mxu1 %v4923_v0  ;;  %v1446_v37 = vrot.slane %v1444_v32, 1  ;;  %v4736_v44 = vld [vmem:[%s5887_s0 + $0xc] sm:$0xff]   ;;  %v4723_v45 = vld [vmem:[%s5886_s1 + $0xe0] sm:$0xff]   ;;  %v4738_v46 = vld [vmem:[%s5887_s0 + $0x18] sm:$0xff]  }
   0xc   :  { %2911 = vmatprep.subr.bf16.mxu0 %v4923_v0  ;;  %v356_v31 = vrot.slane %v354_v26, 1  ;;  %v1441_v34 = vrot.slane %v1439_v29, 1  ;;  %v352_v36 = vor.u32 %v351_v30, %v347_v24  ;;  %v4724_v47 = vld [vmem:[%s5886_s1 + $0x68] sm:$0xff]   ;;  %v4737_v48 = vld [vmem:[%s5887_s0 + $0x14] ss:$0 sps:$4 sm:$0x11]  }
   0xd   :  { %v4725_v49 = vld [vmem:[%s5886_s1 + $0xe8] sm:$0xff]   ;;  %v374_v50 = vshll.u32 %v4736_v44, 16  ;;  %v4739_v51 = vld [vmem:[%s5887_s0 + $0x20] ss:$0 sps:$4 sm:$0x11]   ;;  %v1464_v52 = vshll.u32 %v4738_v46, 16 }
   0xe   :  { %2623 = vmatpush1.bf16.msra.mxu1 %v4704_v7  ;;  %v1442_v38 = vor.u32 %v1441_v34, %v1437_v28  ;;  %v357_v39 = vsel %vm345_vm0, %v352_v36, %v356_v31  ;;  %v4726_v53 = vld [vmem:[%s5886_s1 + $0x70] sm:$0xff]   ;;  %v4742_v54 = vld [vmem:[%s5887_s0 + $0x18] sm:$0xff]   ;;  %v372_v56 = vshrl.u32 %v4736_v44, 16  ;;  %v379_v58 = vshll.u32 %v4737_v48, 16  ;;  %v4744_v60 = vld [vmem:[%s5887_s0 + $0x24] sm:$0xff]  }
   0xf   :  { %2912 = vmatpush1.bf16.msra.mxu0 %v4705_v8  ;;  %2624 = vmatprep.subr.bf16.mxu1 %v4923_v0  ;;  %v4727_v55 = vld [vmem:[%s5886_s1 + $0xf0] sm:$0xff]   ;;  %v376_v57 = vrot.slane %v374_v50, 1  ;;  %v1462_v59 = vshrl.u32 %v4738_v46, 16  ;;  %v1466_v61 = vrot.slane %v1464_v52, 1  ;;  %v1469_v62 = vshll.u32 %v4739_v51, 16  ;;  %v4728_v63 = vld [vmem:[%s5886_s1 + $0x78] sm:$0xff]  }
  0x10   :  { %2913 = vmatprep.subr.bf16.mxu0 %v4923_v0  ;;  %2648 = vmatprep.mubr.bf16.mxu1 %v357_v39  ;;  %v1447_v41 = vsel %vm345_vm0, %v1442_v38, %v1446_v37  ;;  %v4743_v1 = vld [vmem:[%s5887_s0 + $0x20] ss:$0 sps:$4 sm:$0x11]   ;;  %v4729_v2 = vld [vmem:[%s5886_s1 + $0xf8] sm:$0xff]   ;;  %v399_v3 = vshll.u32 %v4742_v54, 16  ;;  %v381_v5 = vrot.slane %v379_v58, 1 }
  0x11   :  { %2937 = vmatprep.mubr.bf16.mxu0 %v1447_v41  ;;  %v377_v4 = vor.u32 %v376_v57, %v372_v56  ;;  %v1489_v6 = vshll.u32 %v4744_v60, 16  ;;  %v1467_v7 = vor.u32 %v1466_v61, %v1462_v59  ;;  %v1471_v8 = vrot.slane %v1469_v62, 1  ;;  %v4749_v21 = vld [vmem:[%s5887_s0 + $0x2c] ss:$0 sps:$4 sm:$0x11]   ;;  %v4741_v30 = vld [vmem:[%s5887_s0 + $0x18] sm:$0xff]  }
  0x12   :  { %2625 = vmatpush1.bf16.msra.mxu1 %v4706_v9  ;;  %v4745_v9 = vld [vmem:[%s5887_s0 + $0x2c] ss:$0 sps:$4 sm:$0x11]   ;;  %v4751_v25 = vld [vmem:[%s5887_s0 + $0x38] ss:$0 sps:$4 sm:$0x11]  }
  0x13   :  { %2914 = vmatpush1.bf16.msra.mxu0 %v4707_v10  ;;  %2626 = vmatprep.subr.bf16.mxu1 %v4923_v0  ;;  %v4734_v10 = vld [vmem:[%s5887_s0] sm:$0xff]   ;;  %v4740_v29 = vld [vmem:[%s5887_s0 + $0xc] sm:$0xff]   ;;  %v1519_v38 = vshll.u32 %v4751_v25, 16  ;;  %v4755_v41 = vld [vmem:[%s5887_s0 + $0x38] ss:$0 sps:$4 sm:$0x11]  }
  0x14   :  { %2915 = vmatprep.subr.bf16.mxu0 %v4923_v0  ;;  %v4754_v32 = vld [vmem:[%s5887_s0 + $0x30] sm:$0xff]   ;;  %v4756_v39 = vld [vmem:[%s5887_s0 + $0x3c] sm:$0xff]   ;;  %v4747_v51 = vld [vmem:[%s5887_s0 + $0x24] sm:$0xff]  }
  0x15   :  { %v1539_v46 = vshll.u32 %v4756_v39, 16  ;;  %v1521_v48 = vrot.slane %v1519_v38, 1  ;;  %v4746_v50 = vld [vmem:[%s5887_s0 + $0x18] sm:$0xff]   ;;  %v447_v52 = vshrl.u32 %v4754_v32, 16  ;;  %v4762_v62 = vld [vmem:[%s5887_s0 + $0x48] sm:$0xff]   ;;  %v4758_v25 = vld [vmem:[%s5887_s0 + $0x30] sm:$0xff]  }
  0x16   :  { %2627 = vmatpush1.bf16.msra.mxu1 %v4708_v11  ;;  %v4735_v11 = vld [vmem:[%s5887_s0 + $0xc] sm:$0xff]   ;;  %v4761_v56 = vld [vmem:[%s5887_s0 + $0x44] ss:$0 sps:$4 sm:$0x11]  }
  0x17   :  { %2916 = vmatpush1.bf16.msra.mxu0 %v4709_v12  ;;  %2628 = vmatprep.subr.bf16.mxu1 %v4923_v0  ;;  %v397_v12 = vshrl.u32 %v4742_v54, 16  ;;  %v1541_v58 = vrot.slane %v1539_v46, 1  ;;  %v4765_v46 = vld [vmem:[%s5887_s0 + $0x48] sm:$0xff]  }
  0x18   :  { %2917 = vmatprep.subr.bf16.mxu0 %v4923_v0 }
  0x1a   :  { %2629 = vmatpush1.bf16.msra.mxu1 %v4710_v13  ;;  %v401_v13 = vrot.slane %v399_v3, 1 }
  0x1b   :  { %2918 = vmatpush1.bf16.msra.mxu0 %v4711_v14  ;;  %2630 = vmatprep.subr.bf16.mxu1 %v4923_v0  ;;  %v404_v14 = vshll.u32 %v4743_v1, 16  ;;  %v4752_v1 = vld [vmem:[%s5887_s0 + $0x24] sm:$0xff]  }
  0x1c   :  { %2919 = vmatprep.subr.bf16.mxu0 %v4923_v0  ;;  %v402_v24 = vor.u32 %v401_v13, %v397_v12  ;;  %v4766_v12 = vld [vmem:[%s5887_s0 + $0x48] sm:$0xff]  }
  0x1d   :  { %v406_v22 = vrot.slane %v404_v14, 1  ;;  %v4768_v14 = vld [vmem:[%s5887_s0 + $0x54] sm:$0xff]  }
  0x1e   :  { %2631 = vmatpush1.bf16.msra.mxu1 %v4712_v15  ;;  %v1487_v15 = vshrl.u32 %v4744_v60, 16 }
  0x1f   :  { %2920 = vmatpush1.bf16.msra.mxu0 %v4713_v16  ;;  %2632 = vmatprep.subr.bf16.mxu1 %v4923_v0  ;;  %v382_v16 = vsel %vm345_vm0, %v377_v4, %v381_v5 }
  0x20   :  { %2921 = vmatprep.subr.bf16.mxu0 %v4923_v0 }
  0x22   :  { %2633 = vmatpush1.bf16.msra.mxu1 %v4714_v17  ;;  %v1491_v17 = vrot.slane %v1489_v6, 1  ;;  %v4753_v6 = vld [vmem:[%s5887_s0 + $0x30] sm:$0xff]  }
  0x23   :  { %2922 = vmatpush1.bf16.msra.mxu0 %v4715_v18  ;;  %2634 = vmatprep.subr.bf16.mxu1 %v4923_v0  ;;  %v4750_v18 = vld [vmem:[%s5887_s0 + $0x30] sm:$0xff]  }
  0x24   :  { %2923 = vmatprep.subr.bf16.mxu0 %v4923_v0  ;;  %v1514_v26 = vshll.u32 %v4750_v18, 16  ;;  %v1492_v27 = vor.u32 %v1491_v17, %v1487_v15  ;;  %v1512_v34 = vshrl.u32 %v4750_v18, 16  ;;  %v4767_v18 = vld [vmem:[%s5887_s0 + $0x50] ss:$0 sps:$4 sm:$0x11]  }
  0x26   :  { %2635 = vmatpush1.bf16.msra.mxu1 %v4716_v19  ;;  %v1472_v19 = vsel %vm345_vm0, %v1467_v7, %v1471_v8  ;;  %v1516_v37 = vrot.slane %v1514_v26, 1  ;;  %v4759_v26 = vld [vmem:[%s5887_s0 + $0x3c] sm:$0xff]  }
  0x27   :  { %2924 = vmatpush1.bf16.msra.mxu0 %v4717_v20  ;;  %2636 = vmatprep.subr.bf16.mxu1 %v4923_v0  ;;  %v1494_v20 = vshll.u32 %v4745_v9, 16  ;;  %v479_v9 = vshll.u32 %v4761_v56, 16 }
  0x28   :  { %2925 = vmatprep.subr.bf16.mxu0 %v4923_v0 }
  0x29   :  { %v1496_v28 = vrot.slane %v1494_v20, 1  ;;  %v481_v17 = vrot.slane %v479_v9, 1 }
  0x2a   :  { %2637 = vmatpush1.bf16.msra.mxu1 %v4718_v33  ;;  %v429_v33 = vshll.u32 %v4749_v21, 16  ;;  %v499_v21 = vshll.u32 %v4766_v12, 16 }
  0x2b   :  { %2926 = vmatpush1.bf16.msra.mxu0 %v4719_v35  ;;  %2638 = vmatprep.subr.bf16.mxu1 %v4923_v0  ;;  %v407_v35 = vsel %vm345_vm0, %v402_v24, %v406_v22  ;;  %v4769_v22 = vld [vmem:[%s5887_s0 + $0x5c] ss:$0 sps:$4 sm:$0x11]  }
  0x2c   :  { %2927 = vmatprep.subr.bf16.mxu0 %v4923_v0  ;;  %v431_v44 = vrot.slane %v429_v33, 1  ;;  %v4774_v33 = vld [vmem:[%s5887_s0 + $0x60] sm:$0xff]  }
  0x2e   :  { %2639 = vmatpush1.bf16.msra.mxu1 %v4720_v40  ;;  %v1497_v40 = vsel %vm345_vm0, %v1492_v27, %v1496_v28  ;;  %v4772_v27 = vld [vmem:[%s5887_s0 + $0x54] sm:$0xff]  }
  0x2f   :  { %2928 = vmatpush1.bf16.msra.mxu0 %v4721_v42  ;;  %2640 = vmatprep.subr.bf16.mxu1 %v4923_v0  ;;  %v449_v42 = vshll.u32 %v4754_v32, 16  ;;  %v1587_v32 = vshrl.u32 %v4768_v14, 16  ;;  %v524_v38 = vshll.u32 %v4772_v27, 16 }
  0x30   :  { %2929 = vmatprep.subr.bf16.mxu0 %v4923_v0 }
  0x31   :  { %v451_v54 = vrot.slane %v449_v42, 1 }
  0x32   :  { %2641 = vmatpush1.bf16.msra.mxu1 %v4722_v43 }
  0x33   :  { %2930 = vmatpush1.bf16.msra.mxu0 %v4723_v45  ;;  %2642 = vmatprep.subr.bf16.mxu1 %v4923_v0  ;;  %v4757_v45 = vld [vmem:[%s5887_s0 + $0x44] ss:$0 sps:$4 sm:$0x11]  }
  0x34   :  { %2931 = vmatprep.subr.bf16.mxu0 %v4923_v0  ;;  %v1544_v59 = vshll.u32 %v4757_v45, 16  ;;  %v4764_v45 = vld [vmem:[%s5887_s0 + $0x3c] sm:$0xff]  }
  0x36   :  { %2643 = vmatpush1.bf16.msra.mxu1 %v4724_v47  ;;  %v1517_v47 = vor.u32 %v1516_v37, %v1512_v34  ;;  %v1546_v5 = vrot.slane %v1544_v59, 1  ;;  %v4773_v37 = vld [vmem:[%s5887_s0 + $0x5c] ss:$0 sps:$4 sm:$0x11]  }
  0x37   :  { %2932 = vmatpush1.bf16.msra.mxu0 %v4725_v49  ;;  %2644 = vmatprep.subr.bf16.mxu1 %v4923_v0  ;;  %v4760_v49 = vld [vmem:[%s5887_s0 + $0x3c] sm:$0xff]  }
  0x38   :  { %2933 = vmatprep.subr.bf16.mxu0 %v4923_v0  ;;  %v1522_v60 = vsel %vm345_vm0, %v1517_v47, %v1521_v48  ;;  %v474_v61 = vshll.u32 %v4760_v49, 16  ;;  %v472_v7 = vshrl.u32 %v4760_v49, 16  ;;  %v522_v47 = vshrl.u32 %v4772_v27, 16 }
  0x39   :  { %v526_v48 = vrot.slane %v524_v38, 1  ;;  %v529_v49 = vshll.u32 %v4773_v37, 16 }
  0x3a   :  { %2645 = vmatpush1.bf16.msra.mxu1 %v4726_v53  ;;  %v454_v53 = vshll.u32 %v4755_v41, 16  ;;  %v476_v8 = vrot.slane %v474_v61, 1  ;;  %v1614_v41 = vshll.u32 %v4774_v33, 16  ;;  %v4781_v61 = vld [vmem:[%s5887_s0 + $0x74] ss:$0 sps:$4 sm:$0x11]  }
  0x3b   :  { %2934 = vmatpush1.bf16.msra.mxu0 %v4727_v55  ;;  %2646 = vmatprep.subr.bf16.mxu1 %v4923_v0  ;;  %v1537_v55 = vshrl.u32 %v4756_v39, 16 }
  0x3c   :  { %2935 = vmatprep.subr.bf16.mxu0 %v4923_v0  ;;  %v4748_v0 = vld [vmem:[%s5887_s0 + $0x24] sm:$0xff]   ;;  %v456_v3 = vrot.slane %v454_v53, 1  ;;  %v1616_v53 = vrot.slane %v1614_v41, 1  ;;  %v4783_v41 = vld [vmem:[%s5887_s0 + $0x6c] sm:$0xff]  }
  0x3d   :  { %v424_v23 = vshll.u32 %v4748_v0, 16  ;;  %v422_v31 = vshrl.u32 %v4748_v0, 16  ;;  %v1542_v4 = vor.u32 %v1541_v58, %v1537_v55  ;;  %v1562_v0 = vshrl.u32 %v4762_v62, 16 }
  0x3e   :  { %2647 = vmatpush1.bf16.msra.mxu1 %v4728_v63  ;;  %v4763_v63 = vld [vmem:[%s5887_s0 + $0x50] ss:$0 sps:$4 sm:$0x11]   ;;  %v531_v58 = vrot.slane %v529_v49, 1 }
  0x3f   :  { %2936 = vmatpush1.bf16.msra.mxu0 %v4729_v2  ;;  %v426_v36 = vrot.slane %v424_v23, 1  ;;  %v452_v2 = vor.u32 %v451_v54, %v447_v52  ;;  %v1547_v15 = vsel %vm345_vm0, %v1542_v4, %v1546_v5  ;;  %v1589_v23 = vshll.u32 %v4768_v14, 16  ;;  %v4780_v54 = vld [vmem:[%s5887_s0 + $0x6c] sm:$0xff]   ;;  %v4785_v14 = vld [vmem:[%s5887_s0 + $0x74] ss:$0 sps:$4 sm:$0x11]  }
  0x40   :  { %v4784_v5 = vld [vmem:[%s5887_s0 + $0x6c] sm:$0xff]  }
  0x41   :  { %2649 = vmatmul.mubr.bf16.vlgmr.msra.gmra.mrb[0].mxu1 %v4734_v10  ;;  %v427_v43 = vor.u32 %v426_v36, %v422_v31  ;;  %v1564_v10 = vshll.u32 %v4762_v62, 16  ;;  %v457_v13 = vsel %vm345_vm0, %v452_v2, %v456_v3  ;;  %v504_v31 = vshll.u32 %v4767_v18, 16  ;;  %v4770_v2 = vld [vmem:[%s5887_s0 + $0x48] sm:$0xff]   ;;  %v4771_v3 = vld [vmem:[%s5887_s0 + $0x54] sm:$0xff]  }
  0x42   :  { %2938 = vmatmul.mubr.bf16.vlgmr.msra.gmra.mrb[0].mxu0 %v4735_v11  ;;  %2656 = vmatprep.mubr.bf16.mxu1 %v382_v16  ;;  %v1569_v11 = vshll.u32 %v4763_v63, 16  ;;  %v1594_v36 = vshll.u32 %v4769_v22, 16  ;;  %v1639_v62 = vshll.u32 %v4780_v54, 16  ;;  %v4776_v22 = vld [vmem:[%s5887_s0 + $0x54] sm:$0xff]  }
  0x43   :  { %2945 = vmatprep.mubr.bf16.mxu0 %v1472_v19  ;;  %v432_v57 = vsel %vm345_vm0, %v427_v43, %v431_v44  ;;  %v1566_v16 = vrot.slane %v1564_v10, 1  ;;  %v477_v19 = vor.u32 %v476_v8, %v472_v7  ;;  %v4775_v44 = vld [vmem:[%s5887_s0 + $0x68] ss:$0 sps:$4 sm:$0x11]   ;;  %v1637_v7 = vshrl.u32 %v4780_v54, 16  ;;  %v4798_v49 = vld [vmem:[%s5887_s0 + $0x90] sm:$0xff]  }
  0x44   :  { %v1571_v20 = vrot.slane %v1569_v11, 1  ;;  %v1596_v43 = vrot.slane %v1594_v36, 1  ;;  %v1619_v56 = vshll.u32 %v4775_v44, 16  ;;  %v1641_v10 = vrot.slane %v1639_v62, 1  ;;  %v4782_v36 = vld [vmem:[%s5887_s0 + $0x60] sm:$0xff]   ;;  %v4789_v62 = vld [vmem:[%s5887_s0 + $0x78] sm:$0xff]  }
  0x45   :  { %v1567_v24 = vor.u32 %v1566_v16, %v1562_v0  ;;  %v482_v28 = vsel %vm345_vm0, %v477_v19, %v481_v17  ;;  %v1644_v11 = vshll.u32 %v4781_v61, 16  ;;  %v4787_v17 = vld [vmem:[%s5887_s0 + $0x80] ss:$0 sps:$4 sm:$0x11]   ;;  %v4788_v61 = vld [vmem:[%s5887_s0 + $0x6c] sm:$0xff]  }
  0x46   :  { %v1642_v19 = vor.u32 %v1641_v10, %v1637_v7  ;;  %v4797_v54 = vld [vmem:[%s5887_s0 + $0x8c] ss:$0 sps:$4 sm:$0x11]   ;;  %v4804_v10 = vld [vmem:[%s5887_s0 + $0x9c] sm:$0xff]  }
  0x47   :  { %v1572_v34 = vsel %vm345_vm0, %v1567_v24, %v1571_v20  ;;  %v1646_v20 = vrot.slane %v1644_v11, 1  ;;  %v572_v24 = vshrl.u32 %v4784_v5, 16  ;;  %v4805_v11 = vld [vmem:[%s5887_s0 + $0xa4] ss:$0 sps:$4 sm:$0x11]  }
  0x49   :  { %2657 = vmatmul.mubr.bf16.gmra.mrb[4].mxu1 %v4740_v29  ;;  %v497_v29 = vshrl.u32 %v4766_v12, 16  ;;  %v4786_v12 = vld [vmem:[%s5887_s0 + $0x78] sm:$0xff]  }
  0x4a   :  { %2946 = vmatmul.mubr.bf16.gmra.mrb[4].mxu0 %v4741_v30  ;;  %2664 = vmatprep.mubr.bf16.mxu1 %v407_v35  ;;  %v501_v30 = vrot.slane %v499_v21, 1  ;;  %v1591_v35 = vrot.slane %v1589_v23, 1  ;;  %v1664_v18 = vshll.u32 %v4786_v12, 16  ;;  %v4790_v21 = vld [vmem:[%s5887_s0 + $0x78] sm:$0xff]   ;;  %v4777_v23 = vld [vmem:[%s5887_s0 + $0x60] sm:$0xff]   ;;  %v1662_v27 = vshrl.u32 %v4786_v12, 16 }
  0x4b   :  { %2953 = vmatprep.mubr.bf16.mxu0 %v1497_v40  ;;  %v506_v40 = vrot.slane %v504_v31, 1  ;;  %v1669_v31 = vshll.u32 %v4787_v17, 16  ;;  %v4794_v17 = vld [vmem:[%s5887_s0 + $0x78] sm:$0xff]  }
  0x4c   :  { %v502_v39 = vor.u32 %v501_v30, %v497_v29  ;;  %v1592_v42 = vor.u32 %v1591_v35, %v1587_v32  ;;  %v1666_v30 = vrot.slane %v1664_v18, 1  ;;  %v1647_v32 = vsel %vm345_vm0, %v1642_v19, %v1646_v20  ;;  %v4793_v35 = vld [vmem:[%s5887_s0 + $0x8c] ss:$0 sps:$4 sm:$0x11]   ;;  %v4795_v18 = vld [vmem:[%s5887_s0 + $0x84] sm:$0xff]  }
  0x4e   :  { %v507_v52 = vsel %vm345_vm0, %v502_v39, %v506_v40  ;;  %v1597_v55 = vsel %vm345_vm0, %v1592_v42, %v1596_v43  ;;  %v1667_v39 = vor.u32 %v1666_v30, %v1662_v27  ;;  %v1671_v40 = vrot.slane %v1669_v31, 1 }
  0x4f   :  { %v597_v42 = vshrl.u32 %v4790_v21, 16 }
  0x51   :  { %2665 = vmatmul.mubr.bf16.gmra.mrb[8].mxu1 %v4746_v50  ;;  %v1612_v50 = vshrl.u32 %v4774_v33, 16  ;;  %v599_v33 = vshll.u32 %v4790_v21, 16 }
  0x52   :  { %2954 = vmatmul.mubr.bf16.gmra.mrb[8].mxu0 %v4747_v51  ;;  %2672 = vmatprep.mubr.bf16.mxu1 %v432_v57  ;;  %v4778_v51 = vld [vmem:[%s5887_s0 + $0x60] sm:$0xff]   ;;  %v4779_v57 = vld [vmem:[%s5887_s0 + $0x68] ss:$0 sps:$4 sm:$0x11]  }
  0x53   :  { %2961 = vmatprep.mubr.bf16.mxu0 %v1522_v60  ;;  %v549_v59 = vshll.u32 %v4778_v51, 16  ;;  %v527_v60 = vor.u32 %v526_v48, %v522_v47  ;;  %v1617_v63 = vor.u32 %v1616_v53, %v1612_v50  ;;  %v547_v4 = vshrl.u32 %v4778_v51, 16  ;;  %v4796_v47 = vld [vmem:[%s5887_s0 + $0x84] sm:$0xff]  }
  0x54   :  { %v601_v43 = vrot.slane %v599_v33, 1  ;;  %v1672_v50 = vsel %vm345_vm0, %v1667_v39, %v1671_v40  ;;  %v4811_v33 = vld [vmem:[%s5887_s0 + $0xb0] ss:$0 sps:$4 sm:$0x11]   ;;  %v4814_v40 = vld [vmem:[%s5887_s0 + $0xa8] sm:$0xff]  }
  0x55   :  { %v532_v8 = vsel %vm345_vm0, %v527_v60, %v531_v58  ;;  %v551_v9 = vrot.slane %v549_v59, 1  ;;  %v4799_v58 = vld [vmem:[%s5887_s0 + $0x98] ss:$0 sps:$4 sm:$0x11]   ;;  %v1714_v59 = vshll.u32 %v4798_v49, 16 }
  0x57   :  { %v552_v0 = vor.u32 %v551_v9, %v547_v4  ;;  %v629_v4 = vshll.u32 %v4797_v54, 16  ;;  %v4803_v9 = vld [vmem:[%s5887_s0 + $0x98] ss:$0 sps:$4 sm:$0x11]  }
  0x58   :  { %v654_v21 = vshll.u32 %v4803_v9, 16  ;;  %v4812_v9 = vld [vmem:[%s5887_s0 + $0x9c] sm:$0xff]  }
  0x59   :  { %2673 = vmatmul.mubr.bf16.gmra.mrb[12].mxu1 %v4752_v1  ;;  %v1621_v1 = vrot.slane %v1619_v56, 1 }
  0x5a   :  { %2962 = vmatmul.mubr.bf16.gmra.mrb[12].mxu0 %v4753_v6  ;;  %2680 = vmatprep.mubr.bf16.mxu1 %v457_v13  ;;  %v554_v6 = vshll.u32 %v4779_v57, 16  ;;  %v624_v57 = vshll.u32 %v4796_v47, 16  ;;  %v656_v30 = vrot.slane %v654_v21, 1  ;;  %v4828_v21 = vld [vmem:[%s5887_s0 + $0xd8] sm:$0xff]  }
  0x5b   :  { %2969 = vmatprep.mubr.bf16.mxu0 %v1547_v15  ;;  %v1622_v13 = vsel %vm345_vm0, %v1617_v63, %v1621_v1  ;;  %v574_v15 = vshll.u32 %v4784_v5, 16  ;;  %v622_v63 = vshrl.u32 %v4796_v47, 16  ;;  %v4802_v1 = vld [vmem:[%s5887_s0 + $0x90] sm:$0xff]   ;;  %v1712_v5 = vshrl.u32 %v4798_v49, 16 }
  0x5c   :  { %v556_v16 = vrot.slane %v554_v6, 1  ;;  %v1716_v6 = vrot.slane %v1714_v59, 1  ;;  %v649_v12 = vshll.u32 %v4802_v1, 16  ;;  %v647_v19 = vshrl.u32 %v4802_v1, 16  ;;  %v4816_v47 = vld [vmem:[%s5887_s0 + $0xb4] sm:$0xff]   ;;  %v4807_v59 = vld [vmem:[%s5887_s0 + $0x9c] sm:$0xff]  }
  0x5d   :  { %v4815_v49 = vld [vmem:[%s5887_s0 + $0xb0] ss:$0 sps:$4 sm:$0x11]   ;;  %v1789_v54 = vshll.u32 %v4816_v47, 16 }
  0x5e   :  { %v557_v29 = vsel %vm345_vm0, %v552_v0, %v556_v16  ;;  %v1739_v16 = vshll.u32 %v4804_v10, 16  ;;  %v651_v20 = vrot.slane %v649_v12, 1  ;;  %v4821_v1 = vld [vmem:[%s5887_s0 + $0xbc] ss:$0 sps:$4 sm:$0x11]  }
  0x61   :  { %2681 = vmatmul.mubr.bf16.gmra.mrb[16].mxu1 %v4758_v25  ;;  %v579_v25 = vshll.u32 %v4785_v14, 16  ;;  %v631_v14 = vrot.slane %v629_v4, 1 }
  0x62   :  { %2970 = vmatmul.mubr.bf16.gmra.mrb[16].mxu0 %v4759_v26  ;;  %2688 = vmatprep.mubr.bf16.mxu1 %v482_v28  ;;  %v576_v26 = vrot.slane %v574_v15, 1  ;;  %v4791_v28 = vld [vmem:[%s5887_s0 + $0x80] ss:$0 sps:$4 sm:$0x11]   ;;  %v1717_v15 = vor.u32 %v1716_v6, %v1712_v5 }
  0x63   :  { %2977 = vmatprep.mubr.bf16.mxu0 %v1572_v34  ;;  %v4792_v34 = vld [vmem:[%s5887_s0 + $0x84] sm:$0xff]   ;;  %v581_v38 = vrot.slane %v579_v25, 1  ;;  %v604_v44 = vshll.u32 %v4791_v28, 16  ;;  %v1744_v25 = vshll.u32 %v4805_v11, 16  ;;  %v1741_v28 = vrot.slane %v1739_v16, 1 }
  0x64   :  { %v577_v37 = vor.u32 %v576_v26, %v572_v24  ;;  %v1687_v51 = vshrl.u32 %v4792_v34, 16  ;;  %v4810_v26 = vld [vmem:[%s5887_s0 + $0xa8] sm:$0xff]   ;;  %v729_v16 = vshll.u32 %v4821_v1, 16 }
  0x65   :  { %v606_v53 = vrot.slane %v604_v44, 1 }
  0x66   :  { %v582_v48 = vsel %vm345_vm0, %v577_v37, %v581_v38  ;;  %v4800_v37 = vld [vmem:[%s5887_s0 + $0x84] sm:$0xff]   ;;  %v4801_v38 = vld [vmem:[%s5887_s0 + $0x90] sm:$0xff]  }
  0x69   :  { %2689 = vmatmul.mubr.bf16.gmra.mrb[20].mxu1 %v4764_v45  ;;  %v1689_v45 = vshll.u32 %v4792_v34, 16  ;;  %v1764_v34 = vshll.u32 %v4810_v26, 16 }
  0x6a   :  { %2978 = vmatmul.mubr.bf16.gmra.mrb[20].mxu0 %v4765_v46  ;;  %2696 = vmatprep.mubr.bf16.mxu1 %v507_v52  ;;  %v1694_v46 = vshll.u32 %v4793_v35, 16 }
  0x6b   :  { %2985 = vmatprep.mubr.bf16.mxu0 %v1597_v55  ;;  %v1691_v52 = vrot.slane %v1689_v45, 1  ;;  %v602_v55 = vor.u32 %v601_v43, %v597_v42  ;;  %v1762_v42 = vshrl.u32 %v4810_v26, 16  ;;  %v1766_v45 = vrot.slane %v1764_v34, 1  ;;  %v4827_v26 = vld [vmem:[%s5887_s0 + $0xd4] ss:$0 sps:$4 sm:$0x11]  }
  0x6c   :  { %v1696_v56 = vrot.slane %v1694_v46, 1  ;;  %v1769_v46 = vshll.u32 %v4811_v33, 16  ;;  %v4818_v33 = vld [vmem:[%s5887_s0 + $0xa8] sm:$0xff]   ;;  %v4819_v34 = vld [vmem:[%s5887_s0 + $0xb4] sm:$0xff]  }
  0x6d   :  { %v1692_v60 = vor.u32 %v1691_v52, %v1687_v51 }
  0x6f   :  { %v1697_v7 = vsel %vm345_vm0, %v1692_v60, %v1696_v56  ;;  %v1771_v56 = vrot.slane %v1769_v46, 1  ;;  %v697_v60 = vshrl.u32 %v4814_v40, 16 }
  0x71   :  { %2697 = vmatmul.mubr.bf16.gmra.mrb[24].mxu1 %v4770_v2  ;;  %v607_v2 = vsel %vm345_vm0, %v602_v55, %v606_v53  ;;  %v4817_v53 = vld [vmem:[%s5887_s0 + $0xbc] ss:$0 sps:$4 sm:$0x11]   ;;  %v1767_v55 = vor.u32 %v1766_v45, %v1762_v42  ;;  %v4833_v45 = vld [vmem:[%s5887_s0 + $0xe0] ss:$0 sps:$4 sm:$0x11]  }
  0x72   :  { %2986 = vmatmul.mubr.bf16.gmra.mrb[24].mxu0 %v4771_v3  ;;  %2704 = vmatprep.mubr.bf16.mxu1 %v532_v8  ;;  %v626_v3 = vrot.slane %v624_v57, 1  ;;  %v1719_v8 = vshll.u32 %v4799_v58, 16  ;;  %v4820_v57 = vld [vmem:[%s5887_s0 + $0xb4] sm:$0xff]   ;;  %v1794_v4 = vshll.u32 %v4817_v53, 16 }
  0x73   :  { %2993 = vmatprep.mubr.bf16.mxu0 %v1622_v13  ;;  %v4806_v58 = vld [vmem:[%s5887_s0 + $0x90] sm:$0xff]   ;;  %v1772_v5 = vsel %vm345_vm0, %v1767_v55, %v1771_v56  ;;  %v724_v6 = vshll.u32 %v4820_v57, 16 }
  0x74   :  { %v627_v13 = vor.u32 %v626_v3, %v622_v63  ;;  %v1721_v0 = vrot.slane %v1719_v8, 1  ;;  %v1787_v63 = vshrl.u32 %v4816_v47, 16  ;;  %v1791_v3 = vrot.slane %v1789_v54, 1  ;;  %v4823_v8 = vld [vmem:[%s5887_s0 + $0xc8] ss:$0 sps:$4 sm:$0x11]  }
  0x75   :  { %v4824_v53 = vld [vmem:[%s5887_s0 + $0xb4] sm:$0xff]   ;;  %v4825_v54 = vld [vmem:[%s5887_s0 + $0xc0] sm:$0xff]  }
  0x76   :  { %v632_v24 = vsel %vm345_vm0, %v627_v13, %v631_v14  ;;  %v1722_v27 = vsel %vm345_vm0, %v1717_v15, %v1721_v0  ;;  %v1792_v12 = vor.u32 %v1791_v3, %v1787_v63  ;;  %v1796_v13 = vrot.slane %v1794_v4, 1  ;;  %v4813_v14 = vld [vmem:[%s5887_s0 + $0xa8] sm:$0xff]  }
  0x77   :  { %v722_v15 = vshrl.u32 %v4820_v57, 16  ;;  %v726_v0 = vrot.slane %v724_v6, 1  ;;  %v779_v57 = vshll.u32 %v4833_v45, 16  ;;  %v4841_v6 = vld [vmem:[%s5887_s0 + $0xf8] ss:$0 sps:$4 sm:$0x11]  }
  0x79   :  { %2705 = vmatmul.mubr.bf16.gmra.mrb[28].mxu1 %v4776_v22  ;;  %v1737_v22 = vshrl.u32 %v4804_v10, 16  ;;  %v781_v3 = vrot.slane %v779_v57, 1  ;;  %v4856_v57 = vld [vmem:[%s5887_s0 + $0x108] sm:$0xff]  }
  0x7a   :  { %2994 = vmatmul.mubr.bf16.gmra.mrb[28].mxu0 %v4777_v23  ;;  %2712 = vmatprep.mubr.bf16.mxu1 %v557_v29  ;;  %v4808_v23 = vld [vmem:[%s5887_s0 + $0x9c] sm:$0xff]   ;;  %v4809_v29 = vld [vmem:[%s5887_s0 + $0xa4] ss:$0 sps:$4 sm:$0x11]  }
  0x7b   :  { %3001 = vmatprep.mubr.bf16.mxu0 %v1647_v32  ;;  %v674_v31 = vshll.u32 %v4808_v23, 16  ;;  %v652_v32 = vor.u32 %v651_v20, %v647_v19  ;;  %v1742_v35 = vor.u32 %v1741_v28, %v1737_v22  ;;  %v672_v39 = vshrl.u32 %v4808_v23, 16  ;;  %v4826_v19 = vld [vmem:[%s5887_s0 + $0xcc] sm:$0xff]  }
  0x7c   :  { %v1797_v22 = vsel %vm345_vm0, %v1792_v12, %v1796_v13 }
  0x7d   :  { %v657_v43 = vsel %vm345_vm0, %v652_v32, %v656_v30  ;;  %v676_v44 = vrot.slane %v674_v31, 1  ;;  %v4829_v30 = vld [vmem:[%s5887_s0 + $0xe0] ss:$0 sps:$4 sm:$0x11]   ;;  %v1839_v31 = vshll.u32 %v4828_v21, 16 }
  0x7f   :  { %v677_v51 = vor.u32 %v676_v44, %v672_v39  ;;  %v754_v39 = vshll.u32 %v4827_v26, 16  ;;  %v1844_v44 = vshll.u32 %v4829_v30, 16  ;;  %v4837_v30 = vld [vmem:[%s5887_s0 + $0xe4] sm:$0xff]  }
  0x81   :  { %2713 = vmatmul.mubr.bf16.gmra.mrb[32].mxu1 %v4782_v36  ;;  %v1746_v36 = vrot.slane %v1744_v25, 1  ;;  %v731_v25 = vrot.slane %v729_v16, 1 }
  0x82   :  { %3002 = vmatmul.mubr.bf16.gmra.mrb[32].mxu0 %v4783_v41  ;;  %2720 = vmatprep.mubr.bf16.mxu1 %v582_v48  ;;  %v679_v41 = vshll.u32 %v4809_v29, 16  ;;  %v749_v29 = vshll.u32 %v4826_v19, 16 }
  0x83   :  { %3009 = vmatprep.mubr.bf16.mxu0 %v1672_v50  ;;  %v1747_v48 = vsel %vm345_vm0, %v1742_v35, %v1746_v36  ;;  %v699_v50 = vshll.u32 %v4814_v40, 16  ;;  %v4832_v35 = vld [vmem:[%s5887_s0 + $0xd8] sm:$0xff]   ;;  %v1837_v40 = vshrl.u32 %v4828_v21, 16 }
  0x84   :  { %v681_v52 = vrot.slane %v679_v41, 1  ;;  %v4834_v41 = vld [vmem:[%s5887_s0 + $0xe4] sm:$0xff]   ;;  %v774_v46 = vshll.u32 %v4832_v35, 16  ;;  %v772_v55 = vshrl.u32 %v4832_v35, 16 }
  0x85   :  { %v4845_v21 = vld [vmem:[%s5887_s0 + $0xf8] ss:$0 sps:$4 sm:$0x11]  }
  0x86   :  { %v776_v56 = vrot.slane %v774_v46, 1 }
  0x89   :  { %2721 = vmatmul.mubr.bf16.gmra.mrb[36].mxu1 %v4788_v61  ;;  %v704_v61 = vshll.u32 %v4815_v49, 16  ;;  %v1864_v49 = vshll.u32 %v4834_v41, 16 }
  0x8a   :  { %3010 = vmatmul.mubr.bf16.gmra.mrb[36].mxu0 %v4789_v62  ;;  %2728 = vmatprep.mubr.bf16.mxu1 %v607_v2  ;;  %v701_v62 = vrot.slane %v699_v50, 1  ;;  %v682_v2 = vsel %vm345_vm0, %v677_v51, %v681_v52  ;;  %v1846_v51 = vrot.slane %v1844_v44, 1  ;;  %v4835_v52 = vld [vmem:[%s5887_s0 + $0xec] ss:$0 sps:$4 sm:$0x11]  }
  0x8b   :  { %3017 = vmatprep.mubr.bf16.mxu0 %v1697_v7  ;;  %v4822_v7 = vld [vmem:[%s5887_s0 + $0xc0] sm:$0xff]   ;;  %v706_v11 = vrot.slane %v704_v61, 1  ;;  %v1866_v61 = vrot.slane %v1864_v49, 1  ;;  %v1869_v1 = vshll.u32 %v4835_v52, 16 }
  0x8c   :  { %v702_v10 = vor.u32 %v701_v62, %v697_v60  ;;  %v1812_v23 = vshrl.u32 %v4822_v7, 16  ;;  %v4840_v62 = vld [vmem:[%s5887_s0 + $0xf0] sm:$0xff]  }
  0x8e   :  { %v707_v20 = vsel %vm345_vm0, %v702_v10, %v706_v11  ;;  %v4830_v10 = vld [vmem:[%s5887_s0 + $0xcc] sm:$0xff]   ;;  %v4831_v11 = vld [vmem:[%s5887_s0 + $0xd8] sm:$0xff]  }
  0x91   :  { %2729 = vmatmul.mubr.bf16.gmra.mrb[40].mxu1 %v4794_v17  ;;  %v1814_v17 = vshll.u32 %v4822_v7, 16  ;;  %v1889_v7 = vshll.u32 %v4840_v62, 16 }
  0x92   :  { %3018 = vmatmul.mubr.bf16.gmra.mrb[40].mxu0 %v4795_v18  ;;  %2736 = vmatprep.mubr.bf16.mxu1 %v632_v24  ;;  %v1819_v18 = vshll.u32 %v4823_v8, 16 }
  0x93   :  { %3025 = vmatprep.mubr.bf16.mxu0 %v1722_v27  ;;  %v1816_v24 = vrot.slane %v1814_v17, 1  ;;  %v727_v27 = vor.u32 %v726_v0, %v722_v15  ;;  %v1887_v15 = vshrl.u32 %v4840_v62, 16  ;;  %v1891_v16 = vrot.slane %v1889_v7, 1  ;;  %v4849_v7 = vld [vmem:[%s5887_s0 + $0xfc] sm:$0xff]  }
  0x94   :  { %v1821_v28 = vrot.slane %v1819_v18, 1  ;;  %v1894_v17 = vshll.u32 %v4841_v6, 16  ;;  %v4844_v18 = vld [vmem:[%s5887_s0 + $0xf0] sm:$0xff]  }
  0x95   :  { %v1817_v32 = vor.u32 %v1816_v24, %v1812_v23  ;;  %v732_v36 = vsel %vm345_vm0, %v727_v27, %v731_v25  ;;  %v824_v24 = vshll.u32 %v4844_v18, 16  ;;  %v4847_v25 = vld [vmem:[%s5887_s0 + $0x104] ss:$0 sps:$4 sm:$0x11]   ;;  %v1892_v26 = vor.u32 %v1891_v16, %v1887_v15 }
  0x96   :  { %v1896_v27 = vrot.slane %v1894_v17, 1  ;;  %v4863_v17 = vld [vmem:[%s5887_s0 + $0x11c] ss:$0 sps:$4 sm:$0x11]  }
  0x97   :  { %v1822_v42 = vsel %vm345_vm0, %v1817_v32, %v1821_v28  ;;  %v829_v32 = vshll.u32 %v4845_v21, 16  ;;  %v826_v35 = vrot.slane %v824_v24, 1 }
  0x99   :  { %2737 = vmatmul.mubr.bf16.gmra.mrb[44].mxu1 %v4800_v37  ;;  %v747_v37 = vshrl.u32 %v4826_v19, 16  ;;  %v4846_v19 = vld [vmem:[%s5887_s0 + $0xfc] sm:$0xff]  }
  0x9a   :  { %3026 = vmatmul.mubr.bf16.gmra.mrb[44].mxu0 %v4801_v38  ;;  %2744 = vmatprep.mubr.bf16.mxu1 %v657_v43  ;;  %v751_v38 = vrot.slane %v749_v29, 1  ;;  %v1841_v43 = vrot.slane %v1839_v31, 1  ;;  %v1914_v28 = vshll.u32 %v4846_v19, 16  ;;  %v4836_v29 = vld [vmem:[%s5887_s0 + $0xd8] sm:$0xff]   ;;  %v822_v31 = vshrl.u32 %v4844_v18, 16 }
  0x9b   :  { %3033 = vmatprep.mubr.bf16.mxu0 %v1747_v48  ;;  %v756_v48 = vrot.slane %v754_v39, 1 }
  0x9c   :  { %v752_v47 = vor.u32 %v751_v38, %v747_v37  ;;  %v1842_v50 = vor.u32 %v1841_v43, %v1837_v40  ;;  %v1897_v37 = vsel %vm345_vm0, %v1892_v26, %v1896_v27  ;;  %v1912_v38 = vshrl.u32 %v4846_v19, 16  ;;  %v4842_v43 = vld [vmem:[%s5887_s0 + $0xe4] sm:$0xff]  }
  0x9d   :  { %v1916_v39 = vrot.slane %v1914_v28, 1  ;;  %v1919_v40 = vshll.u32 %v4847_v25, 16  ;;  %v827_v44 = vor.u32 %v826_v35, %v822_v31  ;;  %v4865_v25 = vld [vmem:[%s5887_s0 + $0x128] ss:$0 sps:$4 sm:$0x11]   ;;  %v4868_v31 = vld [vmem:[%s5887_s0 + $0x120] sm:$0xff]  }
  0x9e   :  { %v757_v60 = vsel %vm345_vm0, %v752_v47, %v756_v48  ;;  %v1847_v63 = vsel %vm345_vm0, %v1842_v50, %v1846_v51  ;;  %v4843_v47 = vld [vmem:[%s5887_s0 + $0xf0] sm:$0xff]   ;;  %v4855_v26 = vld [vmem:[%s5887_s0 + $0x108] sm:$0xff]  }
  0x9f   :  { %v1917_v48 = vor.u32 %v1916_v39, %v1912_v38  ;;  %v1921_v49 = vrot.slane %v1919_v40, 1  ;;  %v4853_v50 = vld [vmem:[%s5887_s0 + $0x110] ss:$0 sps:$4 sm:$0x11]   ;;  %v924_v39 = vshll.u32 %v4868_v31, 16 }
  0xa1   :  { %2745 = vmatmul.mubr.bf16.gmra.mrb[48].mxu1 %v4806_v58  ;;  %v1862_v58 = vshrl.u32 %v4834_v41, 16  ;;  %v831_v41 = vrot.slane %v829_v32, 1 }
  0xa2   :  { %3034 = vmatmul.mubr.bf16.gmra.mrb[48].mxu0 %v4807_v59  ;;  %2752 = vmatprep.mubr.bf16.mxu1 %v682_v2  ;;  %v4838_v59 = vld [vmem:[%s5887_s0 + $0xe4] sm:$0xff]   ;;  %v4839_v2 = vld [vmem:[%s5887_s0 + $0xec] ss:$0 sps:$4 sm:$0x11]  }
  0xa3   :  { %3041 = vmatprep.mubr.bf16.mxu0 %v1772_v5  ;;  %v799_v4 = vshll.u32 %v4838_v59, 16  ;;  %v777_v5 = vor.u32 %v776_v56, %v772_v55  ;;  %v1867_v8 = vor.u32 %v1866_v61, %v1862_v58  ;;  %v797_v12 = vshrl.u32 %v4838_v59, 16  ;;  %v4857_v61 = vld [vmem:[%s5887_s0 + $0x110] ss:$0 sps:$4 sm:$0x11]  }
  0xa4   :  { %v804_v13 = vshll.u32 %v4839_v2, 16  ;;  %v1922_v58 = vsel %vm345_vm0, %v1917_v48, %v1921_v49  ;;  %v1944_v59 = vshll.u32 %v4853_v50, 16  ;;  %v874_v2 = vshll.u32 %v4856_v57, 16  ;;  %v4874_v50 = vld [vmem:[%s5887_s0 + $0x12c] sm:$0xff]  }
  0xa5   :  { %v782_v0 = vsel %vm345_vm0, %v777_v5, %v781_v3  ;;  %v4859_v3 = vld [vmem:[%s5887_s0 + $0x11c] ss:$0 sps:$4 sm:$0x11]  }
  0xa6   :  { %v806_v23 = vrot.slane %v804_v13, 1  ;;  %v1946_v5 = vrot.slane %v1944_v59, 1  ;;  %v876_v13 = vrot.slane %v874_v2, 1  ;;  %v1969_v16 = vshll.u32 %v4859_v3, 16  ;;  %v4867_v3 = vld [vmem:[%s5887_s0 + $0x120] sm:$0xff]  }
  0xa7   :  { %v4877_v59 = vld [vmem:[%s5887_s0 + $0x140] ss:$0 sps:$4 sm:$0x11]  }
  0xa8   :  { %v1971_v24 = vrot.slane %v1969_v16, 1 }
  0xa9   :  { %2753 = vmatmul.mubr.bf16.gmra.mrb[52].mxu1 %v4812_v9  ;;  %v1871_v9 = vrot.slane %v1869_v1, 1 }
  0xaa   :  { %3042 = vmatmul.mubr.bf16.gmra.mrb[52].mxu0 %v4813_v14  ;;  %2760 = vmatprep.mubr.bf16.mxu1 %v707_v20  ;;  %v801_v14 = vrot.slane %v799_v4, 1 }
  0xab   :  { %3049 = vmatprep.mubr.bf16.mxu0 %v1797_v22  ;;  %v1872_v20 = vsel %vm345_vm0, %v1867_v8, %v1871_v9  ;;  %v879_v8 = vshll.u32 %v4857_v61, 16  ;;  %v4862_v9 = vld [vmem:[%s5887_s0 + $0x114] sm:$0xff]  }
  0xac   :  { %v802_v22 = vor.u32 %v801_v14, %v797_v12  ;;  %v872_v12 = vshrl.u32 %v4856_v57, 16  ;;  %v899_v19 = vshll.u32 %v4862_v9, 16  ;;  %v897_v27 = vshrl.u32 %v4862_v9, 16  ;;  %v4875_v57 = vld [vmem:[%s5887_s0 + $0x134] ss:$0 sps:$4 sm:$0x11]  }
  0xad   :  { %v881_v18 = vrot.slane %v879_v8, 1  ;;  %v4880_v8 = vld [vmem:[%s5887_s0 + $0x138] sm:$0xff]  }
  0xae   :  { %v877_v21 = vor.u32 %v876_v13, %v872_v12  ;;  %v901_v28 = vrot.slane %v899_v19, 1  ;;  %v4882_v13 = vld [vmem:[%s5887_s0 + $0x144] sm:$0xff]   ;;  %v4883_v19 = vld [vmem:[%s5887_s0 + $0x14c] ss:$0 sps:$4 sm:$0x11]  }
  0xb0   :  { %v882_v32 = vsel %vm345_vm0, %v877_v21, %v881_v18  ;;  %v902_v40 = vor.u32 %v901_v28, %v897_v27  ;;  %v4872_v21 = vld [vmem:[%s5887_s0 + $0x120] sm:$0xff]  }
  0xb1   :  { %2761 = vmatmul.mubr.bf16.gmra.mrb[56].mxu1 %v4818_v33  ;;  %v4850_v33 = vld [vmem:[%s5887_s0 + $0xfc] sm:$0xff]   ;;  %v4886_v27 = vld [vmem:[%s5887_s0 + $0x144] sm:$0xff]  }
  0xb2   :  { %3050 = vmatmul.mubr.bf16.gmra.mrb[56].mxu0 %v4819_v34  ;;  %2768 = vmatprep.mubr.bf16.mxu1 %v732_v36  ;;  %v807_v34 = vsel %vm345_vm0, %v802_v22, %v806_v23  ;;  %v4852_v36 = vld [vmem:[%s5887_s0 + $0x108] sm:$0xff]   ;;  %v849_v45 = vshll.u32 %v4850_v33, 16  ;;  %v847_v51 = vshrl.u32 %v4850_v33, 16  ;;  %v4854_v22 = vld [vmem:[%s5887_s0 + $0xfc] sm:$0xff]  }
  0xb3   :  { %3057 = vmatprep.mubr.bf16.mxu0 %v1822_v42  ;;  %v4851_v42 = vld [vmem:[%s5887_s0 + $0x104] ss:$0 sps:$4 sm:$0x11]   ;;  %v1939_v46 = vshll.u32 %v4852_v36, 16  ;;  %v1937_v55 = vshrl.u32 %v4852_v36, 16  ;;  %v1994_v36 = vshll.u32 %v4865_v25, 16 }
  0xb4   :  { %v854_v52 = vshll.u32 %v4851_v42, 16 }
  0xb5   :  { %v1941_v56 = vrot.slane %v1939_v46, 1  ;;  %v4861_v46 = vld [vmem:[%s5887_s0 + $0x114] sm:$0xff]  }
  0xb6   :  { %v856_v62 = vrot.slane %v854_v52, 1  ;;  %v926_v52 = vrot.slane %v924_v39, 1  ;;  %v4889_v39 = vld [vmem:[%s5887_s0 + $0x158] ss:$0 sps:$4 sm:$0x11]  }
  0xb7   :  { %v1942_v4 = vor.u32 %v1941_v56, %v1937_v55  ;;  %v4876_v55 = vld [vmem:[%s5887_s0 + $0x138] sm:$0xff]  }
  0xb8   :  { %v2039_v2 = vshll.u32 %v4876_v55, 16 }
  0xb9   :  { %2769 = vmatmul.mubr.bf16.gmra.mrb[60].mxu1 %v4824_v53  ;;  %v832_v53 = vsel %vm345_vm0, %v827_v44, %v831_v41  ;;  %v1947_v14 = vsel %vm345_vm0, %v1942_v4, %v1946_v5  ;;  %v4871_v41 = vld [vmem:[%s5887_s0 + $0x134] ss:$0 sps:$4 sm:$0x11]   ;;  %v1996_v44 = vrot.slane %v1994_v36, 1  ;;  %v947_v4 = vshrl.u32 %v4874_v50, 16 }
  0xba   :  { %3058 = vmatmul.mubr.bf16.gmra.mrb[60].mxu0 %v4825_v54  ;;  %2776 = vmatprep.mubr.bf16.mxu1 %v757_v60  ;;  %v851_v54 = vrot.slane %v849_v45, 1  ;;  %v4858_v60 = vld [vmem:[%s5887_s0 + $0x114] sm:$0xff]   ;;  %v4860_v45 = vld [vmem:[%s5887_s0 + $0x108] sm:$0xff]   ;;  %v2041_v12 = vrot.slane %v2039_v2, 1  ;;  %v999_v36 = vshll.u32 %v4886_v27, 16 }
  0xbb   :  { %3065 = vmatprep.mubr.bf16.mxu0 %v1847_v63  ;;  %v4848_v63 = vld [vmem:[%s5887_s0 + $0xf0] sm:$0xff]   ;;  %v1964_v6 = vshll.u32 %v4858_v60, 16  ;;  %v1962_v15 = vshrl.u32 %v4858_v60, 16 }
  0xbc   :  { %v852_v1 = vor.u32 %v851_v54, %v847_v51  ;;  %v2019_v54 = vshll.u32 %v4871_v41, 16  ;;  %v4878_v41 = vld [vmem:[%s5887_s0 + $0x12c] sm:$0xff]  }
  0xc1   :  { %2777 = vmatmul.mubr.bf16.gmra.mrb[64].mxu1 %v4830_v10  ;;  %v4864_v10 = vld [vmem:[%s5887_s0 + $0x120] sm:$0xff]  }
  0xc2   :  { %3066 = vmatmul.mubr.bf16.gmra.mrb[64].mxu0 %v4831_v11  ;;  %2784 = vmatprep.mubr.bf16.mxu1 %v782_v0  ;;  %v857_v11 = vsel %vm345_vm0, %v852_v1, %v856_v62  ;;  %v1966_v0 = vrot.slane %v1964_v6, 1  ;;  %v4866_v62 = vld [vmem:[%s5887_s0 + $0x114] sm:$0xff]   ;;  %v2021_v1 = vrot.slane %v2019_v54, 1  ;;  %v954_v6 = vshll.u32 %v4875_v57, 16 }
  0xc3   :  { %3073 = vmatprep.mubr.bf16.mxu0 %v1872_v20  ;;  %v1989_v20 = vshll.u32 %v4864_v10, 16 }
  0xc4   :  { %v1967_v23 = vor.u32 %v1966_v0, %v1962_v15  ;;  %v4881_v15 = vld [vmem:[%s5887_s0 + $0x140] ss:$0 sps:$4 sm:$0x11]  }
  0xc5   :  { %v1991_v33 = vrot.slane %v1989_v20, 1  ;;  %v2064_v20 = vshll.u32 %v4882_v13, 16 }
  0xc6   :  { %v1972_v35 = vsel %vm345_vm0, %v1967_v23, %v1971_v24  ;;  %v972_v24 = vshrl.u32 %v4880_v8, 16 }
  0xc9   :  { %2785 = vmatmul.mubr.bf16.gmra.mrb[68].mxu1 %v4836_v29  ;;  %v904_v29 = vshll.u32 %v4863_v17, 16  ;;  %v974_v17 = vshll.u32 %v4880_v8, 16 }
  0xca   :  { %3074 = vmatmul.mubr.bf16.gmra.mrb[68].mxu0 %v4837_v30  ;;  %2792 = vmatprep.mubr.bf16.mxu1 %v807_v34  ;;  %v1987_v30 = vshrl.u32 %v4864_v10, 16  ;;  %v4870_v34 = vld [vmem:[%s5887_s0 + $0x12c] sm:$0xff]  }
  0xcb   :  { %3081 = vmatprep.mubr.bf16.mxu0 %v1897_v37  ;;  %v4869_v37 = vld [vmem:[%s5887_s0 + $0x128] ss:$0 sps:$4 sm:$0x11]   ;;  %v906_v38 = vrot.slane %v904_v29, 1  ;;  %v2014_v42 = vshll.u32 %v4870_v34, 16  ;;  %v2012_v49 = vshrl.u32 %v4870_v34, 16 }
  0xcc   :  { %v929_v48 = vshll.u32 %v4869_v37, 16  ;;  %v976_v25 = vrot.slane %v974_v17, 1  ;;  %v2062_v29 = vshrl.u32 %v4882_v13, 16  ;;  %v4890_v17 = vld [vmem:[%s5887_s0 + $0x144] sm:$0xff]  }
  0xcd   :  { %v907_v51 = vsel %vm345_vm0, %v902_v40, %v906_v38 }
  0xce   :  { %v931_v61 = vrot.slane %v929_v48, 1 }
  0xd1   :  { %2793 = vmatmul.mubr.bf16.gmra.mrb[72].mxu1 %v4842_v43  ;;  %v1992_v43 = vor.u32 %v1991_v33, %v1987_v30  ;;  %v2066_v30 = vrot.slane %v2064_v20, 1  ;;  %v977_v33 = vor.u32 %v976_v25, %v972_v24 }
  0xd2   :  { %3082 = vmatmul.mubr.bf16.gmra.mrb[72].mxu0 %v4843_v47  ;;  %2800 = vmatprep.mubr.bf16.mxu1 %v832_v53  ;;  %v922_v47 = vshrl.u32 %v4868_v31, 16  ;;  %v2016_v53 = vrot.slane %v2014_v42, 1  ;;  %v2069_v31 = vshll.u32 %v4883_v19, 16  ;;  %v4879_v42 = vld [vmem:[%s5887_s0 + $0x138] sm:$0xff]  }
  0xd3   :  { %3089 = vmatprep.mubr.bf16.mxu0 %v1922_v58  ;;  %v1997_v56 = vsel %vm345_vm0, %v1992_v43, %v1996_v44  ;;  %v949_v58 = vshll.u32 %v4874_v50, 16  ;;  %v2067_v37 = vor.u32 %v2066_v30, %v2062_v29  ;;  %v997_v44 = vshrl.u32 %v4886_v27, 16  ;;  %v5647_v29 = vld [vmem:[%s5888_s2] ss:$0 sm:$0xff] }
  0xd4   :  { %v927_v60 = vor.u32 %v926_v52, %v922_v47  ;;  %v2071_v38 = vrot.slane %v2069_v31, 1  ;;  %v4892_v47 = vld [vmem:[%s5887_s0 + $0x150] sm:$0xff]   ;;  %v4894_v52 = vld [vmem:[%s5887_s0 + $0x15c] sm:$0xff]  }
  0xd5   :  { %v951_v5 = vrot.slane %v949_v58, 1  ;;  %v1022_v2 = vshrl.u32 %v4892_v47, 16 }
  0xd6   :  { %v932_v9 = vsel %vm345_vm0, %v927_v60, %v931_v61  ;;  %v2072_v48 = vsel %vm345_vm0, %v2067_v37, %v2071_v38  ;;  %v2114_v60 = vshll.u32 %v4894_v52, 16  ;;  %v4884_v61 = vld [vmem:[%s5887_s0 + $0x138] sm:$0xff]  }
  0xd7   :  { %v952_v0 = vor.u32 %v951_v5, %v947_v4  ;;  %v4907_v37 = vld [vmem:[%s5887_s0 + $0x17c] ss:$0 sps:$4 sm:$0x11]  }
  0xd9   :  { %2801 = vmatmul.mubr.bf16.gmra.mrb[76].mxu1 %v4848_v63  ;;  %v2017_v63 = vor.u32 %v2016_v53, %v2012_v49 }
  0xda   :  { %3090 = vmatmul.mubr.bf16.gmra.mrb[76].mxu0 %v4849_v7  ;;  %2808 = vmatprep.mubr.bf16.mxu1 %v857_v11  ;;  %v2044_v7 = vshll.u32 %v4877_v59, 16  ;;  %v2037_v11 = vshrl.u32 %v4876_v55, 16  ;;  %v4893_v55 = vld [vmem:[%s5887_s0 + $0x158] ss:$0 sps:$4 sm:$0x11]  }
  0xdb   :  { %3097 = vmatprep.mubr.bf16.mxu0 %v1947_v14  ;;  %v2022_v10 = vsel %vm345_vm0, %v2017_v63, %v2021_v1  ;;  %v956_v14 = vrot.slane %v954_v6, 1  ;;  %v4895_v59 = vld [vmem:[%s5887_s0 + $0x164] ss:$0 sps:$4 sm:$0x11]   ;;  %v4898_v63 = vld [vmem:[%s5887_s0 + $0x15c] sm:$0xff]   ;;  %v1029_v4 = vshll.u32 %v4893_v55, 16 }
  0xdc   :  { %v2046_v16 = vrot.slane %v2044_v7, 1  ;;  %v2042_v18 = vor.u32 %v2041_v12, %v2037_v11  ;;  %v2112_v6 = vshrl.u32 %v4894_v52, 16  ;;  %v2116_v7 = vrot.slane %v2114_v60, 1  ;;  %v4912_v60 = vld [vmem:[%s5887_s0 + $0x180] sm:$0xff]  }
  0xdd   :  { %v957_v23 = vsel %vm345_vm0, %v952_v0, %v956_v14  ;;  %v2119_v8 = vshll.u32 %v4895_v59, 16  ;;  %v1049_v11 = vshll.u32 %v4898_v63, 16  ;;  %v1031_v13 = vrot.slane %v1029_v4, 1  ;;  %v4901_v0 = vld [vmem:[%s5887_s0 + $0x170] ss:$0 sps:$4 sm:$0x11]  }
  0xde   :  { %v2047_v28 = vsel %vm345_vm0, %v2042_v18, %v2046_v16  ;;  %v2117_v14 = vor.u32 %v2116_v7, %v2112_v6  ;;  %v4891_v18 = vld [vmem:[%s5887_s0 + $0x150] sm:$0xff]   ;;  %v1047_v19 = vshrl.u32 %v4898_v63, 16  ;;  %v2144_v27 = vshll.u32 %v4901_v0, 16  ;;  %v4911_v63 = vld [vmem:[%s5887_s0 + $0x17c] ss:$0 sps:$4 sm:$0x11]  }
  0xdf   :  { %v1051_v20 = vrot.slane %v1049_v11, 1  ;;  %v2169_v59 = vshll.u32 %v4907_v37, 16 }
  0xe1   :  { %2809 = vmatmul.mubr.bf16.gmra.mrb[80].mxu1 %v4854_v22  ;;  %v4873_v22 = vld [vmem:[%s5887_s0 + $0x12c] sm:$0xff]   ;;  %v1052_v30 = vor.u32 %v1051_v20, %v1047_v19  ;;  %v2171_v7 = vrot.slane %v2169_v59, 1 }
  0xe2   :  { %3098 = vmatmul.mubr.bf16.gmra.mrb[80].mxu0 %v4855_v26  ;;  %2816 = vmatprep.mubr.bf16.mxu1 %v882_v32  ;;  %v979_v26 = vshll.u32 %v4881_v15, 16  ;;  %v4888_v32 = vld [vmem:[%s5887_s0 + $0x150] sm:$0xff]   ;;  %v2121_v15 = vrot.slane %v2119_v8, 1  ;;  %v4913_v8 = vld [vmem:[%s5887_s0 + $0x188] ss:$0 sps:$4 sm:$0x11]  }
  0xe3   :  { %3105 = vmatprep.mubr.bf16.mxu0 %v1972_v35  ;;  %v4887_v35 = vld [vmem:[%s5887_s0 + $0x14c] ss:$0 sps:$4 sm:$0x11]   ;;  %v2089_v40 = vshll.u32 %v4888_v32, 16  ;;  %v2087_v49 = vshrl.u32 %v4888_v32, 16 }
  0xe4   :  { %v981_v34 = vrot.slane %v979_v26, 1  ;;  %v2122_v24 = vsel %vm345_vm0, %v2117_v14, %v2121_v15  ;;  %v4905_v32 = vld [vmem:[%s5887_s0 + $0x170] ss:$0 sps:$4 sm:$0x11]   ;;  %v4902_v15 = vld [vmem:[%s5887_s0 + $0x15c] sm:$0xff]  }
  0xe5   :  { %v2091_v50 = vrot.slane %v2089_v40, 1 }
  0xe6   :  { %v982_v43 = vsel %vm345_vm0, %v977_v33, %v981_v34 }
  0xe7   :  { %v2092_v57 = vor.u32 %v2091_v50, %v2087_v49 }
  0xe9   :  { %2817 = vmatmul.mubr.bf16.gmra.mrb[84].mxu1 %v4860_v45  ;;  %v1001_v45 = vrot.slane %v999_v36, 1  ;;  %v2146_v36 = vrot.slane %v2144_v27, 1  ;;  %v4916_v27 = vld [vmem:[%s5887_s0 + $0x180] sm:$0xff]  }
  0xea   :  { %3106 = vmatmul.mubr.bf16.gmra.mrb[84].mxu0 %v4861_v46  ;;  %2824 = vmatprep.mubr.bf16.mxu1 %v907_v51  ;;  %v1004_v46 = vshll.u32 %v4887_v35, 16  ;;  %v2094_v51 = vshll.u32 %v4889_v39, 16 }
  0xeb   :  { %3113 = vmatprep.mubr.bf16.mxu0 %v1997_v56  ;;  %v1002_v53 = vor.u32 %v1001_v45, %v997_v44  ;;  %v1024_v56 = vshll.u32 %v4892_v47, 16  ;;  %v4897_v45 = vld [vmem:[%s5887_s0 + $0x15c] sm:$0xff]  }
  0xec   :  { %v1006_v54 = vrot.slane %v1004_v46, 1  ;;  %v2096_v58 = vrot.slane %v2094_v51, 1 }
  0xee   :  { %v1007_v1 = vsel %vm345_vm0, %v1002_v53, %v1006_v54  ;;  %v2097_v5 = vsel %vm345_vm0, %v2092_v57, %v2096_v58  ;;  %v1079_v54 = vshll.u32 %v4905_v32, 16 }
  0xf0   :  { %v1081_v4 = vrot.slane %v1079_v54, 1 }
  0xf1   :  { %2825 = vmatmul.mubr.bf16.gmra.mrb[88].mxu1 %v4866_v62  ;;  %v4885_v62 = vld [vmem:[%s5887_s0 + $0x144] sm:$0xff]  }
  0xf2   :  { %3114 = vmatmul.mubr.bf16.gmra.mrb[88].mxu0 %v4867_v3  ;;  %2832 = vmatprep.mubr.bf16.mxu1 %v932_v9  ;;  %v1026_v3 = vrot.slane %v1024_v56, 1  ;;  %v4900_v9 = vld [vmem:[%s5887_s0 + $0x168] sm:$0xff]  }
  0xf3   :  { %3121 = vmatprep.mubr.bf16.mxu0 %v2022_v10  ;;  %v4899_v10 = vld [vmem:[%s5887_s0 + $0x164] ss:$0 sps:$4 sm:$0x11]   ;;  %v2139_v16 = vshll.u32 %v4900_v9, 16  ;;  %v2137_v25 = vshrl.u32 %v4900_v9, 16  ;;  %v2189_v9 = vshll.u32 %v4912_v60, 16 }
  0xf4   :  { %v1027_v12 = vor.u32 %v1026_v3, %v1022_v2 }
  0xf5   :  { %v2141_v26 = vrot.slane %v2139_v16, 1  ;;  %v2191_v32 = vrot.slane %v2189_v9, 1 }
  0xf7   :  { %v2142_v35 = vor.u32 %v2141_v26, %v2137_v25 }
  0xf9   :  { %2833 = vmatmul.mubr.bf16.gmra.mrb[92].mxu1 %v4872_v21  ;;  %v1054_v21 = vshll.u32 %v4899_v10, 16  ;;  %v2147_v56 = vsel %vm345_vm0, %v2142_v35, %v2146_v36 }
  0xfa   :  { %3122 = vmatmul.mubr.bf16.gmra.mrb[92].mxu0 %v4873_v22  ;;  %2840 = vmatprep.mubr.bf16.mxu1 %v957_v23  ;;  %v1032_v22 = vsel %vm345_vm0, %v1027_v12, %v1031_v13  ;;  %v4904_v23 = vld [vmem:[%s5887_s0 + $0x168] sm:$0xff]  }
  0xfb   :  { %3129 = vmatprep.mubr.bf16.mxu0 %v2047_v28  ;;  %v4906_v28 = vld [vmem:[%s5887_s0 + $0x174] sm:$0xff]   ;;  %v1056_v31 = vrot.slane %v1054_v21, 1  ;;  %v1074_v33 = vshll.u32 %v4904_v23, 16  ;;  %v1072_v47 = vshrl.u32 %v4904_v23, 16  ;;  %v1104_v21 = vshll.u32 %v4911_v63, 16 }
  0xfc   :  { %v2164_v38 = vshll.u32 %v4906_v28, 16  ;;  %v2162_v57 = vshrl.u32 %v4906_v28, 16 }
  0xfd   :  { %v1057_v46 = vsel %vm345_vm0, %v1052_v30, %v1056_v31  ;;  %v1076_v53 = vrot.slane %v1074_v33, 1  ;;  %v2187_v31 = vshrl.u32 %v4912_v60, 16  ;;  %v2194_v33 = vshll.u32 %v4913_v8, 16 }
  0xfe   :  { %v2166_v58 = vrot.slane %v2164_v38, 1  ;;  %v1106_v38 = vrot.slane %v1104_v21, 1 }
  0xff   :  { %v1077_v3 = vor.u32 %v1076_v53, %v1072_v47 }
 0x100   :  { %v2167_v6 = vor.u32 %v2166_v58, %v2162_v57  ;;  %v1122_v58 = vshrl.u32 %v4916_v27, 16 }
 0x101   :  { %2841 = vmatmul.mubr.bf16.gmra.mrb[96].mxu1 %v4878_v41  ;;  %v1082_v26 = vsel %vm345_vm0, %v1077_v3, %v1081_v4 }
 0x102   :  { %3130 = vmatmul.mubr.bf16.gmra.mrb[96].mxu0 %v4879_v42  ;;  %2848 = vmatprep.mubr.bf16.mxu1 %v982_v43  ;;  %v4896_v42 = vld [vmem:[%s5887_s0 + $0x150] sm:$0xff]   ;;  %v2172_v30 = vsel %vm345_vm0, %v2167_v6, %v2171_v7 }
 0x103   :  { %3137 = vmatprep.mubr.bf16.mxu0 %v2072_v48  ;;  %v5666_v48 = vld [vmem:[%s5887_s0 + $0x174] sm:$0xff]  }
 0x104   :  { %v1097_v19 = vshrl.u32 %v5666_v48, 16 }
 0x109   :  { %2849 = vmatmul.mubr.bf16.gmra.mrb[100].mxu1 %v4884_v61 }
 0x10a   :  { %3138 = vmatmul.mubr.bf16.gmra.mrb[100].mxu0 %v4885_v62  ;;  %2856 = vmatprep.mubr.bf16.mxu1 %v1007_v1  ;;  %v1099_v1 = vshll.u32 %v5666_v48, 16 }
 0x10b   :  { %3145 = vmatprep.mubr.bf16.mxu0 %v2097_v5 }
 0x10c   :  { %v1101_v20 = vrot.slane %v1099_v1, 1 }
 0x10e   :  { %v1102_v37 = vor.u32 %v1101_v20, %v1097_v19  ;;  %v4914_v19 = vld [vmem:[%s5887_s0 + $0x174] sm:$0xff]  }
 0x110   :  { %v1107_v57 = vsel %vm345_vm0, %v1102_v37, %v1106_v38 }
 0x111   :  { %2857 = vmatmul.mubr.bf16.gmra.mrb[104].mxu1 %v4890_v17 }
 0x112   :  { %3146 = vmatmul.mubr.bf16.gmra.mrb[104].mxu0 %v4891_v18  ;;  %2864 = vmatprep.mubr.bf16.mxu1 %v1032_v22  ;;  %v4903_v18 = vld [vmem:[%s5887_s0 + $0x168] sm:$0xff]  }
 0x113   :  { %3153 = vmatprep.mubr.bf16.mxu0 %v2122_v24 }
 0x114   :  { %v2650_v34 = vpop.f32.mrb[0].mxu1 }
 0x115   :  { %v2651_v39 = vadd.f32 %v5647_v29, %v2650_v34  ;;  %v2939_v40 = vpop.f32.mrb[0].mxu0  ;;  %v2652_v41 = vpop.f32.mrb[1].mxu1  ;;  %v4918_v34 = vld [vmem:[%s5887_s0 + $0x18c] sm:$0xff]  }
 0x116   :  { %v2941_v43 = vpop.f32.mrb[1].mxu0  ;;  %v2653_v44 = vpop.f32.mrb[2].mxu1  ;;  %v1124_v41 = vshll.u32 %v4916_v27, 16  ;;  %v2212_v4 = vshrl.u32 %v4918_v34, 16 }
 0x117   :  { %v2940_v49 = vadd.f32 %v2939_v40, %v2651_v39  ;;  %v2654_v50 = vadd.f32 %v5647_v29, %v2653_v44  ;;  %v2942_v51 = vpop.f32.mrb[2].mxu0  ;;  %v2655_v52 = vpop.f32.mrb[3].mxu1  ;;  %v4917_v39 = vld [vmem:[%s5887_s0 + $0x188] ss:$0 sps:$4 sm:$0x11]   ;;  %v2192_v43 = vor.u32 %v2191_v32, %v2187_v31  ;;  %v2196_v44 = vrot.slane %v2194_v33, 1 }
 0x118   :  { %v2944_v55 = vpop.f32.mrb[3].mxu0  ;;  %v4908_v52 = vld [vmem:[%s5887_s0 + $0x168] sm:$0xff]   ;;  %v1126_v63 = vrot.slane %v1124_v41, 1  ;;  %v1129_v1 = vshll.u32 %v4917_v39, 16  ;;  %v4920_v41 = vld [vmem:[%s5887_s0 + $0x180] sm:$0xff]  }
 0x119   :  { %v3258_v61 = vmul.f32 0.2, %v2940_v49  ;;  %v2943_v62 = vadd.f32 %v2942_v51, %v2654_v50  ;;  %2865 = vmatmul.mubr.bf16.gmra.mrb[108].mxu1 %v4896_v42  ;;  %vm3194_vm1 = vcmp.ge.f32.partialorder %v2940_v49, 0.0  ;;  %v2197_v3 = vsel %vm345_vm0, %v2192_v43, %v2196_v44 }
 0x11a   :  { %3154 = vmatmul.mubr.bf16.gmra.mrb[108].mxu0 %v4897_v45  ;;  %2872 = vmatprep.mubr.bf16.mxu1 %v1057_v46  ;;  %v4919_v45 = vld [vmem:[%s5887_s0 + $0x194] ss:$0 sps:$4 sm:$0x11]   ;;  %v2214_v46 = vshll.u32 %v4918_v34, 16 }
 0x11b   :  { %vm3195_vm2 = vcmp.ge.f32.partialorder %v2943_v62, 0.0  ;;  %v3259_v2 = vmul.f32 0.2, %v2943_v62  ;;  %3161 = vmatprep.mubr.bf16.mxu0 %v2147_v56  ;;  %v3322_v10 = vsel %vm3194_vm1, %v2940_v49, %v3258_v61  ;;  %v4909_v56 = vld [vmem:[%s5887_s0 + $0x174] sm:$0xff]   ;;  %v2219_v6 = vshll.u32 %v4919_v45, 16  ;;  %v4921_v45 = vld [vmem:[%s5887_s0 + $0x18c] sm:$0xff]  }
 0x11c   :  { %v2658_v5 = vpop.f32.mrb[4].mxu1 }
 0x11d   :  { %v3323_v11 = vsel %vm3195_vm2, %v2943_v62, %v3259_v2  ;;  %v2659_v12 = vadd.f32 %v5647_v29, %v2658_v5  ;;  %v2947_v13 = vpop.f32.mrb[4].mxu0  ;;  %v2660_v14 = vpop.f32.mrb[5].mxu1  ;;  %v2216_v5 = vrot.slane %v2214_v46, 1 }
 0x11e   :  { %v4381_v0 = vpack.c.bf16 %v3323_v11, %v3322_v10  ;;  %v2949_v16 = vpop.f32.mrb[5].mxu0  ;;  %v2661_v17 = vpop.f32.mrb[6].mxu1  ;;  %v1127_v10 = vor.u32 %v1126_v63, %v1122_v58  ;;  %v1131_v11 = vrot.slane %v1129_v1, 1  ;;  %v2221_v14 = vrot.slane %v2219_v6, 1 }
 0x11f   :  { %v2948_v22 = vadd.f32 %v2947_v13, %v2659_v12  ;;  %v2662_v23 = vadd.f32 %v5647_v29, %v2661_v17  ;;  %v2950_v24 = vpop.f32.mrb[6].mxu0  ;;  %v2663_v25 = vpop.f32.mrb[7].mxu1  ;;  %v2217_v13 = vor.u32 %v2216_v5, %v2212_v4 }
 0x120   :  { %4382 = vst [vmem:[%s5889_s3] sm:$0xff] %v4381_v0   ;;  %v2952_v28 = vpop.f32.mrb[7].mxu0 }
 0x121   :  { %v3260_v35 = vmul.f32 0.2, %v2948_v22  ;;  %v2951_v36 = vadd.f32 %v2950_v24, %v2662_v23  ;;  %2873 = vmatmul.mubr.bf16.gmra.mrb[112].mxu1 %v4902_v15  ;;  %vm3196_vm3 = vcmp.ge.f32.partialorder %v2948_v22, 0.0  ;;  %v4915_v23 = vld [vmem:[%s5887_s0 + $0x180] sm:$0xff]   ;;  %v1132_v28 = vsel %vm345_vm0, %v1127_v10, %v1131_v11 }
 0x122   :  { %3162 = vmatmul.mubr.bf16.gmra.mrb[112].mxu0 %v4903_v18  ;;  %2880 = vmatprep.mubr.bf16.mxu1 %v1082_v26  ;;  %v2222_v31 = vsel %vm345_vm0, %v2217_v13, %v2221_v14 }
 0x123   :  { %vm3197_vm4 = vcmp.ge.f32.partialorder %v2951_v36, 0.0  ;;  %v3261_v40 = vmul.f32 0.2, %v2951_v36  ;;  %3169 = vmatprep.mubr.bf16.mxu0 %v2172_v30  ;;  %v3324_v47 = vsel %vm3196_vm3, %v2948_v22, %v3260_v35 }
 0x124   :  { %v2666_v42 = vpop.f32.mrb[8].mxu1 }
 0x125   :  { %v3325_v48 = vsel %vm3197_vm4, %v2951_v36, %v3261_v40  ;;  %v2667_v49 = vadd.f32 %v5647_v29, %v2666_v42  ;;  %v2955_v50 = vpop.f32.mrb[8].mxu0  ;;  %v2668_v51 = vpop.f32.mrb[9].mxu1 }
 0x126   :  { %v4386_v53 = vpack.c.bf16 %v3325_v48, %v3324_v47  ;;  %v2957_v54 = vpop.f32.mrb[9].mxu0  ;;  %v2669_v55 = vpop.f32.mrb[10].mxu1 }
 0x127   :  { %v2956_v59 = vadd.f32 %v2955_v50, %v2667_v49  ;;  %v2670_v60 = vadd.f32 %v5647_v29, %v2669_v55  ;;  %v2958_v61 = vpop.f32.mrb[10].mxu0  ;;  %v2671_v62 = vpop.f32.mrb[11].mxu1 }
 0x128   :  { %4538 = vst [vmem:[%s5889_s3 + $0x8] sm:$0xff] %v4386_v53   ;;  %v2960_v2 = vpop.f32.mrb[11].mxu0 }
 0x129   :  { %v3262_v7 = vmul.f32 0.2, %v2956_v59  ;;  %v2959_v8 = vadd.f32 %v2958_v61, %v2670_v60  ;;  %2881 = vmatmul.mubr.bf16.gmra.mrb[116].mxu1 %v4908_v52  ;;  %vm3198_vm5 = vcmp.ge.f32.partialorder %v2956_v59, 0.0 }
 0x12a   :  { %3170 = vmatmul.mubr.bf16.gmra.mrb[116].mxu0 %v4909_v56  ;;  %2888 = vmatprep.mubr.bf16.mxu1 %v1107_v57 }
 0x12b   :  { %vm3199_vm6 = vcmp.ge.f32.partialorder %v2959_v8, 0.0  ;;  %v3263_v9 = vmul.f32 0.2, %v2959_v8  ;;  %3177 = vmatprep.mubr.bf16.mxu0 %v2197_v3  ;;  %v3326_v15 = vsel %vm3198_vm5, %v2956_v59, %v3262_v7 }
 0x12c   :  { %v2674_v12 = vpop.f32.mrb[12].mxu1 }
 0x12d   :  { %v3327_v0 = vsel %vm3199_vm6, %v2959_v8, %v3263_v9  ;;  %v2675_v16 = vadd.f32 %v5647_v29, %v2674_v12  ;;  %v2963_v17 = vpop.f32.mrb[12].mxu0  ;;  %v2676_v18 = vpop.f32.mrb[13].mxu1 }
 0x12e   :  { %v4391_v20 = vpack.c.bf16 %v3327_v0, %v3326_v15  ;;  %v2965_v21 = vpop.f32.mrb[13].mxu0  ;;  %v2677_v22 = vpop.f32.mrb[14].mxu1 }
 0x12f   :  { %v2964_v24 = vadd.f32 %v2963_v17, %v2675_v16  ;;  %v2678_v25 = vadd.f32 %v5647_v29, %v2677_v22  ;;  %v2966_v26 = vpop.f32.mrb[14].mxu0  ;;  %v2679_v27 = vpop.f32.mrb[15].mxu1 }
 0x130   :  { %4539 = vst [vmem:[%s5889_s3 + $0x10] sm:$0xff] %v4391_v20   ;;  %v2968_v30 = vpop.f32.mrb[15].mxu0 }
 0x131   :  { %v3264_v32 = vmul.f32 0.2, %v2964_v24  ;;  %v2967_v33 = vadd.f32 %v2966_v26, %v2678_v25  ;;  %2889 = vmatmul.mubr.bf16.gmra.mrb[120].mxu1 %v4914_v19  ;;  %vm3200_vm7 = vcmp.ge.f32.partialorder %v2964_v24, 0.0 }
 0x132   :  { %3178 = vmatmul.mubr.bf16.gmra.mrb[120].mxu0 %v4915_v23  ;;  %2896 = vmatprep.mubr.bf16.mxu1 %v1132_v28 }
 0x133   :  { %vm3201_vm8 = vcmp.ge.f32.partialorder %v2967_v33, 0.0  ;;  %v3265_v34 = vmul.f32 0.2, %v2967_v33  ;;  %3185 = vmatprep.mubr.bf16.mxu0 %v2222_v31  ;;  %v3328_v36 = vsel %vm3200_vm7, %v2964_v24, %v3264_v32 }
 0x134   :  { %v2682_v35 = vpop.f32.mrb[16].mxu1 }
 0x135   :  { %v3329_v37 = vsel %vm3201_vm8, %v2967_v33, %v3265_v34  ;;  %v2683_v38 = vadd.f32 %v5647_v29, %v2682_v35  ;;  %v2971_v39 = vpop.f32.mrb[16].mxu0  ;;  %v2684_v40 = vpop.f32.mrb[17].mxu1 }
 0x136   :  { %v4396_v42 = vpack.c.bf16 %v3329_v37, %v3328_v36  ;;  %v2973_v43 = vpop.f32.mrb[17].mxu0  ;;  %v2685_v44 = vpop.f32.mrb[18].mxu1 }
 0x137   :  { %v2972_v46 = vadd.f32 %v2971_v39, %v2683_v38  ;;  %v2686_v47 = vadd.f32 %v5647_v29, %v2685_v44  ;;  %v2974_v48 = vpop.f32.mrb[18].mxu0  ;;  %v2687_v49 = vpop.f32.mrb[19].mxu1 }
 0x138   :  { %4540 = vst [vmem:[%s5889_s3 + $0x18] sm:$0xff] %v4396_v42   ;;  %v2976_v50 = vpop.f32.mrb[19].mxu0 }
 0x139   :  { %v3266_v51 = vmul.f32 0.2, %v2972_v46  ;;  %v2975_v52 = vadd.f32 %v2974_v48, %v2686_v47  ;;  %2897 = vmatmul.mubr.bf16.gmra.mrb[124].mxu1 %v4920_v41  ;;  %vm3202_vm9 = vcmp.ge.f32.partialorder %v2972_v46, 0.0 }
 0x13a   :  { %3186 = vmatmul.mubr.bf16.gmra.mrb[124].mxu0 %v4921_v45 }
 0x13b   :  { %vm3203_vm10 = vcmp.ge.f32.partialorder %v2975_v52, 0.0  ;;  %v3267_v53 = vmul.f32 0.2, %v2975_v52  ;;  %v3330_v55 = vsel %vm3202_vm9, %v2972_v46, %v3266_v51 }
 0x13c   :  { %v2690_v54 = vpop.f32.mrb[20].mxu1 }
 0x13d   :  { %v3331_v56 = vsel %vm3203_vm10, %v2975_v52, %v3267_v53  ;;  %v2691_v57 = vadd.f32 %v5647_v29, %v2690_v54  ;;  %v2979_v58 = vpop.f32.mrb[20].mxu0  ;;  %v2692_v59 = vpop.f32.mrb[21].mxu1 }
 0x13e   :  { %v4401_v60 = vpack.c.bf16 %v3331_v56, %v3330_v55  ;;  %v2981_v61 = vpop.f32.mrb[21].mxu0  ;;  %v2693_v62 = vpop.f32.mrb[22].mxu1 }
 0x13f   :  { %v2980_v63 = vadd.f32 %v2979_v58, %v2691_v57  ;;  %v2694_v1 = vadd.f32 %v5647_v29, %v2693_v62  ;;  %v2982_v2 = vpop.f32.mrb[22].mxu0  ;;  %v2695_v3 = vpop.f32.mrb[23].mxu1 }
 0x140   :  { %4541 = vst [vmem:[%s5889_s3 + $0x20] sm:$0xff] %v4401_v60   ;;  %v2984_v4 = vpop.f32.mrb[23].mxu0 }
 0x141   :  { %v3268_v5 = vmul.f32 0.2, %v2980_v63  ;;  %v2983_v6 = vadd.f32 %v2982_v2, %v2694_v1  ;;  %vm3204_vm11 = vcmp.ge.f32.partialorder %v2980_v63, 0.0 }
 0x143   :  { %vm3205_vm12 = vcmp.ge.f32.partialorder %v2983_v6, 0.0  ;;  %v3269_v7 = vmul.f32 0.2, %v2983_v6  ;;  %v3332_v9 = vsel %vm3204_vm11, %v2980_v63, %v3268_v5 }
 0x144   :  { %v2698_v8 = vpop.f32.mrb[24].mxu1 }
 0x145   :  { %v3333_v10 = vsel %vm3205_vm12, %v2983_v6, %v3269_v7  ;;  %v2699_v11 = vadd.f32 %v5647_v29, %v2698_v8  ;;  %v2987_v12 = vpop.f32.mrb[24].mxu0  ;;  %v2700_v13 = vpop.f32.mrb[25].mxu1 }
 0x146   :  { %v4406_v14 = vpack.c.bf16 %v3333_v10, %v3332_v9  ;;  %v2989_v15 = vpop.f32.mrb[25].mxu0  ;;  %v2701_v0 = vpop.f32.mrb[26].mxu1 }
 0x147   :  { %v2988_v16 = vadd.f32 %v2987_v12, %v2699_v11  ;;  %v2702_v17 = vadd.f32 %v5647_v29, %v2701_v0  ;;  %v2990_v18 = vpop.f32.mrb[26].mxu0  ;;  %v2703_v19 = vpop.f32.mrb[27].mxu1 }
 0x148   :  { %4542 = vst [vmem:[%s5889_s3 + $0x28] sm:$0xff] %v4406_v14   ;;  %v2992_v20 = vpop.f32.mrb[27].mxu0 }
 0x149   :  { %v3270_v21 = vmul.f32 0.2, %v2988_v16  ;;  %v2991_v22 = vadd.f32 %v2990_v18, %v2702_v17  ;;  %vm3206_vm13 = vcmp.ge.f32.partialorder %v2988_v16, 0.0 }
 0x14b   :  { %vm3207_vm14 = vcmp.ge.f32.partialorder %v2991_v22, 0.0  ;;  %v3271_v23 = vmul.f32 0.2, %v2991_v22  ;;  %v3334_v25 = vsel %vm3206_vm13, %v2988_v16, %v3270_v21 }
 0x14c   :  { %v2706_v24 = vpop.f32.mrb[28].mxu1 }
 0x14d   :  { %v3335_v26 = vsel %vm3207_vm14, %v2991_v22, %v3271_v23  ;;  %v2707_v27 = vadd.f32 %v5647_v29, %v2706_v24  ;;  %v2995_v28 = vpop.f32.mrb[28].mxu0  ;;  %v2708_v30 = vpop.f32.mrb[29].mxu1 }
 0x14e   :  { %v4411_v31 = vpack.c.bf16 %v3335_v26, %v3334_v25  ;;  %v2997_v32 = vpop.f32.mrb[29].mxu0  ;;  %v2709_v33 = vpop.f32.mrb[30].mxu1 }
 0x14f   :  { %v2996_v34 = vadd.f32 %v2995_v28, %v2707_v27  ;;  %v2710_v35 = vadd.f32 %v5647_v29, %v2709_v33  ;;  %v2998_v36 = vpop.f32.mrb[30].mxu0  ;;  %v2711_v37 = vpop.f32.mrb[31].mxu1 }
 0x150   :  { %4543 = vst [vmem:[%s5889_s3 + $0x30] sm:$0xff] %v4411_v31   ;;  %v3000_v38 = vpop.f32.mrb[31].mxu0 }
 0x151   :  { %v3272_v39 = vmul.f32 0.2, %v2996_v34  ;;  %v2999_v40 = vadd.f32 %v2998_v36, %v2710_v35  ;;  %vm3208_vm15 = vcmp.ge.f32.partialorder %v2996_v34, 0.0 }
 0x153   :  { %vm3209_vm0 = vcmp.ge.f32.partialorder %v2999_v40, 0.0  ;;  %v3273_v41 = vmul.f32 0.2, %v2999_v40  ;;  %v3336_v43 = vsel %vm3208_vm15, %v2996_v34, %v3272_v39 }
 0x154   :  { %v2714_v42 = vpop.f32.mrb[32].mxu1 }
 0x155   :  { %v3337_v44 = vsel %vm3209_vm0, %v2999_v40, %v3273_v41  ;;  %v2715_v45 = vadd.f32 %v5647_v29, %v2714_v42  ;;  %v3003_v46 = vpop.f32.mrb[32].mxu0  ;;  %v2716_v47 = vpop.f32.mrb[33].mxu1 }
 0x156   :  { %v4416_v48 = vpack.c.bf16 %v3337_v44, %v3336_v43  ;;  %v3005_v49 = vpop.f32.mrb[33].mxu0  ;;  %v2717_v50 = vpop.f32.mrb[34].mxu1 }
 0x157   :  { %v3004_v51 = vadd.f32 %v3003_v46, %v2715_v45  ;;  %v2718_v52 = vadd.f32 %v5647_v29, %v2717_v50  ;;  %v3006_v53 = vpop.f32.mrb[34].mxu0  ;;  %v2719_v54 = vpop.f32.mrb[35].mxu1 }
 0x158   :  { %4544 = vst [vmem:[%s5889_s3 + $0x38] sm:$0xff] %v4416_v48   ;;  %v3008_v55 = vpop.f32.mrb[35].mxu0 }
 0x159   :  { %v3274_v56 = vmul.f32 0.2, %v3004_v51  ;;  %v3007_v57 = vadd.f32 %v3006_v53, %v2718_v52  ;;  %vm3210_vm1 = vcmp.ge.f32.partialorder %v3004_v51, 0.0 }
 0x15b   :  { %vm3211_vm2 = vcmp.ge.f32.partialorder %v3007_v57, 0.0  ;;  %v3275_v58 = vmul.f32 0.2, %v3007_v57  ;;  %v3338_v60 = vsel %vm3210_vm1, %v3004_v51, %v3274_v56 }
 0x15c   :  { %v2722_v59 = vpop.f32.mrb[36].mxu1 }
 0x15d   :  { %v3339_v61 = vsel %vm3211_vm2, %v3007_v57, %v3275_v58  ;;  %v2723_v62 = vadd.f32 %v5647_v29, %v2722_v59  ;;  %v3011_v63 = vpop.f32.mrb[36].mxu0  ;;  %v2724_v1 = vpop.f32.mrb[37].mxu1 }
 0x15e   :  { %v4421_v2 = vpack.c.bf16 %v3339_v61, %v3338_v60  ;;  %v3013_v3 = vpop.f32.mrb[37].mxu0  ;;  %v2725_v4 = vpop.f32.mrb[38].mxu1 }
 0x15f   :  { %v3012_v5 = vadd.f32 %v3011_v63, %v2723_v62  ;;  %v2726_v6 = vadd.f32 %v5647_v29, %v2725_v4  ;;  %v3014_v7 = vpop.f32.mrb[38].mxu0  ;;  %v2727_v8 = vpop.f32.mrb[39].mxu1 }
 0x160   :  { %4545 = vst [vmem:[%s5889_s3 + $0x40] sm:$0xff] %v4421_v2   ;;  %v3016_v9 = vpop.f32.mrb[39].mxu0 }
 0x161   :  { %v3276_v10 = vmul.f32 0.2, %v3012_v5  ;;  %v3015_v11 = vadd.f32 %v3014_v7, %v2726_v6  ;;  %vm3212_vm3 = vcmp.ge.f32.partialorder %v3012_v5, 0.0 }
 0x163   :  { %vm3213_vm4 = vcmp.ge.f32.partialorder %v3015_v11, 0.0  ;;  %v3277_v12 = vmul.f32 0.2, %v3015_v11  ;;  %v3340_v14 = vsel %vm3212_vm3, %v3012_v5, %v3276_v10 }
 0x164   :  { %v2730_v13 = vpop.f32.mrb[40].mxu1 }
 0x165   :  { %v3341_v15 = vsel %vm3213_vm4, %v3015_v11, %v3277_v12  ;;  %v2731_v0 = vadd.f32 %v5647_v29, %v2730_v13  ;;  %v3019_v16 = vpop.f32.mrb[40].mxu0  ;;  %v2732_v17 = vpop.f32.mrb[41].mxu1 }
 0x166   :  { %v4426_v18 = vpack.c.bf16 %v3341_v15, %v3340_v14  ;;  %v3021_v19 = vpop.f32.mrb[41].mxu0  ;;  %v2733_v20 = vpop.f32.mrb[42].mxu1 }
 0x167   :  { %v3020_v21 = vadd.f32 %v3019_v16, %v2731_v0  ;;  %v2734_v22 = vadd.f32 %v5647_v29, %v2733_v20  ;;  %v3022_v23 = vpop.f32.mrb[42].mxu0  ;;  %v2735_v24 = vpop.f32.mrb[43].mxu1 }
 0x168   :  { %4546 = vst [vmem:[%s5889_s3 + $0x48] sm:$0xff] %v4426_v18   ;;  %v3024_v25 = vpop.f32.mrb[43].mxu0 }
 0x169   :  { %v3278_v26 = vmul.f32 0.2, %v3020_v21  ;;  %v3023_v27 = vadd.f32 %v3022_v23, %v2734_v22  ;;  %vm3214_vm5 = vcmp.ge.f32.partialorder %v3020_v21, 0.0 }
 0x16b   :  { %vm3215_vm6 = vcmp.ge.f32.partialorder %v3023_v27, 0.0  ;;  %v3279_v28 = vmul.f32 0.2, %v3023_v27  ;;  %v3342_v31 = vsel %vm3214_vm5, %v3020_v21, %v3278_v26 }
 0x16c   :  { %v2738_v30 = vpop.f32.mrb[44].mxu1 }
 0x16d   :  { %v3343_v32 = vsel %vm3215_vm6, %v3023_v27, %v3279_v28  ;;  %v2739_v33 = vadd.f32 %v5647_v29, %v2738_v30  ;;  %v3027_v34 = vpop.f32.mrb[44].mxu0  ;;  %v2740_v35 = vpop.f32.mrb[45].mxu1 }
 0x16e   :  { %v4431_v36 = vpack.c.bf16 %v3343_v32, %v3342_v31  ;;  %v3029_v37 = vpop.f32.mrb[45].mxu0  ;;  %v2741_v38 = vpop.f32.mrb[46].mxu1 }
 0x16f   :  { %v3028_v39 = vadd.f32 %v3027_v34, %v2739_v33  ;;  %v2742_v40 = vadd.f32 %v5647_v29, %v2741_v38  ;;  %v3030_v41 = vpop.f32.mrb[46].mxu0  ;;  %v2743_v42 = vpop.f32.mrb[47].mxu1 }
 0x170   :  { %4547 = vst [vmem:[%s5889_s3 + $0x50] sm:$0xff] %v4431_v36   ;;  %v3032_v43 = vpop.f32.mrb[47].mxu0 }
 0x171   :  { %v3280_v44 = vmul.f32 0.2, %v3028_v39  ;;  %v3031_v45 = vadd.f32 %v3030_v41, %v2742_v40  ;;  %vm3216_vm7 = vcmp.ge.f32.partialorder %v3028_v39, 0.0 }
 0x173   :  { %vm3217_vm8 = vcmp.ge.f32.partialorder %v3031_v45, 0.0  ;;  %v3281_v46 = vmul.f32 0.2, %v3031_v45  ;;  %v3344_v48 = vsel %vm3216_vm7, %v3028_v39, %v3280_v44 }
 0x174   :  { %v2746_v47 = vpop.f32.mrb[48].mxu1 }
 0x175   :  { %v3345_v49 = vsel %vm3217_vm8, %v3031_v45, %v3281_v46  ;;  %v2747_v50 = vadd.f32 %v5647_v29, %v2746_v47  ;;  %v3035_v51 = vpop.f32.mrb[48].mxu0  ;;  %v2748_v52 = vpop.f32.mrb[49].mxu1 }
 0x176   :  { %v4436_v53 = vpack.c.bf16 %v3345_v49, %v3344_v48  ;;  %v3037_v54 = vpop.f32.mrb[49].mxu0  ;;  %v2749_v55 = vpop.f32.mrb[50].mxu1 }
 0x177   :  { %v3036_v56 = vadd.f32 %v3035_v51, %v2747_v50  ;;  %v2750_v57 = vadd.f32 %v5647_v29, %v2749_v55  ;;  %v3038_v58 = vpop.f32.mrb[50].mxu0  ;;  %v2751_v59 = vpop.f32.mrb[51].mxu1 }
 0x178   :  { %4548 = vst [vmem:[%s5889_s3 + $0x58] sm:$0xff] %v4436_v53   ;;  %v3040_v60 = vpop.f32.mrb[51].mxu0 }
 0x179   :  { %v3282_v61 = vmul.f32 0.2, %v3036_v56  ;;  %v3039_v62 = vadd.f32 %v3038_v58, %v2750_v57  ;;  %vm3218_vm9 = vcmp.ge.f32.partialorder %v3036_v56, 0.0 }
 0x17b   :  { %vm3219_vm10 = vcmp.ge.f32.partialorder %v3039_v62, 0.0  ;;  %v3283_v63 = vmul.f32 0.2, %v3039_v62  ;;  %v3346_v2 = vsel %vm3218_vm9, %v3036_v56, %v3282_v61 }
 0x17c   :  { %v2754_v1 = vpop.f32.mrb[52].mxu1 }
 0x17d   :  { %v3347_v3 = vsel %vm3219_vm10, %v3039_v62, %v3283_v63  ;;  %v2755_v4 = vadd.f32 %v5647_v29, %v2754_v1  ;;  %v3043_v5 = vpop.f32.mrb[52].mxu0  ;;  %v2756_v6 = vpop.f32.mrb[53].mxu1 }
 0x17e   :  { %v4441_v7 = vpack.c.bf16 %v3347_v3, %v3346_v2  ;;  %v3045_v8 = vpop.f32.mrb[53].mxu0  ;;  %v2757_v9 = vpop.f32.mrb[54].mxu1 }
 0x17f   :  { %v3044_v10 = vadd.f32 %v3043_v5, %v2755_v4  ;;  %v2758_v11 = vadd.f32 %v5647_v29, %v2757_v9  ;;  %v3046_v12 = vpop.f32.mrb[54].mxu0  ;;  %v2759_v13 = vpop.f32.mrb[55].mxu1 }
 0x180   :  { %4549 = vst [vmem:[%s5889_s3 + $0x60] sm:$0xff] %v4441_v7   ;;  %v3048_v14 = vpop.f32.mrb[55].mxu0 }
 0x181   :  { %v3284_v15 = vmul.f32 0.2, %v3044_v10  ;;  %v3047_v0 = vadd.f32 %v3046_v12, %v2758_v11  ;;  %vm3220_vm11 = vcmp.ge.f32.partialorder %v3044_v10, 0.0 }
 0x183   :  { %vm3221_vm12 = vcmp.ge.f32.partialorder %v3047_v0, 0.0  ;;  %v3285_v16 = vmul.f32 0.2, %v3047_v0  ;;  %v3348_v18 = vsel %vm3220_vm11, %v3044_v10, %v3284_v15 }
 0x184   :  { %v2762_v17 = vpop.f32.mrb[56].mxu1 }
 0x185   :  { %v3349_v19 = vsel %vm3221_vm12, %v3047_v0, %v3285_v16  ;;  %v2763_v20 = vadd.f32 %v5647_v29, %v2762_v17  ;;  %v3051_v21 = vpop.f32.mrb[56].mxu0  ;;  %v2764_v22 = vpop.f32.mrb[57].mxu1 }
 0x186   :  { %v4446_v23 = vpack.c.bf16 %v3349_v19, %v3348_v18  ;;  %v3053_v24 = vpop.f32.mrb[57].mxu0  ;;  %v2765_v25 = vpop.f32.mrb[58].mxu1 }
 0x187   :  { %v3052_v26 = vadd.f32 %v3051_v21, %v2763_v20  ;;  %v2766_v27 = vadd.f32 %v5647_v29, %v2765_v25  ;;  %v3054_v28 = vpop.f32.mrb[58].mxu0  ;;  %v2767_v30 = vpop.f32.mrb[59].mxu1 }
 0x188   :  { %4550 = vst [vmem:[%s5889_s3 + $0x68] sm:$0xff] %v4446_v23   ;;  %v3056_v31 = vpop.f32.mrb[59].mxu0 }
 0x189   :  { %v3286_v32 = vmul.f32 0.2, %v3052_v26  ;;  %v3055_v33 = vadd.f32 %v3054_v28, %v2766_v27  ;;  %vm3222_vm13 = vcmp.ge.f32.partialorder %v3052_v26, 0.0 }
 0x18b   :  { %vm3223_vm14 = vcmp.ge.f32.partialorder %v3055_v33, 0.0  ;;  %v3287_v34 = vmul.f32 0.2, %v3055_v33  ;;  %v3350_v36 = vsel %vm3222_vm13, %v3052_v26, %v3286_v32 }
 0x18c   :  { %v2770_v35 = vpop.f32.mrb[60].mxu1 }
 0x18d   :  { %v3351_v37 = vsel %vm3223_vm14, %v3055_v33, %v3287_v34  ;;  %v2771_v38 = vadd.f32 %v5647_v29, %v2770_v35  ;;  %v3059_v39 = vpop.f32.mrb[60].mxu0  ;;  %v2772_v40 = vpop.f32.mrb[61].mxu1 }
 0x18e   :  { %v4451_v41 = vpack.c.bf16 %v3351_v37, %v3350_v36  ;;  %v3061_v42 = vpop.f32.mrb[61].mxu0  ;;  %v2773_v43 = vpop.f32.mrb[62].mxu1 }
 0x18f   :  { %v3060_v44 = vadd.f32 %v3059_v39, %v2771_v38  ;;  %v2774_v45 = vadd.f32 %v5647_v29, %v2773_v43  ;;  %v3062_v46 = vpop.f32.mrb[62].mxu0  ;;  %v2775_v47 = vpop.f32.mrb[63].mxu1 }
 0x190   :  { %4551 = vst [vmem:[%s5889_s3 + $0x70] sm:$0xff] %v4451_v41   ;;  %v3064_v48 = vpop.f32.mrb[63].mxu0 }
 0x191   :  { %v3288_v49 = vmul.f32 0.2, %v3060_v44  ;;  %v3063_v50 = vadd.f32 %v3062_v46, %v2774_v45  ;;  %vm3224_vm15 = vcmp.ge.f32.partialorder %v3060_v44, 0.0 }
 0x193   :  { %vm3225_vm0 = vcmp.ge.f32.partialorder %v3063_v50, 0.0  ;;  %v3289_v51 = vmul.f32 0.2, %v3063_v50  ;;  %v3352_v53 = vsel %vm3224_vm15, %v3060_v44, %v3288_v49 }
 0x194   :  { %v2778_v52 = vpop.f32.mrb[64].mxu1 }
 0x195   :  { %v3353_v54 = vsel %vm3225_vm0, %v3063_v50, %v3289_v51  ;;  %v2779_v55 = vadd.f32 %v5647_v29, %v2778_v52  ;;  %v3067_v56 = vpop.f32.mrb[64].mxu0  ;;  %v2780_v57 = vpop.f32.mrb[65].mxu1 }
 0x196   :  { %v4456_v58 = vpack.c.bf16 %v3353_v54, %v3352_v53  ;;  %v3069_v59 = vpop.f32.mrb[65].mxu0  ;;  %v2781_v60 = vpop.f32.mrb[66].mxu1 }
 0x197   :  { %v3068_v61 = vadd.f32 %v3067_v56, %v2779_v55  ;;  %v2782_v62 = vadd.f32 %v5647_v29, %v2781_v60  ;;  %v3070_v63 = vpop.f32.mrb[66].mxu0  ;;  %v2783_v1 = vpop.f32.mrb[67].mxu1 }
 0x198   :  { %4552 = vst [vmem:[%s5889_s3 + $0x78] sm:$0xff] %v4456_v58   ;;  %v3072_v2 = vpop.f32.mrb[67].mxu0 }
 0x199   :  { %v3290_v3 = vmul.f32 0.2, %v3068_v61  ;;  %v3071_v4 = vadd.f32 %v3070_v63, %v2782_v62  ;;  %vm3226_vm1 = vcmp.ge.f32.partialorder %v3068_v61, 0.0 }
 0x19b   :  { %vm3227_vm2 = vcmp.ge.f32.partialorder %v3071_v4, 0.0  ;;  %v3291_v5 = vmul.f32 0.2, %v3071_v4  ;;  %v3354_v7 = vsel %vm3226_vm1, %v3068_v61, %v3290_v3 }
 0x19c   :  { %v2786_v6 = vpop.f32.mrb[68].mxu1 }
 0x19d   :  { %v3355_v8 = vsel %vm3227_vm2, %v3071_v4, %v3291_v5  ;;  %v2787_v9 = vadd.f32 %v5647_v29, %v2786_v6  ;;  %v3075_v10 = vpop.f32.mrb[68].mxu0  ;;  %v2788_v11 = vpop.f32.mrb[69].mxu1 }
 0x19e   :  { %v4461_v12 = vpack.c.bf16 %v3355_v8, %v3354_v7  ;;  %v3077_v13 = vpop.f32.mrb[69].mxu0  ;;  %v2789_v14 = vpop.f32.mrb[70].mxu1 }
 0x19f   :  { %v3076_v15 = vadd.f32 %v3075_v10, %v2787_v9  ;;  %v2790_v0 = vadd.f32 %v5647_v29, %v2789_v14  ;;  %v3078_v16 = vpop.f32.mrb[70].mxu0  ;;  %v2791_v17 = vpop.f32.mrb[71].mxu1 }
 0x1a0   :  { %4553 = vst [vmem:[%s5889_s3 + $0x80] sm:$0xff] %v4461_v12   ;;  %v3080_v18 = vpop.f32.mrb[71].mxu0 }
 0x1a1   :  { %v3292_v19 = vmul.f32 0.2, %v3076_v15  ;;  %v3079_v20 = vadd.f32 %v3078_v16, %v2790_v0  ;;  %vm3228_vm3 = vcmp.ge.f32.partialorder %v3076_v15, 0.0 }
 0x1a3   :  { %vm3229_vm4 = vcmp.ge.f32.partialorder %v3079_v20, 0.0  ;;  %v3293_v21 = vmul.f32 0.2, %v3079_v20  ;;  %v3356_v23 = vsel %vm3228_vm3, %v3076_v15, %v3292_v19 }
 0x1a4   :  { %v2794_v22 = vpop.f32.mrb[72].mxu1 }
 0x1a5   :  { %v3357_v24 = vsel %vm3229_vm4, %v3079_v20, %v3293_v21  ;;  %v2795_v25 = vadd.f32 %v5647_v29, %v2794_v22  ;;  %v3083_v26 = vpop.f32.mrb[72].mxu0  ;;  %v2796_v27 = vpop.f32.mrb[73].mxu1  ;;  %v5827_v20 = vld [vmem:[%s5888_s2] ss:$0 sm:$0xff] }
 0x1a6   :  { %v4466_v28 = vpack.c.bf16 %v3357_v24, %v3356_v23  ;;  %v3085_v30 = vpop.f32.mrb[73].mxu0  ;;  %v2797_v31 = vpop.f32.mrb[74].mxu1 }
 0x1a7   :  { %v3084_v32 = vadd.f32 %v3083_v26, %v2795_v25  ;;  %v2798_v33 = vadd.f32 %v5647_v29, %v2797_v31  ;;  %v3086_v34 = vpop.f32.mrb[74].mxu0  ;;  %v2799_v35 = vpop.f32.mrb[75].mxu1 }
 0x1a8   :  { %4554 = vst [vmem:[%s5889_s3 + $0x88] sm:$0xff] %v4466_v28   ;;  %v3088_v36 = vpop.f32.mrb[75].mxu0 }
 0x1a9   :  { %v3294_v37 = vmul.f32 0.2, %v3084_v32  ;;  %v3087_v38 = vadd.f32 %v3086_v34, %v2798_v33  ;;  %vm3230_vm5 = vcmp.ge.f32.partialorder %v3084_v32, 0.0 }
 0x1ab   :  { %vm3231_vm6 = vcmp.ge.f32.partialorder %v3087_v38, 0.0  ;;  %v3295_v39 = vmul.f32 0.2, %v3087_v38  ;;  %v3358_v41 = vsel %vm3230_vm5, %v3084_v32, %v3294_v37 }
 0x1ac   :  { %v2802_v40 = vpop.f32.mrb[76].mxu1 }
 0x1ad   :  { %v3359_v42 = vsel %vm3231_vm6, %v3087_v38, %v3295_v39  ;;  %v2803_v43 = vadd.f32 %v5647_v29, %v2802_v40  ;;  %v3091_v44 = vpop.f32.mrb[76].mxu0  ;;  %v2804_v45 = vpop.f32.mrb[77].mxu1 }
 0x1ae   :  { %v4471_v46 = vpack.c.bf16 %v3359_v42, %v3358_v41  ;;  %v3093_v47 = vpop.f32.mrb[77].mxu0  ;;  %v2805_v48 = vpop.f32.mrb[78].mxu1 }
 0x1af   :  { %v3092_v49 = vadd.f32 %v3091_v44, %v2803_v43  ;;  %v2806_v50 = vadd.f32 %v5647_v29, %v2805_v48  ;;  %v3094_v51 = vpop.f32.mrb[78].mxu0  ;;  %v2807_v52 = vpop.f32.mrb[79].mxu1 }
 0x1b0   :  { %4555 = vst [vmem:[%s5889_s3 + $0x90] sm:$0xff] %v4471_v46   ;;  %v3096_v53 = vpop.f32.mrb[79].mxu0 }
 0x1b1   :  { %v3296_v54 = vmul.f32 0.2, %v3092_v49  ;;  %v3095_v55 = vadd.f32 %v3094_v51, %v2806_v50  ;;  %vm3232_vm7 = vcmp.ge.f32.partialorder %v3092_v49, 0.0 }
 0x1b3   :  { %vm3233_vm8 = vcmp.ge.f32.partialorder %v3095_v55, 0.0  ;;  %v3297_v56 = vmul.f32 0.2, %v3095_v55  ;;  %v3360_v58 = vsel %vm3232_vm7, %v3092_v49, %v3296_v54 }
 0x1b4   :  { %v2810_v57 = vpop.f32.mrb[80].mxu1 }
 0x1b5   :  { %v3361_v59 = vsel %vm3233_vm8, %v3095_v55, %v3297_v56  ;;  %v2811_v60 = vadd.f32 %v5647_v29, %v2810_v57  ;;  %v3099_v61 = vpop.f32.mrb[80].mxu0  ;;  %v2812_v62 = vpop.f32.mrb[81].mxu1 }
 0x1b6   :  { %v4476_v63 = vpack.c.bf16 %v3361_v59, %v3360_v58  ;;  %v3101_v1 = vpop.f32.mrb[81].mxu0  ;;  %v2813_v2 = vpop.f32.mrb[82].mxu1 }
 0x1b7   :  { %v3100_v3 = vadd.f32 %v3099_v61, %v2811_v60  ;;  %v2814_v4 = vadd.f32 %v5647_v29, %v2813_v2  ;;  %v3102_v5 = vpop.f32.mrb[82].mxu0  ;;  %v2815_v6 = vpop.f32.mrb[83].mxu1 }
 0x1b8   :  { %4556 = vst [vmem:[%s5889_s3 + $0x98] sm:$0xff] %v4476_v63   ;;  %v3104_v7 = vpop.f32.mrb[83].mxu0 }
 0x1b9   :  { %v3298_v8 = vmul.f32 0.2, %v3100_v3  ;;  %v3103_v9 = vadd.f32 %v3102_v5, %v2814_v4  ;;  %vm3234_vm9 = vcmp.ge.f32.partialorder %v3100_v3, 0.0 }
 0x1bb   :  { %vm3235_vm10 = vcmp.ge.f32.partialorder %v3103_v9, 0.0  ;;  %v3299_v10 = vmul.f32 0.2, %v3103_v9  ;;  %v3362_v12 = vsel %vm3234_vm9, %v3100_v3, %v3298_v8 }
 0x1bc   :  { %v2818_v11 = vpop.f32.mrb[84].mxu1 }
 0x1bd   :  { %v3363_v13 = vsel %vm3235_vm10, %v3103_v9, %v3299_v10  ;;  %v2819_v14 = vadd.f32 %v5647_v29, %v2818_v11  ;;  %v3107_v15 = vpop.f32.mrb[84].mxu0  ;;  %v2820_v0 = vpop.f32.mrb[85].mxu1 }
 0x1be   :  { %v4481_v16 = vpack.c.bf16 %v3363_v13, %v3362_v12  ;;  %v3109_v17 = vpop.f32.mrb[85].mxu0  ;;  %v2821_v18 = vpop.f32.mrb[86].mxu1 }
 0x1bf   :  { %v3108_v19 = vadd.f32 %v3107_v15, %v2819_v14  ;;  %v2822_v21 = vadd.f32 %v5827_v20, %v2821_v18  ;;  %v3110_v22 = vpop.f32.mrb[86].mxu0  ;;  %v2823_v23 = vpop.f32.mrb[87].mxu1 }
 0x1c0   :  { %4557 = vst [vmem:[%s5889_s3 + $0xa0] sm:$0xff] %v4481_v16   ;;  %v3112_v29 = vpop.f32.mrb[87].mxu0 }
 0x1c1   :  { %v3300_v24 = vmul.f32 0.2, %v3108_v19  ;;  %v3111_v25 = vadd.f32 %v3110_v22, %v2822_v21  ;;  %vm3236_vm11 = vcmp.ge.f32.partialorder %v3108_v19, 0.0 }
 0x1c3   :  { %vm3237_vm12 = vcmp.ge.f32.partialorder %v3111_v25, 0.0  ;;  %v3301_v26 = vmul.f32 0.2, %v3111_v25  ;;  %v3364_v28 = vsel %vm3236_vm11, %v3108_v19, %v3300_v24 }
 0x1c4   :  { %v2826_v27 = vpop.f32.mrb[88].mxu1 }
 0x1c5   :  { %v3365_v30 = vsel %vm3237_vm12, %v3111_v25, %v3301_v26  ;;  %v2827_v31 = vadd.f32 %v5827_v20, %v2826_v27  ;;  %v3115_v32 = vpop.f32.mrb[88].mxu0  ;;  %v2828_v33 = vpop.f32.mrb[89].mxu1 }
 0x1c6   :  { %v4486_v34 = vpack.c.bf16 %v3365_v30, %v3364_v28  ;;  %v3117_v35 = vpop.f32.mrb[89].mxu0  ;;  %v2829_v36 = vpop.f32.mrb[90].mxu1 }
 0x1c7   :  { %v3116_v37 = vadd.f32 %v3115_v32, %v2827_v31  ;;  %v2830_v38 = vadd.f32 %v5827_v20, %v2829_v36  ;;  %v3118_v39 = vpop.f32.mrb[90].mxu0  ;;  %v2831_v40 = vpop.f32.mrb[91].mxu1 }
 0x1c8   :  { %4558 = vst [vmem:[%s5889_s3 + $0xa8] sm:$0xff] %v4486_v34   ;;  %v3120_v41 = vpop.f32.mrb[91].mxu0 }
 0x1c9   :  { %v3302_v42 = vmul.f32 0.2, %v3116_v37  ;;  %v3119_v43 = vadd.f32 %v3118_v39, %v2830_v38  ;;  %vm3238_vm13 = vcmp.ge.f32.partialorder %v3116_v37, 0.0 }
 0x1cb   :  { %vm3239_vm14 = vcmp.ge.f32.partialorder %v3119_v43, 0.0  ;;  %v3303_v44 = vmul.f32 0.2, %v3119_v43  ;;  %v3366_v46 = vsel %vm3238_vm13, %v3116_v37, %v3302_v42 }
 0x1cc   :  { %v2834_v45 = vpop.f32.mrb[92].mxu1 }
 0x1cd   :  { %v3367_v47 = vsel %vm3239_vm14, %v3119_v43, %v3303_v44  ;;  %v2835_v48 = vadd.f32 %v5827_v20, %v2834_v45  ;;  %v3123_v49 = vpop.f32.mrb[92].mxu0  ;;  %v2836_v50 = vpop.f32.mrb[93].mxu1 }
 0x1ce   :  { %v4491_v51 = vpack.c.bf16 %v3367_v47, %v3366_v46  ;;  %v3125_v52 = vpop.f32.mrb[93].mxu0  ;;  %v2837_v53 = vpop.f32.mrb[94].mxu1 }
 0x1cf   :  { %v3124_v54 = vadd.f32 %v3123_v49, %v2835_v48  ;;  %v2838_v55 = vadd.f32 %v5827_v20, %v2837_v53  ;;  %v3126_v56 = vpop.f32.mrb[94].mxu0  ;;  %v2839_v57 = vpop.f32.mrb[95].mxu1 }
 0x1d0   :  { %4559 = vst [vmem:[%s5889_s3 + $0xb0] sm:$0xff] %v4491_v51   ;;  %v3128_v58 = vpop.f32.mrb[95].mxu0 }
 0x1d1   :  { %v3304_v59 = vmul.f32 0.2, %v3124_v54  ;;  %v3127_v60 = vadd.f32 %v3126_v56, %v2838_v55  ;;  %vm3240_vm15 = vcmp.ge.f32.partialorder %v3124_v54, 0.0 }
 0x1d3   :  { %vm3241_vm0 = vcmp.ge.f32.partialorder %v3127_v60, 0.0  ;;  %v3305_v61 = vmul.f32 0.2, %v3127_v60  ;;  %v3368_v63 = vsel %vm3240_vm15, %v3124_v54, %v3304_v59 }
 0x1d4   :  { %v2842_v62 = vpop.f32.mrb[96].mxu1 }
 0x1d5   :  { %v3369_v1 = vsel %vm3241_vm0, %v3127_v60, %v3305_v61  ;;  %v2843_v2 = vadd.f32 %v5827_v20, %v2842_v62  ;;  %v3131_v3 = vpop.f32.mrb[96].mxu0  ;;  %v2844_v4 = vpop.f32.mrb[97].mxu1 }
 0x1d6   :  { %v4496_v5 = vpack.c.bf16 %v3369_v1, %v3368_v63  ;;  %v3133_v6 = vpop.f32.mrb[97].mxu0  ;;  %v2845_v7 = vpop.f32.mrb[98].mxu1 }
 0x1d7   :  { %v3132_v8 = vadd.f32 %v3131_v3, %v2843_v2  ;;  %v2846_v9 = vadd.f32 %v5827_v20, %v2845_v7  ;;  %v3134_v10 = vpop.f32.mrb[98].mxu0  ;;  %v2847_v11 = vpop.f32.mrb[99].mxu1 }
 0x1d8   :  { %4560 = vst [vmem:[%s5889_s3 + $0xb8] sm:$0xff] %v4496_v5   ;;  %v3136_v12 = vpop.f32.mrb[99].mxu0 }
 0x1d9   :  { %v3306_v13 = vmul.f32 0.2, %v3132_v8  ;;  %v3135_v14 = vadd.f32 %v3134_v10, %v2846_v9  ;;  %vm3242_vm1 = vcmp.ge.f32.partialorder %v3132_v8, 0.0 }
 0x1db   :  { %vm3243_vm2 = vcmp.ge.f32.partialorder %v3135_v14, 0.0  ;;  %v3307_v15 = vmul.f32 0.2, %v3135_v14  ;;  %v3370_v16 = vsel %vm3242_vm1, %v3132_v8, %v3306_v13 }
 0x1dc   :  { %v2850_v0 = vpop.f32.mrb[100].mxu1 }
 0x1dd   :  { %v3371_v17 = vsel %vm3243_vm2, %v3135_v14, %v3307_v15  ;;  %v2851_v18 = vadd.f32 %v5827_v20, %v2850_v0  ;;  %v3139_v19 = vpop.f32.mrb[100].mxu0  ;;  %v2852_v21 = vpop.f32.mrb[101].mxu1 }
 0x1de   :  { %v4501_v22 = vpack.c.bf16 %v3371_v17, %v3370_v16  ;;  %v3141_v23 = vpop.f32.mrb[101].mxu0  ;;  %v2853_v29 = vpop.f32.mrb[102].mxu1 }
 0x1df   :  { %v3140_v24 = vadd.f32 %v3139_v19, %v2851_v18  ;;  %v2854_v25 = vadd.f32 %v5827_v20, %v2853_v29  ;;  %v3142_v26 = vpop.f32.mrb[102].mxu0  ;;  %v2855_v27 = vpop.f32.mrb[103].mxu1 }
 0x1e0   :  { %4561 = vst [vmem:[%s5889_s3 + $0xc0] sm:$0xff] %v4501_v22   ;;  %v3144_v28 = vpop.f32.mrb[103].mxu0 }
 0x1e1   :  { %v3308_v30 = vmul.f32 0.2, %v3140_v24  ;;  %v3143_v31 = vadd.f32 %v3142_v26, %v2854_v25  ;;  %vm3244_vm3 = vcmp.ge.f32.partialorder %v3140_v24, 0.0 }
 0x1e3   :  { %vm3245_vm4 = vcmp.ge.f32.partialorder %v3143_v31, 0.0  ;;  %v3309_v32 = vmul.f32 0.2, %v3143_v31  ;;  %v3372_v34 = vsel %vm3244_vm3, %v3140_v24, %v3308_v30 }
 0x1e4   :  { %v2858_v33 = vpop.f32.mrb[104].mxu1 }
 0x1e5   :  { %v3373_v35 = vsel %vm3245_vm4, %v3143_v31, %v3309_v32  ;;  %v2859_v36 = vadd.f32 %v5827_v20, %v2858_v33  ;;  %v3147_v37 = vpop.f32.mrb[104].mxu0  ;;  %v2860_v38 = vpop.f32.mrb[105].mxu1 }
 0x1e6   :  { %v4506_v39 = vpack.c.bf16 %v3373_v35, %v3372_v34  ;;  %v3149_v40 = vpop.f32.mrb[105].mxu0  ;;  %v2861_v41 = vpop.f32.mrb[106].mxu1 }
 0x1e7   :  { %v3148_v42 = vadd.f32 %v3147_v37, %v2859_v36  ;;  %v2862_v43 = vadd.f32 %v5827_v20, %v2861_v41  ;;  %v3150_v44 = vpop.f32.mrb[106].mxu0  ;;  %v2863_v45 = vpop.f32.mrb[107].mxu1 }
 0x1e8   :  { %4562 = vst [vmem:[%s5889_s3 + $0xc8] sm:$0xff] %v4506_v39   ;;  %v3152_v46 = vpop.f32.mrb[107].mxu0 }
 0x1e9   :  { %v3310_v47 = vmul.f32 0.2, %v3148_v42  ;;  %v3151_v48 = vadd.f32 %v3150_v44, %v2862_v43  ;;  %vm3246_vm5 = vcmp.ge.f32.partialorder %v3148_v42, 0.0 }
 0x1eb   :  { %vm3247_vm6 = vcmp.ge.f32.partialorder %v3151_v48, 0.0  ;;  %v3311_v49 = vmul.f32 0.2, %v3151_v48  ;;  %v3374_v51 = vsel %vm3246_vm5, %v3148_v42, %v3310_v47 }
 0x1ec   :  { %v2866_v50 = vpop.f32.mrb[108].mxu1 }
 0x1ed   :  { %v3375_v52 = vsel %vm3247_vm6, %v3151_v48, %v3311_v49  ;;  %v2867_v53 = vadd.f32 %v5827_v20, %v2866_v50  ;;  %v3155_v54 = vpop.f32.mrb[108].mxu0  ;;  %v2868_v55 = vpop.f32.mrb[109].mxu1 }
 0x1ee   :  { %v4511_v56 = vpack.c.bf16 %v3375_v52, %v3374_v51  ;;  %v3157_v57 = vpop.f32.mrb[109].mxu0  ;;  %v2869_v58 = vpop.f32.mrb[110].mxu1 }
 0x1ef   :  { %v3156_v59 = vadd.f32 %v3155_v54, %v2867_v53  ;;  %v2870_v60 = vadd.f32 %v5827_v20, %v2869_v58  ;;  %v3158_v61 = vpop.f32.mrb[110].mxu0  ;;  %v2871_v62 = vpop.f32.mrb[111].mxu1 }
 0x1f0   :  { %4563 = vst [vmem:[%s5889_s3 + $0xd0] sm:$0xff] %v4511_v56   ;;  %v3160_v63 = vpop.f32.mrb[111].mxu0 }
 0x1f1   :  { %v3312_v1 = vmul.f32 0.2, %v3156_v59  ;;  %v3159_v2 = vadd.f32 %v3158_v61, %v2870_v60  ;;  %vm3248_vm7 = vcmp.ge.f32.partialorder %v3156_v59, 0.0 }
 0x1f3   :  { %vm3249_vm8 = vcmp.ge.f32.partialorder %v3159_v2, 0.0  ;;  %v3313_v3 = vmul.f32 0.2, %v3159_v2  ;;  %v3376_v5 = vsel %vm3248_vm7, %v3156_v59, %v3312_v1 }
 0x1f4   :  { %v2874_v4 = vpop.f32.mrb[112].mxu1 }
 0x1f5   :  { %v3377_v6 = vsel %vm3249_vm8, %v3159_v2, %v3313_v3  ;;  %v2875_v7 = vadd.f32 %v5827_v20, %v2874_v4  ;;  %v3163_v8 = vpop.f32.mrb[112].mxu0  ;;  %v2876_v9 = vpop.f32.mrb[113].mxu1 }
 0x1f6   :  { %v4516_v10 = vpack.c.bf16 %v3377_v6, %v3376_v5  ;;  %v3165_v11 = vpop.f32.mrb[113].mxu0  ;;  %v2877_v12 = vpop.f32.mrb[114].mxu1 }
 0x1f7   :  { %v3164_v13 = vadd.f32 %v3163_v8, %v2875_v7  ;;  %v2878_v14 = vadd.f32 %v5827_v20, %v2877_v12  ;;  %v3166_v15 = vpop.f32.mrb[114].mxu0  ;;  %v2879_v0 = vpop.f32.mrb[115].mxu1 }
 0x1f8   :  { %4564 = vst [vmem:[%s5889_s3 + $0xd8] sm:$0xff] %v4516_v10   ;;  %v3168_v16 = vpop.f32.mrb[115].mxu0 }
 0x1f9   :  { %v3314_v17 = vmul.f32 0.2, %v3164_v13  ;;  %v3167_v18 = vadd.f32 %v3166_v15, %v2878_v14  ;;  %vm3250_vm9 = vcmp.ge.f32.partialorder %v3164_v13, 0.0 }
 0x1fb   :  { %vm3251_vm10 = vcmp.ge.f32.partialorder %v3167_v18, 0.0  ;;  %v3315_v19 = vmul.f32 0.2, %v3167_v18  ;;  %v3378_v22 = vsel %vm3250_vm9, %v3164_v13, %v3314_v17 }
 0x1fc   :  { %v2882_v21 = vpop.f32.mrb[116].mxu1 }
 0x1fd   :  { %v3379_v23 = vsel %vm3251_vm10, %v3167_v18, %v3315_v19  ;;  %v2883_v29 = vadd.f32 %v5827_v20, %v2882_v21  ;;  %v3171_v24 = vpop.f32.mrb[116].mxu0  ;;  %v2884_v25 = vpop.f32.mrb[117].mxu1 }
 0x1fe   :  { %v4521_v26 = vpack.c.bf16 %v3379_v23, %v3378_v22  ;;  %v3173_v27 = vpop.f32.mrb[117].mxu0  ;;  %v2885_v28 = vpop.f32.mrb[118].mxu1 }
 0x1ff   :  { %v3172_v30 = vadd.f32 %v3171_v24, %v2883_v29  ;;  %v2886_v31 = vadd.f32 %v5827_v20, %v2885_v28  ;;  %v3174_v32 = vpop.f32.mrb[118].mxu0  ;;  %v2887_v33 = vpop.f32.mrb[119].mxu1 }
 0x200   :  { %4565 = vst [vmem:[%s5889_s3 + $0xe0] sm:$0xff] %v4521_v26   ;;  %v3176_v34 = vpop.f32.mrb[119].mxu0 }
 0x201   :  { %v3316_v35 = vmul.f32 0.2, %v3172_v30  ;;  %v3175_v36 = vadd.f32 %v3174_v32, %v2886_v31  ;;  %vm3252_vm11 = vcmp.ge.f32.partialorder %v3172_v30, 0.0 }
 0x203   :  { %vm3253_vm12 = vcmp.ge.f32.partialorder %v3175_v36, 0.0  ;;  %v3317_v37 = vmul.f32 0.2, %v3175_v36  ;;  %v3380_v39 = vsel %vm3252_vm11, %v3172_v30, %v3316_v35 }
 0x204   :  { %v2890_v38 = vpop.f32.mrb[120].mxu1 }
 0x205   :  { %v3381_v40 = vsel %vm3253_vm12, %v3175_v36, %v3317_v37  ;;  %v2891_v41 = vadd.f32 %v5827_v20, %v2890_v38  ;;  %v3179_v42 = vpop.f32.mrb[120].mxu0  ;;  %v2892_v43 = vpop.f32.mrb[121].mxu1 }
 0x206   :  { %v4526_v44 = vpack.c.bf16 %v3381_v40, %v3380_v39  ;;  %v3181_v45 = vpop.f32.mrb[121].mxu0  ;;  %v2893_v46 = vpop.f32.mrb[122].mxu1 }
 0x207   :  { %v3180_v47 = vadd.f32 %v3179_v42, %v2891_v41  ;;  %v2894_v48 = vadd.f32 %v5827_v20, %v2893_v46  ;;  %v3182_v49 = vpop.f32.mrb[122].mxu0  ;;  %v2895_v50 = vpop.f32.mrb[123].mxu1 }
 0x208   :  { %4566 = vst [vmem:[%s5889_s3 + $0xe8] sm:$0xff] %v4526_v44   ;;  %v3184_v51 = vpop.f32.mrb[123].mxu0 }
 0x209   :  { %v3318_v52 = vmul.f32 0.2, %v3180_v47  ;;  %v3183_v53 = vadd.f32 %v3182_v49, %v2894_v48  ;;  %vm3254_vm13 = vcmp.ge.f32.partialorder %v3180_v47, 0.0 }
 0x20b   :  { %vm3255_vm14 = vcmp.ge.f32.partialorder %v3183_v53, 0.0  ;;  %v3319_v54 = vmul.f32 0.2, %v3183_v53  ;;  %v3382_v56 = vsel %vm3254_vm13, %v3180_v47, %v3318_v52 }
 0x20c   :  { %v2898_v55 = vpop.f32.mrb[124].mxu1 }
 0x20d   :  { %v3383_v57 = vsel %vm3255_vm14, %v3183_v53, %v3319_v54  ;;  %v2899_v58 = vadd.f32 %v5827_v20, %v2898_v55  ;;  %v3187_v59 = vpop.f32.mrb[124].mxu0  ;;  %v2900_v60 = vpop.f32.mrb[125].mxu1 }
 0x20e   :  { %v4531_v61 = vpack.c.bf16 %v3383_v57, %v3382_v56  ;;  %v3189_v62 = vpop.f32.mrb[125].mxu0  ;;  %v2901_v63 = vpop.f32.mrb[126].mxu1 }
 0x20f   :  { %v3188_v1 = vadd.f32 %v3187_v59, %v2899_v58  ;;  %v2902_v2 = vadd.f32 %v5827_v20, %v2901_v63  ;;  %v3190_v3 = vpop.f32.mrb[126].mxu0  ;;  %v2903_v4 = vpop.f32.mrb[127].mxu1 }
 0x210   :  { %4567 = vst [vmem:[%s5889_s3 + $0xf0] sm:$0xff] %v4531_v61   ;;  %v3192_v5 = vpop.f32.mrb[127].mxu0 }
 0x211   :  { %v3320_v6 = vmul.f32 0.2, %v3188_v1  ;;  %v3191_v7 = vadd.f32 %v3190_v3, %v2902_v2  ;;  %vm3256_vm15 = vcmp.ge.f32.partialorder %v3188_v1, 0.0 }
 0x213   :  { %vm3257_vm0 = vcmp.ge.f32.partialorder %v3191_v7, 0.0  ;;  %v3321_v8 = vmul.f32 0.2, %v3191_v7  ;;  %v3384_v9 = vsel %vm3256_vm15, %v3188_v1, %v3320_v6 }
 0x215   :  { %v3385_v10 = vsel %vm3257_vm0, %v3191_v7, %v3321_v8 }
 0x216   :  { %v4536_v11 = vpack.c.bf16 %v3385_v10, %v3384_v9 }
 0x218   :  { %4568 = vst [vmem:[%s5889_s3 + $0xf8] sm:$0xff] %v4536_v11  }

// kernel: discriminator_forward.6
= control target key start
LH: loop header
LB: loop body
LE: loop exit
PB: predicated region body
PF: predicated region fallthrough
CT: control target
= control target key end

     0   :  { %s2123_s1 = inlined_call_operand.vmem [shape: bf16[512,128], index: 1, kind: input, shape index: {}]   ;;  %s2124_s0 = inlined_call_operand.vmem [shape: bf16[2,9,9,128], index: 0, kind: input, shape index: {}]   ;;  %s2125_s2 = inlined_call_operand.vmem [shape: f32[1,128], index: 2, kind: input, shape index: {}]   ;;  %s2126_s3 = inlined_call_operand.vmem [shape: bf16[128,128], index: 3, kind: output, shape index: {}]  }
   0x1   :  { %v1690_v0 = vld [vmem:[%s2123_s1 + $0x40] sm:$0xff]   ;;  %v1694_v4 = vld [vmem:[%s2123_s1 + $0x48] sm:$0xff]   ;;  %v1698_v8 = vld [vmem:[%s2123_s1 + $0x50] sm:$0xff]  }
   0x2   :  { %v1691_v1 = vld [vmem:[%s2123_s1 + $0xc0] sm:$0xff]   ;;  %1562 = vmatprep.subr.bf16.mxu0 %v1690_v0  ;;  %v1695_v5 = vld [vmem:[%s2123_s1 + $0xc8] sm:$0xff]   ;;  %v1699_v9 = vld [vmem:[%s2123_s1 + $0xd0] sm:$0xff]  }
   0x3   :  { %v1692_v2 = vld [vmem:[%s2123_s1] sm:$0xff]   ;;  %1626 = vmatprep.subr.bf16.mxu1 %v1691_v1  ;;  %v1696_v6 = vld [vmem:[%s2123_s1 + $0x8] sm:$0xff]   ;;  %v1700_v10 = vld [vmem:[%s2123_s1 + $0x10] sm:$0xff]  }
   0x4   :  { %v1693_v3 = vld [vmem:[%s2123_s1 + $0x80] sm:$0xff]   ;;  %1563 = vmatpush3.bf16.msra.mxu0 %v1692_v2  ;;  %v1697_v7 = vld [vmem:[%s2123_s1 + $0x88] sm:$0xff]   ;;  %v1701_v11 = vld [vmem:[%s2123_s1 + $0x90] sm:$0xff]  }
   0x5   :  { %1627 = vmatpush3.bf16.msra.mxu1 %v1693_v3  ;;  %1564 = vmatprep.subr.bf16.mxu0 %v1694_v4  ;;  %v1702_v12 = vld [vmem:[%s2123_s1 + $0x58] sm:$0xff]   ;;  %v1706_v16 = vld [vmem:[%s2123_s1 + $0x60] sm:$0xff]   ;;  %v1710_v20 = vld [vmem:[%s2123_s1 + $0x68] sm:$0xff]  }
   0x6   :  { %1628 = vmatprep.subr.bf16.mxu1 %v1695_v5  ;;  %v1703_v13 = vld [vmem:[%s2123_s1 + $0xd8] sm:$0xff]   ;;  %v1707_v17 = vld [vmem:[%s2123_s1 + $0xe0] sm:$0xff]   ;;  %v1711_v21 = vld [vmem:[%s2123_s1 + $0xe8] sm:$0xff]  }
   0x7   :  { %v1704_v14 = vld [vmem:[%s2123_s1 + $0x18] sm:$0xff]   ;;  %v1708_v18 = vld [vmem:[%s2123_s1 + $0x20] sm:$0xff]   ;;  %v1712_v22 = vld [vmem:[%s2123_s1 + $0x28] sm:$0xff]  }
   0x8   :  { %1565 = vmatpush3.bf16.msra.mxu0 %v1696_v6  ;;  %v1705_v15 = vld [vmem:[%s2123_s1 + $0x98] sm:$0xff]   ;;  %v1709_v19 = vld [vmem:[%s2123_s1 + $0xa0] sm:$0xff]   ;;  %v1713_v23 = vld [vmem:[%s2123_s1 + $0xa8] sm:$0xff]  }
   0x9   :  { %1629 = vmatpush3.bf16.msra.mxu1 %v1697_v7  ;;  %1566 = vmatprep.subr.bf16.mxu0 %v1698_v8  ;;  %v1714_v24 = vld [vmem:[%s2123_s1 + $0x70] sm:$0xff]   ;;  %v1718_v28 = vld [vmem:[%s2123_s1 + $0x78] sm:$0xff]   ;;  %v1722_v32 = vld [vmem:[%s2124_s0] sm:$0x1f]  }
   0xa   :  { %1630 = vmatprep.subr.bf16.mxu1 %v1699_v9  ;;  %v1715_v25 = vld [vmem:[%s2123_s1 + $0xf0] sm:$0xff]   ;;  %v1719_v29 = vld [vmem:[%s2123_s1 + $0xf8] sm:$0xff]   ;;  %v1723_v33 = vld [vmem:[%s2124_s0 + $0x8] sm:$0x1f]   ;;  %v102_v34 = vshrl.u32 %v1722_v32, 16  ;;  %v104_v35 = vshll.u32 %v1722_v32, 16 }
   0xb   :  { %v1716_v26 = vld [vmem:[%s2123_s1 + $0x30] sm:$0xff]   ;;  %v1720_v30 = vld [vmem:[%s2123_s1 + $0x38] sm:$0xff]   ;;  %v118_v36 = vshrl.u32 %v1723_v33, 16  ;;  %v121_v37 = vshll.u32 %v1723_v33, 16  ;;  %v1724_v38 = vld [vmem:[%s2124_s0 + $0x8] sm:$0x1f]  }
   0xc   :  { %1567 = vmatpush3.bf16.msra.mxu0 %v1700_v10  ;;  %v1717_v27 = vld [vmem:[%s2123_s1 + $0xb0] sm:$0xff]   ;;  %v1721_v31 = vld [vmem:[%s2123_s1 + $0xb8] sm:$0xff]   ;;  %v106_v39 = vrot.slane %v104_v35, 1  ;;  %v432_v43 = vshrl.u32 %v1724_v38, 16  ;;  %v434_v44 = vshll.u32 %v1724_v38, 16 }
   0xd   :  { %1631 = vmatpush3.bf16.msra.mxu1 %v1701_v11  ;;  %1568 = vmatprep.subr.bf16.mxu0 %v1702_v12  ;;  %v1725_v40 = vld [vmem:[%s2124_s0 + $0x10] sm:$0x1f]   ;;  %v120_v41 = vrot.slane %v118_v36, 4  ;;  %v123_v42 = vrot.slane %v121_v37, 5  ;;  %v15_v45 = vld [vmem:[%s2124_s0] sm:$0xf] }
   0xe   :  { %1632 = vmatprep.subr.bf16.mxu1 %v1703_v13  ;;  %v107_v46 = vor.u32 %v106_v39, %v102_v34  ;;  %v448_v47 = vshrl.u32 %v1725_v40, 16  ;;  %v451_v48 = vshll.u32 %v1725_v40, 16  ;;  %16 = vst [vmem:[#allocation2] sm:$0xf] %v15_v45  ;;  %v1726_v49 = vld [vmem:[%s2124_s0 + $0x8] ss:$0 sps:$4 sm:$0xff]  }
   0xf   :  { %v124_v50 = vor.u32 %v123_v42, %v120_v41  ;;  %v436_v51 = vrot.slane %v434_v44, 1  ;;  %v1378_v52 = vld [vmem:[%s2124_s0 + $0x8] sm:$0xf]  ;;  %23 = vst [vmem:[#allocation2] sm:$0xf0] %v1726_v49 }
  0x10   :  { %1569 = vmatpush3.bf16.msra.mxu0 %v1704_v14  ;;  %109 = vst [vmem:[#allocation2 + $0x8] sm:$0xf] %v107_v46  ;;  %v450_v53 = vrot.slane %v448_v47, 4  ;;  %v453_v54 = vrot.slane %v451_v48, 5  ;;  %359 = vst [vmem:[#allocation2 + $0x10] sm:$0xf] %v1378_v52 }
  0x11   :  { %1633 = vmatpush3.bf16.msra.mxu1 %v1705_v15  ;;  %1570 = vmatprep.subr.bf16.mxu0 %v1706_v16  ;;  %v1727_v55 = vld [vmem:[%s2124_s0 + $0x10] ss:$0 sps:$4 sm:$0xff]   ;;  %126 = vst [vmem:[#allocation2 + $0x8] sm:$0xf0] %v124_v50  ;;  %v437_v56 = vor.u32 %v436_v51, %v432_v43  ;;  %v1729_v59 = vld [vmem:[%s2124_s0 + $0x18] sm:$0x1f]  }
  0x12   :  { %1634 = vmatprep.subr.bf16.mxu1 %v1707_v17  ;;  %v1728_v57 = vld [vmem:[%s2124_s0 + $0x10] sm:$0x1f]   ;;  %v454_v58 = vor.u32 %v453_v54, %v450_v53  ;;  %365 = vst [vmem:[#allocation2 + $0x10] sm:$0xf0] %v1727_v55  ;;  %v1730_v62 = vld [vmem:[%s2124_s0 + $0x18] sm:$0x1f]  }
  0x13   :  { %439 = vst [vmem:[#allocation2 + $0x18] sm:$0xf] %v437_v56  ;;  %v135_v60 = vshrl.u32 %v1728_v57, 16  ;;  %v137_v61 = vshll.u32 %v1728_v57, 16  ;;  %v151_v63 = vshrl.u32 %v1729_v59, 16  ;;  %v154_v0 = vshll.u32 %v1729_v59, 16 }
  0x14   :  { %1571 = vmatpush3.bf16.msra.mxu0 %v1708_v18  ;;  %456 = vst [vmem:[#allocation2 + $0x18] sm:$0xf0] %v454_v58  ;;  %v465_v2 = vshrl.u32 %v1730_v62, 16  ;;  %v467_v3 = vshll.u32 %v1730_v62, 16  ;;  %v1731_v4 = vld [vmem:[%s2124_s0 + $0x20] sm:$0x1f]  }
  0x15   :  { %1635 = vmatpush3.bf16.msra.mxu1 %v1709_v19  ;;  %1572 = vmatprep.subr.bf16.mxu0 %v1710_v20  ;;  %v139_v1 = vrot.slane %v137_v61, 1  ;;  %v153_v5 = vrot.slane %v151_v63, 4  ;;  %v156_v6 = vrot.slane %v154_v0, 5  ;;  %v1311_v7 = vld [vmem:[%s2124_s0 + $0x10] sm:$0xf]  ;;  %v481_v11 = vshrl.u32 %v1731_v4, 16 }
  0x16   :  { %1636 = vmatprep.subr.bf16.mxu1 %v1711_v21  ;;  %v688_v8 = vld [vmem:[#allocation2] sm:$0xff]  ;;  %v469_v10 = vrot.slane %v467_v3, 1  ;;  %v484_v12 = vshll.u32 %v1731_v4, 16  ;;  %26 = vst [vmem:[#allocation2 + $0x20] sm:$0xf] %v1311_v7 }
  0x17   :  { %v140_v9 = vor.u32 %v139_v1, %v135_v60  ;;  %v1732_v13 = vld [vmem:[%s2124_s0 + $0x18] ss:$0 sps:$4 sm:$0xff]   ;;  %v157_v15 = vor.u32 %v156_v6, %v153_v5  ;;  %v483_v19 = vrot.slane %v481_v11, 4  ;;  %v1733_v21 = vld [vmem:[%s2124_s0 + $0x20] ss:$0 sps:$4 sm:$0xff]  }
  0x18   :  { %1573 = vmatpush3.bf16.msra.mxu0 %v1712_v22  ;;  %v689_v14 = vld [vmem:[#allocation2 + $0x8] sm:$0xff]  ;;  %v1381_v16 = vld [vmem:[%s2124_s0 + $0x18] sm:$0xf]  ;;  %v470_v18 = vor.u32 %v469_v10, %v465_v2  ;;  %v486_v20 = vrot.slane %v484_v12, 5  ;;  %33 = vst [vmem:[#allocation2 + $0x20] sm:$0xf0] %v1732_v13 }
  0x19   :  { %1637 = vmatpush3.bf16.msra.mxu1 %v1713_v23  ;;  %1574 = vmatprep.subr.bf16.mxu0 %v1714_v24  ;;  %v690_v17 = vld [vmem:[#allocation2 + $0x10] sm:$0xff]  ;;  %142 = vst [vmem:[#allocation2 + $0x28] sm:$0xf] %v140_v9  ;;  %367 = vst [vmem:[#allocation2 + $0x30] sm:$0xf] %v1381_v16 }
  0x1a   :  { %1638 = vmatprep.subr.bf16.mxu1 %v1715_v25  ;;  %1015 = vmatprep.mubr.bf16.mxu0 %v689_v14  ;;  %159 = vst [vmem:[#allocation2 + $0x28] sm:$0xf0] %v157_v15  ;;  %v1734_v22 = vld [vmem:[%s2124_s0 + $0x20] sm:$0x1f]   ;;  %472 = vst [vmem:[#allocation2 + $0x38] sm:$0xf] %v470_v18  ;;  %v487_v24 = vor.u32 %v486_v20, %v483_v19 }
  0x1b   :  { %v691_v23 = vld [vmem:[#allocation2 + $0x18] sm:$0xff]  ;;  %373 = vst [vmem:[#allocation2 + $0x30] sm:$0xf0] %v1733_v21  ;;  %v168_v25 = vshrl.u32 %v1734_v22, 16  ;;  %v1737_v34 = vld [vmem:[%s2124_s0 + $0x30] sm:$0x1f]  }
  0x1c   :  { %1575 = vmatpush3.bf16.msra.mxu0 %v1716_v26  ;;  %1112 = vmatprep.mubr.bf16.mxu1 %v691_v23  ;;  %v170_v26 = vshll.u32 %v1734_v22, 16  ;;  %489 = vst [vmem:[#allocation2 + $0x38] sm:$0xf0] %v487_v24  ;;  %v1314_v35 = vld [vmem:[%s2124_s0 + $0x20] sm:$0xf]  ;;  %v514_v42 = vshrl.u32 %v1737_v34, 16 }
  0x1d   :  { %1639 = vmatpush3.bf16.msra.mxu1 %v1717_v27  ;;  %1576 = vmatprep.subr.bf16.mxu0 %v1718_v28  ;;  %v1735_v27 = vld [vmem:[%s2124_s0 + $0x28] sm:$0x1f]   ;;  %36 = vst [vmem:[#allocation2 + $0x40] sm:$0xf] %v1314_v35  ;;  %v517_v43 = vshll.u32 %v1737_v34, 16 }
  0x1e   :  { %1640 = vmatprep.subr.bf16.mxu1 %v1719_v29  ;;  %v1736_v28 = vld [vmem:[%s2124_s0 + $0x28] sm:$0x1f]   ;;  %v172_v29 = vrot.slane %v170_v26, 1  ;;  %v516_v49 = vrot.slane %v514_v42, 4  ;;  %v1739_v51 = vld [vmem:[%s2124_s0 + $0x30] ss:$0 sps:$4 sm:$0xff]  }
  0x1f   :  { %v498_v32 = vshrl.u32 %v1736_v28, 16  ;;  %v500_v33 = vshll.u32 %v1736_v28, 16  ;;  %v692_v36 = vld [vmem:[#allocation2 + $0x20] sm:$0xff]  ;;  %v1738_v44 = vld [vmem:[%s2124_s0 + $0x28] ss:$0 sps:$4 sm:$0xff]   ;;  %v519_v50 = vrot.slane %v517_v43, 5 }
  0x20   :  { %1577 = vmatpush3.bf16.msra.mxu0 %v1720_v30  ;;  %v184_v30 = vshrl.u32 %v1735_v27, 16  ;;  %v173_v37 = vor.u32 %v172_v29, %v168_v25  ;;  %v1384_v47 = vld [vmem:[%s2124_s0 + $0x28] sm:$0xf]  ;;  %43 = vst [vmem:[#allocation2 + $0x40] sm:$0xf0] %v1738_v44 }
  0x21   :  { %1641 = vmatpush3.bf16.msra.mxu1 %v1721_v31  ;;  %v187_v31 = vshll.u32 %v1735_v27, 16  ;;  %v693_v40 = vld [vmem:[#allocation2 + $0x28] sm:$0xff]  ;;  %v502_v41 = vrot.slane %v500_v33, 1  ;;  %375 = vst [vmem:[#allocation2 + $0x50] sm:$0xf] %v1384_v47  ;;  %v520_v54 = vor.u32 %v519_v50, %v516_v49 }
  0x22   :  { %v186_v38 = vrot.slane %v184_v30, 4  ;;  %v694_v45 = vld [vmem:[#allocation2 + $0x30] sm:$0xff]  ;;  %175 = vst [vmem:[#allocation2 + $0x48] sm:$0xf] %v173_v37  ;;  %381 = vst [vmem:[#allocation2 + $0x50] sm:$0xf0] %v1739_v51 }
  0x23   :  { %1016 = vmatmul.mubr.bf16.vlgmr.msra.gmra.mrb[0].mxu0 %v688_v8  ;;  %v189_v39 = vrot.slane %v187_v31, 5  ;;  %v503_v48 = vor.u32 %v502_v41, %v498_v32  ;;  %v695_v52 = vld [vmem:[#allocation2 + $0x38] sm:$0xff]  ;;  %v1740_v53 = vld [vmem:[%s2124_s0 + $0x30] sm:$0x1f]   ;;  %522 = vst [vmem:[#allocation2 + $0x58] sm:$0xf0] %v520_v54 }
  0x24   :  { %1113 = vmatmul.mubr.bf16.vlgmr.msra.gmra.mrb[0].mxu1 %v690_v17  ;;  %1023 = vmatprep.mubr.bf16.mxu0 %v693_v40  ;;  %v1741_v55 = vld [vmem:[%s2124_s0 + $0x38] sm:$0x1f]   ;;  %v201_v56 = vshrl.u32 %v1740_v53, 16  ;;  %v203_v57 = vshll.u32 %v1740_v53, 16  ;;  %v1743_v62 = vld [vmem:[%s2124_s0 + $0x40] sm:$0x1f]  }
  0x25   :  { %v190_v46 = vor.u32 %v189_v39, %v186_v38  ;;  %1120 = vmatprep.mubr.bf16.mxu1 %v695_v52  ;;  %505 = vst [vmem:[#allocation2 + $0x58] sm:$0xf] %v503_v48  ;;  %v217_v58 = vshrl.u32 %v1741_v55, 16  ;;  %v220_v59 = vshll.u32 %v1741_v55, 16  ;;  %v1742_v60 = vld [vmem:[%s2124_s0 + $0x38] sm:$0x1f]  }
  0x26   :  { %v205_v61 = vrot.slane %v203_v57, 1  ;;  %v531_v1 = vshrl.u32 %v1742_v60, 16  ;;  %v533_v2 = vshll.u32 %v1742_v60, 16  ;;  %v1317_v3 = vld [vmem:[%s2124_s0 + $0x30] sm:$0xf]  ;;  %v547_v6 = vshrl.u32 %v1743_v62, 16 }
  0x27   :  { %192 = vst [vmem:[#allocation2 + $0x48] sm:$0xf0] %v190_v46  ;;  %v219_v63 = vrot.slane %v217_v58, 4  ;;  %v222_v0 = vrot.slane %v220_v59, 5  ;;  %v696_v4 = vld [vmem:[#allocation2 + $0x40] sm:$0xff]  ;;  %v550_v7 = vshll.u32 %v1743_v62, 16 }
  0x28   :  { %v206_v5 = vor.u32 %v205_v61, %v201_v56  ;;  %46 = vst [vmem:[#allocation2 + $0x60] sm:$0xf] %v1317_v3  ;;  %v535_v10 = vrot.slane %v533_v2, 1  ;;  %v1744_v11 = vld [vmem:[%s2124_s0 + $0x38] ss:$0 sps:$4 sm:$0xff]   ;;  %v549_v14 = vrot.slane %v547_v6, 4 }
  0x29   :  { %v223_v9 = vor.u32 %v222_v0, %v219_v63  ;;  %v1387_v12 = vld [vmem:[%s2124_s0 + $0x38] sm:$0xf]  ;;  %v698_v13 = vld [vmem:[#allocation2 + $0x50] sm:$0xff]  ;;  %v552_v15 = vrot.slane %v550_v7, 5  ;;  %53 = vst [vmem:[#allocation2 + $0x60] sm:$0xf0] %v1744_v11 }
  0x2a   :  { %208 = vst [vmem:[#allocation2 + $0x68] sm:$0xf] %v206_v5  ;;  %383 = vst [vmem:[#allocation2 + $0x70] sm:$0xf] %v1387_v12  ;;  %v536_v16 = vor.u32 %v535_v10, %v531_v1  ;;  %v1745_v17 = vld [vmem:[%s2124_s0 + $0x40] ss:$0 sps:$4 sm:$0xff]  }
  0x2b   :  { %1024 = vmatmul.mubr.bf16.gmra.mrb[4].mxu0 %v692_v36  ;;  %225 = vst [vmem:[#allocation2 + $0x68] sm:$0xf0] %v223_v9  ;;  %v553_v19 = vor.u32 %v552_v15, %v549_v14  ;;  %v1746_v20 = vld [vmem:[%s2124_s0 + $0x48] sm:$0x1f]   ;;  %390 = vst [vmem:[#allocation2 + $0x70] sm:$0xf0] %v1745_v17 }
  0x2c   :  { %1121 = vmatmul.mubr.bf16.gmra.mrb[4].mxu1 %v694_v45  ;;  %v699_v18 = vld [vmem:[#allocation2 + $0x58] sm:$0xff]  ;;  %538 = vst [vmem:[#allocation2 + $0x78] sm:$0xf] %v536_v16  ;;  %v1747_v21 = vld [vmem:[%s2124_s0 + $0x50] sm:$0x1f]   ;;  %v234_v22 = vshrl.u32 %v1746_v20, 16 }
  0x2d   :  { %1128 = vmatprep.mubr.bf16.mxu1 %v699_v18  ;;  %555 = vst [vmem:[#allocation2 + $0x78] sm:$0xf0] %v553_v19  ;;  %v236_v23 = vshll.u32 %v1746_v20, 16  ;;  %v1748_v24 = vld [vmem:[%s2124_s0 + $0x50] sm:$0x1f]   ;;  %v250_v25 = vshrl.u32 %v1747_v21, 16 }
  0x2e   :  { %v697_v8 = vld [vmem:[#allocation2 + $0x48] sm:$0xff]  ;;  %v253_v26 = vshll.u32 %v1747_v21, 16  ;;  %v564_v28 = vshrl.u32 %v1748_v24, 16  ;;  %v566_v29 = vshll.u32 %v1748_v24, 16  ;;  %v1749_v30 = vld [vmem:[%s2124_s0 + $0x58] sm:$0x1f]  }
  0x2f   :  { %1031 = vmatprep.mubr.bf16.mxu0 %v697_v8  ;;  %v238_v27 = vrot.slane %v236_v23, 1  ;;  %v252_v31 = vrot.slane %v250_v25, 4  ;;  %v1320_v33 = vld [vmem:[%s2124_s0 + $0x48] sm:$0xf]  ;;  %v580_v38 = vshrl.u32 %v1749_v30, 16  ;;  %v583_v39 = vshll.u32 %v1749_v30, 16 }
  0x30   :  { %v255_v32 = vrot.slane %v253_v26, 5  ;;  %v700_v35 = vld [vmem:[#allocation2 + $0x60] sm:$0xff]  ;;  %v568_v37 = vrot.slane %v566_v29, 1  ;;  %56 = vst [vmem:[#allocation2 + $0x80] sm:$0xf] %v1320_v33 }
  0x31   :  { %v239_v36 = vor.u32 %v238_v27, %v234_v22  ;;  %v1750_v41 = vld [vmem:[%s2124_s0 + $0x50] ss:$0 sps:$4 sm:$0xff]   ;;  %v582_v45 = vrot.slane %v580_v38, 4  ;;  %v585_v46 = vrot.slane %v583_v39, 5  ;;  %v1751_v47 = vld [vmem:[%s2124_s0 + $0x58] ss:$0 sps:$4 sm:$0xff]  }
  0x32   :  { %v701_v34 = vld [vmem:[#allocation2 + $0x68] sm:$0xff]  ;;  %v256_v40 = vor.u32 %v255_v32, %v252_v31  ;;  %v1390_v42 = vld [vmem:[%s2124_s0 + $0x50] sm:$0xf]  ;;  %v569_v44 = vor.u32 %v568_v37, %v564_v28  ;;  %63 = vst [vmem:[#allocation2 + $0x80] sm:$0xf0] %v1750_v41 }
  0x33   :  { %1032 = vmatmul.mubr.bf16.gmra.mrb[8].mxu0 %v696_v4  ;;  %v702_v43 = vld [vmem:[#allocation2 + $0x70] sm:$0xff]  ;;  %241 = vst [vmem:[#allocation2 + $0x88] sm:$0xf] %v239_v36  ;;  %392 = vst [vmem:[#allocation2 + $0x90] sm:$0xf] %v1390_v42  ;;  %v586_v49 = vor.u32 %v585_v46, %v582_v45 }
  0x34   :  { %1129 = vmatmul.mubr.bf16.gmra.mrb[8].mxu1 %v698_v13  ;;  %1039 = vmatprep.mubr.bf16.mxu0 %v701_v34  ;;  %v703_v48 = vld [vmem:[#allocation2 + $0x78] sm:$0xff]  ;;  %258 = vst [vmem:[#allocation2 + $0x88] sm:$0xf0] %v256_v40  ;;  %571 = vst [vmem:[#allocation2 + $0x98] sm:$0xf] %v569_v44 }
  0x35   :  { %1136 = vmatprep.mubr.bf16.mxu1 %v703_v48  ;;  %398 = vst [vmem:[#allocation2 + $0x90] sm:$0xf0] %v1751_v47  ;;  %v1752_v50 = vld [vmem:[%s2124_s0 + $0x58] sm:$0x1f]   ;;  %v1753_v51 = vld [vmem:[%s2124_s0 + $0x60] sm:$0x1f]  }
  0x36   :  { %588 = vst [vmem:[#allocation2 + $0x98] sm:$0xf0] %v586_v49  ;;  %v267_v52 = vshrl.u32 %v1752_v50, 16  ;;  %v269_v53 = vshll.u32 %v1752_v50, 16  ;;  %v1754_v54 = vld [vmem:[%s2124_s0 + $0x60] sm:$0x1f]  }
  0x37   :  { %v283_v55 = vshrl.u32 %v1753_v51, 16  ;;  %v286_v56 = vshll.u32 %v1753_v51, 16  ;;  %v1755_v57 = vld [vmem:[%s2124_s0 + $0x68] sm:$0x1f]   ;;  %v597_v59 = vshrl.u32 %v1754_v54, 16  ;;  %v599_v60 = vshll.u32 %v1754_v54, 16 }
  0x38   :  { %v271_v58 = vrot.slane %v269_v53, 1  ;;  %v1323_v61 = vld [vmem:[%s2124_s0 + $0x58] sm:$0xf]  ;;  %v613_v0 = vshrl.u32 %v1755_v57, 16  ;;  %v616_v1 = vshll.u32 %v1755_v57, 16 }
  0x39   :  { %v285_v62 = vrot.slane %v283_v55, 4  ;;  %v288_v63 = vrot.slane %v286_v56, 5  ;;  %66 = vst [vmem:[#allocation2 + $0xa0] sm:$0xf] %v1323_v61  ;;  %v704_v3 = vld [vmem:[#allocation2 + $0x80] sm:$0xff]  ;;  %v601_v5 = vrot.slane %v599_v60, 1 }
  0x3a   :  { %v272_v4 = vor.u32 %v271_v58, %v267_v52  ;;  %v1756_v6 = vld [vmem:[%s2124_s0 + $0x60] ss:$0 sps:$4 sm:$0xff]   ;;  %v615_v9 = vrot.slane %v613_v0, 4  ;;  %v618_v10 = vrot.slane %v616_v1, 5  ;;  %v1757_v13 = vld [vmem:[%s2124_s0 + $0x68] ss:$0 sps:$4 sm:$0xff]  }
  0x3b   :  { %1040 = vmatmul.mubr.bf16.gmra.mrb[12].mxu0 %v700_v35  ;;  %v705_v2 = vld [vmem:[#allocation2 + $0x88] sm:$0xff]  ;;  %v289_v8 = vor.u32 %v288_v63, %v285_v62  ;;  %v1393_v11 = vld [vmem:[%s2124_s0 + $0x60] sm:$0xf]  ;;  %v602_v12 = vor.u32 %v601_v5, %v597_v59  ;;  %73 = vst [vmem:[#allocation2 + $0xa0] sm:$0xf0] %v1756_v6 }
  0x3c   :  { %1137 = vmatmul.mubr.bf16.gmra.mrb[12].mxu1 %v702_v43  ;;  %1047 = vmatprep.mubr.bf16.mxu0 %v705_v2  ;;  %v706_v7 = vld [vmem:[#allocation2 + $0x90] sm:$0xff]  ;;  %274 = vst [vmem:[#allocation2 + $0xa8] sm:$0xf] %v272_v4  ;;  %400 = vst [vmem:[#allocation2 + $0xb0] sm:$0xf] %v1393_v11  ;;  %v619_v15 = vor.u32 %v618_v10, %v615_v9 }
  0x3d   :  { %v707_v14 = vld [vmem:[#allocation2 + $0x98] sm:$0xff]  ;;  %291 = vst [vmem:[#allocation2 + $0xa8] sm:$0xf0] %v289_v8  ;;  %v1758_v16 = vld [vmem:[%s2124_s0 + $0x68] sm:$0x1f]  }
  0x3e   :  { %1144 = vmatprep.mubr.bf16.mxu1 %v707_v14  ;;  %604 = vst [vmem:[#allocation2 + $0xb8] sm:$0xf] %v602_v12  ;;  %406 = vst [vmem:[#allocation2 + $0xb0] sm:$0xf0] %v1757_v13  ;;  %v1759_v17 = vld [vmem:[%s2124_s0 + $0x70] sm:$0x1f]  }
  0x3f   :  { %621 = vst [vmem:[#allocation2 + $0xb8] sm:$0xf0] %v619_v15  ;;  %v300_v18 = vshrl.u32 %v1758_v16, 16  ;;  %v302_v19 = vshll.u32 %v1758_v16, 16  ;;  %v316_v20 = vshrl.u32 %v1759_v17, 16  ;;  %v319_v21 = vshll.u32 %v1759_v17, 16 }
  0x40   :  { %v1760_v22 = vld [vmem:[%s2124_s0 + $0x70] sm:$0x1f]   ;;  %v1761_v24 = vld [vmem:[%s2124_s0 + $0x78] sm:$0x1f]   ;;  %v1326_v29 = vld [vmem:[%s2124_s0 + $0x68] sm:$0xf] }
  0x41   :  { %v304_v23 = vrot.slane %v302_v19, 1  ;;  %v318_v25 = vrot.slane %v316_v20, 4  ;;  %v321_v26 = vrot.slane %v319_v21, 5  ;;  %v630_v27 = vshrl.u32 %v1760_v22, 16  ;;  %76 = vst [vmem:[#allocation2 + $0xc0] sm:$0xf] %v1326_v29 }
  0x42   :  { %v632_v28 = vshll.u32 %v1760_v22, 16  ;;  %v708_v30 = vld [vmem:[#allocation2 + $0xa0] sm:$0xff]  ;;  %v646_v32 = vshrl.u32 %v1761_v24, 16  ;;  %v649_v33 = vshll.u32 %v1761_v24, 16  ;;  %v1762_v37 = vld [vmem:[%s2124_s0 + $0x70] ss:$0 sps:$4 sm:$0xff]  }
  0x43   :  { %1048 = vmatmul.mubr.bf16.gmra.mrb[16].mxu0 %v704_v3  ;;  %v305_v31 = vor.u32 %v304_v23, %v300_v18  ;;  %v322_v35 = vor.u32 %v321_v26, %v318_v25  ;;  %v1396_v38 = vld [vmem:[%s2124_s0 + $0x70] sm:$0xf]  ;;  %83 = vst [vmem:[#allocation2 + $0xc0] sm:$0xf0] %v1762_v37  ;;  %v1763_v44 = vld [vmem:[%s2124_s0 + $0x78] ss:$0 sps:$4 sm:$0xff]  }
  0x44   :  { %1145 = vmatmul.mubr.bf16.gmra.mrb[16].mxu1 %v706_v7  ;;  %v709_v34 = vld [vmem:[#allocation2 + $0xa8] sm:$0xff]  ;;  %v634_v36 = vrot.slane %v632_v28, 1  ;;  %v648_v40 = vrot.slane %v646_v32, 4  ;;  %v651_v41 = vrot.slane %v649_v33, 5  ;;  %408 = vst [vmem:[#allocation2 + $0xd0] sm:$0xf] %v1396_v38 }
  0x45   :  { %1055 = vmatprep.mubr.bf16.mxu0 %v709_v34  ;;  %v710_v39 = vld [vmem:[#allocation2 + $0xb0] sm:$0xff]  ;;  %307 = vst [vmem:[#allocation2 + $0xc8] sm:$0xf] %v305_v31  ;;  %324 = vst [vmem:[#allocation2 + $0xc8] sm:$0xf0] %v322_v35 }
  0x46   :  { %v711_v42 = vld [vmem:[#allocation2 + $0xb8] sm:$0xff]  ;;  %v635_v43 = vor.u32 %v634_v36, %v630_v27  ;;  %v652_v45 = vor.u32 %v651_v41, %v648_v40  ;;  %414 = vst [vmem:[#allocation2 + $0xd0] sm:$0xf0] %v1763_v44  ;;  %v1765_v47 = vld [vmem:[%s2124_s0 + $0x80] sm:$0x1f]  }
  0x47   :  { %1152 = vmatprep.mubr.bf16.mxu1 %v711_v42  ;;  %v1764_v46 = vld [vmem:[%s2124_s0 + $0x78] sm:$0x1f]   ;;  %v1766_v50 = vld [vmem:[%s2124_s0 + $0x80] sm:$0x1f]   ;;  %v349_v51 = vshrl.u32 %v1765_v47, 16  ;;  %v352_v52 = vshll.u32 %v1765_v47, 16 }
  0x48   :  { %637 = vst [vmem:[#allocation2 + $0xd8] sm:$0xf] %v635_v43  ;;  %654 = vst [vmem:[#allocation2 + $0xd8] sm:$0xf0] %v652_v45  ;;  %v333_v48 = vshrl.u32 %v1764_v46, 16  ;;  %v335_v49 = vshll.u32 %v1764_v46, 16 }
  0x49   :  { %v663_v54 = vshrl.u32 %v1766_v50, 16  ;;  %v665_v55 = vshll.u32 %v1766_v50, 16  ;;  %v1767_v56 = vld [vmem:[%s2124_s0 + $0x88] sm:$0x1f]   ;;  %v351_v57 = vrot.slane %v349_v51, 4  ;;  %v354_v58 = vrot.slane %v352_v52, 5 }
  0x4a   :  { %v337_v53 = vrot.slane %v335_v49, 1  ;;  %v1329_v59 = vld [vmem:[%s2124_s0 + $0x78] sm:$0xf]  ;;  %v712_v61 = vld [vmem:[#allocation2 + $0xc0] sm:$0xff]  ;;  %v679_v0 = vshrl.u32 %v1767_v56, 16  ;;  %v682_v1 = vshll.u32 %v1767_v56, 16 }
  0x4b   :  { %1056 = vmatmul.mubr.bf16.gmra.mrb[20].mxu0 %v708_v30  ;;  %v667_v63 = vrot.slane %v665_v55, 1  ;;  %86 = vst [vmem:[#allocation2 + $0xe0] sm:$0xf] %v1329_v59  ;;  %v355_v2 = vor.u32 %v354_v58, %v351_v57  ;;  %v1768_v3 = vld [vmem:[%s2124_s0 + $0x80] ss:$0 sps:$4 sm:$0xff]  }
  0x4c   :  { %1153 = vmatmul.mubr.bf16.gmra.mrb[20].mxu1 %v710_v39  ;;  %v713_v60 = vld [vmem:[#allocation2 + $0xc8] sm:$0xff]  ;;  %v338_v62 = vor.u32 %v337_v53, %v333_v48  ;;  %v1399_v4 = vld [vmem:[%s2124_s0 + $0x80] sm:$0xf]  ;;  %v681_v7 = vrot.slane %v679_v0, 4  ;;  %v684_v8 = vrot.slane %v682_v1, 5 }
  0x4d   :  { %1063 = vmatprep.mubr.bf16.mxu0 %v713_v60  ;;  %v714_v5 = vld [vmem:[#allocation2 + $0xd0] sm:$0xff]  ;;  %v668_v6 = vor.u32 %v667_v63, %v663_v54  ;;  %416 = vst [vmem:[#allocation2 + $0xf0] sm:$0xf] %v1399_v4  ;;  %v1769_v9 = vld [vmem:[%s2124_s0 + $0x88] ss:$0 sps:$4 sm:$0xff]  }
  0x4e   :  { %340 = vst [vmem:[#allocation2 + $0xe8] sm:$0xf] %v338_v62  ;;  %357 = vst [vmem:[#allocation2 + $0xe8] sm:$0xf0] %v355_v2  ;;  %v685_v11 = vor.u32 %v684_v8, %v681_v7  ;;  %v2081_v17 = vld [vmem:[%s2125_s2] ss:$0 sm:$0xff] }
  0x4f   :  { %v715_v10 = vld [vmem:[#allocation2 + $0xd8] sm:$0xff]  ;;  %93 = vst [vmem:[#allocation2 + $0xe0] sm:$0xf0] %v1768_v3  ;;  %670 = vst [vmem:[#allocation2 + $0xf8] sm:$0xf] %v668_v6 }
  0x50   :  { %1160 = vmatprep.mubr.bf16.mxu1 %v715_v10  ;;  %423 = vst [vmem:[#allocation2 + $0xf0] sm:$0xf0] %v1769_v9  ;;  %687 = vst [vmem:[#allocation2 + $0xf8] sm:$0xf0] %v685_v11 }
  0x53   :  { %1064 = vmatmul.mubr.bf16.gmra.mrb[24].mxu0 %v712_v61 }
  0x54   :  { %1161 = vmatmul.mubr.bf16.gmra.mrb[24].mxu1 %v714_v5 }
  0x55   :  { %v717_v12 = vld [vmem:[#allocation2 + $0xe8] sm:$0xff] }
  0x56   :  { %v716_v13 = vld [vmem:[#allocation2 + $0xe0] sm:$0xff]  ;;  %1071 = vmatprep.mubr.bf16.mxu0 %v717_v12 }
  0x57   :  { %v718_v14 = vld [vmem:[#allocation2 + $0xf0] sm:$0xff]  ;;  %v719_v15 = vld [vmem:[#allocation2 + $0xf8] sm:$0xff] }
  0x58   :  { %1168 = vmatprep.mubr.bf16.mxu1 %v719_v15 }
  0x5b   :  { %1072 = vmatmul.mubr.bf16.gmra.mrb[28].mxu0 %v716_v13 }
  0x5c   :  { %1169 = vmatmul.mubr.bf16.gmra.mrb[28].mxu1 %v718_v14 }
  0xf6   :  { %v1578_v16 = vpop.f32.mrb[0].mxu0 }
  0xf7   :  { %v1579_v18 = vpop.f32.mrb[1].mxu0  ;;  %v1642_v21 = vpop.f32.mrb[0].mxu1 }
  0xf8   :  { %v1580_v19 = vadd.f32 %v1579_v18, %v1578_v16  ;;  %v1581_v20 = vpop.f32.mrb[2].mxu0  ;;  %v1643_v24 = vpop.f32.mrb[1].mxu1 }
  0xf9   :  { %v1582_v22 = vpop.f32.mrb[3].mxu0  ;;  %v1644_v26 = vadd.f32 %v1643_v24, %v1642_v21  ;;  %v1645_v27 = vpop.f32.mrb[2].mxu1 }
  0xfa   :  { %v1018_v23 = vadd.f32 %v1580_v19, %v2081_v17  ;;  %v1583_v25 = vadd.f32 %v1582_v22, %v1581_v20  ;;  %v1646_v29 = vpop.f32.mrb[3].mxu1 }
  0xfb   :  { %v1647_v31 = vadd.f32 %v1646_v29, %v1645_v27 }
  0xfc   :  { %v1021_v28 = vadd.f32 %v1583_v25, %v2081_v17  ;;  %v1115_v30 = vadd.f32 %v1644_v26, %v1018_v23 }
  0xfe   :  { %v1193_v32 = vmul.f32 0.2, %v1115_v30  ;;  %v1118_v33 = vadd.f32 %v1647_v31, %v1021_v28  ;;  %v1584_v34 = vpop.f32.mrb[4].mxu0  ;;  %vm1177_vm0 = vcmp.ge.f32.partialorder %v1115_v30, 0.0 }
  0xff   :  { %v1585_v35 = vpop.f32.mrb[5].mxu0  ;;  %v1648_v39 = vpop.f32.mrb[4].mxu1 }
 0x100   :  { %vm1178_vm1 = vcmp.ge.f32.partialorder %v1118_v33, 0.0  ;;  %v1194_v36 = vmul.f32 0.2, %v1118_v33  ;;  %v1586_v37 = vadd.f32 %v1585_v35, %v1584_v34  ;;  %v1587_v38 = vpop.f32.mrb[6].mxu0  ;;  %v1209_v41 = vsel %vm1177_vm0, %v1115_v30, %v1193_v32  ;;  %v1649_v44 = vpop.f32.mrb[5].mxu1 }
 0x101   :  { %v1588_v40 = vpop.f32.mrb[7].mxu0  ;;  %v1650_v47 = vadd.f32 %v1649_v44, %v1648_v39  ;;  %v1651_v48 = vpop.f32.mrb[6].mxu1 }
 0x102   :  { %v1210_v42 = vsel %vm1178_vm1, %v1118_v33, %v1194_v36  ;;  %v1026_v43 = vadd.f32 %v1586_v37, %v2081_v17  ;;  %v1589_v45 = vadd.f32 %v1588_v40, %v1587_v38  ;;  %v1652_v50 = vpop.f32.mrb[7].mxu1 }
 0x103   :  { %v1518_v46 = vpack.c.bf16 %v1210_v42, %v1209_v41  ;;  %v1653_v52 = vadd.f32 %v1652_v50, %v1651_v48 }
 0x104   :  { %v1029_v49 = vadd.f32 %v1589_v45, %v2081_v17  ;;  %v1123_v51 = vadd.f32 %v1650_v47, %v1026_v43 }
 0x105   :  { %1519 = vst [vmem:[%s2126_s3] sm:$0xff] %v1518_v46  }
 0x106   :  { %v1195_v53 = vmul.f32 0.2, %v1123_v51  ;;  %v1126_v54 = vadd.f32 %v1653_v52, %v1029_v49  ;;  %vm1179_vm2 = vcmp.ge.f32.partialorder %v1123_v51, 0.0  ;;  %v1590_v55 = vpop.f32.mrb[8].mxu0 }
 0x107   :  { %v1591_v57 = vpop.f32.mrb[9].mxu0  ;;  %v1654_v62 = vpop.f32.mrb[8].mxu1 }
 0x108   :  { %vm1180_vm3 = vcmp.ge.f32.partialorder %v1126_v54, 0.0  ;;  %v1196_v56 = vmul.f32 0.2, %v1126_v54  ;;  %v1592_v58 = vadd.f32 %v1591_v57, %v1590_v55  ;;  %v1593_v59 = vpop.f32.mrb[10].mxu0  ;;  %v1211_v60 = vsel %vm1179_vm2, %v1123_v51, %v1195_v53  ;;  %v1655_v2 = vpop.f32.mrb[9].mxu1 }
 0x109   :  { %v1594_v63 = vpop.f32.mrb[11].mxu0  ;;  %v1656_v4 = vadd.f32 %v1655_v2, %v1654_v62  ;;  %v1657_v5 = vpop.f32.mrb[10].mxu1 }
 0x10a   :  { %v1212_v61 = vsel %vm1180_vm3, %v1126_v54, %v1196_v56  ;;  %v1034_v1 = vadd.f32 %v1592_v58, %v2081_v17  ;;  %v1595_v3 = vadd.f32 %v1594_v63, %v1593_v59  ;;  %v1658_v7 = vpop.f32.mrb[11].mxu1 }
 0x10b   :  { %v1523_v0 = vpack.c.bf16 %v1212_v61, %v1211_v60  ;;  %v1659_v9 = vadd.f32 %v1658_v7, %v1657_v5 }
 0x10c   :  { %v1037_v6 = vadd.f32 %v1595_v3, %v2081_v17  ;;  %v1131_v8 = vadd.f32 %v1656_v4, %v1034_v1 }
 0x10d   :  { %1555 = vst [vmem:[%s2126_s3 + $0x8] sm:$0xff] %v1523_v0  }
 0x10e   :  { %v1197_v10 = vmul.f32 0.2, %v1131_v8  ;;  %v1134_v11 = vadd.f32 %v1659_v9, %v1037_v6  ;;  %v1596_v12 = vpop.f32.mrb[12].mxu0  ;;  %vm1181_vm4 = vcmp.ge.f32.partialorder %v1131_v8, 0.0 }
 0x10f   :  { %v1597_v13 = vpop.f32.mrb[13].mxu0  ;;  %v1660_v18 = vpop.f32.mrb[12].mxu1 }
 0x110   :  { %vm1182_vm5 = vcmp.ge.f32.partialorder %v1134_v11, 0.0  ;;  %v1198_v14 = vmul.f32 0.2, %v1134_v11  ;;  %v1598_v15 = vadd.f32 %v1597_v13, %v1596_v12  ;;  %v1599_v16 = vpop.f32.mrb[14].mxu0  ;;  %v1213_v20 = vsel %vm1181_vm4, %v1131_v8, %v1197_v10  ;;  %v1661_v23 = vpop.f32.mrb[13].mxu1 }
 0x111   :  { %v1600_v19 = vpop.f32.mrb[15].mxu0  ;;  %v1662_v26 = vadd.f32 %v1661_v23, %v1660_v18  ;;  %v1663_v27 = vpop.f32.mrb[14].mxu1 }
 0x112   :  { %v1214_v21 = vsel %vm1182_vm5, %v1134_v11, %v1198_v14  ;;  %v1042_v22 = vadd.f32 %v1598_v15, %v2081_v17  ;;  %v1601_v24 = vadd.f32 %v1600_v19, %v1599_v16  ;;  %v1664_v29 = vpop.f32.mrb[15].mxu1 }
 0x113   :  { %v1528_v25 = vpack.c.bf16 %v1214_v21, %v1213_v20  ;;  %v1665_v31 = vadd.f32 %v1664_v29, %v1663_v27 }
 0x114   :  { %v1045_v28 = vadd.f32 %v1601_v24, %v2081_v17  ;;  %v1139_v30 = vadd.f32 %v1662_v26, %v1042_v22 }
 0x115   :  { %1556 = vst [vmem:[%s2126_s3 + $0x10] sm:$0xff] %v1528_v25  }
 0x116   :  { %v1199_v32 = vmul.f32 0.2, %v1139_v30  ;;  %v1142_v33 = vadd.f32 %v1665_v31, %v1045_v28  ;;  %vm1183_vm6 = vcmp.ge.f32.partialorder %v1139_v30, 0.0  ;;  %v1602_v34 = vpop.f32.mrb[16].mxu0 }
 0x117   :  { %v1603_v36 = vpop.f32.mrb[17].mxu0  ;;  %v1666_v41 = vpop.f32.mrb[16].mxu1 }
 0x118   :  { %vm1184_vm7 = vcmp.ge.f32.partialorder %v1142_v33, 0.0  ;;  %v1200_v35 = vmul.f32 0.2, %v1142_v33  ;;  %v1604_v37 = vadd.f32 %v1603_v36, %v1602_v34  ;;  %v1605_v38 = vpop.f32.mrb[18].mxu0  ;;  %v1215_v39 = vsel %vm1183_vm6, %v1139_v30, %v1199_v32  ;;  %v1667_v45 = vpop.f32.mrb[17].mxu1 }
 0x119   :  { %v1606_v42 = vpop.f32.mrb[19].mxu0  ;;  %v1668_v47 = vadd.f32 %v1667_v45, %v1666_v41  ;;  %v1669_v48 = vpop.f32.mrb[18].mxu1 }
 0x11a   :  { %v1216_v40 = vsel %vm1184_vm7, %v1142_v33, %v1200_v35  ;;  %v1050_v44 = vadd.f32 %v1604_v37, %v2081_v17  ;;  %v1607_v46 = vadd.f32 %v1606_v42, %v1605_v38  ;;  %v1670_v50 = vpop.f32.mrb[19].mxu1 }
 0x11b   :  { %v1533_v43 = vpack.c.bf16 %v1216_v40, %v1215_v39  ;;  %v1671_v52 = vadd.f32 %v1670_v50, %v1669_v48 }
 0x11c   :  { %v1053_v49 = vadd.f32 %v1607_v46, %v2081_v17  ;;  %v1147_v51 = vadd.f32 %v1668_v47, %v1050_v44 }
 0x11d   :  { %1557 = vst [vmem:[%s2126_s3 + $0x18] sm:$0xff] %v1533_v43  }
 0x11e   :  { %v1201_v53 = vmul.f32 0.2, %v1147_v51  ;;  %v1150_v54 = vadd.f32 %v1671_v52, %v1053_v49  ;;  %vm1185_vm8 = vcmp.ge.f32.partialorder %v1147_v51, 0.0  ;;  %v1608_v55 = vpop.f32.mrb[20].mxu0 }
 0x11f   :  { %v1609_v57 = vpop.f32.mrb[21].mxu0  ;;  %v1672_v58 = vpop.f32.mrb[20].mxu1 }
 0x120   :  { %vm1186_vm9 = vcmp.ge.f32.partialorder %v1150_v54, 0.0  ;;  %v1202_v56 = vmul.f32 0.2, %v1150_v54  ;;  %v1610_v59 = vadd.f32 %v1609_v57, %v1608_v55  ;;  %v1611_v60 = vpop.f32.mrb[22].mxu0  ;;  %v1217_v61 = vsel %vm1185_vm8, %v1147_v51, %v1201_v53  ;;  %v1673_v63 = vpop.f32.mrb[21].mxu1 }
 0x121   :  { %v1612_v0 = vpop.f32.mrb[23].mxu0  ;;  %v1674_v3 = vadd.f32 %v1673_v63, %v1672_v58  ;;  %v1675_v4 = vpop.f32.mrb[22].mxu1 }
 0x122   :  { %v1218_v62 = vsel %vm1186_vm9, %v1150_v54, %v1202_v56  ;;  %v1058_v2 = vadd.f32 %v1610_v59, %v2081_v17  ;;  %v1613_v5 = vadd.f32 %v1612_v0, %v1611_v60  ;;  %v1676_v6 = vpop.f32.mrb[23].mxu1 }
 0x123   :  { %v1538_v1 = vpack.c.bf16 %v1218_v62, %v1217_v61  ;;  %v1677_v9 = vadd.f32 %v1676_v6, %v1675_v4 }
 0x124   :  { %v1155_v7 = vadd.f32 %v1674_v3, %v1058_v2  ;;  %v1061_v8 = vadd.f32 %v1613_v5, %v2081_v17 }
 0x125   :  { %1558 = vst [vmem:[%s2126_s3 + $0x20] sm:$0xff] %v1538_v1  }
 0x126   :  { %v1203_v10 = vmul.f32 0.2, %v1155_v7  ;;  %v1158_v11 = vadd.f32 %v1677_v9, %v1061_v8  ;;  %vm1187_vm10 = vcmp.ge.f32.partialorder %v1155_v7, 0.0  ;;  %v1614_v12 = vpop.f32.mrb[24].mxu0 }
 0x127   :  { %v1615_v14 = vpop.f32.mrb[25].mxu0  ;;  %v1678_v20 = vpop.f32.mrb[24].mxu1 }
 0x128   :  { %vm1188_vm11 = vcmp.ge.f32.partialorder %v1158_v11, 0.0  ;;  %v1204_v13 = vmul.f32 0.2, %v1158_v11  ;;  %v1616_v15 = vadd.f32 %v1615_v14, %v1614_v12  ;;  %v1617_v16 = vpop.f32.mrb[26].mxu0  ;;  %v1219_v18 = vsel %vm1187_vm10, %v1155_v7, %v1203_v10  ;;  %v1679_v24 = vpop.f32.mrb[25].mxu1 }
 0x129   :  { %v1618_v21 = vpop.f32.mrb[27].mxu0  ;;  %v1680_v26 = vadd.f32 %v1679_v24, %v1678_v20  ;;  %v1681_v27 = vpop.f32.mrb[26].mxu1 }
 0x12a   :  { %v1220_v19 = vsel %vm1188_vm11, %v1158_v11, %v1204_v13  ;;  %v1066_v23 = vadd.f32 %v1616_v15, %v2081_v17  ;;  %v1619_v25 = vadd.f32 %v1618_v21, %v1617_v16  ;;  %v1682_v29 = vpop.f32.mrb[27].mxu1 }
 0x12b   :  { %v1543_v22 = vpack.c.bf16 %v1220_v19, %v1219_v18  ;;  %v1683_v31 = vadd.f32 %v1682_v29, %v1681_v27 }
 0x12c   :  { %v1069_v28 = vadd.f32 %v1619_v25, %v2081_v17  ;;  %v1163_v30 = vadd.f32 %v1680_v26, %v1066_v23 }
 0x12d   :  { %1559 = vst [vmem:[%s2126_s3 + $0x28] sm:$0xff] %v1543_v22  }
 0x12e   :  { %v1205_v32 = vmul.f32 0.2, %v1163_v30  ;;  %v1166_v33 = vadd.f32 %v1683_v31, %v1069_v28  ;;  %vm1189_vm12 = vcmp.ge.f32.partialorder %v1163_v30, 0.0  ;;  %v1620_v34 = vpop.f32.mrb[28].mxu0 }
 0x12f   :  { %v1621_v36 = vpop.f32.mrb[29].mxu0  ;;  %v1684_v41 = vpop.f32.mrb[28].mxu1 }
 0x130   :  { %vm1190_vm13 = vcmp.ge.f32.partialorder %v1166_v33, 0.0  ;;  %v1206_v35 = vmul.f32 0.2, %v1166_v33  ;;  %v1622_v37 = vadd.f32 %v1621_v36, %v1620_v34  ;;  %v1623_v38 = vpop.f32.mrb[30].mxu0  ;;  %v1221_v39 = vsel %vm1189_vm12, %v1163_v30, %v1205_v32  ;;  %v1685_v45 = vpop.f32.mrb[29].mxu1 }
 0x131   :  { %v1624_v42 = vpop.f32.mrb[31].mxu0  ;;  %v1686_v47 = vadd.f32 %v1685_v45, %v1684_v41  ;;  %v1687_v48 = vpop.f32.mrb[30].mxu1 }
 0x132   :  { %v1222_v40 = vsel %vm1190_vm13, %v1166_v33, %v1206_v35  ;;  %v1074_v44 = vadd.f32 %v1622_v37, %v2081_v17  ;;  %v1625_v46 = vadd.f32 %v1624_v42, %v1623_v38  ;;  %v1688_v50 = vpop.f32.mrb[31].mxu1 }
 0x133   :  { %v1548_v43 = vpack.c.bf16 %v1222_v40, %v1221_v39  ;;  %v1689_v52 = vadd.f32 %v1688_v50, %v1687_v48 }
 0x134   :  { %v1077_v49 = vadd.f32 %v1625_v46, %v2081_v17  ;;  %v1171_v51 = vadd.f32 %v1686_v47, %v1074_v44 }
 0x135   :  { %1560 = vst [vmem:[%s2126_s3 + $0x30] sm:$0xff] %v1548_v43  }
 0x136   :  { %v1207_v53 = vmul.f32 0.2, %v1171_v51  ;;  %v1174_v54 = vadd.f32 %v1689_v52, %v1077_v49  ;;  %vm1191_vm14 = vcmp.ge.f32.partialorder %v1171_v51, 0.0 }
 0x138   :  { %vm1192_vm15 = vcmp.ge.f32.partialorder %v1174_v54, 0.0  ;;  %v1208_v55 = vmul.f32 0.2, %v1174_v54  ;;  %v1223_v56 = vsel %vm1191_vm14, %v1171_v51, %v1207_v53 }
 0x13a   :  { %v1224_v57 = vsel %vm1192_vm15, %v1174_v54, %v1208_v55 }
 0x13b   :  { %v1553_v58 = vpack.c.bf16 %v1224_v57, %v1223_v56 }
 0x13d   :  { %1561 = vst [vmem:[%s2126_s3 + $0x38] sm:$0xff] %v1553_v58  }

// kernel: discriminator_forward.8
= control target key start
LH: loop header
LB: loop body
LE: loop exit
PB: predicated region body
PF: predicated region fallthrough
CT: control target
= control target key end

     0   :  { %s927_s1 = inlined_call_operand.vmem [shape: bf16[512,128], index: 1, kind: input, shape index: {}]   ;;  %s928_s0 = inlined_call_operand.vmem [shape: bf16[2,3,3,128], index: 0, kind: input, shape index: {}]   ;;  %s929_s2 = inlined_call_operand.vmem [shape: f32[1,128], index: 2, kind: input, shape index: {}]   ;;  %s930_s3 = inlined_call_operand.vmem [shape: bf16[8,128], index: 3, kind: output, shape index: {}]  }
   0x1   :  { %v725_v0 = vld [vmem:[%s927_s1 + $0x40] sm:$0xff]   ;;  %v729_v4 = vld [vmem:[%s927_s1 + $0x48] sm:$0xff]   ;;  %v733_v8 = vld [vmem:[%s927_s1 + $0x50] sm:$0xff]  }
   0x2   :  { %v726_v1 = vld [vmem:[%s927_s1 + $0xc0] sm:$0xff]   ;;  %681 = vmatprep.subr.bf16.mxu0 %v725_v0  ;;  %v730_v5 = vld [vmem:[%s927_s1 + $0xc8] sm:$0xff]   ;;  %v734_v9 = vld [vmem:[%s927_s1 + $0xd0] sm:$0xff]  }
   0x3   :  { %v727_v2 = vld [vmem:[%s927_s1] sm:$0xff]   ;;  %703 = vmatprep.subr.bf16.mxu1 %v726_v1  ;;  %v731_v6 = vld [vmem:[%s927_s1 + $0x8] sm:$0xff]   ;;  %v735_v10 = vld [vmem:[%s927_s1 + $0x10] sm:$0xff]  }
   0x4   :  { %v728_v3 = vld [vmem:[%s927_s1 + $0x80] sm:$0xff]   ;;  %682 = vmatpush3.bf16.msra.mxu0 %v727_v2  ;;  %v732_v7 = vld [vmem:[%s927_s1 + $0x88] sm:$0xff]   ;;  %v736_v11 = vld [vmem:[%s927_s1 + $0x90] sm:$0xff]  }
   0x5   :  { %704 = vmatpush3.bf16.msra.mxu1 %v728_v3  ;;  %683 = vmatprep.subr.bf16.mxu0 %v729_v4  ;;  %v737_v12 = vld [vmem:[%s927_s1 + $0x58] sm:$0xff]   ;;  %v741_v16 = vld [vmem:[%s927_s1 + $0x60] sm:$0xff]   ;;  %v745_v20 = vld [vmem:[%s927_s1 + $0x68] sm:$0xff]  }
   0x6   :  { %705 = vmatprep.subr.bf16.mxu1 %v730_v5  ;;  %v738_v13 = vld [vmem:[%s927_s1 + $0xd8] sm:$0xff]   ;;  %v742_v17 = vld [vmem:[%s927_s1 + $0xe0] sm:$0xff]   ;;  %v746_v21 = vld [vmem:[%s927_s1 + $0xe8] sm:$0xff]  }
   0x7   :  { %v739_v14 = vld [vmem:[%s927_s1 + $0x18] sm:$0xff]   ;;  %v743_v18 = vld [vmem:[%s927_s1 + $0x20] sm:$0xff]   ;;  %v747_v22 = vld [vmem:[%s927_s1 + $0x28] sm:$0xff]  }
   0x8   :  { %684 = vmatpush3.bf16.msra.mxu0 %v731_v6  ;;  %v740_v15 = vld [vmem:[%s927_s1 + $0x98] sm:$0xff]   ;;  %v744_v19 = vld [vmem:[%s927_s1 + $0xa0] sm:$0xff]   ;;  %v748_v23 = vld [vmem:[%s927_s1 + $0xa8] sm:$0xff]  }
   0x9   :  { %706 = vmatpush3.bf16.msra.mxu1 %v732_v7  ;;  %685 = vmatprep.subr.bf16.mxu0 %v733_v8  ;;  %v749_v24 = vld [vmem:[%s927_s1 + $0x70] sm:$0xff]   ;;  %v753_v28 = vld [vmem:[%s927_s1 + $0x78] sm:$0xff]   ;;  %v15_v32 = vld [vmem:[%s928_s0] sm:$0x1] }
   0xa   :  { %707 = vmatprep.subr.bf16.mxu1 %v734_v9  ;;  %v750_v25 = vld [vmem:[%s927_s1 + $0xf0] sm:$0xff]   ;;  %v754_v29 = vld [vmem:[%s927_s1 + $0xf8] sm:$0xff]   ;;  %v617_v33 = vld.sshfl [vmem:[%s928_s0 + $0x2] sm:$0x1 pattern:$0x76325410] }
   0xb   :  { %v751_v26 = vld [vmem:[%s927_s1 + $0x30] sm:$0xff]   ;;  %v755_v30 = vld [vmem:[%s927_s1 + $0x38] sm:$0xff]   ;;  %16 = vst [vmem:[#allocation2] sm:$0x1] %v15_v32  ;;  %v27_v34 = vrot.slane %v617_v33, 7 }
   0xc   :  { %686 = vmatpush3.bf16.msra.mxu0 %v735_v10  ;;  %v752_v27 = vld [vmem:[%s927_s1 + $0xb0] sm:$0xff]   ;;  %v756_v31 = vld [vmem:[%s927_s1 + $0xb8] sm:$0xff]   ;;  %v757_v35 = vld [vmem:[%s928_s0 + $0x6] ss:$0 sps:$4 sm:$0x11]  }
   0xd   :  { %708 = vmatpush3.bf16.msra.mxu1 %v736_v11  ;;  %687 = vmatprep.subr.bf16.mxu0 %v737_v12  ;;  %v621_v36 = vld.sshfl [vmem:[%s928_s0 + $0x8] sm:$0x1 pattern:$0x76325410]  ;;  %v629_v37 = vld [vmem:[%s928_s0 + $0x2] sm:$0x1] }
   0xe   :  { %709 = vmatprep.subr.bf16.mxu1 %v738_v13  ;;  %29 = vst [vmem:[#allocation2] sm:$0x2] %v27_v34  ;;  %619 = vst.sshfl [vmem:[#allocation2] sm:$0x10 pattern:$0x76325410] %v757_v35 }
   0xf   :  { %v53_v38 = vrot.slane %v621_v36, 5  ;;  %v622_v39 = vld.sshfl [vmem:[%s928_s0] sm:$0x3 pattern:$0x76325410] }
  0x10   :  { %688 = vmatpush3.bf16.msra.mxu0 %v739_v14  ;;  %133 = vst [vmem:[#allocation2 + $0x8] sm:$0x1] %v629_v37  ;;  %v66_v40 = vshrl.u32 %v622_v39, 16  ;;  %v69_v41 = vshll.u32 %v622_v39, 16  ;;  %v644_v32 = vld [vmem:[%s929_s2] ss:$0 sm:$0xff] }
  0x11   :  { %710 = vmatpush3.bf16.msra.mxu1 %v740_v15  ;;  %689 = vmatprep.subr.bf16.mxu0 %v741_v16  ;;  %v624_v42 = vld.sshfl [vmem:[%s928_s0 + $0x2] sm:$0x3 pattern:$0x76325410]  ;;  %55 = vst [vmem:[#allocation2] sm:$0x8] %v53_v38 }
  0x12   :  { %711 = vmatprep.subr.bf16.mxu1 %v742_v17  ;;  %v86_v43 = vshrl.u32 %v624_v42, 16  ;;  %v89_v44 = vshll.u32 %v624_v42, 16  ;;  %v626_v45 = vld.sshfl [vmem:[%s928_s0 + $0x6] sm:$0x3 pattern:$0x76325410] }
  0x13   :  { %v68_v46 = vrot.slane %v66_v40, 4  ;;  %v71_v47 = vrot.slane %v69_v41, 5  ;;  %v104_v48 = vshrl.u32 %v626_v45, 16  ;;  %v107_v49 = vshll.u32 %v626_v45, 16 }
  0x14   :  { %690 = vmatpush3.bf16.msra.mxu0 %v743_v18  ;;  %v88_v50 = vrot.slane %v86_v43, 7  ;;  %v628_v51 = vld.sshfl [vmem:[%s928_s0 + $0x8] sm:$0x3 pattern:$0x76325410]  ;;  %v184_v52 = vrot.slane %v86_v43, 4 }
  0x15   :  { %712 = vmatpush3.bf16.msra.mxu1 %v744_v19  ;;  %691 = vmatprep.subr.bf16.mxu0 %v745_v20  ;;  %v72_v53 = vor.u32 %v71_v47, %v68_v46  ;;  %v106_v54 = vrot.slane %v104_v48, 6  ;;  %v109_v55 = vrot.slane %v107_v49, 7  ;;  %v123_v56 = vshrl.u32 %v628_v51, 16  ;;  %v760_v57 = vld [vmem:[%s928_s0 + $0x8] ss:$0 sps:$4 sm:$0x11]  }
  0x16   :  { %713 = vmatprep.subr.bf16.mxu1 %v746_v21  ;;  %v91_v58 = vor.u32 %v89_v44, %v88_v50  ;;  %v126_v59 = vshll.u32 %v628_v51, 16  ;;  %v631_v60 = vld.sshfl [vmem:[%s928_s0 + $0x4] sm:$0x1 pattern:$0x76325410]  ;;  %v187_v61 = vrot.slane %v89_v44, 5 }
  0x17   :  { %v73_v62 = vrot.slane %v72_v53, 4  ;;  %v110_v63 = vor.u32 %v109_v55, %v106_v54  ;;  %v125_v0 = vrot.slane %v123_v56, 5  ;;  %v144_v1 = vrot.slane %v631_v60, 7 }
  0x18   :  { %692 = vmatpush3.bf16.msra.mxu0 %v747_v22  ;;  %633 = vst.sshfl [vmem:[#allocation2 + $0x8] sm:$0x10 pattern:$0x76325410] %v760_v57  ;;  %93 = vst [vmem:[#allocation2 + $0x4] sm:$0x2] %v91_v58  ;;  %v188_v4 = vor.u32 %v187_v61, %v184_v52 }
  0x19   :  { %714 = vmatpush3.bf16.msra.mxu1 %v748_v23  ;;  %693 = vmatprep.subr.bf16.mxu0 %v749_v24  ;;  %v128_v2 = vrot.slane %v126_v59, 6  ;;  %v635_v3 = vld.sshfl [vmem:[%s928_s0 + $0xa] sm:$0x1 pattern:$0x76325410]  ;;  %v222_v5 = vrot.slane %v123_v56, 6 }
  0x1a   :  { %715 = vmatprep.subr.bf16.mxu1 %v750_v25  ;;  %75 = vst [vmem:[#allocation2 + $0x4] sm:$0x1] %v73_v62  ;;  %112 = vst [vmem:[#allocation2 + $0x4] sm:$0x4] %v110_v63  ;;  %v169_v6 = vrot.slane %v635_v3, 5  ;;  %v225_v8 = vrot.slane %v126_v59, 7 }
  0x1b   :  { %146 = vst [vmem:[#allocation2 + $0x8] sm:$0x2] %v144_v1  ;;  %v639_v7 = vld.sshfl [vmem:[%s928_s0 + $0x4] sm:$0x3 pattern:$0x76325410]  ;;  %v129_v9 = vor.u32 %v128_v2, %v125_v0 }
  0x1c   :  { %694 = vmatpush3.bf16.msra.mxu0 %v751_v26  ;;  %v189_v10 = vrot.slane %v188_v4, 4  ;;  %v202_v11 = vshrl.u32 %v639_v7, 16  ;;  %v205_v12 = vshll.u32 %v639_v7, 16  ;;  %171 = vst [vmem:[#allocation2 + $0x8] sm:$0x8] %v169_v6  ;;  %v226_v13 = vor.u32 %v225_v8, %v222_v5 }
  0x1d   :  { %716 = vmatpush3.bf16.msra.mxu1 %v752_v27  ;;  %695 = vmatprep.subr.bf16.mxu0 %v753_v28  ;;  %v643_v14 = vld.sshfl [vmem:[%s928_s0 + $0xa] sm:$0x3 pattern:$0x76325410]  ;;  %131 = vst [vmem:[#allocation2 + $0x4] sm:$0x8] %v129_v9 }
  0x1e   :  { %717 = vmatprep.subr.bf16.mxu1 %v754_v29  ;;  %191 = vst [vmem:[#allocation2 + $0xc] sm:$0x1] %v189_v10  ;;  %v204_v15 = vrot.slane %v202_v11, 7  ;;  %v239_v16 = vshrl.u32 %v643_v14, 16  ;;  %v242_v17 = vshll.u32 %v643_v14, 16 }
  0x1f   :  { %228 = vst [vmem:[#allocation2 + $0xc] sm:$0x4] %v226_v13 }
  0x20   :  { %696 = vmatpush3.bf16.msra.mxu0 %v755_v30  ;;  %v207_v18 = vor.u32 %v205_v12, %v204_v15  ;;  %v241_v19 = vrot.slane %v239_v16, 5  ;;  %v244_v20 = vrot.slane %v242_v17, 6 }
  0x21   :  { %718 = vmatpush3.bf16.msra.mxu1 %v756_v31 }
  0x22   :  { %209 = vst [vmem:[#allocation2 + $0xc] sm:$0x2] %v207_v18  ;;  %v245_v21 = vor.u32 %v244_v20, %v241_v19 }
  0x24   :  { %247 = vst [vmem:[#allocation2 + $0xc] sm:$0x8] %v245_v21  ;;  %v248_v22 = vld [vmem:[#allocation2] sm:$0xff] }
  0x25   :  { %v645_v23 = vcombine.low %v248_v22, %v248_v22  ;;  %v646_v24 = vcombine.high %v248_v22, %v248_v22 }
  0x27   :  { %559 = vmatprep.mubr.bf16.mxu0 %v646_v24 }
  0x28   :  { %560 = vmatmul.mubr.bf16.vlgmr.msra.gmra.mrb[0].mxu0 %v645_v23 }
  0x2b   :  { %v249_v25 = vld [vmem:[#allocation2 + $0x8] sm:$0xff] }
  0x2c   :  { %v647_v26 = vcombine.low %v249_v25, %v249_v25  ;;  %v648_v27 = vcombine.high %v249_v25, %v249_v25 }
  0x2e   :  { %599 = vmatprep.mubr.bf16.mxu1 %v648_v27 }
  0x2f   :  { %600 = vmatmul.mubr.bf16.vlgmr.msra.gmra.mrb[0].mxu1 %v647_v26 }
  0xfb   :  { %v697_v28 = vpop.f32.mrb[0].mxu0 }
  0xfc   :  { %v698_v29 = vpop.f32.mrb[1].mxu0 }
  0xfd   :  { %v699_v30 = vadd.f32 %v698_v29, %v697_v28  ;;  %v700_v31 = vpop.f32.mrb[2].mxu0 }
  0xfe   :  { %v701_v33 = vpop.f32.mrb[3].mxu0 }
  0xff   :  { %v562_v35 = vadd.f32 %v699_v30, %v644_v32 }
 0x102   :  { %v719_v34 = vpop.f32.mrb[0].mxu1 }
 0x103   :  { %v720_v36 = vpop.f32.mrb[1].mxu1 }
 0x104   :  { %v721_v37 = vadd.f32 %v720_v36, %v719_v34  ;;  %v722_v38 = vpop.f32.mrb[2].mxu1 }
 0x105   :  { %v723_v39 = vpop.f32.mrb[3].mxu1 }
 0x106   :  { %v602_v40 = vadd.f32 %v721_v37, %v562_v35 }
 0x108   :  { %vm607_vm0 = vcmp.ge.f32.partialorder %v602_v40, 0.0  ;;  %v608_v41 = vmul.f32 0.2, %v602_v40 }
 0x10a   :  { %v609_v42 = vsel %vm607_vm0, %v602_v40, %v608_v41 }
 0x10b   :  { %v610_v43 = vpack.c.bf16 %v609_v42, %v609_v42 }
 0x10d   :  { %611 = vst [vmem:[%s930_s3] sm:$0xf] %v610_v43 }

// kernel: discriminator_forward.7
= control target key start
LH: loop header
LB: loop body
LE: loop exit
PB: predicated region body
PF: predicated region fallthrough
CT: control target
= control target key end

     0   :  { %s1184_s1 = inlined_call_operand.vmem [shape: bf16[512,128], index: 1, kind: input, shape index: {}]   ;;  %s1185_s0 = inlined_call_operand.vmem [shape: bf16[2,5,5,128], index: 0, kind: input, shape index: {}]   ;;  %s1186_s2 = inlined_call_operand.vmem [shape: f32[1,128], index: 2, kind: input, shape index: {}]   ;;  %s1187_s3 = inlined_call_operand.vmem [shape: bf16[32,128], index: 3, kind: output, shape index: {}]  }
   0x1   :  { %v903_v0 = vld [vmem:[%s1184_s1 + $0x40] sm:$0xff]   ;;  %v907_v4 = vld [vmem:[%s1184_s1 + $0x48] sm:$0xff]   ;;  %v911_v8 = vld [vmem:[%s1184_s1 + $0x50] sm:$0xff]  }
   0x2   :  { %v904_v1 = vld [vmem:[%s1184_s1 + $0xc0] sm:$0xff]   ;;  %847 = vmatprep.subr.bf16.mxu0 %v903_v0  ;;  %v908_v5 = vld [vmem:[%s1184_s1 + $0xc8] sm:$0xff]   ;;  %v912_v9 = vld [vmem:[%s1184_s1 + $0xd0] sm:$0xff]  }
   0x3   :  { %v905_v2 = vld [vmem:[%s1184_s1] sm:$0xff]   ;;  %875 = vmatprep.subr.bf16.mxu1 %v904_v1  ;;  %v909_v6 = vld [vmem:[%s1184_s1 + $0x8] sm:$0xff]   ;;  %v913_v10 = vld [vmem:[%s1184_s1 + $0x10] sm:$0xff]  }
   0x4   :  { %v906_v3 = vld [vmem:[%s1184_s1 + $0x80] sm:$0xff]   ;;  %848 = vmatpush3.bf16.msra.mxu0 %v905_v2  ;;  %v910_v7 = vld [vmem:[%s1184_s1 + $0x88] sm:$0xff]   ;;  %v914_v11 = vld [vmem:[%s1184_s1 + $0x90] sm:$0xff]  }
   0x5   :  { %876 = vmatpush3.bf16.msra.mxu1 %v906_v3  ;;  %849 = vmatprep.subr.bf16.mxu0 %v907_v4  ;;  %v915_v12 = vld [vmem:[%s1184_s1 + $0x58] sm:$0xff]   ;;  %v919_v16 = vld [vmem:[%s1184_s1 + $0x60] sm:$0xff]   ;;  %v923_v20 = vld [vmem:[%s1184_s1 + $0x68] sm:$0xff]  }
   0x6   :  { %877 = vmatprep.subr.bf16.mxu1 %v908_v5  ;;  %v916_v13 = vld [vmem:[%s1184_s1 + $0xd8] sm:$0xff]   ;;  %v920_v17 = vld [vmem:[%s1184_s1 + $0xe0] sm:$0xff]   ;;  %v924_v21 = vld [vmem:[%s1184_s1 + $0xe8] sm:$0xff]  }
   0x7   :  { %v917_v14 = vld [vmem:[%s1184_s1 + $0x18] sm:$0xff]   ;;  %v921_v18 = vld [vmem:[%s1184_s1 + $0x20] sm:$0xff]   ;;  %v925_v22 = vld [vmem:[%s1184_s1 + $0x28] sm:$0xff]  }
   0x8   :  { %850 = vmatpush3.bf16.msra.mxu0 %v909_v6  ;;  %v918_v15 = vld [vmem:[%s1184_s1 + $0x98] sm:$0xff]   ;;  %v922_v19 = vld [vmem:[%s1184_s1 + $0xa0] sm:$0xff]   ;;  %v926_v23 = vld [vmem:[%s1184_s1 + $0xa8] sm:$0xff]  }
   0x9   :  { %878 = vmatpush3.bf16.msra.mxu1 %v910_v7  ;;  %851 = vmatprep.subr.bf16.mxu0 %v911_v8  ;;  %v927_v24 = vld [vmem:[%s1184_s1 + $0x70] sm:$0xff]   ;;  %v931_v28 = vld [vmem:[%s1184_s1 + $0x78] sm:$0xff]   ;;  %v935_v32 = vld [vmem:[%s1185_s0] ss:$0 sps:$4 sm:$0x77]  }
   0xa   :  { %879 = vmatprep.subr.bf16.mxu1 %v912_v9  ;;  %v928_v25 = vld [vmem:[%s1184_s1 + $0xf0] sm:$0xff]   ;;  %v932_v29 = vld [vmem:[%s1184_s1 + $0xf8] sm:$0xff]   ;;  %v936_v33 = vld [vmem:[%s1185_s0 + $0x4] ss:$0 sps:$4 sm:$0x77]   ;;  %v71_v34 = vshrl.u32 %v935_v32, 16 }
   0xb   :  { %v929_v26 = vld [vmem:[%s1184_s1 + $0x30] sm:$0xff]   ;;  %v933_v30 = vld [vmem:[%s1184_s1 + $0x38] sm:$0xff]   ;;  %v73_v35 = vshll.u32 %v935_v32, 16  ;;  %v84_v36 = vshrl.u32 %v936_v33, 16  ;;  %v87_v37 = vshll.u32 %v936_v33, 16 }
   0xc   :  { %852 = vmatpush3.bf16.msra.mxu0 %v913_v10  ;;  %v930_v27 = vld [vmem:[%s1184_s1 + $0xb0] sm:$0xff]   ;;  %v934_v31 = vld [vmem:[%s1184_s1 + $0xb8] sm:$0xff]   ;;  %v937_v38 = vld [vmem:[%s1185_s0 + $0x8] ss:$0 sps:$4 sm:$0x77]  }
   0xd   :  { %880 = vmatpush3.bf16.msra.mxu1 %v914_v11  ;;  %853 = vmatprep.subr.bf16.mxu0 %v915_v12  ;;  %v75_v39 = vrot.slane %v73_v35, 1  ;;  %v938_v40 = vld [vmem:[%s1185_s0 + $0xc] ss:$0 sps:$4 sm:$0x77]   ;;  %v86_v41 = vrot.slane %v84_v36, 6  ;;  %v89_v42 = vrot.slane %v87_v37, 7 }
   0xe   :  { %881 = vmatprep.subr.bf16.mxu1 %v916_v13  ;;  %v98_v43 = vshrl.u32 %v937_v38, 16  ;;  %v101_v44 = vshll.u32 %v937_v38, 16  ;;  %v112_v46 = vshrl.u32 %v938_v40, 16  ;;  %v115_v47 = vshll.u32 %v938_v40, 16  ;;  %v15_v4 = vld [vmem:[%s1185_s0] sm:$0x3] }
   0xf   :  { %v76_v45 = vor.u32 %v75_v39, %v71_v34  ;;  %v939_v48 = vld [vmem:[%s1185_s0 + $0x4] ss:$0 sps:$4 sm:$0x77]   ;;  %v90_v49 = vor.u32 %v89_v42, %v86_v41  ;;  %v940_v52 = vld [vmem:[%s1185_s0 + $0x8] ss:$0 sps:$4 sm:$0x77]  }
  0x10   :  { %854 = vmatpush3.bf16.msra.mxu0 %v917_v14  ;;  %v100_v50 = vrot.slane %v98_v43, 4  ;;  %v103_v51 = vrot.slane %v101_v44, 5  ;;  %v114_v53 = vrot.slane %v112_v46, 2  ;;  %v117_v54 = vrot.slane %v115_v47, 3  ;;  %16 = vst [vmem:[#allocation2] sm:$0x3] %v15_v4 }
  0x11   :  { %882 = vmatpush3.bf16.msra.mxu1 %v918_v15  ;;  %855 = vmatprep.subr.bf16.mxu0 %v919_v16  ;;  %78 = vst [vmem:[#allocation2 + $0x8] sm:$0x3] %v76_v45  ;;  %v227_v55 = vshrl.u32 %v939_v48, 16  ;;  %v229_v56 = vshll.u32 %v939_v48, 16  ;;  %92 = vst [vmem:[#allocation2 + $0x8] sm:$0xc] %v90_v49 }
  0x12   :  { %883 = vmatprep.subr.bf16.mxu1 %v920_v17  ;;  %v104_v57 = vor.u32 %v103_v51, %v100_v50  ;;  %v240_v58 = vshrl.u32 %v940_v52, 16  ;;  %v243_v59 = vshll.u32 %v940_v52, 16  ;;  %v941_v60 = vld [vmem:[%s1185_s0 + $0xc] ss:$0 sps:$4 sm:$0x77]   ;;  %v118_v61 = vor.u32 %v117_v54, %v114_v53 }
  0x13   :  { %v231_v62 = vrot.slane %v229_v56, 1  ;;  %v942_v63 = vld [vmem:[%s1185_s0 + $0x10] ss:$0 sps:$4 sm:$0x77]   ;;  %v254_v2 = vshrl.u32 %v941_v60, 16  ;;  %v257_v3 = vshll.u32 %v941_v60, 16 }
  0x14   :  { %856 = vmatpush3.bf16.msra.mxu0 %v921_v18  ;;  %106 = vst [vmem:[#allocation2 + $0x8] sm:$0x30] %v104_v57  ;;  %v242_v0 = vrot.slane %v240_v58, 6  ;;  %v245_v1 = vrot.slane %v243_v59, 7  ;;  %120 = vst [vmem:[#allocation2 + $0x8] sm:$0xc0] %v118_v61 }
  0x15   :  { %884 = vmatpush3.bf16.msra.mxu1 %v922_v19  ;;  %857 = vmatprep.subr.bf16.mxu0 %v923_v20  ;;  %v232_v5 = vor.u32 %v231_v62, %v227_v55  ;;  %v268_v6 = vshrl.u32 %v942_v63, 16  ;;  %v271_v7 = vshll.u32 %v942_v63, 16  ;;  %v256_v9 = vrot.slane %v254_v2, 4  ;;  %v943_v11 = vld [vmem:[%s1185_s0 + $0x4] ss:$0 sps:$4 sm:$0x33]  }
  0x16   :  { %885 = vmatprep.subr.bf16.mxu1 %v924_v21  ;;  %v246_v8 = vor.u32 %v245_v1, %v242_v0  ;;  %v259_v10 = vrot.slane %v257_v3, 5  ;;  %v944_v14 = vld [vmem:[%s1185_s0 + $0x8] ss:$0 sps:$4 sm:$0x33]   ;;  %v22_v16 = vrot.slane %v943_v11, 6 }
  0x17   :  { %234 = vst [vmem:[#allocation2 + $0x18] sm:$0x3] %v232_v5  ;;  %v270_v12 = vrot.slane %v268_v6, 2  ;;  %v273_v13 = vrot.slane %v271_v7, 3  ;;  %31 = vst [vmem:[#allocation2] sm:$0x30] %v944_v14 }
  0x18   :  { %858 = vmatpush3.bf16.msra.mxu0 %v925_v22  ;;  %248 = vst [vmem:[#allocation2 + $0x18] sm:$0xc] %v246_v8  ;;  %v260_v15 = vor.u32 %v259_v10, %v256_v9  ;;  %v945_v17 = vld [vmem:[%s1185_s0 + $0xc] ss:$0 sps:$4 sm:$0x33]  }
  0x19   :  { %886 = vmatpush3.bf16.msra.mxu1 %v926_v23  ;;  %859 = vmatprep.subr.bf16.mxu0 %v927_v24  ;;  %v274_v18 = vor.u32 %v273_v13, %v270_v12  ;;  %v765_v19 = vld [vmem:[%s1185_s0 + $0x4] sm:$0x3]  ;;  %24 = vst [vmem:[#allocation2] sm:$0xc] %v22_v16  ;;  %v37_v20 = vrot.slane %v945_v17, 2 }
  0x1a   :  { %887 = vmatprep.subr.bf16.mxu1 %v928_v25  ;;  %262 = vst [vmem:[#allocation2 + $0x18] sm:$0x30] %v260_v15  ;;  %177 = vst [vmem:[#allocation2 + $0x10] sm:$0x3] %v765_v19  ;;  %v743_v0 = vld [vmem:[%s1185_s0 + $0x14] sm:$0x3] }
  0x1b   :  { %v946_v21 = vld [vmem:[%s1185_s0 + $0x8] ss:$0 sps:$4 sm:$0x33]   ;;  %276 = vst [vmem:[#allocation2 + $0x18] sm:$0xc0] %v274_v18 }
  0x1c   :  { %860 = vmatpush3.bf16.msra.mxu0 %v929_v26  ;;  %v947_v22 = vld [vmem:[%s1185_s0 + $0xc] ss:$0 sps:$4 sm:$0x33]   ;;  %v948_v23 = vld [vmem:[%s1185_s0 + $0x10] ss:$0 sps:$4 sm:$0x33]  }
  0x1d   :  { %888 = vmatpush3.bf16.msra.mxu1 %v930_v27  ;;  %861 = vmatprep.subr.bf16.mxu0 %v931_v28  ;;  %v333_v24 = vld [vmem:[#allocation2 + $0x8] sm:$0xff]  ;;  %39 = vst [vmem:[#allocation2] sm:$0xc0] %v37_v20  ;;  %v182_v25 = vrot.slane %v946_v21, 6  ;;  %190 = vst [vmem:[#allocation2 + $0x10] sm:$0x30] %v947_v22 }
  0x1e   :  { %889 = vmatprep.subr.bf16.mxu1 %v932_v29  ;;  %635 = vmatprep.mubr.bf16.mxu0 %v333_v24  ;;  %v196_v26 = vrot.slane %v948_v23, 2  ;;  %v949_v27 = vld [vmem:[%s1185_s0 + $0x14] ss:$0 sps:$4 sm:$0x77]   ;;  %42 = vst [vmem:[#allocation2 + $0x20] sm:$0x3] %v743_v0 }
  0x1f   :  { %184 = vst [vmem:[#allocation2 + $0x10] sm:$0xc] %v182_v25  ;;  %v950_v28 = vld [vmem:[%s1185_s0 + $0x18] ss:$0 sps:$4 sm:$0x77]  }
  0x20   :  { %862 = vmatpush3.bf16.msra.mxu0 %v933_v30  ;;  %v951_v29 = vld [vmem:[%s1185_s0 + $0x1c] ss:$0 sps:$4 sm:$0x77]   ;;  %198 = vst [vmem:[#allocation2 + $0x10] sm:$0xc0] %v196_v26  ;;  %v126_v30 = vshrl.u32 %v949_v27, 16 }
  0x21   :  { %890 = vmatpush3.bf16.msra.mxu1 %v934_v31  ;;  %v128_v31 = vshll.u32 %v949_v27, 16  ;;  %v139_v32 = vshrl.u32 %v950_v28, 16  ;;  %v142_v33 = vshll.u32 %v950_v28, 16  ;;  %v153_v34 = vshrl.u32 %v951_v29, 16  ;;  %v772_v16 = vld [vmem:[%s1185_s0 + $0x18] sm:$0x3] }
  0x22   :  { %v156_v35 = vshll.u32 %v951_v29, 16  ;;  %v952_v37 = vld [vmem:[%s1185_s0 + $0x20] ss:$0 sps:$4 sm:$0x77]   ;;  %v335_v38 = vld [vmem:[#allocation2 + $0x18] sm:$0xff] }
  0x23   :  { %v130_v36 = vrot.slane %v128_v31, 1  ;;  %v141_v39 = vrot.slane %v139_v32, 6  ;;  %v144_v40 = vrot.slane %v142_v33, 7  ;;  %v155_v41 = vrot.slane %v153_v34, 4  ;;  %684 = vmatprep.mubr.bf16.mxu1 %v335_v38  ;;  %200 = vst [vmem:[#allocation2 + $0x30] sm:$0x3] %v772_v16 }
  0x24   :  { %v158_v42 = vrot.slane %v156_v35, 5  ;;  %v332_v43 = vld [vmem:[#allocation2] sm:$0xff]  ;;  %v167_v45 = vshrl.u32 %v952_v37, 16  ;;  %v170_v46 = vshll.u32 %v952_v37, 16 }
  0x25   :  { %v131_v44 = vor.u32 %v130_v36, %v126_v30  ;;  %v953_v47 = vld [vmem:[%s1185_s0 + $0x18] ss:$0 sps:$4 sm:$0x77]   ;;  %636 = vmatmul.mubr.bf16.vlgmr.msra.gmra.mrb[0].mxu0 %v332_v43  ;;  %v145_v48 = vor.u32 %v144_v40, %v141_v39  ;;  %v954_v50 = vld [vmem:[%s1185_s0 + $0x1c] ss:$0 sps:$4 sm:$0x77]  }
  0x26   :  { %v159_v49 = vor.u32 %v158_v42, %v155_v41  ;;  %v955_v51 = vld [vmem:[%s1185_s0 + $0x20] ss:$0 sps:$4 sm:$0x77]   ;;  %v169_v52 = vrot.slane %v167_v45, 2  ;;  %v172_v53 = vrot.slane %v170_v46, 3  ;;  %v282_v54 = vshrl.u32 %v953_v47, 16 }
  0x27   :  { %133 = vst [vmem:[#allocation2 + $0x28] sm:$0x3] %v131_v44  ;;  %v284_v55 = vshll.u32 %v953_v47, 16  ;;  %v334_v56 = vld [vmem:[#allocation2 + $0x10] sm:$0xff]  ;;  %147 = vst [vmem:[#allocation2 + $0x28] sm:$0xc] %v145_v48 }
  0x28   :  { %161 = vst [vmem:[#allocation2 + $0x28] sm:$0x30] %v159_v49  ;;  %v295_v57 = vshrl.u32 %v954_v50, 16  ;;  %v298_v58 = vshll.u32 %v954_v50, 16  ;;  %v309_v59 = vshrl.u32 %v955_v51, 16  ;;  %v312_v60 = vshll.u32 %v955_v51, 16  ;;  %685 = vmatmul.mubr.bf16.vlgmr.msra.gmra.mrb[0].mxu1 %v334_v56 }
  0x29   :  { %v173_v61 = vor.u32 %v172_v53, %v169_v52  ;;  %v286_v62 = vrot.slane %v284_v55, 1  ;;  %v956_v63 = vld [vmem:[%s1185_s0 + $0x24] ss:$0 sps:$4 sm:$0x77]   ;;  %v795_v29 = vld [vmem:[%s1186_s2] ss:$0 sm:$0xff] }
  0x2a   :  { %v297_v1 = vrot.slane %v295_v57, 6  ;;  %v300_v2 = vrot.slane %v298_v58, 7  ;;  %v311_v3 = vrot.slane %v309_v59, 4  ;;  %v314_v4 = vrot.slane %v312_v60, 5 }
  0x2b   :  { %175 = vst [vmem:[#allocation2 + $0x28] sm:$0xc0] %v173_v61  ;;  %v287_v5 = vor.u32 %v286_v62, %v282_v54  ;;  %v323_v6 = vshrl.u32 %v956_v63, 16  ;;  %v326_v7 = vshll.u32 %v956_v63, 16 }
  0x2c   :  { %v957_v8 = vld [vmem:[%s1185_s0 + $0x18] ss:$0 sps:$4 sm:$0x33]   ;;  %v301_v9 = vor.u32 %v300_v2, %v297_v1  ;;  %v315_v10 = vor.u32 %v314_v4, %v311_v3  ;;  %v958_v11 = vld [vmem:[%s1185_s0 + $0x1c] ss:$0 sps:$4 sm:$0x33]  }
  0x2d   :  { %289 = vst [vmem:[#allocation2 + $0x38] sm:$0x3] %v287_v5  ;;  %v325_v12 = vrot.slane %v323_v6, 2  ;;  %v328_v13 = vrot.slane %v326_v7, 3  ;;  %v48_v14 = vrot.slane %v957_v8, 6 }
  0x2e   :  { %303 = vst [vmem:[#allocation2 + $0x38] sm:$0xc] %v301_v9  ;;  %317 = vst [vmem:[#allocation2 + $0x38] sm:$0x30] %v315_v10 }
  0x2f   :  { %57 = vst [vmem:[#allocation2 + $0x20] sm:$0x30] %v958_v11  ;;  %v959_v15 = vld [vmem:[%s1185_s0 + $0x20] ss:$0 sps:$4 sm:$0x33]   ;;  %v329_v17 = vor.u32 %v328_v13, %v325_v12 }
  0x30   :  { %50 = vst [vmem:[#allocation2 + $0x20] sm:$0xc] %v48_v14  ;;  %v960_v18 = vld [vmem:[%s1185_s0 + $0x1c] ss:$0 sps:$4 sm:$0x33]   ;;  %v63_v19 = vrot.slane %v959_v15, 2 }
  0x31   :  { %v961_v20 = vld [vmem:[%s1185_s0 + $0x20] ss:$0 sps:$4 sm:$0x33]   ;;  %331 = vst [vmem:[#allocation2 + $0x38] sm:$0xc0] %v329_v17  ;;  %v205_v21 = vrot.slane %v960_v18, 6 }
  0x32   :  { %v962_v22 = vld [vmem:[%s1185_s0 + $0x24] ss:$0 sps:$4 sm:$0x33]   ;;  %v337_v23 = vld [vmem:[#allocation2 + $0x28] sm:$0xff]  ;;  %65 = vst [vmem:[#allocation2 + $0x20] sm:$0xc0] %v63_v19 }
  0x33   :  { %213 = vst [vmem:[#allocation2 + $0x30] sm:$0x30] %v961_v20  ;;  %643 = vmatprep.mubr.bf16.mxu0 %v337_v23  ;;  %207 = vst [vmem:[#allocation2 + $0x30] sm:$0xc] %v205_v21  ;;  %v219_v24 = vrot.slane %v962_v22, 2 }
  0x35   :  { %221 = vst [vmem:[#allocation2 + $0x30] sm:$0xc0] %v219_v24 }
  0x38   :  { %v339_v25 = vld [vmem:[#allocation2 + $0x38] sm:$0xff] }
  0x39   :  { %692 = vmatprep.mubr.bf16.mxu1 %v339_v25  ;;  %v336_v26 = vld [vmem:[#allocation2 + $0x20] sm:$0xff] }
  0x3a   :  { %644 = vmatmul.mubr.bf16.gmra.mrb[4].mxu0 %v336_v26 }
  0x3c   :  { %v338_v27 = vld [vmem:[#allocation2 + $0x30] sm:$0xff] }
  0x3d   :  { %693 = vmatmul.mubr.bf16.gmra.mrb[4].mxu1 %v338_v27 }
  0xf8   :  { %v863_v28 = vpop.f32.mrb[0].mxu0 }
  0xf9   :  { %v864_v30 = vpop.f32.mrb[1].mxu0 }
  0xfa   :  { %v865_v31 = vadd.f32 %v864_v30, %v863_v28  ;;  %v866_v32 = vpop.f32.mrb[2].mxu0 }
  0xfb   :  { %v891_v33 = vpop.f32.mrb[0].mxu1  ;;  %v867_v34 = vpop.f32.mrb[3].mxu0 }
  0xfc   :  { %v638_v35 = vadd.f32 %v865_v31, %v795_v29  ;;  %v892_v36 = vpop.f32.mrb[1].mxu1  ;;  %v868_v37 = vadd.f32 %v867_v34, %v866_v32 }
  0xfd   :  { %v893_v38 = vadd.f32 %v892_v36, %v891_v33  ;;  %v894_v39 = vpop.f32.mrb[2].mxu1 }
  0xfe   :  { %v641_v40 = vadd.f32 %v868_v37, %v795_v29  ;;  %v895_v41 = vpop.f32.mrb[3].mxu1 }
  0xff   :  { %v687_v42 = vadd.f32 %v893_v38, %v638_v35  ;;  %v896_v43 = vadd.f32 %v895_v41, %v894_v39 }
 0x101   :  { %v705_v44 = vmul.f32 0.2, %v687_v42  ;;  %v690_v45 = vadd.f32 %v896_v43, %v641_v40  ;;  %vm701_vm0 = vcmp.ge.f32.partialorder %v687_v42, 0.0 }
 0x103   :  { %vm702_vm1 = vcmp.ge.f32.partialorder %v690_v45, 0.0  ;;  %v706_v46 = vmul.f32 0.2, %v690_v45  ;;  %v709_v47 = vsel %vm701_vm0, %v687_v42, %v705_v44 }
 0x105   :  { %v710_v48 = vsel %vm702_vm1, %v690_v45, %v706_v46 }
 0x106   :  { %v839_v49 = vpack.c.bf16 %v710_v48, %v709_v47 }
 0x108   :  { %840 = vst [vmem:[%s1187_s3] sm:$0xff] %v839_v49  }
 0x10d   :  { %v869_v50 = vpop.f32.mrb[4].mxu0 }
 0x10e   :  { %v870_v51 = vpop.f32.mrb[5].mxu0 }
 0x10f   :  { %v871_v52 = vadd.f32 %v870_v51, %v869_v50  ;;  %v872_v53 = vpop.f32.mrb[6].mxu0 }
 0x110   :  { %v897_v54 = vpop.f32.mrb[4].mxu1  ;;  %v873_v55 = vpop.f32.mrb[7].mxu0 }
 0x111   :  { %v646_v56 = vadd.f32 %v871_v52, %v795_v29  ;;  %v898_v57 = vpop.f32.mrb[5].mxu1  ;;  %v874_v58 = vadd.f32 %v873_v55, %v872_v53 }
 0x112   :  { %v899_v59 = vadd.f32 %v898_v57, %v897_v54  ;;  %v900_v60 = vpop.f32.mrb[6].mxu1 }
 0x113   :  { %v649_v61 = vadd.f32 %v874_v58, %v795_v29  ;;  %v901_v62 = vpop.f32.mrb[7].mxu1 }
 0x114   :  { %v695_v63 = vadd.f32 %v899_v59, %v646_v56  ;;  %v902_v0 = vadd.f32 %v901_v62, %v900_v60 }
 0x116   :  { %v707_v1 = vmul.f32 0.2, %v695_v63  ;;  %v698_v2 = vadd.f32 %v902_v0, %v649_v61  ;;  %vm703_vm2 = vcmp.ge.f32.partialorder %v695_v63, 0.0 }
 0x118   :  { %vm704_vm3 = vcmp.ge.f32.partialorder %v698_v2, 0.0  ;;  %v708_v3 = vmul.f32 0.2, %v698_v2  ;;  %v711_v4 = vsel %vm703_vm2, %v695_v63, %v707_v1 }
 0x11a   :  { %v712_v5 = vsel %vm704_vm3, %v698_v2, %v708_v3 }
 0x11b   :  { %v844_v6 = vpack.c.bf16 %v712_v5, %v711_v4 }
 0x11d   :  { %846 = vst [vmem:[%s1187_s3 + $0x8] sm:$0xff] %v844_v6  }

// kernel: discriminator_forward.9
= control target key start
LH: loop header
LB: loop body
LE: loop exit
PB: predicated region body
PF: predicated region fallthrough
CT: control target
= control target key end

     0   :  { %vm17_vm0 = vsmask.f32 256  ;;  %vm20_vm1 = vsmask.f32 1280  ;;  %vm16_vm2 = vcmask 1040384   ;;  %vm19_vm3 = vcmask 1041409   ;;  %s1344_s1 = inlined_call_operand.vmem [shape: bf16[1024,128], index: 1, kind: input, shape index: {}]   ;;  %s1345_s0 = inlined_call_operand.vmem [shape: bf16[2,2,2,256], index: 0, kind: input, shape index: {}]   ;;  %s1346_s2 = inlined_call_operand.vmem [shape: f32[1,128], index: 2, kind: input, shape index: {}]   ;;  %s1347_s3 = inlined_call_operand.vmem [shape: f32[2,128], index: 3, kind: output, shape index: {}]  }
   0x1   :  { %v987_v0 = vld [vmem:[%s1344_s1 + $0x40] sm:$0xff]   ;;  %v991_v4 = vld [vmem:[%s1344_s1 + $0x48] sm:$0xff]   ;;  %v995_v8 = vld [vmem:[%s1344_s1 + $0x50] sm:$0xff]   ;;  %vm32_vm6 = vsmask.f32 7938 }
   0x2   :  { %v988_v1 = vld [vmem:[%s1344_s1 + $0xc0] sm:$0xff]   ;;  %898 = vmatprep.subr.bf16.mxu0 %v987_v0  ;;  %v992_v5 = vld [vmem:[%s1344_s1 + $0xc8] sm:$0xff]   ;;  %v996_v9 = vld [vmem:[%s1344_s1 + $0xd0] sm:$0xff]   ;;  %vm34_vm8 = vsmask.f32 7942 }
   0x3   :  { %v989_v2 = vld [vmem:[%s1344_s1] sm:$0xff]   ;;  %920 = vmatprep.subr.bf16.mxu1 %v988_v1  ;;  %v993_v6 = vld [vmem:[%s1344_s1 + $0x8] sm:$0xff]   ;;  %v997_v10 = vld [vmem:[%s1344_s1 + $0x10] sm:$0xff]   ;;  %v1052_v63 = vmov 1966171168   ;;  %v223_v1 = vlaneseq }
   0x4   :  { %v990_v3 = vld [vmem:[%s1344_s1 + $0x80] sm:$0xff]   ;;  %899 = vmatpush3.bf16.msra.mxu0 %v989_v2  ;;  %v994_v7 = vld [vmem:[%s1344_s1 + $0x88] sm:$0xff]   ;;  %v998_v11 = vld [vmem:[%s1344_s1 + $0x90] sm:$0xff]   ;;  %v221_v0 = vunpack.c.l.s4 %v1052_v63 }
   0x5   :  { %921 = vmatpush3.bf16.msra.mxu1 %v990_v3  ;;  %900 = vmatprep.subr.bf16.mxu0 %v991_v4  ;;  %v999_v12 = vld [vmem:[%s1344_s1 + $0x58] sm:$0xff]   ;;  %v1003_v16 = vld [vmem:[%s1344_s1 + $0x60] sm:$0xff]   ;;  %v1007_v20 = vld [vmem:[%s1344_s1 + $0x68] sm:$0xff]  }
   0x6   :  { %922 = vmatprep.subr.bf16.mxu1 %v992_v5  ;;  %v1000_v13 = vld [vmem:[%s1344_s1 + $0xd8] sm:$0xff]   ;;  %v1004_v17 = vld [vmem:[%s1344_s1 + $0xe0] sm:$0xff]   ;;  %v1008_v21 = vld [vmem:[%s1344_s1 + $0xe8] sm:$0xff]   ;;  %v222_v4 = vunpack.c.0.s8 %v221_v0  ;;  %v224_v5 = vshrl.u32 %v223_v1, 7 }
   0x7   :  { %v1001_v14 = vld [vmem:[%s1344_s1 + $0x18] sm:$0xff]   ;;  %v1005_v18 = vld [vmem:[%s1344_s1 + $0x20] sm:$0xff]   ;;  %v1009_v22 = vld [vmem:[%s1344_s1 + $0x28] sm:$0xff]  }
   0x8   :  { %901 = vmatpush3.bf16.msra.mxu0 %v993_v6  ;;  %v1002_v15 = vld [vmem:[%s1344_s1 + $0x98] sm:$0xff]   ;;  %v1006_v19 = vld [vmem:[%s1344_s1 + $0xa0] sm:$0xff]   ;;  %v1010_v23 = vld [vmem:[%s1344_s1 + $0xa8] sm:$0xff]   ;;  %v1235_v6 = vsub.s32 %v222_v4, %v224_v5 }
   0x9   :  { %923 = vmatpush3.bf16.msra.mxu1 %v994_v7  ;;  %902 = vmatprep.subr.bf16.mxu0 %v995_v8  ;;  %v1011_v24 = vld [vmem:[%s1344_s1 + $0x70] sm:$0xff]   ;;  %v1015_v28 = vld [vmem:[%s1344_s1 + $0x78] sm:$0xff]   ;;  %v15_v32 = vld [vmem:[%s1345_s0] sm:$0x3] }
   0xa   :  { %924 = vmatprep.subr.bf16.mxu1 %v996_v9  ;;  %v1012_v25 = vld [vmem:[%s1344_s1 + $0xf0] sm:$0xff]   ;;  %v1016_v29 = vld [vmem:[%s1344_s1 + $0xf8] sm:$0xff]   ;;  %vm18_vm4 = vmand %vm16_vm2, %vm17_vm0 }
   0xb   :  { %v1013_v26 = vld [vmem:[%s1344_s1 + $0x30] sm:$0xff]   ;;  %v1017_v30 = vld [vmem:[%s1344_s1 + $0x38] sm:$0xff]   ;;  %v23_v33 = vld [vmem:[#allocation2] sm:$0x3] }
   0xc   :  { %903 = vmatpush3.bf16.msra.mxu0 %v997_v10  ;;  %v1014_v27 = vld [vmem:[%s1344_s1 + $0xb0] sm:$0xff]   ;;  %v1018_v31 = vld [vmem:[%s1344_s1 + $0xb8] sm:$0xff]   ;;  %vm21_vm5 = vmand %vm19_vm3, %vm20_vm1 }
   0xd   :  { %925 = vmatpush3.bf16.msra.mxu1 %v998_v11  ;;  %904 = vmatprep.subr.bf16.mxu0 %v999_v12  ;;  %v40_v34 = vld [vmem:[%s1345_s0] sm:$0x3]  ;;  %vm1179_vm7 = vmor %vm21_vm5, %vm18_vm4  ;;  %v47_v37 = vld [vmem:[#allocation2 + $0x2] sm:$0x3] }
   0xe   :  { %926 = vmatprep.subr.bf16.mxu1 %v1000_v13  ;;  %v42_v36 = vshrl.u32 %v40_v34, 16  ;;  %v24_v38 = vsel %vm1179_vm7, %v15_v32, %v23_v33  ;;  %v828_v39 = vld [vmem:[%s1345_s0 + $0x2] sm:$0x3]  ;;  %v56_v40 = vld [vmem:[#allocation2 + $0x4] sm:$0x3]  ;;  %vm1192_vm9 = vmand %vm16_vm2, %vm32_vm6 }
   0xf   :  { %25 = vst [vmem:[#allocation2] sm:$0x3] %v24_v38  ;;  %v825_v41 = vld [vmem:[%s1345_s0 + $0x4] sm:$0x3]  ;;  %v57_v44 = vsel %vm1179_vm7, %v828_v39, %v56_v40  ;;  %v830_v45 = vld [vmem:[%s1345_s0 + $0x2] sm:$0x3]  ;;  %vm35_vm10 = vmand %vm19_vm3, %vm34_vm8 }
  0x10   :  { %905 = vmatpush3.bf16.msra.mxu0 %v1001_v14  ;;  %v48_v43 = vsel %vm1179_vm7, %v42_v36, %v47_v37  ;;  %58 = vst [vmem:[#allocation2 + $0x4] sm:$0x3] %v57_v44  ;;  %v829_v46 = vld [vmem:[%s1345_s0 + $0x6] sm:$0x3]  ;;  %v70_v47 = vshrl.u32 %v830_v45, 16  ;;  %v29_v50 = vshll.u32 %v825_v41, 16  ;;  %vm1220_vm11 = vmor %vm35_vm10, %vm1192_vm9 }
  0x11   :  { %927 = vmatpush3.bf16.msra.mxu1 %v1002_v15  ;;  %906 = vmatprep.subr.bf16.mxu0 %v1003_v16  ;;  %49 = vst [vmem:[#allocation2 + $0x2] sm:$0x3] %v48_v43  ;;  %v75_v48 = vld [vmem:[#allocation2 + $0x6] sm:$0x3]  ;;  %v827_v53 = vld [vmem:[%s1345_s0 + $0x4] sm:$0x3] }
  0x12   :  { %928 = vmatprep.subr.bf16.mxu1 %v1004_v17  ;;  %v1020_v49 = vld [vmem:[%s1344_s1 + $0x140] sm:$0xff]   ;;  %v76_v51 = vsel %vm1179_vm7, %v70_v47, %v75_v48  ;;  %v62_v55 = vshll.u32 %v829_v46, 16  ;;  %v1024_v17 = vld [vmem:[%s1344_s1 + $0x148] sm:$0xff]   ;;  %v1035_v33 = vld [vmem:[%s1344_s1 + $0x198] sm:$0xff]  }
  0x13   :  { %v1021_v52 = vld [vmem:[%s1344_s1 + $0x1c0] sm:$0xff]   ;;  %77 = vst [vmem:[#allocation2 + $0x6] sm:$0x3] %v76_v51  ;;  %v1040_v36 = vld [vmem:[%s1344_s1 + $0x168] sm:$0xff]   ;;  %v1044_v40 = vld [vmem:[%s1344_s1 + $0x170] sm:$0xff]  }
  0x14   :  { %907 = vmatpush3.bf16.msra.mxu0 %v1005_v18  ;;  %v832_v62 = vld [vmem:[%s1345_s0 + $0x6] sm:$0x3]  ;;  %v1041_v38 = vld [vmem:[%s1344_s1 + $0x1e8] sm:$0xff]   ;;  %v1045_v42 = vld [vmem:[%s1344_s1 + $0x1f0] sm:$0xff]  }
  0x15   :  { %929 = vmatpush3.bf16.msra.mxu1 %v1006_v19  ;;  %908 = vmatprep.subr.bf16.mxu0 %v1007_v20  ;;  %v1022_v14 = vld [vmem:[%s1344_s1 + $0x100] sm:$0xff]   ;;  %v1042_v39 = vld [vmem:[%s1344_s1 + $0x128] sm:$0xff]   ;;  %v1046_v43 = vld [vmem:[%s1344_s1 + $0x130] sm:$0xff]  }
  0x16   :  { %930 = vmatprep.subr.bf16.mxu1 %v1008_v21  ;;  %v37_v56 = vld [vmem:[#allocation2] sm:$0x3]  ;;  %v1025_v21 = vld [vmem:[%s1344_s1 + $0x1c8] sm:$0xff]   ;;  %v1048_v44 = vld [vmem:[%s1344_s1 + $0x178] sm:$0xff]  }
  0x17   :  { %v38_v57 = vsel %vm1220_vm11, %v29_v50, %v37_v56  ;;  %v65_v59 = vld [vmem:[#allocation2 + $0x4] sm:$0x3]  ;;  %v1043_v41 = vld [vmem:[%s1344_s1 + $0x1a8] sm:$0xff]   ;;  %v1047_v45 = vld [vmem:[%s1344_s1 + $0x1b0] sm:$0xff]  }
  0x18   :  { %909 = vmatpush3.bf16.msra.mxu0 %v1009_v22  ;;  %v51_v58 = vld [vmem:[#allocation2 + $0x2] sm:$0x3]  ;;  %39 = vst [vmem:[#allocation2] sm:$0x3] %v38_v57  ;;  %v66_v61 = vsel %vm1220_vm11, %v62_v55, %v65_v59  ;;  %v1026_v22 = vld [vmem:[%s1344_s1 + $0x108] sm:$0xff]   ;;  %v1049_v46 = vld [vmem:[%s1344_s1 + $0x1f8] sm:$0xff]  }
  0x19   :  { %931 = vmatpush3.bf16.msra.mxu1 %v1010_v23  ;;  %910 = vmatprep.subr.bf16.mxu0 %v1011_v24  ;;  %v52_v60 = vsel %vm1220_vm11, %v827_v53, %v51_v58  ;;  %67 = vst [vmem:[#allocation2 + $0x4] sm:$0x3] %v66_v61  ;;  %v1023_v19 = vld [vmem:[%s1344_s1 + $0x180] sm:$0xff]   ;;  %v1028_v24 = vld [vmem:[%s1344_s1 + $0x150] sm:$0xff]   ;;  %v1050_v47 = vld [vmem:[%s1344_s1 + $0x138] sm:$0xff]  }
  0x1a   :  { %932 = vmatprep.subr.bf16.mxu1 %v1012_v25  ;;  %53 = vst [vmem:[#allocation2 + $0x2] sm:$0x3] %v52_v60  ;;  %v79_v2 = vld [vmem:[#allocation2 + $0x6] sm:$0x3]  ;;  %v1027_v25 = vld [vmem:[%s1344_s1 + $0x188] sm:$0xff]  }
  0x1b   :  { %v80_v3 = vsel %vm1220_vm11, %v832_v62, %v79_v2  ;;  %v1036_v32 = vld [vmem:[%s1344_s1 + $0x160] sm:$0xff]  }
  0x1c   :  { %911 = vmatpush3.bf16.msra.mxu0 %v1013_v26  ;;  %81 = vst [vmem:[#allocation2 + $0x6] sm:$0x3] %v80_v3  ;;  %v1029_v26 = vld [vmem:[%s1344_s1 + $0x1d0] sm:$0xff]   ;;  %v1037_v34 = vld [vmem:[%s1344_s1 + $0x1e0] sm:$0xff]  }
  0x1d   :  { %933 = vmatpush3.bf16.msra.mxu1 %v1014_v27  ;;  %912 = vmatprep.subr.bf16.mxu0 %v1015_v28  ;;  %v1030_v27 = vld [vmem:[%s1344_s1 + $0x110] sm:$0xff]   ;;  %v1032_v28 = vld [vmem:[%s1344_s1 + $0x158] sm:$0xff]   ;;  %v1038_v35 = vld [vmem:[%s1344_s1 + $0x120] sm:$0xff]  }
  0x1e   :  { %934 = vmatprep.subr.bf16.mxu1 %v1016_v29  ;;  %v1031_v29 = vld [vmem:[%s1344_s1 + $0x190] sm:$0xff]   ;;  %v1039_v37 = vld [vmem:[%s1344_s1 + $0x1a0] sm:$0xff]  }
  0x20   :  { %913 = vmatpush3.bf16.msra.mxu0 %v1017_v30  ;;  %v1033_v30 = vld [vmem:[%s1344_s1 + $0x1d8] sm:$0xff]  }
  0x21   :  { %935 = vmatpush3.bf16.msra.mxu1 %v1018_v31  ;;  %942 = vmatprep.subr.bf16.mxu0 %v1020_v49  ;;  %v1034_v31 = vld [vmem:[%s1344_s1 + $0x118] sm:$0xff]  }
  0x22   :  { %964 = vmatprep.subr.bf16.mxu1 %v1021_v52  ;;  %v1051_v49 = vld [vmem:[%s1344_s1 + $0x1b8] sm:$0xff]   ;;  %v833_v52 = vld [vmem:[%s1346_s2] ss:$0 sm:$0xff] }
  0x23   :  { %v82_v7 = vld [vmem:[#allocation2] sm:$0xff] }
  0x24   :  { %v219_v8 = vcombine.high %v82_v7, %v82_v7  ;;  %v226_v9 = vrot.slane %v82_v7, %v1235_v6 }
  0x26   :  { %v234_v10 = vcombine.high %v226_v9, %v226_v9  ;;  %v242_v11 = vrot.slane %v226_v9, %v1235_v6  ;;  %v1240_v12 = vrot.slane %v219_v8, %v1235_v6 }
  0x28   :  { %v256_v13 = vrot.slane %v234_v10, %v1235_v6  ;;  %v235_v15 = vcombine.high %v1240_v12, %v1240_v12  ;;  %v264_v16 = vcombine.high %v242_v11, %v242_v11  ;;  %v249_v48 = vrot.slane %v1240_v12, %v1235_v6 }
  0x2a   :  { %692 = vmatprep.mubr.bf16.mxu0 %v256_v13  ;;  %v266_v18 = vcombine.high %v256_v13, %v256_v13  ;;  %v263_v20 = vrot.slane %v235_v15, %v1235_v6  ;;  %v265_v50 = vcombine.high %v249_v48, %v249_v48 }
  0x2b   :  { %693 = vmatmul.mubr.bf16.vlgmr.msra.gmra.mrb[0].mxu0 %v242_v11 }
  0x2c   :  { %732 = vmatprep.mubr.bf16.mxu1 %v266_v18  ;;  %943 = vmatpush3.bf16.msra.mxu0 %v1022_v14  ;;  %v267_v23 = vcombine.high %v263_v20, %v263_v20 }
  0x2d   :  { %733 = vmatmul.mubr.bf16.vlgmr.msra.gmra.mrb[0].mxu1 %v264_v16  ;;  %944 = vmatprep.subr.bf16.mxu0 %v1024_v17 }
  0x2e   :  { %965 = vmatpush3.bf16.msra.mxu1 %v1023_v19  ;;  %772 = vmatprep.mubr.bf16.mxu0 %v263_v20 }
  0x2f   :  { %966 = vmatprep.subr.bf16.mxu1 %v1025_v21  ;;  %812 = vmatprep.mubr.bf16.mxu1 %v267_v23 }
  0x30   :  { %945 = vmatpush3.bf16.msra.mxu0 %v1026_v22 }
  0x31   :  { %946 = vmatprep.subr.bf16.mxu0 %v1028_v24 }
  0x32   :  { %967 = vmatpush3.bf16.msra.mxu1 %v1027_v25 }
  0x33   :  { %968 = vmatprep.subr.bf16.mxu1 %v1029_v26 }
  0x34   :  { %947 = vmatpush3.bf16.msra.mxu0 %v1030_v27 }
  0x35   :  { %948 = vmatprep.subr.bf16.mxu0 %v1032_v28 }
  0x36   :  { %969 = vmatpush3.bf16.msra.mxu1 %v1031_v29 }
  0x37   :  { %970 = vmatprep.subr.bf16.mxu1 %v1033_v30 }
  0x38   :  { %949 = vmatpush3.bf16.msra.mxu0 %v1034_v31 }
  0x39   :  { %950 = vmatprep.subr.bf16.mxu0 %v1036_v32 }
  0x3a   :  { %971 = vmatpush3.bf16.msra.mxu1 %v1035_v33 }
  0x3b   :  { %972 = vmatprep.subr.bf16.mxu1 %v1037_v34 }
  0x3c   :  { %951 = vmatpush3.bf16.msra.mxu0 %v1038_v35 }
  0x3d   :  { %952 = vmatprep.subr.bf16.mxu0 %v1040_v36 }
  0x3e   :  { %973 = vmatpush3.bf16.msra.mxu1 %v1039_v37 }
  0x3f   :  { %974 = vmatprep.subr.bf16.mxu1 %v1041_v38 }
  0x40   :  { %953 = vmatpush3.bf16.msra.mxu0 %v1042_v39 }
  0x41   :  { %954 = vmatprep.subr.bf16.mxu0 %v1044_v40 }
  0x42   :  { %975 = vmatpush3.bf16.msra.mxu1 %v1043_v41 }
  0x43   :  { %976 = vmatprep.subr.bf16.mxu1 %v1045_v42 }
  0x44   :  { %955 = vmatpush3.bf16.msra.mxu0 %v1046_v43 }
  0x45   :  { %956 = vmatprep.subr.bf16.mxu0 %v1048_v44 }
  0x46   :  { %977 = vmatpush3.bf16.msra.mxu1 %v1047_v45 }
  0x47   :  { %978 = vmatprep.subr.bf16.mxu1 %v1049_v46 }
  0x48   :  { %957 = vmatpush3.bf16.msra.mxu0 %v1050_v47 }
  0x4a   :  { %979 = vmatpush3.bf16.msra.mxu1 %v1051_v49 }
  0x4b   :  { %773 = vmatmul.mubr.bf16.vlgmr.msra.gmra.mrb[4].mxu0 %v249_v48 }
  0x4d   :  { %813 = vmatmul.mubr.bf16.vlgmr.msra.gmra.mrb[4].mxu1 %v265_v50 }
  0xfe   :  { %v914_v51 = vpop.f32.mrb[0].mxu0 }
  0xff   :  { %v915_v53 = vpop.f32.mrb[1].mxu0 }
 0x100   :  { %v936_v54 = vpop.f32.mrb[0].mxu1  ;;  %v916_v55 = vadd.f32 %v915_v53, %v914_v51  ;;  %v917_v56 = vpop.f32.mrb[2].mxu0 }
 0x101   :  { %v937_v57 = vpop.f32.mrb[1].mxu1  ;;  %v918_v58 = vpop.f32.mrb[3].mxu0 }
 0x102   :  { %v695_v59 = vadd.f32 %v916_v55, %v833_v52  ;;  %v938_v60 = vadd.f32 %v937_v57, %v936_v54  ;;  %v939_v61 = vpop.f32.mrb[2].mxu1 }
 0x103   :  { %v940_v62 = vpop.f32.mrb[3].mxu1 }
 0x104   :  { %v735_v63 = vadd.f32 %v938_v60, %v695_v59 }
 0x11e   :  { %v958_v0 = vpop.f32.mrb[4].mxu0 }
 0x11f   :  { %v959_v1 = vpop.f32.mrb[5].mxu0 }
 0x120   :  { %v980_v2 = vpop.f32.mrb[4].mxu1  ;;  %v960_v3 = vadd.f32 %v959_v1, %v958_v0  ;;  %v961_v4 = vpop.f32.mrb[6].mxu0 }
 0x121   :  { %v981_v5 = vpop.f32.mrb[5].mxu1  ;;  %v962_v6 = vpop.f32.mrb[7].mxu0 }
 0x122   :  { %v775_v7 = vadd.f32 %v960_v3, %v735_v63  ;;  %v982_v8 = vadd.f32 %v981_v5, %v980_v2  ;;  %v983_v9 = vpop.f32.mrb[6].mxu1 }
 0x123   :  { %v984_v10 = vpop.f32.mrb[7].mxu1 }
 0x124   :  { %v815_v11 = vadd.f32 %v982_v8, %v775_v7 }
 0x126   :  { %820 = vst [vmem:[%s1347_s3] sm:$0x3] %v815_v11 }

</bundles_post_ra>
